<compile_context>
chip_gen: v6e
topology: v6e:2x2x1
jax: 0.10.0
libtpu: 0.0.40
codegen_flags: <defaults>
</compile_context>

<pallas_src>
import math

import jax
import jax.numpy as jnp
from jax.experimental import pallas as pl
from jax.experimental.pallas import tpu as pltpu

HIDDEN = 128
EMBED = 2 * HIDDEN
NUM_HEADS = 4
HEAD_DIM = EMBED // NUM_HEADS


# ----------------------------------------------------------------------------
# Fused kernel: bi-LSTM -> MultiheadAttention (last query) -> signal/price heads
# ----------------------------------------------------------------------------
def fused_kernel(x_ref, wih_ref, whh_f_ref, whh_r_ref, b_f_ref, b_r_ref,
                 wq_ref, bq_ref, wkv_ref, bkv_ref, wo_ref, bo_ref,
                 w1_ref, b1_ref, ln_g_ref, ln_b_ref, w2_ref, b2_ref,
                 w3_ref, b3_ref, w4_ref, b4_ref,
                 out_ref, lstm_ref, gxf_ref, gxr_ref):
    B, T, D = x_ref.shape
    H = HIDDEN
    E = EMBED

    # ---------------- bi-LSTM ----------------
    # Hoisted input projection: one MXU matmul for both directions + biases.
    x_flat = x_ref[...].reshape(B * T, D)                     # (B*T, D)
    gx = jnp.dot(x_flat, wih_ref[...],
                 preferred_element_type=jnp.float32)          # (B*T, 8H)
    gxf_ref[...] = (gx[:, :4 * H] + b_f_ref[...]).reshape(B, T, 4 * H)
    gxr_ref[...] = (gx[:, 4 * H:] + b_r_ref[...]).reshape(B, T, 4 * H)

    whh_f = whh_f_ref[...]                                    # (H, 4H)
    whh_r = whh_r_ref[...]                                    # (H, 4H)

    def cell(gates, c):                                       # PyTorch order i,f,g,o
        i_g = jax.nn.sigmoid(gates[:, 0:H])
        f_g = jax.nn.sigmoid(gates[:, H:2 * H])
        g_g = jnp.tanh(gates[:, 2 * H:3 * H])
        o_g = jax.nn.sigmoid(gates[:, 3 * H:4 * H])
        c_new = f_g * c + i_g * g_g
        h_new = o_g * jnp.tanh(c_new)
        return h_new, c_new

    # Interleaved forward / reverse recurrence in one loop; lstm scratch rows
    # are batch-major: row = b*T + t, forward lanes [0,H), reverse lanes [H,2H).
    def step(i, carry):
        h_f, c_f, h_r, c_r = carry
        tf = i
        tr = T - 1 - i
        gf = (gxf_ref[:, pl.ds(tf, 1), :][:, 0, :]
              + jnp.dot(h_f, whh_f, preferred_element_type=jnp.float32))
        gr = (gxr_ref[:, pl.ds(tr, 1), :][:, 0, :]
              + jnp.dot(h_r, whh_r, preferred_element_type=jnp.float32))
        h_f, c_f = cell(gf, c_f)
        h_r, c_r = cell(gr, c_r)
        for b in range(B):                                    # static unroll over batch
            lstm_ref[pl.ds(b * T + tf, 1), 0:H] = h_f[b:b + 1, :]
            lstm_ref[pl.ds(b * T + tr, 1), H:E] = h_r[b:b + 1, :]
        return (h_f, c_f, h_r, c_r)

    zero = jnp.zeros((B, H), jnp.float32)
    jax.lax.fori_loop(0, T, step, (zero, zero, zero, zero), unroll=True)

    # ---------------- attention (only the last query position is needed) ------
    lstm = lstm_ref[...]                                      # (B*T, E), row = b*T + t
    q_in = jnp.concatenate(
        [lstm[b * T + T - 1: b * T + T, :] for b in range(B)], axis=0)   # (B, E)

    q = jnp.dot(q_in, wq_ref[...], preferred_element_type=jnp.float32) + bq_ref[...]
    kv = (jnp.dot(lstm, wkv_ref[...], preferred_element_type=jnp.float32)
          + bkv_ref[...])                                     # (B*T, 2E)
    k = kv[:, :E].reshape(B, T, E)
    v = kv[:, E:].reshape(B, T, E)

    scale = 1.0 / math.sqrt(HEAD_DIM)
    parts = []
    for hh in range(NUM_HEADS):
        sl = slice(hh * HEAD_DIM, (hh + 1) * HEAD_DIM)
        qh = q[:, sl]                                         # (B, Hd)
        kh = k[:, :, sl]                                      # (B, T, Hd)
        vh = v[:, :, sl]                                      # (B, T, Hd)
        s = jnp.sum(qh[:, None, :] * kh, axis=-1) * scale     # (B, T)
        s = s - jnp.max(s, axis=-1, keepdims=True)
        p = jnp.exp(s)
        p = p / jnp.sum(p, axis=-1, keepdims=True)
        parts.append(jnp.sum(p[:, :, None] * vh, axis=1))     # (B, Hd)
    attn = jnp.concatenate(parts, axis=-1)                    # (B, E)

    ctx = jnp.dot(attn, wo_ref[...], preferred_element_type=jnp.float32) + bo_ref[...]

    # signal head: Linear -> SiLU -> LayerNorm -> Linear -> LogSoftmax
    h1 = jnp.dot(ctx, w1_ref[...], preferred_element_type=jnp.float32) + b1_ref[...]
    h1 = h1 * jax.nn.sigmoid(h1)
    mean = jnp.mean(h1, axis=-1, keepdims=True)
    var = jnp.mean((h1 - mean) ** 2, axis=-1, keepdims=True)
    ln = (h1 - mean) * jax.lax.rsqrt(var + 1e-5) * ln_g_ref[...] + ln_b_ref[...]
    logits = jnp.dot(ln, w2_ref[...], preferred_element_type=jnp.float32) + b2_ref[...]
    lmax = jnp.max(logits, axis=-1, keepdims=True)
    lse = jnp.log(jnp.sum(jnp.exp(logits - lmax), axis=-1, keepdims=True)) + lmax
    logsm = logits - lse                                      # (B, 3)

    # price head: Linear -> ReLU -> Linear
    p1 = jnp.maximum(jnp.dot(ctx, w3_ref[...], preferred_element_type=jnp.float32)
                     + b3_ref[...], 0.0)
    prices = jnp.dot(p1, w4_ref[...], preferred_element_type=jnp.float32) + b4_ref[...]

    out_ref[...] = jnp.concatenate([logsm, prices], axis=1)   # (B, 5)


# ----------------------------------------------------------------------------
# One-time parameter packing (all transposes / concats hoisted out of forward)
# ----------------------------------------------------------------------------
def pack_params(params):
    E = EMBED
    return dict(
        wih=jnp.concatenate([params["wih_f"].T, params["wih_r"].T], axis=1),  # (D, 8H)
        whh_f=params["whh_f"].T, whh_r=params["whh_r"].T,                     # (H, 4H)
        b_f=params["b_f"].reshape(1, -1), b_r=params["b_r"].reshape(1, -1),
        wq=params["in_proj_w"][:E].T,                                         # (E, E)
        wkv=jnp.concatenate([params["in_proj_w"][E:2 * E].T,
                             params["in_proj_w"][2 * E:].T], axis=1),         # (E, 2E)
        bq=params["in_proj_b"][:E].reshape(1, -1),
        bkv=params["in_proj_b"][E:].reshape(1, -1),
        wo=params["out_proj_w"].T, bo=params["out_proj_b"].reshape(1, -1),
        w1=params["w1"].T, b1=params["b1"].reshape(1, -1),
        ln_g=params["ln_g"].reshape(1, -1), ln_b=params["ln_b"].reshape(1, -1),
        w2=params["w2"].T, b2=params["b2"].reshape(1, -1),
        w3=params["w3"].T, b3=params["b3"].reshape(1, -1),
        w4=params["w4"].T, b4=params["b4"].reshape(1, -1),
    )


# ----------------------------------------------------------------------------
# Wrapper: single pallas_call, everything VMEM-resident (no grid needed)
# ----------------------------------------------------------------------------
def enhanced_sol_forward(x, kp):
    B, T, D = x.shape
    vmem = pl.BlockSpec(memory_space=pltpu.MemorySpace.VMEM)

    args = (x, kp["wih"], kp["whh_f"], kp["whh_r"], kp["b_f"], kp["b_r"],
            kp["wq"], kp["bq"], kp["wkv"], kp["bkv"], kp["wo"], kp["bo"],
            kp["w1"], kp["b1"], kp["ln_g"], kp["ln_b"], kp["w2"], kp["b2"],
            kp["w3"], kp["b3"], kp["w4"], kp["b4"])

    return pl.pallas_call(
        fused_kernel,
        out_shape=jax.ShapeDtypeStruct((B, 5), jnp.float32),
        in_specs=[vmem] * len(args),
        out_specs=vmem,
        scratch_shapes=[
            pltpu.VMEM((B * T, EMBED), jnp.float32),          # bi-LSTM outputs
            pltpu.VMEM((B, T, 4 * HIDDEN), jnp.float32),      # hoisted fwd input gates
            pltpu.VMEM((B, T, 4 * HIDDEN), jnp.float32),      # hoisted rev input gates
        ],
    )(*args)


# ----------------------------------------------------------------------------
# Pure-JAX reference (mirrors PyTorch eval-mode forward)
# ----------------------------------------------------------------------------
def reference_forward(x, params):
    B, T, D = x.shape
    H = HIDDEN

    def run_dir(wih, whh, b, reverse):
        h = jnp.zeros((B, H), jnp.float32)
        c = jnp.zeros((B, H), jnp.float32)
        outs = [None] * T
        order = range(T - 1, -1, -1) if reverse else range(T)
        for t in order:
            gates = x[:, t, :] @ wih.T + h @ whh.T + b
            i_g = jax.nn.sigmoid(gates[:, 0:H])
            f_g = jax.nn.sigmoid(gates[:, H:2 * H])
            g_g = jnp.tanh(gates[:, 2 * H:3 * H])
            o_g = jax.nn.sigmoid(gates[:, 3 * H:4 * H])
            c = f_g * c + i_g * g_g
            h = o_g * jnp.tanh(c)
            outs[t] = h
        return jnp.stack(outs, axis=1)

    lstm_out = jnp.concatenate(
        [run_dir(params["wih_f"], params["whh_f"], params["b_f"], False),
         run_dir(params["wih_r"], params["whh_r"], params["b_r"], True)], axis=-1)

    wq, wk, wv = jnp.split(params["in_proj_w"], 3, axis=0)
    bq, bk, bv = jnp.split(params["in_proj_b"], 3, axis=0)
    q = (lstm_out @ wq.T + bq).reshape(B, T, NUM_HEADS, HEAD_DIM)
    k = (lstm_out @ wk.T + bk).reshape(B, T, NUM_HEADS, HEAD_DIM)
    v = (lstm_out @ wv.T + bv).reshape(B, T, NUM_HEADS, HEAD_DIM)
    s = jnp.einsum('bqhd,bkhd->bhqk', q, k) / math.sqrt(HEAD_DIM)
    p = jax.nn.softmax(s, axis=-1)
    attn = jnp.einsum('bhqk,bkhd->bqhd', p, v).reshape(B, T, EMBED)
    attn = attn @ params["out_proj_w"].T + params["out_proj_b"]
    ctx = attn[:, -1, :]

    h1 = ctx @ params["w1"].T + params["b1"]
    h1 = h1 * jax.nn.sigmoid(h1)
    mean = jnp.mean(h1, -1, keepdims=True)
    var = jnp.mean((h1 - mean) ** 2, -1, keepdims=True)
    ln = (h1 - mean) / jnp.sqrt(var + 1e-5) * params["ln_g"] + params["ln_b"]
    logits = ln @ params["w2"].T + params["b2"]
    logsm = jax.nn.log_softmax(logits, axis=1)
    p1 = jax.nn.relu(ctx @ params["w3"].T + params["b3"])
    prices = p1 @ params["w4"].T + params["b4"]
    return jnp.concatenate([logsm, prices], axis=1)


def init_params(key, input_size):
    keys = jax.random.split(key, 20)

    def w(k, shape, scale=0.1):
        return scale * jax.random.normal(k, shape, jnp.float32)

    H, E = HIDDEN, EMBED
    return dict(
        # LSTM (bias = b_ih + b_hh combined; equivalent forward semantics)
        wih_f=w(keys[0], (4 * H, input_size)), whh_f=w(keys[1], (4 * H, H)),
        b_f=w(keys[2], (4 * H,)),
        wih_r=w(keys[3], (4 * H, input_size)), whh_r=w(keys[4], (4 * H, H)),
        b_r=w(keys[5], (4 * H,)),
        # MultiheadAttention
        in_proj_w=w(keys[6], (3 * E, E)), in_proj_b=w(keys[7], (3 * E,)),
        out_proj_w=w(keys[8], (E, E)), out_proj_b=w(keys[9], (E,)),
        # signal head
        w1=w(keys[10], (128, E)), b1=w(keys[11], (128,)),
        ln_g=1.0 + w(keys[12], (128,)), ln_b=w(keys[13], (128,)),
        w2=w(keys[14], (3, 128)), b2=w(keys[15], (3,)),
        # price head
        w3=w(keys[16], (64, E)), b3=w(keys[17], (64,)),
        w4=w(keys[18], (2, 64)), b4=w(keys[19], (2,)),
    )


if __name__ == "__main__":
    key = jax.random.PRNGKey(0)
    k_x, k_p = jax.random.split(key)
    B, T, D = 2, 8, 32            # batch=2, seq=8, input_size=32
    x = jax.random.normal(k_x, (B, T, D), jnp.float32)
    params = init_params(k_p, D)
    kp = pack_params(params)      # one-time layout transforms (hoisted out of forward)

    fwd = jax.jit(enhanced_sol_forward)
    out = jax.block_until_ready(fwd(x, kp))
    assert out.shape == (B, 5)

    ref = reference_forward(x, params)
    max_err = float(jnp.max(jnp.abs(out - ref)))
    assert max_err < 2e-3, f"mismatch vs reference: {max_err}"
    print("KERNEL_OK")
</pallas_src>

<mosaic_0001>
module attributes {stable_mosaic.version = 11 : i64} {
  func.func @fused_kernel(%arg0: memref<2x8x32xf32, #tpu.memory_space<vmem>>, %arg1: memref<32x1024xf32, #tpu.memory_space<vmem>>, %arg2: memref<128x512xf32, #tpu.memory_space<vmem>>, %arg3: memref<128x512xf32, #tpu.memory_space<vmem>>, %arg4: memref<1x512xf32, #tpu.memory_space<vmem>>, %arg5: memref<1x512xf32, #tpu.memory_space<vmem>>, %arg6: memref<256x256xf32, #tpu.memory_space<vmem>>, %arg7: memref<1x256xf32, #tpu.memory_space<vmem>>, %arg8: memref<256x512xf32, #tpu.memory_space<vmem>>, %arg9: memref<1x512xf32, #tpu.memory_space<vmem>>, %arg10: memref<256x256xf32, #tpu.memory_space<vmem>>, %arg11: memref<1x256xf32, #tpu.memory_space<vmem>>, %arg12: memref<256x128xf32, #tpu.memory_space<vmem>>, %arg13: memref<1x128xf32, #tpu.memory_space<vmem>>, %arg14: memref<1x128xf32, #tpu.memory_space<vmem>>, %arg15: memref<1x128xf32, #tpu.memory_space<vmem>>, %arg16: memref<128x3xf32, #tpu.memory_space<vmem>>, %arg17: memref<1x3xf32, #tpu.memory_space<vmem>>, %arg18: memref<256x64xf32, #tpu.memory_space<vmem>>, %arg19: memref<1x64xf32, #tpu.memory_space<vmem>>, %arg20: memref<64x2xf32, #tpu.memory_space<vmem>>, %arg21: memref<1x2xf32, #tpu.memory_space<vmem>>, %arg22: memref<2x5xf32, #tpu.memory_space<vmem>>, %arg23: memref<16x256xf32, #tpu.memory_space<vmem>>, %arg24: memref<2x8x512xf32, #tpu.memory_space<vmem>>, %arg25: memref<2x8x512xf32, #tpu.memory_space<vmem>>) attributes {dimension_semantics = [], scalar_prefetch = 0 : i64, scratch_operands = 3 : i64, tpu.core_type = #tpu.core_type<tc>} {
    %c0 = arith.constant 0 : index
    %c0_0 = arith.constant 0 : index
    %c0_1 = arith.constant 0 : index
    %0 = vector.load %arg0[%c0, %c0_0, %c0_1] : memref<2x8x32xf32, #tpu.memory_space<vmem>>, vector<2x8x32xf32>
    %1 = vector.shape_cast %0 : vector<2x8x32xf32> to vector<16x32xf32>
    %c0_2 = arith.constant 0 : index
    %c0_3 = arith.constant 0 : index
    %2 = vector.load %arg1[%c0_2, %c0_3] : memref<32x1024xf32, #tpu.memory_space<vmem>>, vector<32x1024xf32>
    %cst = arith.constant dense<0.000000e+00> : vector<16x1024xf32>
    %3 = tpu.matmul %1, %2, %cst {dimension_numbers = #tpu.dot_dimension_numbers<[1], [0], [0], [1], [0, 0, 1, 1], [], []>} : vector<16x32xf32>, vector<32x1024xf32>, vector<16x1024xf32> -> vector<16x1024xf32>
    %4 = vector.extract_strided_slice %3 {offsets = [0, 0], sizes = [16, 512], strides = [1, 1]} : vector<16x1024xf32> to vector<16x512xf32>
    %c0_4 = arith.constant 0 : index
    %c0_5 = arith.constant 0 : index
    %5 = vector.load %arg4[%c0_4, %c0_5] : memref<1x512xf32, #tpu.memory_space<vmem>>, vector<1x512xf32>
    %6 = vector.broadcast %5 : vector<1x512xf32> to vector<16x512xf32>
    %7 = arith.addf %4, %6 : vector<16x512xf32>
    %8 = vector.shape_cast %7 : vector<16x512xf32> to vector<2x8x512xf32>
    %c0_6 = arith.constant 0 : index
    %c0_7 = arith.constant 0 : index
    %c0_8 = arith.constant 0 : index
    %9 = vector.load %arg24[%c0_6, %c0_7, %c0_8] : memref<2x8x512xf32, #tpu.memory_space<vmem>>, vector<2x8x512xf32>
    tpu.vector_store %arg24[%c0_6, %c0_7, %c0_8], %8 {strides = array<i32>} : memref<2x8x512xf32, #tpu.memory_space<vmem>>, vector<2x8x512xf32>,
    %10 = vector.extract_strided_slice %3 {offsets = [0, 512], sizes = [16, 512], strides = [1, 1]} : vector<16x1024xf32> to vector<16x512xf32>
    %c0_9 = arith.constant 0 : index
    %c0_10 = arith.constant 0 : index
    %11 = vector.load %arg5[%c0_9, %c0_10] : memref<1x512xf32, #tpu.memory_space<vmem>>, vector<1x512xf32>
    %12 = vector.broadcast %11 : vector<1x512xf32> to vector<16x512xf32>
    %13 = arith.addf %10, %12 : vector<16x512xf32>
    %14 = vector.shape_cast %13 : vector<16x512xf32> to vector<2x8x512xf32>
    %c0_11 = arith.constant 0 : index
    %c0_12 = arith.constant 0 : index
    %c0_13 = arith.constant 0 : index
    %15 = vector.load %arg25[%c0_11, %c0_12, %c0_13] : memref<2x8x512xf32, #tpu.memory_space<vmem>>, vector<2x8x512xf32>
    tpu.vector_store %arg25[%c0_11, %c0_12, %c0_13], %14 {strides = array<i32>} : memref<2x8x512xf32, #tpu.memory_space<vmem>>, vector<2x8x512xf32>,
    %c0_14 = arith.constant 0 : index
    %c0_15 = arith.constant 0 : index
    %16 = vector.load %arg2[%c0_14, %c0_15] : memref<128x512xf32, #tpu.memory_space<vmem>>, vector<128x512xf32>
    %c0_16 = arith.constant 0 : index
    %c0_17 = arith.constant 0 : index
    %17 = vector.load %arg3[%c0_16, %c0_17] : memref<128x512xf32, #tpu.memory_space<vmem>>, vector<128x512xf32>
    %cst_18 = arith.constant 0.000000e+00 : f32
    %18 = vector.broadcast %cst_18 : f32 to vector<2x128xf32>
    %c0_i32 = arith.constant 0 : i32
    %c7_i32 = arith.constant 7 : i32
    %19 = arith.subi %c7_i32, %c0_i32 : i32
    %c0_19 = arith.constant 0 : index
    %20 = arith.index_cast %c0_i32 : i32 to index
    %c0_20 = arith.constant 0 : index
    %21 = vector.load %arg24[%c0_19, %20, %c0_20] : memref<2x8x512xf32, #tpu.memory_space<vmem>>, vector<2x1x512xf32>
    %22 = vector.shape_cast %21 : vector<2x1x512xf32> to vector<2x512xf32>
    %cst_21 = arith.constant dense<0.000000e+00> : vector<2x512xf32>
    %23 = tpu.matmul %18, %16, %cst_21 {dimension_numbers = #tpu.dot_dimension_numbers<[1], [0], [0], [1], [0, 0, 1, 1], [], []>} : vector<2x128xf32>, vector<128x512xf32>, vector<2x512xf32> -> vector<2x512xf32>
    %24 = arith.addf %22, %23 : vector<2x512xf32>
    %c0_22 = arith.constant 0 : index
    %25 = arith.index_cast %19 : i32 to index
    %c0_23 = arith.constant 0 : index
    %26 = vector.load %arg25[%c0_22, %25, %c0_23] : memref<2x8x512xf32, #tpu.memory_space<vmem>>, vector<2x1x512xf32>
    %27 = vector.shape_cast %26 : vector<2x1x512xf32> to vector<2x512xf32>
    %cst_24 = arith.constant dense<0.000000e+00> : vector<2x512xf32>
    %28 = tpu.matmul %18, %17, %cst_24 {dimension_numbers = #tpu.dot_dimension_numbers<[1], [0], [0], [1], [0, 0, 1, 1], [], []>} : vector<2x128xf32>, vector<128x512xf32>, vector<2x512xf32> -> vector<2x512xf32>
    %29 = arith.addf %27, %28 : vector<2x512xf32>
    %30 = vector.extract_strided_slice %24 {offsets = [0, 0], sizes = [2, 128], strides = [1, 1]} : vector<2x512xf32> to vector<2x128xf32>
    %31 = arith.negf %30 : vector<2x128xf32>
    %32 = math.exp %31 : vector<2x128xf32>
    %cst_25 = arith.constant 1.000000e+00 : f32
    %33 = vector.broadcast %cst_25 : f32 to vector<2x128xf32>
    %34 = arith.addf %33, %32 : vector<2x128xf32>
    %35 = arith.divf %33, %34 : vector<2x128xf32>
    %36 = vector.extract_strided_slice %24 {offsets = [0, 128], sizes = [2, 128], strides = [1, 1]} : vector<2x512xf32> to vector<2x128xf32>
    %37 = arith.negf %36 : vector<2x128xf32>
    %38 = math.exp %37 : vector<2x128xf32>
    %cst_26 = arith.constant 1.000000e+00 : f32
    %39 = vector.broadcast %cst_26 : f32 to vector<2x128xf32>
    %40 = arith.addf %39, %38 : vector<2x128xf32>
    %41 = arith.divf %39, %40 : vector<2x128xf32>
    %42 = vector.extract_strided_slice %24 {offsets = [0, 256], sizes = [2, 128], strides = [1, 1]} : vector<2x512xf32> to vector<2x128xf32>
    %43 = math.tanh %42 : vector<2x128xf32>
    %44 = vector.extract_strided_slice %24 {offsets = [0, 384], sizes = [2, 128], strides = [1, 1]} : vector<2x512xf32> to vector<2x128xf32>
    %45 = arith.negf %44 : vector<2x128xf32>
    %46 = math.exp %45 : vector<2x128xf32>
    %cst_27 = arith.constant 1.000000e+00 : f32
    %47 = vector.broadcast %cst_27 : f32 to vector<2x128xf32>
    %48 = arith.addf %47, %46 : vector<2x128xf32>
    %49 = arith.divf %47, %48 : vector<2x128xf32>
    %50 = arith.mulf %41, %18 : vector<2x128xf32>
    %51 = arith.mulf %35, %43 : vector<2x128xf32>
    %52 = arith.addf %50, %51 : vector<2x128xf32>
    %53 = math.tanh %52 : vector<2x128xf32>
    %54 = arith.mulf %49, %53 : vector<2x128xf32>
    %55 = vector.extract_strided_slice %29 {offsets = [0, 0], sizes = [2, 128], strides = [1, 1]} : vector<2x512xf32> to vector<2x128xf32>
    %56 = arith.negf %55 : vector<2x128xf32>
    %57 = math.exp %56 : vector<2x128xf32>
    %cst_28 = arith.constant 1.000000e+00 : f32
    %58 = vector.broadcast %cst_28 : f32 to vector<2x128xf32>
    %59 = arith.addf %58, %57 : vector<2x128xf32>
    %60 = arith.divf %58, %59 : vector<2x128xf32>
    %61 = vector.extract_strided_slice %29 {offsets = [0, 128], sizes = [2, 128], strides = [1, 1]} : vector<2x512xf32> to vector<2x128xf32>
    %62 = arith.negf %61 : vector<2x128xf32>
    %63 = math.exp %62 : vector<2x128xf32>
    %cst_29 = arith.constant 1.000000e+00 : f32
    %64 = vector.broadcast %cst_29 : f32 to vector<2x128xf32>
    %65 = arith.addf %64, %63 : vector<2x128xf32>
    %66 = arith.divf %64, %65 : vector<2x128xf32>
    %67 = vector.extract_strided_slice %29 {offsets = [0, 256], sizes = [2, 128], strides = [1, 1]} : vector<2x512xf32> to vector<2x128xf32>
    %68 = math.tanh %67 : vector<2x128xf32>
    %69 = vector.extract_strided_slice %29 {offsets = [0, 384], sizes = [2, 128], strides = [1, 1]} : vector<2x512xf32> to vector<2x128xf32>
    %70 = arith.negf %69 : vector<2x128xf32>
    %71 = math.exp %70 : vector<2x128xf32>
    %cst_30 = arith.constant 1.000000e+00 : f32
    %72 = vector.broadcast %cst_30 : f32 to vector<2x128xf32>
    %73 = arith.addf %72, %71 : vector<2x128xf32>
    %74 = arith.divf %72, %73 : vector<2x128xf32>
    %75 = arith.mulf %66, %18 : vector<2x128xf32>
    %76 = arith.mulf %60, %68 : vector<2x128xf32>
    %77 = arith.addf %75, %76 : vector<2x128xf32>
    %78 = math.tanh %77 : vector<2x128xf32>
    %79 = arith.mulf %74, %78 : vector<2x128xf32>
    %80 = vector.extract_strided_slice %54 {offsets = [0, 0], sizes = [1, 128], strides = [1, 1]} : vector<2x128xf32> to vector<1x128xf32>
    %c0_i32_31 = arith.constant 0 : i32
    %81 = arith.addi %c0_i32_31, %c0_i32 : i32
    %82 = arith.index_cast %81 : i32 to index
    %c0_32 = arith.constant 0 : index
    %83 = vector.load %arg23[%82, %c0_32] : memref<16x256xf32, #tpu.memory_space<vmem>>, vector<1x128xf32>
    tpu.vector_store %arg23[%82, %c0_32], %80 {strides = array<i32>} : memref<16x256xf32, #tpu.memory_space<vmem>>, vector<1x128xf32>,
    %84 = vector.extract_strided_slice %79 {offsets = [0, 0], sizes = [1, 128], strides = [1, 1]} : vector<2x128xf32> to vector<1x128xf32>
    %c0_i32_33 = arith.constant 0 : i32
    %85 = arith.addi %c0_i32_33, %19 : i32
    %86 = arith.index_cast %85 : i32 to index
    %c128 = arith.constant 128 : index
    %87 = vector.load %arg23[%86, %c128] : memref<16x256xf32, #tpu.memory_space<vmem>>, vector<1x128xf32>
    tpu.vector_store %arg23[%86, %c128], %84 {strides = array<i32>} : memref<16x256xf32, #tpu.memory_space<vmem>>, vector<1x128xf32>,
    %88 = vector.extract_strided_slice %54 {offsets = [1, 0], sizes = [1, 128], strides = [1, 1]} : vector<2x128xf32> to vector<1x128xf32>
    %c8_i32 = arith.constant 8 : i32
    %89 = arith.addi %c8_i32, %c0_i32 : i32
    %90 = arith.index_cast %89 : i32 to index
    %c0_34 = arith.constant 0 : index
    %91 = vector.load %arg23[%90, %c0_34] : memref<16x256xf32, #tpu.memory_space<vmem>>, vector<1x128xf32>
    tpu.vector_store %arg23[%90, %c0_34], %88 {strides = array<i32>} : memref<16x256xf32, #tpu.memory_space<vmem>>, vector<1x128xf32>,
    %92 = vector.extract_strided_slice %79 {offsets = [1, 0], sizes = [1, 128], strides = [1, 1]} : vector<2x128xf32> to vector<1x128xf32>
    %c8_i32_35 = arith.constant 8 : i32
    %93 = arith.addi %c8_i32_35, %19 : i32
    %94 = arith.index_cast %93 : i32 to index
    %c128_36 = arith.constant 128 : index
    %95 = vector.load %arg23[%94, %c128_36] : memref<16x256xf32, #tpu.memory_space<vmem>>, vector<1x128xf32>
    tpu.vector_store %arg23[%94, %c128_36], %92 {strides = array<i32>} : memref<16x256xf32, #tpu.memory_space<vmem>>, vector<1x128xf32>,
    %c1_i32 = arith.constant 1 : i32
    %c7_i32_37 = arith.constant 7 : i32
    %96 = arith.subi %c7_i32_37, %c1_i32 : i32
    %c0_38 = arith.constant 0 : index
    %97 = arith.index_cast %c1_i32 : i32 to index
    %c0_39 = arith.constant 0 : index
    %98 = vector.load %arg24[%c0_38, %97, %c0_39] : memref<2x8x512xf32, #tpu.memory_space<vmem>>, vector<2x1x512xf32>
    %99 = vector.shape_cast %98 : vector<2x1x512xf32> to vector<2x512xf32>
    %cst_40 = arith.constant dense<0.000000e+00> : vector<2x512xf32>
    %100 = tpu.matmul %54, %16, %cst_40 {dimension_numbers = #tpu.dot_dimension_numbers<[1], [0], [0], [1], [0, 0, 1, 1], [], []>} : vector<2x128xf32>, vector<128x512xf32>, vector<2x512xf32> -> vector<2x512xf32>
    %101 = arith.addf %99, %100 : vector<2x512xf32>
    %c0_41 = arith.constant 0 : index
    %102 = arith.index_cast %96 : i32 to index
    %c0_42 = arith.constant 0 : index
    %103 = vector.load %arg25[%c0_41, %102, %c0_42] : memref<2x8x512xf32, #tpu.memory_space<vmem>>, vector<2x1x512xf32>
    %104 = vector.shape_cast %103 : vector<2x1x512xf32> to vector<2x512xf32>
    %cst_43 = arith.constant dense<0.000000e+00> : vector<2x512xf32>
    %105 = tpu.matmul %79, %17, %cst_43 {dimension_numbers = #tpu.dot_dimension_numbers<[1], [0], [0], [1], [0, 0, 1, 1], [], []>} : vector<2x128xf32>, vector<128x512xf32>, vector<2x512xf32> -> vector<2x512xf32>
    %106 = arith.addf %104, %105 : vector<2x512xf32>
    %107 = vector.extract_strided_slice %101 {offsets = [0, 0], sizes = [2, 128], strides = [1, 1]} : vector<2x512xf32> to vector<2x128xf32>
    %108 = arith.negf %107 : vector<2x128xf32>
    %109 = math.exp %108 : vector<2x128xf32>
    %cst_44 = arith.constant 1.000000e+00 : f32
    %110 = vector.broadcast %cst_44 : f32 to vector<2x128xf32>
    %111 = arith.addf %110, %109 : vector<2x128xf32>
    %112 = arith.divf %110, %111 : vector<2x128xf32>
    %113 = vector.extract_strided_slice %101 {offsets = [0, 128], sizes = [2, 128], strides = [1, 1]} : vector<2x512xf32> to vector<2x128xf32>
    %114 = arith.negf %113 : vector<2x128xf32>
    %115 = math.exp %114 : vector<2x128xf32>
    %cst_45 = arith.constant 1.000000e+00 : f32
    %116 = vector.broadcast %cst_45 : f32 to vector<2x128xf32>
    %117 = arith.addf %116, %115 : vector<2x128xf32>
    %118 = arith.divf %116, %117 : vector<2x128xf32>
    %119 = vector.extract_strided_slice %101 {offsets = [0, 256], sizes = [2, 128], strides = [1, 1]} : vector<2x512xf32> to vector<2x128xf32>
    %120 = math.tanh %119 : vector<2x128xf32>
    %121 = vector.extract_strided_slice %101 {offsets = [0, 384], sizes = [2, 128], strides = [1, 1]} : vector<2x512xf32> to vector<2x128xf32>
    %122 = arith.negf %121 : vector<2x128xf32>
    %123 = math.exp %122 : vector<2x128xf32>
    %cst_46 = arith.constant 1.000000e+00 : f32
    %124 = vector.broadcast %cst_46 : f32 to vector<2x128xf32>
    %125 = arith.addf %124, %123 : vector<2x128xf32>
    %126 = arith.divf %124, %125 : vector<2x128xf32>
    %127 = arith.mulf %118, %52 : vector<2x128xf32>
    %128 = arith.mulf %112, %120 : vector<2x128xf32>
    %129 = arith.addf %127, %128 : vector<2x128xf32>
    %130 = math.tanh %129 : vector<2x128xf32>
    %131 = arith.mulf %126, %130 : vector<2x128xf32>
    %132 = vector.extract_strided_slice %106 {offsets = [0, 0], sizes = [2, 128], strides = [1, 1]} : vector<2x512xf32> to vector<2x128xf32>
    %133 = arith.negf %132 : vector<2x128xf32>
    %134 = math.exp %133 : vector<2x128xf32>
    %cst_47 = arith.constant 1.000000e+00 : f32
    %135 = vector.broadcast %cst_47 : f32 to vector<2x128xf32>
    %136 = arith.addf %135, %134 : vector<2x128xf32>
    %137 = arith.divf %135, %136 : vector<2x128xf32>
    %138 = vector.extract_strided_slice %106 {offsets = [0, 128], sizes = [2, 128], strides = [1, 1]} : vector<2x512xf32> to vector<2x128xf32>
    %139 = arith.negf %138 : vector<2x128xf32>
    %140 = math.exp %139 : vector<2x128xf32>
    %cst_48 = arith.constant 1.000000e+00 : f32
    %141 = vector.broadcast %cst_48 : f32 to vector<2x128xf32>
    %142 = arith.addf %141, %140 : vector<2x128xf32>
    %143 = arith.divf %141, %142 : vector<2x128xf32>
    %144 = vector.extract_strided_slice %106 {offsets = [0, 256], sizes = [2, 128], strides = [1, 1]} : vector<2x512xf32> to vector<2x128xf32>
    %145 = math.tanh %144 : vector<2x128xf32>
    %146 = vector.extract_strided_slice %106 {offsets = [0, 384], sizes = [2, 128], strides = [1, 1]} : vector<2x512xf32> to vector<2x128xf32>
    %147 = arith.negf %146 : vector<2x128xf32>
    %148 = math.exp %147 : vector<2x128xf32>
    %cst_49 = arith.constant 1.000000e+00 : f32
    %149 = vector.broadcast %cst_49 : f32 to vector<2x128xf32>
    %150 = arith.addf %149, %148 : vector<2x128xf32>
    %151 = arith.divf %149, %150 : vector<2x128xf32>
    %152 = arith.mulf %143, %77 : vector<2x128xf32>
    %153 = arith.mulf %137, %145 : vector<2x128xf32>
    %154 = arith.addf %152, %153 : vector<2x128xf32>
    %155 = math.tanh %154 : vector<2x128xf32>
    %156 = arith.mulf %151, %155 : vector<2x128xf32>
    %157 = vector.extract_strided_slice %131 {offsets = [0, 0], sizes = [1, 128], strides = [1, 1]} : vector<2x128xf32> to vector<1x128xf32>
    %c0_i32_50 = arith.constant 0 : i32
    %158 = arith.addi %c0_i32_50, %c1_i32 : i32
    %159 = arith.index_cast %158 : i32 to index
    %c0_51 = arith.constant 0 : index
    %160 = vector.load %arg23[%159, %c0_51] : memref<16x256xf32, #tpu.memory_space<vmem>>, vector<1x128xf32>
    tpu.vector_store %arg23[%159, %c0_51], %157 {strides = array<i32>} : memref<16x256xf32, #tpu.memory_space<vmem>>, vector<1x128xf32>,
    %161 = vector.extract_strided_slice %156 {offsets = [0, 0], sizes = [1, 128], strides = [1, 1]} : vector<2x128xf32> to vector<1x128xf32>
    %c0_i32_52 = arith.constant 0 : i32
    %162 = arith.addi %c0_i32_52, %96 : i32
    %163 = arith.index_cast %162 : i32 to index
    %c128_53 = arith.constant 128 : index
    %164 = vector.load %arg23[%163, %c128_53] : memref<16x256xf32, #tpu.memory_space<vmem>>, vector<1x128xf32>
    tpu.vector_store %arg23[%163, %c128_53], %161 {strides = array<i32>} : memref<16x256xf32, #tpu.memory_space<vmem>>, vector<1x128xf32>,
    %165 = vector.extract_strided_slice %131 {offsets = [1, 0], sizes = [1, 128], strides = [1, 1]} : vector<2x128xf32> to vector<1x128xf32>
    %c8_i32_54 = arith.constant 8 : i32
    %166 = arith.addi %c8_i32_54, %c1_i32 : i32
    %167 = arith.index_cast %166 : i32 to index
    %c0_55 = arith.constant 0 : index
    %168 = vector.load %arg23[%167, %c0_55] : memref<16x256xf32, #tpu.memory_space<vmem>>, vector<1x128xf32>
    tpu.vector_store %arg23[%167, %c0_55], %165 {strides = array<i32>} : memref<16x256xf32, #tpu.memory_space<vmem>>, vector<1x128xf32>,
    %169 = vector.extract_strided_slice %156 {offsets = [1, 0], sizes = [1, 128], strides = [1, 1]} : vector<2x128xf32> to vector<1x128xf32>
    %c8_i32_56 = arith.constant 8 : i32
    %170 = arith.addi %c8_i32_56, %96 : i32
    %171 = arith.index_cast %170 : i32 to index
    %c128_57 = arith.constant 128 : index
    %172 = vector.load %arg23[%171, %c128_57] : memref<16x256xf32, #tpu.memory_space<vmem>>, vector<1x128xf32>
    tpu.vector_store %arg23[%171, %c128_57], %169 {strides = array<i32>} : memref<16x256xf32, #tpu.memory_space<vmem>>, vector<1x128xf32>,
    %c2_i32 = arith.constant 2 : i32
    %c7_i32_58 = arith.constant 7 : i32
    %173 = arith.subi %c7_i32_58, %c2_i32 : i32
    %c0_59 = arith.constant 0 : index
    %174 = arith.index_cast %c2_i32 : i32 to index
    %c0_60 = arith.constant 0 : index
    %175 = vector.load %arg24[%c0_59, %174, %c0_60] : memref<2x8x512xf32, #tpu.memory_space<vmem>>, vector<2x1x512xf32>
    %176 = vector.shape_cast %175 : vector<2x1x512xf32> to vector<2x512xf32>
    %cst_61 = arith.constant dense<0.000000e+00> : vector<2x512xf32>
    %177 = tpu.matmul %131, %16, %cst_61 {dimension_numbers = #tpu.dot_dimension_numbers<[1], [0], [0], [1], [0, 0, 1, 1], [], []>} : vector<2x128xf32>, vector<128x512xf32>, vector<2x512xf32> -> vector<2x512xf32>
    %178 = arith.addf %176, %177 : vector<2x512xf32>
    %c0_62 = arith.constant 0 : index
    %179 = arith.index_cast %173 : i32 to index
    %c0_63 = arith.constant 0 : index
    %180 = vector.load %arg25[%c0_62, %179, %c0_63] : memref<2x8x512xf32, #tpu.memory_space<vmem>>, vector<2x1x512xf32>
    %181 = vector.shape_cast %180 : vector<2x1x512xf32> to vector<2x512xf32>
    %cst_64 = arith.constant dense<0.000000e+00> : vector<2x512xf32>
    %182 = tpu.matmul %156, %17, %cst_64 {dimension_numbers = #tpu.dot_dimension_numbers<[1], [0], [0], [1], [0, 0, 1, 1], [], []>} : vector<2x128xf32>, vector<128x512xf32>, vector<2x512xf32> -> vector<2x512xf32>
    %183 = arith.addf %181, %182 : vector<2x512xf32>
    %184 = vector.extract_strided_slice %178 {offsets = [0, 0], sizes = [2, 128], strides = [1, 1]} : vector<2x512xf32> to vector<2x128xf32>
    %185 = arith.negf %184 : vector<2x128xf32>
    %186 = math.exp %185 : vector<2x128xf32>
    %cst_65 = arith.constant 1.000000e+00 : f32
    %187 = vector.broadcast %cst_65 : f32 to vector<2x128xf32>
    %188 = arith.addf %187, %186 : vector<2x128xf32>
    %189 = arith.divf %187, %188 : vector<2x128xf32>
    %190 = vector.extract_strided_slice %178 {offsets = [0, 128], sizes = [2, 128], strides = [1, 1]} : vector<2x512xf32> to vector<2x128xf32>
    %191 = arith.negf %190 : vector<2x128xf32>
    %192 = math.exp %191 : vector<2x128xf32>
    %cst_66 = arith.constant 1.000000e+00 : f32
    %193 = vector.broadcast %cst_66 : f32 to vector<2x128xf32>
    %194 = arith.addf %193, %192 : vector<2x128xf32>
    %195 = arith.divf %193, %194 : vector<2x128xf32>
    %196 = vector.extract_strided_slice %178 {offsets = [0, 256], sizes = [2, 128], strides = [1, 1]} : vector<2x512xf32> to vector<2x128xf32>
    %197 = math.tanh %196 : vector<2x128xf32>
    %198 = vector.extract_strided_slice %178 {offsets = [0, 384], sizes = [2, 128], strides = [1, 1]} : vector<2x512xf32> to vector<2x128xf32>
    %199 = arith.negf %198 : vector<2x128xf32>
    %200 = math.exp %199 : vector<2x128xf32>
    %cst_67 = arith.constant 1.000000e+00 : f32
    %201 = vector.broadcast %cst_67 : f32 to vector<2x128xf32>
    %202 = arith.addf %201, %200 : vector<2x128xf32>
    %203 = arith.divf %201, %202 : vector<2x128xf32>
    %204 = arith.mulf %195, %129 : vector<2x128xf32>
    %205 = arith.mulf %189, %197 : vector<2x128xf32>
    %206 = arith.addf %204, %205 : vector<2x128xf32>
    %207 = math.tanh %206 : vector<2x128xf32>
    %208 = arith.mulf %203, %207 : vector<2x128xf32>
    %209 = vector.extract_strided_slice %183 {offsets = [0, 0], sizes = [2, 128], strides = [1, 1]} : vector<2x512xf32> to vector<2x128xf32>
    %210 = arith.negf %209 : vector<2x128xf32>
    %211 = math.exp %210 : vector<2x128xf32>
    %cst_68 = arith.constant 1.000000e+00 : f32
    %212 = vector.broadcast %cst_68 : f32 to vector<2x128xf32>
    %213 = arith.addf %212, %211 : vector<2x128xf32>
    %214 = arith.divf %212, %213 : vector<2x128xf32>
    %215 = vector.extract_strided_slice %183 {offsets = [0, 128], sizes = [2, 128], strides = [1, 1]} : vector<2x512xf32> to vector<2x128xf32>
    %216 = arith.negf %215 : vector<2x128xf32>
    %217 = math.exp %216 : vector<2x128xf32>
    %cst_69 = arith.constant 1.000000e+00 : f32
    %218 = vector.broadcast %cst_69 : f32 to vector<2x128xf32>
    %219 = arith.addf %218, %217 : vector<2x128xf32>
    %220 = arith.divf %218, %219 : vector<2x128xf32>
    %221 = vector.extract_strided_slice %183 {offsets = [0, 256], sizes = [2, 128], strides = [1, 1]} : vector<2x512xf32> to vector<2x128xf32>
    %222 = math.tanh %221 : vector<2x128xf32>
    %223 = vector.extract_strided_slice %183 {offsets = [0, 384], sizes = [2, 128], strides = [1, 1]} : vector<2x512xf32> to vector<2x128xf32>
    %224 = arith.negf %223 : vector<2x128xf32>
    %225 = math.exp %224 : vector<2x128xf32>
    %cst_70 = arith.constant 1.000000e+00 : f32
    %226 = vector.broadcast %cst_70 : f32 to vector<2x128xf32>
    %227 = arith.addf %226, %225 : vector<2x128xf32>
    %228 = arith.divf %226, %227 : vector<2x128xf32>
    %229 = arith.mulf %220, %154 : vector<2x128xf32>
    %230 = arith.mulf %214, %222 : vector<2x128xf32>
    %231 = arith.addf %229, %230 : vector<2x128xf32>
    %232 = math.tanh %231 : vector<2x128xf32>
    %233 = arith.mulf %228, %232 : vector<2x128xf32>
    %234 = vector.extract_strided_slice %208 {offsets = [0, 0], sizes = [1, 128], strides = [1, 1]} : vector<2x128xf32> to vector<1x128xf32>
    %c0_i32_71 = arith.constant 0 : i32
    %235 = arith.addi %c0_i32_71, %c2_i32 : i32
    %236 = arith.index_cast %235 : i32 to index
    %c0_72 = arith.constant 0 : index
    %237 = vector.load %arg23[%236, %c0_72] : memref<16x256xf32, #tpu.memory_space<vmem>>, vector<1x128xf32>
    tpu.vector_store %arg23[%236, %c0_72], %234 {strides = array<i32>} : memref<16x256xf32, #tpu.memory_space<vmem>>, vector<1x128xf32>,
    %238 = vector.extract_strided_slice %233 {offsets = [0, 0], sizes = [1, 128], strides = [1, 1]} : vector<2x128xf32> to vector<1x128xf32>
    %c0_i32_73 = arith.constant 0 : i32
    %239 = arith.addi %c0_i32_73, %173 : i32
    %240 = arith.index_cast %239 : i32 to index
    %c128_74 = arith.constant 128 : index
    %241 = vector.load %arg23[%240, %c128_74] : memref<16x256xf32, #tpu.memory_space<vmem>>, vector<1x128xf32>
    tpu.vector_store %arg23[%240, %c128_74], %238 {strides = array<i32>} : memref<16x256xf32, #tpu.memory_space<vmem>>, vector<1x128xf32>,
    %242 = vector.extract_strided_slice %208 {offsets = [1, 0], sizes = [1, 128], strides = [1, 1]} : vector<2x128xf32> to vector<1x128xf32>
    %c8_i32_75 = arith.constant 8 : i32
    %243 = arith.addi %c8_i32_75, %c2_i32 : i32
    %244 = arith.index_cast %243 : i32 to index
    %c0_76 = arith.constant 0 : index
    %245 = vector.load %arg23[%244, %c0_76] : memref<16x256xf32, #tpu.memory_space<vmem>>, vector<1x128xf32>
    tpu.vector_store %arg23[%244, %c0_76], %242 {strides = array<i32>} : memref<16x256xf32, #tpu.memory_space<vmem>>, vector<1x128xf32>,
    %246 = vector.extract_strided_slice %233 {offsets = [1, 0], sizes = [1, 128], strides = [1, 1]} : vector<2x128xf32> to vector<1x128xf32>
    %c8_i32_77 = arith.constant 8 : i32
    %247 = arith.addi %c8_i32_77, %173 : i32
    %248 = arith.index_cast %247 : i32 to index
    %c128_78 = arith.constant 128 : index
    %249 = vector.load %arg23[%248, %c128_78] : memref<16x256xf32, #tpu.memory_space<vmem>>, vector<1x128xf32>
    tpu.vector_store %arg23[%248, %c128_78], %246 {strides = array<i32>} : memref<16x256xf32, #tpu.memory_space<vmem>>, vector<1x128xf32>,
    %c3_i32 = arith.constant 3 : i32
    %c7_i32_79 = arith.constant 7 : i32
    %250 = arith.subi %c7_i32_79, %c3_i32 : i32
    %c0_80 = arith.constant 0 : index
    %251 = arith.index_cast %c3_i32 : i32 to index
    %c0_81 = arith.constant 0 : index
    %252 = vector.load %arg24[%c0_80, %251, %c0_81] : memref<2x8x512xf32, #tpu.memory_space<vmem>>, vector<2x1x512xf32>
    %253 = vector.shape_cast %252 : vector<2x1x512xf32> to vector<2x512xf32>
    %cst_82 = arith.constant dense<0.000000e+00> : vector<2x512xf32>
    %254 = tpu.matmul %208, %16, %cst_82 {dimension_numbers = #tpu.dot_dimension_numbers<[1], [0], [0], [1], [0, 0, 1, 1], [], []>} : vector<2x128xf32>, vector<128x512xf32>, vector<2x512xf32> -> vector<2x512xf32>
    %255 = arith.addf %253, %254 : vector<2x512xf32>
    %c0_83 = arith.constant 0 : index
    %256 = arith.index_cast %250 : i32 to index
    %c0_84 = arith.constant 0 : index
    %257 = vector.load %arg25[%c0_83, %256, %c0_84] : memref<2x8x512xf32, #tpu.memory_space<vmem>>, vector<2x1x512xf32>
    %258 = vector.shape_cast %257 : vector<2x1x512xf32> to vector<2x512xf32>
    %cst_85 = arith.constant dense<0.000000e+00> : vector<2x512xf32>
    %259 = tpu.matmul %233, %17, %cst_85 {dimension_numbers = #tpu.dot_dimension_numbers<[1], [0], [0], [1], [0, 0, 1, 1], [], []>} : vector<2x128xf32>, vector<128x512xf32>, vector<2x512xf32> -> vector<2x512xf32>
    %260 = arith.addf %258, %259 : vector<2x512xf32>
    %261 = vector.extract_strided_slice %255 {offsets = [0, 0], sizes = [2, 128], strides = [1, 1]} : vector<2x512xf32> to vector<2x128xf32>
    %262 = arith.negf %261 : vector<2x128xf32>
    %263 = math.exp %262 : vector<2x128xf32>
    %cst_86 = arith.constant 1.000000e+00 : f32
    %264 = vector.broadcast %cst_86 : f32 to vector<2x128xf32>
    %265 = arith.addf %264, %263 : vector<2x128xf32>
    %266 = arith.divf %264, %265 : vector<2x128xf32>
    %267 = vector.extract_strided_slice %255 {offsets = [0, 128], sizes = [2, 128], strides = [1, 1]} : vector<2x512xf32> to vector<2x128xf32>
    %268 = arith.negf %267 : vector<2x128xf32>
    %269 = math.exp %268 : vector<2x128xf32>
    %cst_87 = arith.constant 1.000000e+00 : f32
    %270 = vector.broadcast %cst_87 : f32 to vector<2x128xf32>
    %271 = arith.addf %270, %269 : vector<2x128xf32>
    %272 = arith.divf %270, %271 : vector<2x128xf32>
    %273 = vector.extract_strided_slice %255 {offsets = [0, 256], sizes = [2, 128], strides = [1, 1]} : vector<2x512xf32> to vector<2x128xf32>
    %274 = math.tanh %273 : vector<2x128xf32>
    %275 = vector.extract_strided_slice %255 {offsets = [0, 384], sizes = [2, 128], strides = [1, 1]} : vector<2x512xf32> to vector<2x128xf32>
    %276 = arith.negf %275 : vector<2x128xf32>
    %277 = math.exp %276 : vector<2x128xf32>
    %cst_88 = arith.constant 1.000000e+00 : f32
    %278 = vector.broadcast %cst_88 : f32 to vector<2x128xf32>
    %279 = arith.addf %278, %277 : vector<2x128xf32>
    %280 = arith.divf %278, %279 : vector<2x128xf32>
    %281 = arith.mulf %272, %206 : vector<2x128xf32>
    %282 = arith.mulf %266, %274 : vector<2x128xf32>
    %283 = arith.addf %281, %282 : vector<2x128xf32>
    %284 = math.tanh %283 : vector<2x128xf32>
    %285 = arith.mulf %280, %284 : vector<2x128xf32>
    %286 = vector.extract_strided_slice %260 {offsets = [0, 0], sizes = [2, 128], strides = [1, 1]} : vector<2x512xf32> to vector<2x128xf32>
    %287 = arith.negf %286 : vector<2x128xf32>
    %288 = math.exp %287 : vector<2x128xf32>
    %cst_89 = arith.constant 1.000000e+00 : f32
    %289 = vector.broadcast %cst_89 : f32 to vector<2x128xf32>
    %290 = arith.addf %289, %288 : vector<2x128xf32>
    %291 = arith.divf %289, %290 : vector<2x128xf32>
    %292 = vector.extract_strided_slice %260 {offsets = [0, 128], sizes = [2, 128], strides = [1, 1]} : vector<2x512xf32> to vector<2x128xf32>
    %293 = arith.negf %292 : vector<2x128xf32>
    %294 = math.exp %293 : vector<2x128xf32>
    %cst_90 = arith.constant 1.000000e+00 : f32
    %295 = vector.broadcast %cst_90 : f32 to vector<2x128xf32>
    %296 = arith.addf %295, %294 : vector<2x128xf32>
    %297 = arith.divf %295, %296 : vector<2x128xf32>
    %298 = vector.extract_strided_slice %260 {offsets = [0, 256], sizes = [2, 128], strides = [1, 1]} : vector<2x512xf32> to vector<2x128xf32>
    %299 = math.tanh %298 : vector<2x128xf32>
    %300 = vector.extract_strided_slice %260 {offsets = [0, 384], sizes = [2, 128], strides = [1, 1]} : vector<2x512xf32> to vector<2x128xf32>
    %301 = arith.negf %300 : vector<2x128xf32>
    %302 = math.exp %301 : vector<2x128xf32>
    %cst_91 = arith.constant 1.000000e+00 : f32
    %303 = vector.broadcast %cst_91 : f32 to vector<2x128xf32>
    %304 = arith.addf %303, %302 : vector<2x128xf32>
    %305 = arith.divf %303, %304 : vector<2x128xf32>
    %306 = arith.mulf %297, %231 : vector<2x128xf32>
    %307 = arith.mulf %291, %299 : vector<2x128xf32>
    %308 = arith.addf %306, %307 : vector<2x128xf32>
    %309 = math.tanh %308 : vector<2x128xf32>
    %310 = arith.mulf %305, %309 : vector<2x128xf32>
    %311 = vector.extract_strided_slice %285 {offsets = [0, 0], sizes = [1, 128], strides = [1, 1]} : vector<2x128xf32> to vector<1x128xf32>
    %c0_i32_92 = arith.constant 0 : i32
    %312 = arith.addi %c0_i32_92, %c3_i32 : i32
    %313 = arith.index_cast %312 : i32 to index
    %c0_93 = arith.constant 0 : index
    %314 = vector.load %arg23[%313, %c0_93] : memref<16x256xf32, #tpu.memory_space<vmem>>, vector<1x128xf32>
    tpu.vector_store %arg23[%313, %c0_93], %311 {strides = array<i32>} : memref<16x256xf32, #tpu.memory_space<vmem>>, vector<1x128xf32>,
    %315 = vector.extract_strided_slice %310 {offsets = [0, 0], sizes = [1, 128], strides = [1, 1]} : vector<2x128xf32> to vector<1x128xf32>
    %c0_i32_94 = arith.constant 0 : i32
    %316 = arith.addi %c0_i32_94, %250 : i32
    %317 = arith.index_cast %316 : i32 to index
    %c128_95 = arith.constant 128 : index
    %318 = vector.load %arg23[%317, %c128_95] : memref<16x256xf32, #tpu.memory_space<vmem>>, vector<1x128xf32>
    tpu.vector_store %arg23[%317, %c128_95], %315 {strides = array<i32>} : memref<16x256xf32, #tpu.memory_space<vmem>>, vector<1x128xf32>,
    %319 = vector.extract_strided_slice %285 {offsets = [1, 0], sizes = [1, 128], strides = [1, 1]} : vector<2x128xf32> to vector<1x128xf32>
    %c8_i32_96 = arith.constant 8 : i32
    %320 = arith.addi %c8_i32_96, %c3_i32 : i32
    %321 = arith.index_cast %320 : i32 to index
    %c0_97 = arith.constant 0 : index
    %322 = vector.load %arg23[%321, %c0_97] : memref<16x256xf32, #tpu.memory_space<vmem>>, vector<1x128xf32>
    tpu.vector_store %arg23[%321, %c0_97], %319 {strides = array<i32>} : memref<16x256xf32, #tpu.memory_space<vmem>>, vector<1x128xf32>,
    %323 = vector.extract_strided_slice %310 {offsets = [1, 0], sizes = [1, 128], strides = [1, 1]} : vector<2x128xf32> to vector<1x128xf32>
    %c8_i32_98 = arith.constant 8 : i32
    %324 = arith.addi %c8_i32_98, %250 : i32
    %325 = arith.index_cast %324 : i32 to index
    %c128_99 = arith.constant 128 : index
    %326 = vector.load %arg23[%325, %c128_99] : memref<16x256xf32, #tpu.memory_space<vmem>>, vector<1x128xf32>
    tpu.vector_store %arg23[%325, %c128_99], %323 {strides = array<i32>} : memref<16x256xf32, #tpu.memory_space<vmem>>, vector<1x128xf32>,
    %c4_i32 = arith.constant 4 : i32
    %c7_i32_100 = arith.constant 7 : i32
    %327 = arith.subi %c7_i32_100, %c4_i32 : i32
    %c0_101 = arith.constant 0 : index
    %328 = arith.index_cast %c4_i32 : i32 to index
    %c0_102 = arith.constant 0 : index
    %329 = vector.load %arg24[%c0_101, %328, %c0_102] : memref<2x8x512xf32, #tpu.memory_space<vmem>>, vector<2x1x512xf32>
    %330 = vector.shape_cast %329 : vector<2x1x512xf32> to vector<2x512xf32>
    %cst_103 = arith.constant dense<0.000000e+00> : vector<2x512xf32>
    %331 = tpu.matmul %285, %16, %cst_103 {dimension_numbers = #tpu.dot_dimension_numbers<[1], [0], [0], [1], [0, 0, 1, 1], [], []>} : vector<2x128xf32>, vector<128x512xf32>, vector<2x512xf32> -> vector<2x512xf32>
    %332 = arith.addf %330, %331 : vector<2x512xf32>
    %c0_104 = arith.constant 0 : index
    %333 = arith.index_cast %327 : i32 to index
    %c0_105 = arith.constant 0 : index
    %334 = vector.load %arg25[%c0_104, %333, %c0_105] : memref<2x8x512xf32, #tpu.memory_space<vmem>>, vector<2x1x512xf32>
    %335 = vector.shape_cast %334 : vector<2x1x512xf32> to vector<2x512xf32>
    %cst_106 = arith.constant dense<0.000000e+00> : vector<2x512xf32>
    %336 = tpu.matmul %310, %17, %cst_106 {dimension_numbers = #tpu.dot_dimension_numbers<[1], [0], [0], [1], [0, 0, 1, 1], [], []>} : vector<2x128xf32>, vector<128x512xf32>, vector<2x512xf32> -> vector<2x512xf32>
    %337 = arith.addf %335, %336 : vector<2x512xf32>
    %338 = vector.extract_strided_slice %332 {offsets = [0, 0], sizes = [2, 128], strides = [1, 1]} : vector<2x512xf32> to vector<2x128xf32>
    %339 = arith.negf %338 : vector<2x128xf32>
    %340 = math.exp %339 : vector<2x128xf32>
    %cst_107 = arith.constant 1.000000e+00 : f32
    %341 = vector.broadcast %cst_107 : f32 to vector<2x128xf32>
    %342 = arith.addf %341, %340 : vector<2x128xf32>
    %343 = arith.divf %341, %342 : vector<2x128xf32>
    %344 = vector.extract_strided_slice %332 {offsets = [0, 128], sizes = [2, 128], strides = [1, 1]} : vector<2x512xf32> to vector<2x128xf32>
    %345 = arith.negf %344 : vector<2x128xf32>
    %346 = math.exp %345 : vector<2x128xf32>
    %cst_108 = arith.constant 1.000000e+00 : f32
    %347 = vector.broadcast %cst_108 : f32 to vector<2x128xf32>
    %348 = arith.addf %347, %346 : vector<2x128xf32>
    %349 = arith.divf %347, %348 : vector<2x128xf32>
    %350 = vector.extract_strided_slice %332 {offsets = [0, 256], sizes = [2, 128], strides = [1, 1]} : vector<2x512xf32> to vector<2x128xf32>
    %351 = math.tanh %350 : vector<2x128xf32>
    %352 = vector.extract_strided_slice %332 {offsets = [0, 384], sizes = [2, 128], strides = [1, 1]} : vector<2x512xf32> to vector<2x128xf32>
    %353 = arith.negf %352 : vector<2x128xf32>
    %354 = math.exp %353 : vector<2x128xf32>
    %cst_109 = arith.constant 1.000000e+00 : f32
    %355 = vector.broadcast %cst_109 : f32 to vector<2x128xf32>
    %356 = arith.addf %355, %354 : vector<2x128xf32>
    %357 = arith.divf %355, %356 : vector<2x128xf32>
    %358 = arith.mulf %349, %283 : vector<2x128xf32>
    %359 = arith.mulf %343, %351 : vector<2x128xf32>
    %360 = arith.addf %358, %359 : vector<2x128xf32>
    %361 = math.tanh %360 : vector<2x128xf32>
    %362 = arith.mulf %357, %361 : vector<2x128xf32>
    %363 = vector.extract_strided_slice %337 {offsets = [0, 0], sizes = [2, 128], strides = [1, 1]} : vector<2x512xf32> to vector<2x128xf32>
    %364 = arith.negf %363 : vector<2x128xf32>
    %365 = math.exp %364 : vector<2x128xf32>
    %cst_110 = arith.constant 1.000000e+00 : f32
    %366 = vector.broadcast %cst_110 : f32 to vector<2x128xf32>
    %367 = arith.addf %366, %365 : vector<2x128xf32>
    %368 = arith.divf %366, %367 : vector<2x128xf32>
    %369 = vector.extract_strided_slice %337 {offsets = [0, 128], sizes = [2, 128], strides = [1, 1]} : vector<2x512xf32> to vector<2x128xf32>
    %370 = arith.negf %369 : vector<2x128xf32>
    %371 = math.exp %370 : vector<2x128xf32>
    %cst_111 = arith.constant 1.000000e+00 : f32
    %372 = vector.broadcast %cst_111 : f32 to vector<2x128xf32>
    %373 = arith.addf %372, %371 : vector<2x128xf32>
    %374 = arith.divf %372, %373 : vector<2x128xf32>
    %375 = vector.extract_strided_slice %337 {offsets = [0, 256], sizes = [2, 128], strides = [1, 1]} : vector<2x512xf32> to vector<2x128xf32>
    %376 = math.tanh %375 : vector<2x128xf32>
    %377 = vector.extract_strided_slice %337 {offsets = [0, 384], sizes = [2, 128], strides = [1, 1]} : vector<2x512xf32> to vector<2x128xf32>
    %378 = arith.negf %377 : vector<2x128xf32>
    %379 = math.exp %378 : vector<2x128xf32>
    %cst_112 = arith.constant 1.000000e+00 : f32
    %380 = vector.broadcast %cst_112 : f32 to vector<2x128xf32>
    %381 = arith.addf %380, %379 : vector<2x128xf32>
    %382 = arith.divf %380, %381 : vector<2x128xf32>
    %383 = arith.mulf %374, %308 : vector<2x128xf32>
    %384 = arith.mulf %368, %376 : vector<2x128xf32>
    %385 = arith.addf %383, %384 : vector<2x128xf32>
    %386 = math.tanh %385 : vector<2x128xf32>
    %387 = arith.mulf %382, %386 : vector<2x128xf32>
    %388 = vector.extract_strided_slice %362 {offsets = [0, 0], sizes = [1, 128], strides = [1, 1]} : vector<2x128xf32> to vector<1x128xf32>
    %c0_i32_113 = arith.constant 0 : i32
    %389 = arith.addi %c0_i32_113, %c4_i32 : i32
    %390 = arith.index_cast %389 : i32 to index
    %c0_114 = arith.constant 0 : index
    %391 = vector.load %arg23[%390, %c0_114] : memref<16x256xf32, #tpu.memory_space<vmem>>, vector<1x128xf32>
    tpu.vector_store %arg23[%390, %c0_114], %388 {strides = array<i32>} : memref<16x256xf32, #tpu.memory_space<vmem>>, vector<1x128xf32>,
    %392 = vector.extract_strided_slice %387 {offsets = [0, 0], sizes = [1, 128], strides = [1, 1]} : vector<2x128xf32> to vector<1x128xf32>
    %c0_i32_115 = arith.constant 0 : i32
    %393 = arith.addi %c0_i32_115, %327 : i32
    %394 = arith.index_cast %393 : i32 to index
    %c128_116 = arith.constant 128 : index
    %395 = vector.load %arg23[%394, %c128_116] : memref<16x256xf32, #tpu.memory_space<vmem>>, vector<1x128xf32>
    tpu.vector_store %arg23[%394, %c128_116], %392 {strides = array<i32>} : memref<16x256xf32, #tpu.memory_space<vmem>>, vector<1x128xf32>,
    %396 = vector.extract_strided_slice %362 {offsets = [1, 0], sizes = [1, 128], strides = [1, 1]} : vector<2x128xf32> to vector<1x128xf32>
    %c8_i32_117 = arith.constant 8 : i32
    %397 = arith.addi %c8_i32_117, %c4_i32 : i32
    %398 = arith.index_cast %397 : i32 to index
    %c0_118 = arith.constant 0 : index
    %399 = vector.load %arg23[%398, %c0_118] : memref<16x256xf32, #tpu.memory_space<vmem>>, vector<1x128xf32>
    tpu.vector_store %arg23[%398, %c0_118], %396 {strides = array<i32>} : memref<16x256xf32, #tpu.memory_space<vmem>>, vector<1x128xf32>,
    %400 = vector.extract_strided_slice %387 {offsets = [1, 0], sizes = [1, 128], strides = [1, 1]} : vector<2x128xf32> to vector<1x128xf32>
    %c8_i32_119 = arith.constant 8 : i32
    %401 = arith.addi %c8_i32_119, %327 : i32
    %402 = arith.index_cast %401 : i32 to index
    %c128_120 = arith.constant 128 : index
    %403 = vector.load %arg23[%402, %c128_120] : memref<16x256xf32, #tpu.memory_space<vmem>>, vector<1x128xf32>
    tpu.vector_store %arg23[%402, %c128_120], %400 {strides = array<i32>} : memref<16x256xf32, #tpu.memory_space<vmem>>, vector<1x128xf32>,
    %c5_i32 = arith.constant 5 : i32
    %c7_i32_121 = arith.constant 7 : i32
    %404 = arith.subi %c7_i32_121, %c5_i32 : i32
    %c0_122 = arith.constant 0 : index
    %405 = arith.index_cast %c5_i32 : i32 to index
    %c0_123 = arith.constant 0 : index
    %406 = vector.load %arg24[%c0_122, %405, %c0_123] : memref<2x8x512xf32, #tpu.memory_space<vmem>>, vector<2x1x512xf32>
    %407 = vector.shape_cast %406 : vector<2x1x512xf32> to vector<2x512xf32>
    %cst_124 = arith.constant dense<0.000000e+00> : vector<2x512xf32>
    %408 = tpu.matmul %362, %16, %cst_124 {dimension_numbers = #tpu.dot_dimension_numbers<[1], [0], [0], [1], [0, 0, 1, 1], [], []>} : vector<2x128xf32>, vector<128x512xf32>, vector<2x512xf32> -> vector<2x512xf32>
    %409 = arith.addf %407, %408 : vector<2x512xf32>
    %c0_125 = arith.constant 0 : index
    %410 = arith.index_cast %404 : i32 to index
    %c0_126 = arith.constant 0 : index
    %411 = vector.load %arg25[%c0_125, %410, %c0_126] : memref<2x8x512xf32, #tpu.memory_space<vmem>>, vector<2x1x512xf32>
    %412 = vector.shape_cast %411 : vector<2x1x512xf32> to vector<2x512xf32>
    %cst_127 = arith.constant dense<0.000000e+00> : vector<2x512xf32>
    %413 = tpu.matmul %387, %17, %cst_127 {dimension_numbers = #tpu.dot_dimension_numbers<[1], [0], [0], [1], [0, 0, 1, 1], [], []>} : vector<2x128xf32>, vector<128x512xf32>, vector<2x512xf32> -> vector<2x512xf32>
    %414 = arith.addf %412, %413 : vector<2x512xf32>
    %415 = vector.extract_strided_slice %409 {offsets = [0, 0], sizes = [2, 128], strides = [1, 1]} : vector<2x512xf32> to vector<2x128xf32>
    %416 = arith.negf %415 : vector<2x128xf32>
    %417 = math.exp %416 : vector<2x128xf32>
    %cst_128 = arith.constant 1.000000e+00 : f32
    %418 = vector.broadcast %cst_128 : f32 to vector<2x128xf32>
    %419 = arith.addf %418, %417 : vector<2x128xf32>
    %420 = arith.divf %418, %419 : vector<2x128xf32>
    %421 = vector.extract_strided_slice %409 {offsets = [0, 128], sizes = [2, 128], strides = [1, 1]} : vector<2x512xf32> to vector<2x128xf32>
    %422 = arith.negf %421 : vector<2x128xf32>
    %423 = math.exp %422 : vector<2x128xf32>
    %cst_129 = arith.constant 1.000000e+00 : f32
    %424 = vector.broadcast %cst_129 : f32 to vector<2x128xf32>
    %425 = arith.addf %424, %423 : vector<2x128xf32>
    %426 = arith.divf %424, %425 : vector<2x128xf32>
    %427 = vector.extract_strided_slice %409 {offsets = [0, 256], sizes = [2, 128], strides = [1, 1]} : vector<2x512xf32> to vector<2x128xf32>
    %428 = math.tanh %427 : vector<2x128xf32>
    %429 = vector.extract_strided_slice %409 {offsets = [0, 384], sizes = [2, 128], strides = [1, 1]} : vector<2x512xf32> to vector<2x128xf32>
    %430 = arith.negf %429 : vector<2x128xf32>
    %431 = math.exp %430 : vector<2x128xf32>
    %cst_130 = arith.constant 1.000000e+00 : f32
    %432 = vector.broadcast %cst_130 : f32 to vector<2x128xf32>
    %433 = arith.addf %432, %431 : vector<2x128xf32>
    %434 = arith.divf %432, %433 : vector<2x128xf32>
    %435 = arith.mulf %426, %360 : vector<2x128xf32>
    %436 = arith.mulf %420, %428 : vector<2x128xf32>
    %437 = arith.addf %435, %436 : vector<2x128xf32>
    %438 = math.tanh %437 : vector<2x128xf32>
    %439 = arith.mulf %434, %438 : vector<2x128xf32>
    %440 = vector.extract_strided_slice %414 {offsets = [0, 0], sizes = [2, 128], strides = [1, 1]} : vector<2x512xf32> to vector<2x128xf32>
    %441 = arith.negf %440 : vector<2x128xf32>
    %442 = math.exp %441 : vector<2x128xf32>
    %cst_131 = arith.constant 1.000000e+00 : f32
    %443 = vector.broadcast %cst_131 : f32 to vector<2x128xf32>
    %444 = arith.addf %443, %442 : vector<2x128xf32>
    %445 = arith.divf %443, %444 : vector<2x128xf32>
    %446 = vector.extract_strided_slice %414 {offsets = [0, 128], sizes = [2, 128], strides = [1, 1]} : vector<2x512xf32> to vector<2x128xf32>
    %447 = arith.negf %446 : vector<2x128xf32>
    %448 = math.exp %447 : vector<2x128xf32>
    %cst_132 = arith.constant 1.000000e+00 : f32
    %449 = vector.broadcast %cst_132 : f32 to vector<2x128xf32>
    %450 = arith.addf %449, %448 : vector<2x128xf32>
    %451 = arith.divf %449, %450 : vector<2x128xf32>
    %452 = vector.extract_strided_slice %414 {offsets = [0, 256], sizes = [2, 128], strides = [1, 1]} : vector<2x512xf32> to vector<2x128xf32>
    %453 = math.tanh %452 : vector<2x128xf32>
    %454 = vector.extract_strided_slice %414 {offsets = [0, 384], sizes = [2, 128], strides = [1, 1]} : vector<2x512xf32> to vector<2x128xf32>
    %455 = arith.negf %454 : vector<2x128xf32>
    %456 = math.exp %455 : vector<2x128xf32>
    %cst_133 = arith.constant 1.000000e+00 : f32
    %457 = vector.broadcast %cst_133 : f32 to vector<2x128xf32>
    %458 = arith.addf %457, %456 : vector<2x128xf32>
    %459 = arith.divf %457, %458 : vector<2x128xf32>
    %460 = arith.mulf %451, %385 : vector<2x128xf32>
    %461 = arith.mulf %445, %453 : vector<2x128xf32>
    %462 = arith.addf %460, %461 : vector<2x128xf32>
    %463 = math.tanh %462 : vector<2x128xf32>
    %464 = arith.mulf %459, %463 : vector<2x128xf32>
    %465 = vector.extract_strided_slice %439 {offsets = [0, 0], sizes = [1, 128], strides = [1, 1]} : vector<2x128xf32> to vector<1x128xf32>
    %c0_i32_134 = arith.constant 0 : i32
    %466 = arith.addi %c0_i32_134, %c5_i32 : i32
    %467 = arith.index_cast %466 : i32 to index
    %c0_135 = arith.constant 0 : index
    %468 = vector.load %arg23[%467, %c0_135] : memref<16x256xf32, #tpu.memory_space<vmem>>, vector<1x128xf32>
    tpu.vector_store %arg23[%467, %c0_135], %465 {strides = array<i32>} : memref<16x256xf32, #tpu.memory_space<vmem>>, vector<1x128xf32>,
    %469 = vector.extract_strided_slice %464 {offsets = [0, 0], sizes = [1, 128], strides = [1, 1]} : vector<2x128xf32> to vector<1x128xf32>
    %c0_i32_136 = arith.constant 0 : i32
    %470 = arith.addi %c0_i32_136, %404 : i32
    %471 = arith.index_cast %470 : i32 to index
    %c128_137 = arith.constant 128 : index
    %472 = vector.load %arg23[%471, %c128_137] : memref<16x256xf32, #tpu.memory_space<vmem>>, vector<1x128xf32>
    tpu.vector_store %arg23[%471, %c128_137], %469 {strides = array<i32>} : memref<16x256xf32, #tpu.memory_space<vmem>>, vector<1x128xf32>,
    %473 = vector.extract_strided_slice %439 {offsets = [1, 0], sizes = [1, 128], strides = [1, 1]} : vector<2x128xf32> to vector<1x128xf32>
    %c8_i32_138 = arith.constant 8 : i32
    %474 = arith.addi %c8_i32_138, %c5_i32 : i32
    %475 = arith.index_cast %474 : i32 to index
    %c0_139 = arith.constant 0 : index
    %476 = vector.load %arg23[%475, %c0_139] : memref<16x256xf32, #tpu.memory_space<vmem>>, vector<1x128xf32>
    tpu.vector_store %arg23[%475, %c0_139], %473 {strides = array<i32>} : memref<16x256xf32, #tpu.memory_space<vmem>>, vector<1x128xf32>,
    %477 = vector.extract_strided_slice %464 {offsets = [1, 0], sizes = [1, 128], strides = [1, 1]} : vector<2x128xf32> to vector<1x128xf32>
    %c8_i32_140 = arith.constant 8 : i32
    %478 = arith.addi %c8_i32_140, %404 : i32
    %479 = arith.index_cast %478 : i32 to index
    %c128_141 = arith.constant 128 : index
    %480 = vector.load %arg23[%479, %c128_141] : memref<16x256xf32, #tpu.memory_space<vmem>>, vector<1x128xf32>
    tpu.vector_store %arg23[%479, %c128_141], %477 {strides = array<i32>} : memref<16x256xf32, #tpu.memory_space<vmem>>, vector<1x128xf32>,
    %c6_i32 = arith.constant 6 : i32
    %c7_i32_142 = arith.constant 7 : i32
    %481 = arith.subi %c7_i32_142, %c6_i32 : i32
    %c0_143 = arith.constant 0 : index
    %482 = arith.index_cast %c6_i32 : i32 to index
    %c0_144 = arith.constant 0 : index
    %483 = vector.load %arg24[%c0_143, %482, %c0_144] : memref<2x8x512xf32, #tpu.memory_space<vmem>>, vector<2x1x512xf32>
    %484 = vector.shape_cast %483 : vector<2x1x512xf32> to vector<2x512xf32>
    %cst_145 = arith.constant dense<0.000000e+00> : vector<2x512xf32>
    %485 = tpu.matmul %439, %16, %cst_145 {dimension_numbers = #tpu.dot_dimension_numbers<[1], [0], [0], [1], [0, 0, 1, 1], [], []>} : vector<2x128xf32>, vector<128x512xf32>, vector<2x512xf32> -> vector<2x512xf32>
    %486 = arith.addf %484, %485 : vector<2x512xf32>
    %c0_146 = arith.constant 0 : index
    %487 = arith.index_cast %481 : i32 to index
    %c0_147 = arith.constant 0 : index
    %488 = vector.load %arg25[%c0_146, %487, %c0_147] : memref<2x8x512xf32, #tpu.memory_space<vmem>>, vector<2x1x512xf32>
    %489 = vector.shape_cast %488 : vector<2x1x512xf32> to vector<2x512xf32>
    %cst_148 = arith.constant dense<0.000000e+00> : vector<2x512xf32>
    %490 = tpu.matmul %464, %17, %cst_148 {dimension_numbers = #tpu.dot_dimension_numbers<[1], [0], [0], [1], [0, 0, 1, 1], [], []>} : vector<2x128xf32>, vector<128x512xf32>, vector<2x512xf32> -> vector<2x512xf32>
    %491 = arith.addf %489, %490 : vector<2x512xf32>
    %492 = vector.extract_strided_slice %486 {offsets = [0, 0], sizes = [2, 128], strides = [1, 1]} : vector<2x512xf32> to vector<2x128xf32>
    %493 = arith.negf %492 : vector<2x128xf32>
    %494 = math.exp %493 : vector<2x128xf32>
    %cst_149 = arith.constant 1.000000e+00 : f32
    %495 = vector.broadcast %cst_149 : f32 to vector<2x128xf32>
    %496 = arith.addf %495, %494 : vector<2x128xf32>
    %497 = arith.divf %495, %496 : vector<2x128xf32>
    %498 = vector.extract_strided_slice %486 {offsets = [0, 128], sizes = [2, 128], strides = [1, 1]} : vector<2x512xf32> to vector<2x128xf32>
    %499 = arith.negf %498 : vector<2x128xf32>
    %500 = math.exp %499 : vector<2x128xf32>
    %cst_150 = arith.constant 1.000000e+00 : f32
    %501 = vector.broadcast %cst_150 : f32 to vector<2x128xf32>
    %502 = arith.addf %501, %500 : vector<2x128xf32>
    %503 = arith.divf %501, %502 : vector<2x128xf32>
    %504 = vector.extract_strided_slice %486 {offsets = [0, 256], sizes = [2, 128], strides = [1, 1]} : vector<2x512xf32> to vector<2x128xf32>
    %505 = math.tanh %504 : vector<2x128xf32>
    %506 = vector.extract_strided_slice %486 {offsets = [0, 384], sizes = [2, 128], strides = [1, 1]} : vector<2x512xf32> to vector<2x128xf32>
    %507 = arith.negf %506 : vector<2x128xf32>
    %508 = math.exp %507 : vector<2x128xf32>
    %cst_151 = arith.constant 1.000000e+00 : f32
    %509 = vector.broadcast %cst_151 : f32 to vector<2x128xf32>
    %510 = arith.addf %509, %508 : vector<2x128xf32>
    %511 = arith.divf %509, %510 : vector<2x128xf32>
    %512 = arith.mulf %503, %437 : vector<2x128xf32>
    %513 = arith.mulf %497, %505 : vector<2x128xf32>
    %514 = arith.addf %512, %513 : vector<2x128xf32>
    %515 = math.tanh %514 : vector<2x128xf32>
    %516 = arith.mulf %511, %515 : vector<2x128xf32>
    %517 = vector.extract_strided_slice %491 {offsets = [0, 0], sizes = [2, 128], strides = [1, 1]} : vector<2x512xf32> to vector<2x128xf32>
    %518 = arith.negf %517 : vector<2x128xf32>
    %519 = math.exp %518 : vector<2x128xf32>
    %cst_152 = arith.constant 1.000000e+00 : f32
    %520 = vector.broadcast %cst_152 : f32 to vector<2x128xf32>
    %521 = arith.addf %520, %519 : vector<2x128xf32>
    %522 = arith.divf %520, %521 : vector<2x128xf32>
    %523 = vector.extract_strided_slice %491 {offsets = [0, 128], sizes = [2, 128], strides = [1, 1]} : vector<2x512xf32> to vector<2x128xf32>
    %524 = arith.negf %523 : vector<2x128xf32>
    %525 = math.exp %524 : vector<2x128xf32>
    %cst_153 = arith.constant 1.000000e+00 : f32
    %526 = vector.broadcast %cst_153 : f32 to vector<2x128xf32>
    %527 = arith.addf %526, %525 : vector<2x128xf32>
    %528 = arith.divf %526, %527 : vector<2x128xf32>
    %529 = vector.extract_strided_slice %491 {offsets = [0, 256], sizes = [2, 128], strides = [1, 1]} : vector<2x512xf32> to vector<2x128xf32>
    %530 = math.tanh %529 : vector<2x128xf32>
    %531 = vector.extract_strided_slice %491 {offsets = [0, 384], sizes = [2, 128], strides = [1, 1]} : vector<2x512xf32> to vector<2x128xf32>
    %532 = arith.negf %531 : vector<2x128xf32>
    %533 = math.exp %532 : vector<2x128xf32>
    %cst_154 = arith.constant 1.000000e+00 : f32
    %534 = vector.broadcast %cst_154 : f32 to vector<2x128xf32>
    %535 = arith.addf %534, %533 : vector<2x128xf32>
    %536 = arith.divf %534, %535 : vector<2x128xf32>
    %537 = arith.mulf %528, %462 : vector<2x128xf32>
    %538 = arith.mulf %522, %530 : vector<2x128xf32>
    %539 = arith.addf %537, %538 : vector<2x128xf32>
    %540 = math.tanh %539 : vector<2x128xf32>
    %541 = arith.mulf %536, %540 : vector<2x128xf32>
    %542 = vector.extract_strided_slice %516 {offsets = [0, 0], sizes = [1, 128], strides = [1, 1]} : vector<2x128xf32> to vector<1x128xf32>
    %c0_i32_155 = arith.constant 0 : i32
    %543 = arith.addi %c0_i32_155, %c6_i32 : i32
    %544 = arith.index_cast %543 : i32 to index
    %c0_156 = arith.constant 0 : index
    %545 = vector.load %arg23[%544, %c0_156] : memref<16x256xf32, #tpu.memory_space<vmem>>, vector<1x128xf32>
    tpu.vector_store %arg23[%544, %c0_156], %542 {strides = array<i32>} : memref<16x256xf32, #tpu.memory_space<vmem>>, vector<1x128xf32>,
    %546 = vector.extract_strided_slice %541 {offsets = [0, 0], sizes = [1, 128], strides = [1, 1]} : vector<2x128xf32> to vector<1x128xf32>
    %c0_i32_157 = arith.constant 0 : i32
    %547 = arith.addi %c0_i32_157, %481 : i32
    %548 = arith.index_cast %547 : i32 to index
    %c128_158 = arith.constant 128 : index
    %549 = vector.load %arg23[%548, %c128_158] : memref<16x256xf32, #tpu.memory_space<vmem>>, vector<1x128xf32>
    tpu.vector_store %arg23[%548, %c128_158], %546 {strides = array<i32>} : memref<16x256xf32, #tpu.memory_space<vmem>>, vector<1x128xf32>,
    %550 = vector.extract_strided_slice %516 {offsets = [1, 0], sizes = [1, 128], strides = [1, 1]} : vector<2x128xf32> to vector<1x128xf32>
    %c8_i32_159 = arith.constant 8 : i32
    %551 = arith.addi %c8_i32_159, %c6_i32 : i32
    %552 = arith.index_cast %551 : i32 to index
    %c0_160 = arith.constant 0 : index
    %553 = vector.load %arg23[%552, %c0_160] : memref<16x256xf32, #tpu.memory_space<vmem>>, vector<1x128xf32>
    tpu.vector_store %arg23[%552, %c0_160], %550 {strides = array<i32>} : memref<16x256xf32, #tpu.memory_space<vmem>>, vector<1x128xf32>,
    %554 = vector.extract_strided_slice %541 {offsets = [1, 0], sizes = [1, 128], strides = [1, 1]} : vector<2x128xf32> to vector<1x128xf32>
    %c8_i32_161 = arith.constant 8 : i32
    %555 = arith.addi %c8_i32_161, %481 : i32
    %556 = arith.index_cast %555 : i32 to index
    %c128_162 = arith.constant 128 : index
    %557 = vector.load %arg23[%556, %c128_162] : memref<16x256xf32, #tpu.memory_space<vmem>>, vector<1x128xf32>
    tpu.vector_store %arg23[%556, %c128_162], %554 {strides = array<i32>} : memref<16x256xf32, #tpu.memory_space<vmem>>, vector<1x128xf32>,
    %c7_i32_163 = arith.constant 7 : i32
    %c7_i32_164 = arith.constant 7 : i32
    %558 = arith.subi %c7_i32_164, %c7_i32_163 : i32
    %c0_165 = arith.constant 0 : index
    %559 = arith.index_cast %c7_i32_163 : i32 to index
    %c0_166 = arith.constant 0 : index
    %560 = vector.load %arg24[%c0_165, %559, %c0_166] : memref<2x8x512xf32, #tpu.memory_space<vmem>>, vector<2x1x512xf32>
    %561 = vector.shape_cast %560 : vector<2x1x512xf32> to vector<2x512xf32>
    %cst_167 = arith.constant dense<0.000000e+00> : vector<2x512xf32>
    %562 = tpu.matmul %516, %16, %cst_167 {dimension_numbers = #tpu.dot_dimension_numbers<[1], [0], [0], [1], [0, 0, 1, 1], [], []>} : vector<2x128xf32>, vector<128x512xf32>, vector<2x512xf32> -> vector<2x512xf32>
    %563 = arith.addf %561, %562 : vector<2x512xf32>
    %c0_168 = arith.constant 0 : index
    %564 = arith.index_cast %558 : i32 to index
    %c0_169 = arith.constant 0 : index
    %565 = vector.load %arg25[%c0_168, %564, %c0_169] : memref<2x8x512xf32, #tpu.memory_space<vmem>>, vector<2x1x512xf32>
    %566 = vector.shape_cast %565 : vector<2x1x512xf32> to vector<2x512xf32>
    %cst_170 = arith.constant dense<0.000000e+00> : vector<2x512xf32>
    %567 = tpu.matmul %541, %17, %cst_170 {dimension_numbers = #tpu.dot_dimension_numbers<[1], [0], [0], [1], [0, 0, 1, 1], [], []>} : vector<2x128xf32>, vector<128x512xf32>, vector<2x512xf32> -> vector<2x512xf32>
    %568 = arith.addf %566, %567 : vector<2x512xf32>
    %569 = vector.extract_strided_slice %563 {offsets = [0, 0], sizes = [2, 128], strides = [1, 1]} : vector<2x512xf32> to vector<2x128xf32>
    %570 = arith.negf %569 : vector<2x128xf32>
    %571 = math.exp %570 : vector<2x128xf32>
    %cst_171 = arith.constant 1.000000e+00 : f32
    %572 = vector.broadcast %cst_171 : f32 to vector<2x128xf32>
    %573 = arith.addf %572, %571 : vector<2x128xf32>
    %574 = arith.divf %572, %573 : vector<2x128xf32>
    %575 = vector.extract_strided_slice %563 {offsets = [0, 128], sizes = [2, 128], strides = [1, 1]} : vector<2x512xf32> to vector<2x128xf32>
    %576 = arith.negf %575 : vector<2x128xf32>
    %577 = math.exp %576 : vector<2x128xf32>
    %cst_172 = arith.constant 1.000000e+00 : f32
    %578 = vector.broadcast %cst_172 : f32 to vector<2x128xf32>
    %579 = arith.addf %578, %577 : vector<2x128xf32>
    %580 = arith.divf %578, %579 : vector<2x128xf32>
    %581 = vector.extract_strided_slice %563 {offsets = [0, 256], sizes = [2, 128], strides = [1, 1]} : vector<2x512xf32> to vector<2x128xf32>
    %582 = math.tanh %581 : vector<2x128xf32>
    %583 = vector.extract_strided_slice %563 {offsets = [0, 384], sizes = [2, 128], strides = [1, 1]} : vector<2x512xf32> to vector<2x128xf32>
    %584 = arith.negf %583 : vector<2x128xf32>
    %585 = math.exp %584 : vector<2x128xf32>
    %cst_173 = arith.constant 1.000000e+00 : f32
    %586 = vector.broadcast %cst_173 : f32 to vector<2x128xf32>
    %587 = arith.addf %586, %585 : vector<2x128xf32>
    %588 = arith.divf %586, %587 : vector<2x128xf32>
    %589 = arith.mulf %580, %514 : vector<2x128xf32>
    %590 = arith.mulf %574, %582 : vector<2x128xf32>
    %591 = arith.addf %589, %590 : vector<2x128xf32>
    %592 = math.tanh %591 : vector<2x128xf32>
    %593 = arith.mulf %588, %592 : vector<2x128xf32>
    %594 = vector.extract_strided_slice %568 {offsets = [0, 0], sizes = [2, 128], strides = [1, 1]} : vector<2x512xf32> to vector<2x128xf32>
    %595 = arith.negf %594 : vector<2x128xf32>
    %596 = math.exp %595 : vector<2x128xf32>
    %cst_174 = arith.constant 1.000000e+00 : f32
    %597 = vector.broadcast %cst_174 : f32 to vector<2x128xf32>
    %598 = arith.addf %597, %596 : vector<2x128xf32>
    %599 = arith.divf %597, %598 : vector<2x128xf32>
    %600 = vector.extract_strided_slice %568 {offsets = [0, 128], sizes = [2, 128], strides = [1, 1]} : vector<2x512xf32> to vector<2x128xf32>
    %601 = arith.negf %600 : vector<2x128xf32>
    %602 = math.exp %601 : vector<2x128xf32>
    %cst_175 = arith.constant 1.000000e+00 : f32
    %603 = vector.broadcast %cst_175 : f32 to vector<2x128xf32>
    %604 = arith.addf %603, %602 : vector<2x128xf32>
    %605 = arith.divf %603, %604 : vector<2x128xf32>
    %606 = vector.extract_strided_slice %568 {offsets = [0, 256], sizes = [2, 128], strides = [1, 1]} : vector<2x512xf32> to vector<2x128xf32>
    %607 = math.tanh %606 : vector<2x128xf32>
    %608 = vector.extract_strided_slice %568 {offsets = [0, 384], sizes = [2, 128], strides = [1, 1]} : vector<2x512xf32> to vector<2x128xf32>
    %609 = arith.negf %608 : vector<2x128xf32>
    %610 = math.exp %609 : vector<2x128xf32>
    %cst_176 = arith.constant 1.000000e+00 : f32
    %611 = vector.broadcast %cst_176 : f32 to vector<2x128xf32>
    %612 = arith.addf %611, %610 : vector<2x128xf32>
    %613 = arith.divf %611, %612 : vector<2x128xf32>
    %614 = arith.mulf %605, %539 : vector<2x128xf32>
    %615 = arith.mulf %599, %607 : vector<2x128xf32>
    %616 = arith.addf %614, %615 : vector<2x128xf32>
    %617 = math.tanh %616 : vector<2x128xf32>
    %618 = arith.mulf %613, %617 : vector<2x128xf32>
    %619 = vector.extract_strided_slice %593 {offsets = [0, 0], sizes = [1, 128], strides = [1, 1]} : vector<2x128xf32> to vector<1x128xf32>
    %c0_i32_177 = arith.constant 0 : i32
    %620 = arith.addi %c0_i32_177, %c7_i32_163 : i32
    %621 = arith.index_cast %620 : i32 to index
    %c0_178 = arith.constant 0 : index
    %622 = vector.load %arg23[%621, %c0_178] : memref<16x256xf32, #tpu.memory_space<vmem>>, vector<1x128xf32>
    tpu.vector_store %arg23[%621, %c0_178], %619 {strides = array<i32>} : memref<16x256xf32, #tpu.memory_space<vmem>>, vector<1x128xf32>,
    %623 = vector.extract_strided_slice %618 {offsets = [0, 0], sizes = [1, 128], strides = [1, 1]} : vector<2x128xf32> to vector<1x128xf32>
    %c0_i32_179 = arith.constant 0 : i32
    %624 = arith.addi %c0_i32_179, %558 : i32
    %625 = arith.index_cast %624 : i32 to index
    %c128_180 = arith.constant 128 : index
    %626 = vector.load %arg23[%625, %c128_180] : memref<16x256xf32, #tpu.memory_space<vmem>>, vector<1x128xf32>
    tpu.vector_store %arg23[%625, %c128_180], %623 {strides = array<i32>} : memref<16x256xf32, #tpu.memory_space<vmem>>, vector<1x128xf32>,
    %627 = vector.extract_strided_slice %593 {offsets = [1, 0], sizes = [1, 128], strides = [1, 1]} : vector<2x128xf32> to vector<1x128xf32>
    %c8_i32_181 = arith.constant 8 : i32
    %628 = arith.addi %c8_i32_181, %c7_i32_163 : i32
    %629 = arith.index_cast %628 : i32 to index
    %c0_182 = arith.constant 0 : index
    %630 = vector.load %arg23[%629, %c0_182] : memref<16x256xf32, #tpu.memory_space<vmem>>, vector<1x128xf32>
    tpu.vector_store %arg23[%629, %c0_182], %627 {strides = array<i32>} : memref<16x256xf32, #tpu.memory_space<vmem>>, vector<1x128xf32>,
    %631 = vector.extract_strided_slice %618 {offsets = [1, 0], sizes = [1, 128], strides = [1, 1]} : vector<2x128xf32> to vector<1x128xf32>
    %c8_i32_183 = arith.constant 8 : i32
    %632 = arith.addi %c8_i32_183, %558 : i32
    %633 = arith.index_cast %632 : i32 to index
    %c128_184 = arith.constant 128 : index
    %634 = vector.load %arg23[%633, %c128_184] : memref<16x256xf32, #tpu.memory_space<vmem>>, vector<1x128xf32>
    tpu.vector_store %arg23[%633, %c128_184], %631 {strides = array<i32>} : memref<16x256xf32, #tpu.memory_space<vmem>>, vector<1x128xf32>,
    %c8_i32_185 = arith.constant 8 : i32
    %c0_186 = arith.constant 0 : index
    %c0_187 = arith.constant 0 : index
    %635 = vector.load %arg23[%c0_186, %c0_187] : memref<16x256xf32, #tpu.memory_space<vmem>>, vector<16x256xf32>
    %636 = vector.extract_strided_slice %635 {offsets = [7, 0], sizes = [1, 256], strides = [1, 1]} : vector<16x256xf32> to vector<1x256xf32>
    %637 = vector.extract_strided_slice %635 {offsets = [15, 0], sizes = [1, 256], strides = [1, 1]} : vector<16x256xf32> to vector<1x256xf32>
    %638 = tpu.concatenate %636, %637 in 0 : vector<1x256xf32>, vector<1x256xf32> -> vector<2x256xf32>
    %c0_188 = arith.constant 0 : index
    %c0_189 = arith.constant 0 : index
    %639 = vector.load %arg6[%c0_188, %c0_189] : memref<256x256xf32, #tpu.memory_space<vmem>>, vector<256x256xf32>
    %cst_190 = arith.constant dense<0.000000e+00> : vector<2x256xf32>
    %640 = tpu.matmul %638, %639, %cst_190 {dimension_numbers = #tpu.dot_dimension_numbers<[1], [0], [0], [1], [0, 0, 1, 1], [], []>} : vector<2x256xf32>, vector<256x256xf32>, vector<2x256xf32> -> vector<2x256xf32>
    %c0_191 = arith.constant 0 : index
    %c0_192 = arith.constant 0 : index
    %641 = vector.load %arg7[%c0_191, %c0_192] : memref<1x256xf32, #tpu.memory_space<vmem>>, vector<1x256xf32>
    %642 = vector.broadcast %641 : vector<1x256xf32> to vector<2x256xf32>
    %643 = arith.addf %640, %642 : vector<2x256xf32>
    %c0_193 = arith.constant 0 : index
    %c0_194 = arith.constant 0 : index
    %644 = vector.load %arg8[%c0_193, %c0_194] : memref<256x512xf32, #tpu.memory_space<vmem>>, vector<256x512xf32>
    %cst_195 = arith.constant dense<0.000000e+00> : vector<16x512xf32>
    %645 = tpu.matmul %635, %644, %cst_195 {dimension_numbers = #tpu.dot_dimension_numbers<[1], [0], [0], [1], [0, 0, 1, 1], [], []>} : vector<16x256xf32>, vector<256x512xf32>, vector<16x512xf32> -> vector<16x512xf32>
    %c0_196 = arith.constant 0 : index
    %c0_197 = arith.constant 0 : index
    %646 = vector.load %arg9[%c0_196, %c0_197] : memref<1x512xf32, #tpu.memory_space<vmem>>, vector<1x512xf32>
    %647 = vector.broadcast %646 : vector<1x512xf32> to vector<16x512xf32>
    %648 = arith.addf %645, %647 : vector<16x512xf32>
    %649 = vector.extract_strided_slice %648 {offsets = [0, 0], sizes = [16, 256], strides = [1, 1]} : vector<16x512xf32> to vector<16x256xf32>
    %650 = vector.shape_cast %649 : vector<16x256xf32> to vector<2x8x256xf32>
    %651 = vector.extract_strided_slice %648 {offsets = [0, 256], sizes = [16, 256], strides = [1, 1]} : vector<16x512xf32> to vector<16x256xf32>
    %652 = vector.shape_cast %651 : vector<16x256xf32> to vector<2x8x256xf32>
    %653 = vector.extract_strided_slice %643 {offsets = [0, 0], sizes = [2, 64], strides = [1, 1]} : vector<2x256xf32> to vector<2x64xf32>
    %654 = vector.extract_strided_slice %650 {offsets = [0, 0, 0], sizes = [2, 8, 64], strides = [1, 1, 1]} : vector<2x8x256xf32> to vector<2x8x64xf32>
    %655 = vector.extract_strided_slice %652 {offsets = [0, 0, 0], sizes = [2, 8, 64], strides = [1, 1, 1]} : vector<2x8x256xf32> to vector<2x8x64xf32>
    %656 = vector.shape_cast %653 : vector<2x64xf32> to vector<2x1x64xf32>
    %657 = vector.broadcast %656 : vector<2x1x64xf32> to vector<2x8x64xf32>
    %658 = arith.mulf %657, %654 : vector<2x8x64xf32>
    %cst_198 = arith.constant dense<0.000000e+00> : vector<2x8xf32>
    %659 = vector.multi_reduction <add>, %658, %cst_198 [2] : vector<2x8x64xf32> to vector<2x8xf32>
    %cst_199 = arith.constant 1.250000e-01 : f32
    %660 = vector.broadcast %cst_199 : f32 to vector<2x8xf32>
    %661 = arith.mulf %659, %660 : vector<2x8xf32>
    %cst_200 = arith.constant dense<0xFF800000> : vector<2xf32>
    %662 = vector.multi_reduction <maximumf>, %661, %cst_200 [1] : vector<2x8xf32> to vector<2xf32>
    %663 = vector.shape_cast %662 : vector<2xf32> to vector<2x1xf32>
    %664 = vector.broadcast %663 : vector<2x1xf32> to vector<2x8xf32>
    %665 = arith.subf %661, %664 : vector<2x8xf32>
    %666 = math.exp %665 : vector<2x8xf32>
    %cst_201 = arith.constant dense<0.000000e+00> : vector<2xf32>
    %667 = vector.multi_reduction <add>, %666, %cst_201 [1] : vector<2x8xf32> to vector<2xf32>
    %668 = vector.shape_cast %667 : vector<2xf32> to vector<2x1xf32>
    %669 = vector.broadcast %668 : vector<2x1xf32> to vector<2x8xf32>
    %670 = arith.divf %666, %669 : vector<2x8xf32>
    %671 = vector.shape_cast %670 : vector<2x8xf32> to vector<2x8x1xf32>
    %672 = vector.broadcast %671 : vector<2x8x1xf32> to vector<2x8x64xf32>
    %673 = arith.mulf %672, %655 : vector<2x8x64xf32>
    %cst_202 = arith.constant dense<0.000000e+00> : vector<2x64xf32>
    %674 = vector.multi_reduction <add>, %673, %cst_202 [1] : vector<2x8x64xf32> to vector<2x64xf32>
    %675 = vector.extract_strided_slice %643 {offsets = [0, 64], sizes = [2, 64], strides = [1, 1]} : vector<2x256xf32> to vector<2x64xf32>
    %676 = vector.extract_strided_slice %650 {offsets = [0, 0, 64], sizes = [2, 8, 64], strides = [1, 1, 1]} : vector<2x8x256xf32> to vector<2x8x64xf32>
    %677 = vector.extract_strided_slice %652 {offsets = [0, 0, 64], sizes = [2, 8, 64], strides = [1, 1, 1]} : vector<2x8x256xf32> to vector<2x8x64xf32>
    %678 = vector.shape_cast %675 : vector<2x64xf32> to vector<2x1x64xf32>
    %679 = vector.broadcast %678 : vector<2x1x64xf32> to vector<2x8x64xf32>
    %680 = arith.mulf %679, %676 : vector<2x8x64xf32>
    %cst_203 = arith.constant dense<0.000000e+00> : vector<2x8xf32>
    %681 = vector.multi_reduction <add>, %680, %cst_203 [2] : vector<2x8x64xf32> to vector<2x8xf32>
    %cst_204 = arith.constant 1.250000e-01 : f32
    %682 = vector.broadcast %cst_204 : f32 to vector<2x8xf32>
    %683 = arith.mulf %681, %682 : vector<2x8xf32>
    %cst_205 = arith.constant dense<0xFF800000> : vector<2xf32>
    %684 = vector.multi_reduction <maximumf>, %683, %cst_205 [1] : vector<2x8xf32> to vector<2xf32>
    %685 = vector.shape_cast %684 : vector<2xf32> to vector<2x1xf32>
    %686 = vector.broadcast %685 : vector<2x1xf32> to vector<2x8xf32>
    %687 = arith.subf %683, %686 : vector<2x8xf32>
    %688 = math.exp %687 : vector<2x8xf32>
    %cst_206 = arith.constant dense<0.000000e+00> : vector<2xf32>
    %689 = vector.multi_reduction <add>, %688, %cst_206 [1] : vector<2x8xf32> to vector<2xf32>
    %690 = vector.shape_cast %689 : vector<2xf32> to vector<2x1xf32>
    %691 = vector.broadcast %690 : vector<2x1xf32> to vector<2x8xf32>
    %692 = arith.divf %688, %691 : vector<2x8xf32>
    %693 = vector.shape_cast %692 : vector<2x8xf32> to vector<2x8x1xf32>
    %694 = vector.broadcast %693 : vector<2x8x1xf32> to vector<2x8x64xf32>
    %695 = arith.mulf %694, %677 : vector<2x8x64xf32>
    %cst_207 = arith.constant dense<0.000000e+00> : vector<2x64xf32>
    %696 = vector.multi_reduction <add>, %695, %cst_207 [1] : vector<2x8x64xf32> to vector<2x64xf32>
    %697 = vector.extract_strided_slice %643 {offsets = [0, 128], sizes = [2, 64], strides = [1, 1]} : vector<2x256xf32> to vector<2x64xf32>
    %698 = vector.extract_strided_slice %650 {offsets = [0, 0, 128], sizes = [2, 8, 64], strides = [1, 1, 1]} : vector<2x8x256xf32> to vector<2x8x64xf32>
    %699 = vector.extract_strided_slice %652 {offsets = [0, 0, 128], sizes = [2, 8, 64], strides = [1, 1, 1]} : vector<2x8x256xf32> to vector<2x8x64xf32>
    %700 = vector.shape_cast %697 : vector<2x64xf32> to vector<2x1x64xf32>
    %701 = vector.broadcast %700 : vector<2x1x64xf32> to vector<2x8x64xf32>
    %702 = arith.mulf %701, %698 : vector<2x8x64xf32>
    %cst_208 = arith.constant dense<0.000000e+00> : vector<2x8xf32>
    %703 = vector.multi_reduction <add>, %702, %cst_208 [2] : vector<2x8x64xf32> to vector<2x8xf32>
    %cst_209 = arith.constant 1.250000e-01 : f32
    %704 = vector.broadcast %cst_209 : f32 to vector<2x8xf32>
    %705 = arith.mulf %703, %704 : vector<2x8xf32>
    %cst_210 = arith.constant dense<0xFF800000> : vector<2xf32>
    %706 = vector.multi_reduction <maximumf>, %705, %cst_210 [1] : vector<2x8xf32> to vector<2xf32>
    %707 = vector.shape_cast %706 : vector<2xf32> to vector<2x1xf32>
    %708 = vector.broadcast %707 : vector<2x1xf32> to vector<2x8xf32>
    %709 = arith.subf %705, %708 : vector<2x8xf32>
    %710 = math.exp %709 : vector<2x8xf32>
    %cst_211 = arith.constant dense<0.000000e+00> : vector<2xf32>
    %711 = vector.multi_reduction <add>, %710, %cst_211 [1] : vector<2x8xf32> to vector<2xf32>
    %712 = vector.shape_cast %711 : vector<2xf32> to vector<2x1xf32>
    %713 = vector.broadcast %712 : vector<2x1xf32> to vector<2x8xf32>
    %714 = arith.divf %710, %713 : vector<2x8xf32>
    %715 = vector.shape_cast %714 : vector<2x8xf32> to vector<2x8x1xf32>
    %716 = vector.broadcast %715 : vector<2x8x1xf32> to vector<2x8x64xf32>
    %717 = arith.mulf %716, %699 : vector<2x8x64xf32>
    %cst_212 = arith.constant dense<0.000000e+00> : vector<2x64xf32>
    %718 = vector.multi_reduction <add>, %717, %cst_212 [1] : vector<2x8x64xf32> to vector<2x64xf32>
    %719 = vector.extract_strided_slice %643 {offsets = [0, 192], sizes = [2, 64], strides = [1, 1]} : vector<2x256xf32> to vector<2x64xf32>
    %720 = vector.extract_strided_slice %650 {offsets = [0, 0, 192], sizes = [2, 8, 64], strides = [1, 1, 1]} : vector<2x8x256xf32> to vector<2x8x64xf32>
    %721 = vector.extract_strided_slice %652 {offsets = [0, 0, 192], sizes = [2, 8, 64], strides = [1, 1, 1]} : vector<2x8x256xf32> to vector<2x8x64xf32>
    %722 = vector.shape_cast %719 : vector<2x64xf32> to vector<2x1x64xf32>
    %723 = vector.broadcast %722 : vector<2x1x64xf32> to vector<2x8x64xf32>
    %724 = arith.mulf %723, %720 : vector<2x8x64xf32>
    %cst_213 = arith.constant dense<0.000000e+00> : vector<2x8xf32>
    %725 = vector.multi_reduction <add>, %724, %cst_213 [2] : vector<2x8x64xf32> to vector<2x8xf32>
    %cst_214 = arith.constant 1.250000e-01 : f32
    %726 = vector.broadcast %cst_214 : f32 to vector<2x8xf32>
    %727 = arith.mulf %725, %726 : vector<2x8xf32>
    %cst_215 = arith.constant dense<0xFF800000> : vector<2xf32>
    %728 = vector.multi_reduction <maximumf>, %727, %cst_215 [1] : vector<2x8xf32> to vector<2xf32>
    %729 = vector.shape_cast %728 : vector<2xf32> to vector<2x1xf32>
    %730 = vector.broadcast %729 : vector<2x1xf32> to vector<2x8xf32>
    %731 = arith.subf %727, %730 : vector<2x8xf32>
    %732 = math.exp %731 : vector<2x8xf32>
    %cst_216 = arith.constant dense<0.000000e+00> : vector<2xf32>
    %733 = vector.multi_reduction <add>, %732, %cst_216 [1] : vector<2x8xf32> to vector<2xf32>
    %734 = vector.shape_cast %733 : vector<2xf32> to vector<2x1xf32>
    %735 = vector.broadcast %734 : vector<2x1xf32> to vector<2x8xf32>
    %736 = arith.divf %732, %735 : vector<2x8xf32>
    %737 = vector.shape_cast %736 : vector<2x8xf32> to vector<2x8x1xf32>
    %738 = vector.broadcast %737 : vector<2x8x1xf32> to vector<2x8x64xf32>
    %739 = arith.mulf %738, %721 : vector<2x8x64xf32>
    %cst_217 = arith.constant dense<0.000000e+00> : vector<2x64xf32>
    %740 = vector.multi_reduction <add>, %739, %cst_217 [1] : vector<2x8x64xf32> to vector<2x64xf32>
    %741 = tpu.concatenate %674, %696, %718, %740 in 1 : vector<2x64xf32>, vector<2x64xf32>, vector<2x64xf32>, vector<2x64xf32> -> vector<2x256xf32>
    %c0_218 = arith.constant 0 : index
    %c0_219 = arith.constant 0 : index
    %742 = vector.load %arg10[%c0_218, %c0_219] : memref<256x256xf32, #tpu.memory_space<vmem>>, vector<256x256xf32>
    %cst_220 = arith.constant dense<0.000000e+00> : vector<2x256xf32>
    %743 = tpu.matmul %741, %742, %cst_220 {dimension_numbers = #tpu.dot_dimension_numbers<[1], [0], [0], [1], [0, 0, 1, 1], [], []>} : vector<2x256xf32>, vector<256x256xf32>, vector<2x256xf32> -> vector<2x256xf32>
    %c0_221 = arith.constant 0 : index
    %c0_222 = arith.constant 0 : index
    %744 = vector.load %arg11[%c0_221, %c0_222] : memref<1x256xf32, #tpu.memory_space<vmem>>, vector<1x256xf32>
    %745 = vector.broadcast %744 : vector<1x256xf32> to vector<2x256xf32>
    %746 = arith.addf %743, %745 : vector<2x256xf32>
    %c0_223 = arith.constant 0 : index
    %c0_224 = arith.constant 0 : index
    %747 = vector.load %arg12[%c0_223, %c0_224] : memref<256x128xf32, #tpu.memory_space<vmem>>, vector<256x128xf32>
    %cst_225 = arith.constant dense<0.000000e+00> : vector<2x128xf32>
    %748 = tpu.matmul %746, %747, %cst_225 {dimension_numbers = #tpu.dot_dimension_numbers<[1], [0], [0], [1], [0, 0, 1, 1], [], []>} : vector<2x256xf32>, vector<256x128xf32>, vector<2x128xf32> -> vector<2x128xf32>
    %c0_226 = arith.constant 0 : index
    %c0_227 = arith.constant 0 : index
    %749 = vector.load %arg13[%c0_226, %c0_227] : memref<1x128xf32, #tpu.memory_space<vmem>>, vector<1x128xf32>
    %750 = vector.broadcast %749 : vector<1x128xf32> to vector<2x128xf32>
    %751 = arith.addf %748, %750 : vector<2x128xf32>
    %752 = arith.negf %751 : vector<2x128xf32>
    %753 = math.exp %752 : vector<2x128xf32>
    %cst_228 = arith.constant 1.000000e+00 : f32
    %754 = vector.broadcast %cst_228 : f32 to vector<2x128xf32>
    %755 = arith.addf %754, %753 : vector<2x128xf32>
    %756 = arith.divf %754, %755 : vector<2x128xf32>
    %757 = arith.mulf %751, %756 : vector<2x128xf32>
    %cst_229 = arith.constant dense<0.000000e+00> : vector<2xf32>
    %758 = vector.multi_reduction <add>, %757, %cst_229 [1] : vector<2x128xf32> to vector<2xf32>
    %759 = vector.shape_cast %758 : vector<2xf32> to vector<2x1xf32>
    %cst_230 = arith.constant 1.280000e+02 : f32
    %760 = vector.broadcast %cst_230 : f32 to vector<2x1xf32>
    %761 = arith.divf %759, %760 : vector<2x1xf32>
    %762 = vector.broadcast %761 : vector<2x1xf32> to vector<2x128xf32>
    %763 = arith.subf %757, %762 : vector<2x128xf32>
    %764 = arith.mulf %763, %763 : vector<2x128xf32>
    %cst_231 = arith.constant dense<0.000000e+00> : vector<2xf32>
    %765 = vector.multi_reduction <add>, %764, %cst_231 [1] : vector<2x128xf32> to vector<2xf32>
    %766 = vector.shape_cast %765 : vector<2xf32> to vector<2x1xf32>
    %cst_232 = arith.constant 1.280000e+02 : f32
    %767 = vector.broadcast %cst_232 : f32 to vector<2x1xf32>
    %768 = arith.divf %766, %767 : vector<2x1xf32>
    %769 = vector.broadcast %761 : vector<2x1xf32> to vector<2x128xf32>
    %770 = arith.subf %757, %769 : vector<2x128xf32>
    %cst_233 = arith.constant 9.99999974E-6 : f32
    %771 = vector.broadcast %cst_233 : f32 to vector<2x1xf32>
    %772 = arith.addf %768, %771 : vector<2x1xf32>
    %773 = math.rsqrt %772 : vector<2x1xf32>
    %774 = vector.broadcast %773 : vector<2x1xf32> to vector<2x128xf32>
    %775 = arith.mulf %770, %774 : vector<2x128xf32>
    %c0_234 = arith.constant 0 : index
    %c0_235 = arith.constant 0 : index
    %776 = vector.load %arg14[%c0_234, %c0_235] : memref<1x128xf32, #tpu.memory_space<vmem>>, vector<1x128xf32>
    %777 = vector.broadcast %776 : vector<1x128xf32> to vector<2x128xf32>
    %778 = arith.mulf %775, %777 : vector<2x128xf32>
    %c0_236 = arith.constant 0 : index
    %c0_237 = arith.constant 0 : index
    %779 = vector.load %arg15[%c0_236, %c0_237] : memref<1x128xf32, #tpu.memory_space<vmem>>, vector<1x128xf32>
    %780 = vector.broadcast %779 : vector<1x128xf32> to vector<2x128xf32>
    %781 = arith.addf %778, %780 : vector<2x128xf32>
    %c0_238 = arith.constant 0 : index
    %c0_239 = arith.constant 0 : index
    %782 = vector.load %arg16[%c0_238, %c0_239] : memref<128x3xf32, #tpu.memory_space<vmem>>, vector<128x3xf32>
    %cst_240 = arith.constant dense<0.000000e+00> : vector<2x3xf32>
    %783 = tpu.matmul %781, %782, %cst_240 {dimension_numbers = #tpu.dot_dimension_numbers<[1], [0], [0], [1], [0, 0, 1, 1], [], []>} : vector<2x128xf32>, vector<128x3xf32>, vector<2x3xf32> -> vector<2x3xf32>
    %c0_241 = arith.constant 0 : index
    %c0_242 = arith.constant 0 : index
    %784 = vector.load %arg17[%c0_241, %c0_242] : memref<1x3xf32, #tpu.memory_space<vmem>>, vector<1x3xf32>
    %785 = vector.broadcast %784 : vector<1x3xf32> to vector<2x3xf32>
    %786 = arith.addf %783, %785 : vector<2x3xf32>
    %cst_243 = arith.constant dense<0xFF800000> : vector<2xf32>
    %787 = vector.multi_reduction <maximumf>, %786, %cst_243 [1] : vector<2x3xf32> to vector<2xf32>
    %788 = vector.shape_cast %787 : vector<2xf32> to vector<2x1xf32>
    %789 = vector.broadcast %788 : vector<2x1xf32> to vector<2x3xf32>
    %790 = arith.subf %786, %789 : vector<2x3xf32>
    %791 = math.exp %790 : vector<2x3xf32>
    %cst_244 = arith.constant dense<0.000000e+00> : vector<2xf32>
    %792 = vector.multi_reduction <add>, %791, %cst_244 [1] : vector<2x3xf32> to vector<2xf32>
    %793 = vector.shape_cast %792 : vector<2xf32> to vector<2x1xf32>
    %794 = math.log %793 : vector<2x1xf32>
    %795 = arith.addf %794, %788 : vector<2x1xf32>
    %796 = vector.broadcast %795 : vector<2x1xf32> to vector<2x3xf32>
    %797 = arith.subf %786, %796 : vector<2x3xf32>
    %c0_245 = arith.constant 0 : index
    %c0_246 = arith.constant 0 : index
    %798 = vector.load %arg18[%c0_245, %c0_246] : memref<256x64xf32, #tpu.memory_space<vmem>>, vector<256x64xf32>
    %cst_247 = arith.constant dense<0.000000e+00> : vector<2x64xf32>
    %799 = tpu.matmul %746, %798, %cst_247 {dimension_numbers = #tpu.dot_dimension_numbers<[1], [0], [0], [1], [0, 0, 1, 1], [], []>} : vector<2x256xf32>, vector<256x64xf32>, vector<2x64xf32> -> vector<2x64xf32>
    %c0_248 = arith.constant 0 : index
    %c0_249 = arith.constant 0 : index
    %800 = vector.load %arg19[%c0_248, %c0_249] : memref<1x64xf32, #tpu.memory_space<vmem>>, vector<1x64xf32>
    %801 = vector.broadcast %800 : vector<1x64xf32> to vector<2x64xf32>
    %802 = arith.addf %799, %801 : vector<2x64xf32>
    %cst_250 = arith.constant 0.000000e+00 : f32
    %803 = vector.broadcast %cst_250 : f32 to vector<2x64xf32>
    %804 = arith.maximumf %802, %803 : vector<2x64xf32>
    %c0_251 = arith.constant 0 : index
    %c0_252 = arith.constant 0 : index
    %805 = vector.load %arg20[%c0_251, %c0_252] : memref<64x2xf32, #tpu.memory_space<vmem>>, vector<64x2xf32>
    %cst_253 = arith.constant dense<0.000000e+00> : vector<2x2xf32>
    %806 = tpu.matmul %804, %805, %cst_253 {dimension_numbers = #tpu.dot_dimension_numbers<[1], [0], [0], [1], [0, 0, 1, 1], [], []>} : vector<2x64xf32>, vector<64x2xf32>, vector<2x2xf32> -> vector<2x2xf32>
    %c0_254 = arith.constant 0 : index
    %c0_255 = arith.constant 0 : index
    %807 = vector.load %arg21[%c0_254, %c0_255] : memref<1x2xf32, #tpu.memory_space<vmem>>, vector<1x2xf32>
    %808 = vector.broadcast %807 : vector<1x2xf32> to vector<2x2xf32>
    %809 = arith.addf %806, %808 : vector<2x2xf32>
    %810 = tpu.concatenate %797, %809 in 1 : vector<2x3xf32>, vector<2x2xf32> -> vector<2x5xf32>
    %c0_256 = arith.constant 0 : index
    %c0_257 = arith.constant 0 : index
    %811 = vector.load %arg22[%c0_256, %c0_257] : memref<2x5xf32, #tpu.memory_space<vmem>>, vector<2x5xf32>
    tpu.vector_store %arg22[%c0_256, %c0_257], %810 {strides = array<i32>} : memref<2x5xf32, #tpu.memory_space<vmem>>, vector<2x5xf32>,
    return
  }
}

</mosaic_0001>

<bundles_post_ra>
// kernel: enhanced_sol_forward.1
= control target key start
LH: loop header
LB: loop body
LE: loop exit
PB: predicated region body
PF: predicated region fallthrough
CT: control target
= control target key end

     0   :  { %s11602_s0 = inlined_call_operand.vmem [shape: f32[2,8,32], index: 0, kind: input, shape index: {}]   ;;  %s11603_s1 = inlined_call_operand.hbm [shape: f32[32,1024], index: 1, kind: input, shape index: {}]   ;;  %s11604_s2 = inlined_call_operand.vmem [shape: f32[128,512], index: 2, kind: input, shape index: {}]   ;;  %s11605_s3 = inlined_call_operand.hbm [shape: f32[128,512], index: 3, kind: input, shape index: {}]   ;;  %s11606_s4 = inlined_call_operand.vmem [shape: f32[1,512], index: 4, kind: input, shape index: {}]   ;;  %s11607_s5 = inlined_call_operand.vmem [shape: f32[1,512], index: 5, kind: input, shape index: {}]   ;;  %s11608_s6 = inlined_call_operand.hbm [shape: f32[256,256], index: 6, kind: input, shape index: {}]   ;;  %s11609_s7 = inlined_call_operand.vmem [shape: f32[1,256], index: 7, kind: input, shape index: {}]   ;;  %s11610_s8 = inlined_call_operand.hbm [shape: f32[256,512], index: 8, kind: input, shape index: {}]   ;;  %s11611_s9 = inlined_call_operand.vmem [shape: f32[1,512], index: 9, kind: input, shape index: {}]   ;;  %s11612_s10 = inlined_call_operand.hbm [shape: f32[256,256], index: 10, kind: input, shape index: {}]   ;;  %s11613_s11 = inlined_call_operand.vmem [shape: f32[1,256], index: 11, kind: input, shape index: {}]   ;;  %s11614_s12 = inlined_call_operand.hbm [shape: f32[256,128], index: 12, kind: input, shape index: {}]   ;;  %s11615_s13 = inlined_call_operand.vmem [shape: f32[1,128], index: 13, kind: input, shape index: {}]   ;;  %s11616_s14 = inlined_call_operand.vmem [shape: f32[1,128], index: 14, kind: input, shape index: {}]   ;;  %s11617_s15 = inlined_call_operand.vmem [shape: f32[1,128], index: 15, kind: input, shape index: {}]   ;;  %s11618_s16 = inlined_call_operand.vmem [shape: f32[128,3], index: 16, kind: input, shape index: {}]   ;;  %s11619_s17 = inlined_call_operand.vmem [shape: f32[1,3], index: 17, kind: input, shape index: {}]   ;;  %s11620_s18 = inlined_call_operand.vmem [shape: f32[256,64], index: 18, kind: input, shape index: {}]   ;;  %s11621_s19 = inlined_call_operand.vmem [shape: f32[1,64], index: 19, kind: input, shape index: {}]   ;;  %s11622_s20 = inlined_call_operand.vmem [shape: f32[64,2], index: 20, kind: input, shape index: {}]   ;;  %s11623_s21 = inlined_call_operand.vmem [shape: f32[1,2], index: 21, kind: input, shape index: {}]   ;;  %s11624_s22 = inlined_call_operand.hbm [shape: f32[2,5], index: 22, kind: output, shape index: {}]  }
   0x1   :  { %11918 = sst [smem:[#allocation99_spill]] %s11602_s0 }
   0x2   :  { %11919 = sst [smem:[#allocation100_spill]] %s11603_s1 }
   0x3   :  { %11920 = sst [smem:[#allocation101_spill]] %s11604_s2 }
   0x4   :  { %11921 = sst [smem:[#allocation102_spill]] %s11605_s3 }
   0x5   :  { %11922 = sst [smem:[#allocation103_spill]] %s11606_s4 }
   0x6   :  { %11923 = sst [smem:[#allocation104_spill]] %s11607_s5 }
   0x7   :  { %11924 = sst [smem:[#allocation105_spill]] %s11608_s6 }
   0x8   :  { %27 = vsyncpa [#allocation6], 0 }
   0x9   :  { %28 = vsyncpa [#allocation9], 0 }
   0xa   :  { %29 = vsyncpa [#allocation12], 0 }
   0xb   :  { %30 = vsyncpa [#allocation15], 0 }
   0xc   :  { %31 = vsyncpa [#allocation7], 0  ;;  %s7942_s3 = smov [#allocation8]  }
   0xd   :  { %s53_s28 = sshll.u32 %s7942_s3, 4  ;;  %s54_s28 = int_to_ptr.vmem [resolvable:$true] %s53_s28 }
   0xe   :  { %s7800_s29 = scalar_lea.vmem %s54_s28, 8192  ;;  %p7805_p1 = scmp.lt.s32.totalorder %s54_s28, %s54_s28 }
   0xf   :  { %p7801_p0 = scmp.ne.s32.totalorder %s54_s28, %s7800_s29  ;;  %p7806_p2 = scmp.lt.s32.totalorder %s7800_s29, %s7800_s29 }
  0x11   :  { %p7807_p3 = por %p7806_p2, %p7805_p1 }
  0x13   :  { %p7808_p4 = pnand %p7807_p3, %p7801_p0 }
  0x15   :  { %7811 = shalt.err (!%p7808_p4)
}
  0x16   :  { %s7943_s30 = smov 512   ;;  %s7944_s4 = smov 32  }
  0x17   :  { %s11925_s1 = sld [smem:[#allocation102_spill]]  ;;  %s7945_s5 = smov [#allocation11]  }
  0x18   :  { %s83_s24 = sshll.u32 %s7945_s5, 4  ;;  %s7946_s6 = smov [#allocation5]   ;;  %s84_s24 = int_to_ptr.vmem [resolvable:$true] %s83_s24 }
  0x19   :  { %s39_s25 = sshll.u32 %s7946_s6, 4  ;;  %s7820_s26 = scalar_lea.vmem %s84_s24, 16384  ;;  %s40_s25 = int_to_ptr.vmem [resolvable:$true] %s39_s25 }
  0x1a   :  { %p7821_p5 = scmp.ne.s32.totalorder %s84_s24, %s7820_s26  ;;  %p7825_p6 = scmp.lt.s32.totalorder %s84_s24, %s84_s24 }
  0x1b   :  { %p7826_p7 = scmp.lt.s32.totalorder %s7820_s26, %s7820_s26 }
  0x1d   :  { %59 = dma.hbm_to_vmem [thread:$0]  %s11925_s1, 8192, %s54_s28, [#allocation9], %s7943_s30, %s7943_s30, %s7944_s4  }
  0x1e   :  { %p7827_p8 = por %p7826_p7, %p7825_p6 }
  0x20   :  { %p7828_p9 = pnand %p7827_p8, %p7821_p5 }
  0x22   :  { %7831 = shalt.err (!%p7828_p9)
}
  0x23   :  { %89 = dma.hbm_to_vmem [thread:$0]  %s11610_s8, 16384, %s84_s24, [#allocation12], %s7943_s30, %s7943_s30, %s7944_s4  }
  0x24   :  { %s7840_s3 = scalar_lea.vmem %s40_s25, 4096  ;;  %p7845_p11 = scmp.lt.s32.totalorder %s40_s25, %s40_s25 }
  0x25   :  { %p7841_p10 = scmp.ne.s32.totalorder %s40_s25, %s7840_s3  ;;  %p7846_p12 = scmp.lt.s32.totalorder %s7840_s3, %s7840_s3 }
  0x27   :  { %p7847_p13 = por %p7846_p12, %p7845_p11 }
  0x29   :  { %p7848_p0 = pnand %p7847_p13, %p7841_p10 }
  0x2b   :  { %7851 = shalt.err (!%p7848_p0)
}
  0x2c   :  { %s7947_s28 = smov 1024   ;;  %s7948_s29 = smov 64  }
  0x2d   :  { %s11926_s1 = sld [smem:[#allocation100_spill]]  ;;  %s7949_s5 = smov [#allocation10]  }
  0x2e   :  { %s69_s6 = sshll.u32 %s7949_s5, 4  ;;  %s70_s6 = int_to_ptr.vmem [resolvable:$true] %s69_s6 }
  0x2f   :  { %s7860_s26 = scalar_lea.vmem %s70_s6, 8192  ;;  %p7865_p2 = scmp.lt.s32.totalorder %s70_s6, %s70_s6 }
  0x30   :  { %p7861_p1 = scmp.ne.s32.totalorder %s70_s6, %s7860_s26  ;;  %p7866_p3 = scmp.lt.s32.totalorder %s7860_s26, %s7860_s26 }
  0x32   :  { %p7867_p4 = por %p7866_p3, %p7865_p2 }
  0x33   :  { %45 = dma.hbm_to_vmem [thread:$0]  %s11926_s1, 4096, %s40_s25, [#allocation6], %s7947_s28, %s7947_s28, %s7948_s29  }
  0x34   :  { %p7868_p5 = pnand %p7867_p4, %p7861_p1 }
  0x36   :  { %7871 = shalt.err (!%p7868_p5)
}
  0x37   :  { %s7950_s8 = smov 256   ;;  %s7951_s30 = smov 16  }
  0x38   :  { %s11927_s2 = sld [smem:[#allocation105_spill]]  ;;  %s7952_s27 = smov [#allocation13]  }
  0x39   :  { %s97_s3 = sshll.u32 %s7952_s27, 4  ;;  %s7953_s0 = smov [#allocation14]   ;;  %s98_s3 = int_to_ptr.vmem [resolvable:$true] %s97_s3 }
  0x3a   :  { %s111_s25 = sshll.u32 %s7953_s0, 4  ;;  %s7880_s28 = scalar_lea.vmem %s98_s3, 8192  ;;  %s112_s25 = int_to_ptr.vmem [resolvable:$true] %s111_s25 }
  0x3b   :  { %p7881_p6 = scmp.ne.s32.totalorder %s98_s3, %s7880_s28  ;;  %p7885_p7 = scmp.lt.s32.totalorder %s98_s3, %s98_s3 }
  0x3c   :  { %p7886_p8 = scmp.lt.s32.totalorder %s7880_s28, %s7880_s28 }
  0x3e   :  { %75 = dma.hbm_to_vmem [thread:$0]  %s11927_s2, 8192, %s70_s6, [#allocation9], %s7950_s8, %s7950_s8, %s7951_s30  }
  0x3f   :  { %p7887_p9 = por %p7886_p8, %p7885_p7 }
  0x41   :  { %p7888_p10 = pnand %p7887_p9, %p7881_p6 }
  0x43   :  { %7891 = shalt.err (!%p7888_p10)
}
  0x44   :  { %103 = dma.hbm_to_vmem [thread:$0]  %s11612_s10, 8192, %s98_s3, [#allocation12], %s7950_s8, %s7950_s8, %s7951_s30  }
  0x45   :  { %s7900_s5 = scalar_lea.vmem %s112_s25, 4096  ;;  %p7905_p12 = scmp.lt.s32.totalorder %s112_s25, %s112_s25 }
  0x46   :  { %p7901_p11 = scmp.ne.s32.totalorder %s112_s25, %s7900_s5  ;;  %p7906_p13 = scmp.lt.s32.totalorder %s7900_s5, %s7900_s5 }
  0x48   :  { %p7907_p0 = por %p7906_p13, %p7905_p12 }
  0x4a   :  { %p7908_p1 = pnand %p7907_p0, %p7901_p11 }
  0x4c   :  { %7911 = shalt.err (!%p7908_p1)
}
  0x4d   :  { %s7954_s6 = smov 128   ;;  %s7955_s26 = smov 8  }
  0x4e   :  { %117 = dma.hbm_to_vmem [thread:$0]  %s11614_s12, 4096, %s112_s25, [#allocation15], %s7954_s6, %s7954_s6, %s7955_s26  }
  0x4f   :  { %7932 = dma.done.wait [#allocation6], 4096  }
  0x50   :  { %7933 = vsyncadd [#allocation6], 4294963200 }
  0x51   :  { %7934 = dma.done.wait [#allocation9], 16384  }
  0x52   :  { %7935 = vsyncadd [#allocation9], 4294950912 }
  0x53   :  { %7936 = dma.done.wait [#allocation12], 24576  }
  0x54   :  { %7937 = vsyncadd [#allocation12], 4294942720 }
  0x55   :  { %7938 = dma.done.wait [#allocation15], 4096  }
  0x56   :  { %7939 = vsyncadd [#allocation15], 4294963200  ;;  %v11627_v0 = vmov 0.0   ;;  %v181_v1 = vld [vmem:[#allocation5 + $0xc8] sm:$0xff]  ;;  %v180_v2 = vld [vmem:[#allocation5 + $0xc0] sm:$0xff]  ;;  %s11928_s8 = sld [smem:[#allocation99_spill]] }
  0x57   :  { %259 = vmatprep.mubr.f32.mxu1 %v11627_v0  ;;  %413 = vmatprep.mubr.f32.mxu0 %v11627_v0  ;;  %v173_v3 = vld [vmem:[#allocation5 + $0x88] sm:$0xff]  ;;  %v172_v4 = vld [vmem:[#allocation5 + $0x80] sm:$0xff]  ;;  %vm188_vm0 = vcmask 261120   ;;  %v183_v11 = vld [vmem:[#allocation5 + $0xd8] sm:$0xff]  ;;  %s11929_s0 = sld [smem:[#allocation101_spill]]  ;;  %vm4973_vm1 = vcmask 1040384  }
  0x58   :  { %219 = vmatprep.subr.mxu1 %v181_v1  ;;  %v165_v5 = vld [vmem:[#allocation5 + $0x48] sm:$0xff]  ;;  %v164_v6 = vld [vmem:[#allocation5 + $0x40] sm:$0xff]  ;;  %v182_v14 = vld [vmem:[#allocation5 + $0xd0] sm:$0xff]  ;;  %s12012_s25 = sld [smem:[#allocation103_spill]]  ;;  %vm5462_vm2 = vcmask 523264   ;;  %vm5483_vm3 = vcmask 1041409  }
  0x59   :  { %220 = vmatpush1.msra.mxu1 %v180_v2  ;;  %v157_v7 = vld [vmem:[#allocation5 + $0x8] sm:$0xff]  ;;  %v156_v8 = vld [vmem:[#allocation5] sm:$0xff]  ;;  %v175_v15 = vld [vmem:[#allocation5 + $0x98] sm:$0xff]  ;;  %s12016_s1 = sld [smem:[#allocation104_spill]]  ;;  %vm5486_vm4 = vcmask 58368   ;;  %vm5665_vm5 = vcmask 1048064  }
  0x5a   :  { %221 = vmatprep.subr.mxu1 %v173_v3  ;;  %v185_v10 = vld [vmem:[#allocation5 + $0xe8] sm:$0xff]  ;;  %v184_v12 = vld [vmem:[#allocation5 + $0xe0] sm:$0xff]  ;;  %v174_v17 = vld [vmem:[#allocation5 + $0x90] sm:$0xff]  ;;  %vm6208_vm6 = vcmask 1041408   ;;  %vm7959_vm7 = vmmov 0   ;;  %vm6332_vm8 = vcmask 17408  }
  0x5b   :  { %222 = vmatpush1.msra.mxu1 %v172_v4  ;;  %373 = vmatprep.subr.mxu0 %v185_v10  ;;  %v177_v13 = vld [vmem:[#allocation5 + $0xa8] sm:$0xff]  ;;  %v176_v16 = vld [vmem:[#allocation5 + $0xa0] sm:$0xff]  ;;  %v167_v20 = vld [vmem:[#allocation5 + $0x58] sm:$0xff]  ;;  %s7960_s2 = smov 3   ;;  %vm6548_vm9 = vcmask 23552   ;;  %vm6550_vm10 = vcmask 33792  }
  0x5c   :  { %223 = vmatprep.subr.mxu1 %v165_v5  ;;  %v8101_v9 = vld [vmem:[%s11928_s8] sm:$0xff]  ;;  %374 = vmatpush1.msra.mxu0 %v184_v12  ;;  %v169_v18 = vld [vmem:[#allocation5 + $0x68] sm:$0xff]  ;;  %v166_v21 = vld [vmem:[#allocation5 + $0x50] sm:$0xff] }
  0x5d   :  { %224 = vmatpush1.msra.mxu1 %v164_v6  ;;  %375 = vmatprep.subr.mxu0 %v177_v13  ;;  %v8109_v19 = vld [vmem:[%s11928_s8 + $0x8] sm:$0xff]  ;;  %v159_v22 = vld [vmem:[#allocation5 + $0x18] sm:$0xff]  ;;  %v168_v23 = vld [vmem:[#allocation5 + $0x60] sm:$0xff] }
  0x5e   :  { %225 = vmatprep.subr.mxu1 %v157_v7  ;;  %376 = vmatpush1.msra.mxu0 %v176_v16  ;;  %v158_v24 = vld [vmem:[#allocation5 + $0x10] sm:$0xff]  ;;  %v161_v25 = vld [vmem:[#allocation5 + $0x28] sm:$0xff]  ;;  %v187_v26 = vld [vmem:[#allocation5 + $0xf8] sm:$0xff] }
  0x5f   :  { %226 = vmatpush1.msra.mxu1 %v156_v8  ;;  %377 = vmatprep.subr.mxu0 %v169_v18  ;;  %v186_v27 = vld [vmem:[#allocation5 + $0xf0] sm:$0xff]  ;;  %v179_v28 = vld [vmem:[#allocation5 + $0xb8] sm:$0xff]  ;;  %v160_v29 = vld [vmem:[#allocation5 + $0x20] sm:$0xff] }
  0x60   :  { %6570 = vmatmul.mubr.msk.f32.vlgmr.msra.gmra.mxu1 %vm188_vm0, %v8101_v9  ;;  %296 = vmatprep.subr.mxu1 %v183_v11  ;;  %v178_v30 = vld [vmem:[#allocation5 + $0xb0] sm:$0xff]  ;;  %v8119_v31 = vld [vmem:[%s11929_s0 + $0x1e8] sm:$0xff]  ;;  %v171_v32 = vld [vmem:[#allocation5 + $0x78] sm:$0xff] }
  0x61   :  { %297 = vmatpush1.msra.mxu1 %v182_v14  ;;  %265 = vmatprep.mubr.f32.mxu1 %v11627_v0  ;;  %v170_v33 = vld [vmem:[#allocation5 + $0x70] sm:$0xff]  ;;  %v163_v34 = vld [vmem:[#allocation5 + $0x38] sm:$0xff]  ;;  %v8128_v36 = vld [vmem:[%s11929_s0 + $0x1e0] sm:$0xff] }
  0x62   :  { %298 = vmatprep.subr.mxu1 %v175_v15  ;;  %378 = vmatpush1.msra.mxu0 %v168_v23  ;;  %v162_v35 = vld [vmem:[#allocation5 + $0x30] sm:$0xff]  ;;  %v8135_v37 = vld [vmem:[%s11929_s0 + $0x1c8] sm:$0xff]  ;;  %v8141_v38 = vld [vmem:[%s11929_s0 + $0x1f8] sm:$0xff] }
  0x63   :  { %299 = vmatpush1.msra.mxu1 %v174_v17  ;;  %379 = vmatprep.subr.mxu0 %v161_v25  ;;  %v8146_v39 = vld [vmem:[%s11929_s0 + $0x1c0] sm:$0xff]  ;;  %v8152_v40 = vld [vmem:[%s11929_s0 + $0x1f0] sm:$0xff]  ;;  %v8157_v41 = vld [vmem:[%s11929_s0 + $0x1a8] sm:$0xff] }
  0x64   :  { %6571 = vmatmul.mubr.msk.f32.gmra.mxu1 %vm188_vm0, %v8109_v19  ;;  %300 = vmatprep.subr.mxu1 %v167_v20  ;;  %v8165_v42 = vld [vmem:[%s11929_s0 + $0x1d8] sm:$0xff]  ;;  %v8170_v43 = vld [vmem:[%s11929_s0 + $0x1a0] sm:$0xff]  ;;  %v8177_v44 = vld [vmem:[%s11929_s0 + $0x1d0] sm:$0xff] }
  0x65   :  { %301 = vmatpush1.msra.mxu1 %v166_v21  ;;  %336 = vmatprep.mubr.f32.mxu1 %v11627_v0  ;;  %v8182_v45 = vld [vmem:[%s11929_s0 + $0x188] sm:$0xff]  ;;  %v8189_v46 = vld [vmem:[%s11929_s0 + $0x1b8] sm:$0xff]  ;;  %v8194_v47 = vld [vmem:[%s11929_s0 + $0x180] sm:$0xff] }
  0x66   :  { %302 = vmatprep.subr.mxu1 %v159_v22  ;;  %380 = vmatpush1.msra.mxu0 %v160_v29  ;;  %v8201_v48 = vld [vmem:[%s11929_s0 + $0x1b0] sm:$0xff]  ;;  %v8206_v49 = vld [vmem:[%s11929_s0 + $0x168] sm:$0xff]  ;;  %v8213_v50 = vld [vmem:[%s11929_s0 + $0x198] sm:$0xff] }
  0x67   :  { %303 = vmatpush1.msra.mxu1 %v158_v24  ;;  %710 = vmatprep.subr.mxu0 %v8119_v31  ;;  %v8218_v51 = vld [vmem:[%s11929_s0 + $0x160] sm:$0xff]  ;;  %v8225_v52 = vld [vmem:[%s11929_s0 + $0x190] sm:$0xff]  ;;  %v8230_v53 = vld [vmem:[%s11929_s0 + $0x148] sm:$0xff] }
  0x68   :  { %6572 = vmatmul.mubr.msk.f32.vlgmr.msra.gmra.mxu1 %vm188_vm0, %v8101_v9  ;;  %450 = vmatprep.subr.mxu1 %v187_v26  ;;  %v8237_v54 = vld [vmem:[%s11929_s0 + $0x178] sm:$0xff]  ;;  %v8242_v55 = vld [vmem:[%s11929_s0 + $0x140] sm:$0xff]  ;;  %v8249_v56 = vld [vmem:[%s11929_s0 + $0x170] sm:$0xff] }
  0x69   :  { %451 = vmatpush1.msra.mxu1 %v186_v27  ;;  %342 = vmatprep.mubr.f32.mxu1 %v11627_v0  ;;  %v8254_v57 = vld [vmem:[%s11929_s0 + $0x128] sm:$0xff]  ;;  %v8261_v58 = vld [vmem:[%s11929_s0 + $0x158] sm:$0xff]  ;;  %v8266_v59 = vld [vmem:[%s11929_s0 + $0x120] sm:$0xff] }
  0x6a   :  { %452 = vmatprep.subr.mxu1 %v179_v28  ;;  %6574 = vmatmul.mubr.msk.f32.vlgmr.msra.gmra.mxu0 %vm188_vm0, %v8101_v9  ;;  %v8273_v60 = vld [vmem:[%s11929_s0 + $0x150] sm:$0xff]  ;;  %v8278_v61 = vld [vmem:[%s11929_s0 + $0x108] sm:$0xff]  ;;  %v8285_v62 = vld [vmem:[%s11929_s0 + $0x138] sm:$0xff] }
  0x6b   :  { %453 = vmatpush1.msra.mxu1 %v178_v30  ;;  %711 = vmatpush1.msra.mxu0 %v8128_v36  ;;  %v8290_v63 = vld [vmem:[%s11929_s0 + $0x100] sm:$0xff]  ;;  %v8297_v1 = vld [vmem:[%s11929_s0 + $0x130] sm:$0xff]  ;;  %v8302_v2 = vld [vmem:[%s11929_s0 + $0xe8] sm:$0xff] }
  0x6c   :  { %6573 = vmatmul.mubr.msk.f32.gmra.mxu1 %vm188_vm0, %v8109_v19  ;;  %454 = vmatprep.subr.mxu1 %v171_v32  ;;  %v8309_v3 = vld [vmem:[%s11929_s0 + $0x118] sm:$0xff]  ;;  %v8314_v4 = vld [vmem:[%s11929_s0 + $0xe0] sm:$0xff]  ;;  %v8321_v5 = vld [vmem:[%s11929_s0 + $0x110] sm:$0xff] }
  0x6d   :  { %455 = vmatpush1.msra.mxu1 %v170_v33  ;;  %490 = vmatprep.mubr.f32.mxu1 %v11627_v0  ;;  %v8326_v6 = vld [vmem:[%s11929_s0 + $0xc8] sm:$0xff]  ;;  %v8333_v7 = vld [vmem:[%s11929_s0 + $0xf8] sm:$0xff]  ;;  %v8338_v8 = vld [vmem:[%s11929_s0 + $0xc0] sm:$0xff] }
  0x6e   :  { %456 = vmatprep.subr.mxu1 %v163_v34  ;;  %712 = vmatprep.subr.mxu0 %v8135_v37  ;;  %v8350_v10 = vld [vmem:[%s11929_s0 + $0xa8] sm:$0xff]  ;;  %v8357_v11 = vld [vmem:[%s11929_s0 + $0xd8] sm:$0xff]  ;;  %v8362_v12 = vld [vmem:[%s11929_s0 + $0xa0] sm:$0xff] }
  0x6f   :  { %457 = vmatpush1.msra.mxu1 %v162_v35  ;;  %713 = vmatpush1.msra.mxu0 %v8146_v39  ;;  %v8369_v13 = vld [vmem:[%s11929_s0 + $0xd0] sm:$0xff]  ;;  %v8374_v14 = vld [vmem:[%s11929_s0 + $0x88] sm:$0xff]  ;;  %v8381_v15 = vld [vmem:[%s11929_s0 + $0xb8] sm:$0xff] }
  0x70   :  { %6576 = vmatmul.mubr.msk.f32.vlgmr.msra.gmra.mxu1 %vm188_vm0, %v8101_v9  ;;  %781 = vmatprep.subr.mxu1 %v8141_v38  ;;  %v8345_v9 = vld [vmem:[%s11929_s0 + $0xf0] sm:$0xff]  ;;  %v8386_v16 = vld [vmem:[%s11929_s0 + $0x80] sm:$0xff]  ;;  %v8398_v18 = vld [vmem:[%s11929_s0 + $0x68] sm:$0xff] }
  0x71   :  { %782 = vmatpush1.msra.mxu1 %v8152_v40  ;;  %714 = vmatprep.subr.mxu0 %v8157_v41  ;;  %v8393_v17 = vld [vmem:[%s11929_s0 + $0xb0] sm:$0xff]  ;;  %v8405_v20 = vld [vmem:[%s11929_s0 + $0x98] sm:$0xff]  ;;  %v8410_v21 = vld [vmem:[%s11929_s0 + $0x60] sm:$0xff] }
  0x72   :  { %783 = vmatprep.subr.mxu1 %v8165_v42  ;;  %715 = vmatpush1.msra.mxu0 %v8170_v43  ;;  %v8417_v22 = vld [vmem:[%s11929_s0 + $0x90] sm:$0xff]  ;;  %v8422_v23 = vld [vmem:[%s11929_s0 + $0x48] sm:$0xff]  ;;  %v8429_v24 = vld [vmem:[%s11929_s0 + $0x78] sm:$0xff] }
  0x73   :  { %784 = vmatpush1.msra.mxu1 %v8177_v44  ;;  %716 = vmatprep.subr.mxu0 %v8182_v45  ;;  %11930 = vst [vmem:[#allocation22_spill] sm:$0xff] %v8422_v23  ;;  %v8434_v25 = vld [vmem:[%s11929_s0 + $0x40] sm:$0xff]  ;;  %v8441_v26 = vld [vmem:[%s11929_s0 + $0x70] sm:$0xff]  ;;  %v8448_v27 = vld [vmem:[%s11929_s0 + $0x28] sm:$0xff] }
  0x74   :  { %785 = vmatprep.subr.mxu1 %v8189_v46  ;;  %717 = vmatpush1.msra.mxu0 %v8194_v47  ;;  %11931 = vst [vmem:[#allocation23_spill] sm:$0xff] %v8434_v25  ;;  %11932 = vst [vmem:[#allocation24_spill] sm:$0xff] %v8448_v27  ;;  %v8455_v28 = vld [vmem:[%s11929_s0 + $0x58] sm:$0xff]  ;;  %v8462_v29 = vld [vmem:[%s11929_s0 + $0x20] sm:$0xff] }
  0x75   :  { %786 = vmatpush1.msra.mxu1 %v8201_v48  ;;  %718 = vmatprep.subr.mxu0 %v8206_v49  ;;  %11933 = vst [vmem:[#allocation25_spill] sm:$0xff] %v8455_v28  ;;  %11934 = vst [vmem:[#allocation26_spill] sm:$0xff] %v8462_v29  ;;  %v8469_v30 = vld [vmem:[%s11929_s0 + $0x50] sm:$0xff]  ;;  %v8474_v32 = vld [vmem:[%s11929_s0 + $0x8] sm:$0xff] }
  0x76   :  { %787 = vmatprep.subr.mxu1 %v8213_v50  ;;  %719 = vmatpush1.msra.mxu0 %v8218_v51  ;;  %11935 = vst [vmem:[#allocation27_spill] sm:$0xff] %v8469_v30  ;;  %11936 = vst [vmem:[#allocation28_spill] sm:$0xff] %v8474_v32  ;;  %v8482_v33 = vld [vmem:[%s11929_s0 + $0x38] sm:$0xff]  ;;  %v8487_v34 = vld [vmem:[%s11929_s0] sm:$0xff] }
  0x77   :  { %788 = vmatpush1.msra.mxu1 %v8225_v52  ;;  %720 = vmatprep.subr.mxu0 %v8230_v53  ;;  %11937 = vst [vmem:[#allocation29_spill] sm:$0xff] %v8482_v33  ;;  %11938 = vst [vmem:[#allocation30_spill] sm:$0xff] %v8487_v34  ;;  %v8495_v35 = vld [vmem:[%s11929_s0 + $0x30] sm:$0xff] }
  0x78   :  { %789 = vmatprep.subr.mxu1 %v8237_v54  ;;  %721 = vmatpush1.msra.mxu0 %v8242_v55  ;;  %11939 = vst [vmem:[#allocation31_spill] sm:$0xff] %v8495_v35 }
  0x79   :  { %790 = vmatpush1.msra.mxu1 %v8249_v56  ;;  %722 = vmatprep.subr.mxu0 %v8254_v57 }
  0x7a   :  { %791 = vmatprep.subr.mxu1 %v8261_v58  ;;  %723 = vmatpush1.msra.mxu0 %v8266_v59 }
  0x7b   :  { %792 = vmatpush1.msra.mxu1 %v8273_v60  ;;  %724 = vmatprep.subr.mxu0 %v8278_v61 }
  0x7c   :  { %793 = vmatprep.subr.mxu1 %v8285_v62  ;;  %725 = vmatpush1.msra.mxu0 %v8290_v63 }
  0x7d   :  { %794 = vmatpush1.msra.mxu1 %v8297_v1  ;;  %726 = vmatprep.subr.mxu0 %v8302_v2 }
  0x7e   :  { %795 = vmatprep.subr.mxu1 %v8309_v3  ;;  %727 = vmatpush1.msra.mxu0 %v8314_v4 }
  0x7f   :  { %796 = vmatpush1.msra.mxu1 %v8321_v5  ;;  %728 = vmatprep.subr.mxu0 %v8326_v6 }
  0x80   :  { %797 = vmatprep.subr.mxu1 %v8333_v7  ;;  %729 = vmatpush1.msra.mxu0 %v8338_v8 }
  0x81   :  { %798 = vmatpush1.msra.mxu1 %v8345_v9  ;;  %730 = vmatprep.subr.mxu0 %v8350_v10 }
  0x82   :  { %799 = vmatprep.subr.mxu1 %v8357_v11  ;;  %731 = vmatpush1.msra.mxu0 %v8362_v12 }
  0x83   :  { %800 = vmatpush1.msra.mxu1 %v8369_v13  ;;  %732 = vmatprep.subr.mxu0 %v8374_v14 }
  0x84   :  { %801 = vmatprep.subr.mxu1 %v8381_v15  ;;  %733 = vmatpush1.msra.mxu0 %v8386_v16 }
  0x85   :  { %802 = vmatpush1.msra.mxu1 %v8393_v17  ;;  %734 = vmatprep.subr.mxu0 %v8398_v18 }
  0x86   :  { %803 = vmatprep.subr.mxu1 %v8405_v20  ;;  %735 = vmatpush1.msra.mxu0 %v8410_v21 }
  0x87   :  { %804 = vmatpush1.msra.mxu1 %v8417_v22  ;;  %736 = vmatprep.subr.mxu0 %v8422_v23  ;;  %v8549_v23 = vld [vmem:[#allocation8 + $0x180] sm:$0xff] }
  0x88   :  { %805 = vmatprep.subr.mxu1 %v8429_v24  ;;  %737 = vmatpush1.msra.mxu0 %v8434_v25  ;;  %v8531_v25 = vld [vmem:[#allocation8 + $0x1a8] sm:$0xff]  ;;  %11955 = vst [vmem:[#allocation46_spill] sm:$0xff] %v8549_v23 }
  0x89   :  { %806 = vmatpush1.msra.mxu1 %v8441_v26  ;;  %419 = vmatprep.mubr.f32.mxu0 %v11627_v0  ;;  %11949 = vst [vmem:[#allocation40_spill] sm:$0xff] %v8531_v25 }
  0x8a   :  { %496 = vmatprep.mubr.f32.mxu1 %v11627_v0  ;;  %738 = vmatprep.subr.mxu0 %v8448_v27  ;;  %v8502_v0 = vld [vmem:[%s11929_s0 + $0x18] sm:$0xff]  ;;  %v8504_v27 = vld [vmem:[#allocation8 + $0x1e8] sm:$0xff] }
  0x8b   :  { %807 = vmatprep.subr.mxu1 %v8455_v28  ;;  %6575 = vmatmul.mubr.msk.f32.gmra.mxu0 %vm188_vm0, %v8109_v19  ;;  %11940 = vst [vmem:[#allocation32_spill] sm:$0xff] %v8502_v0  ;;  %11941 = vst [vmem:[#allocation33_spill] sm:$0xff] %v8504_v27  ;;  %v8543_v28 = vld [vmem:[#allocation8 + $0x188] sm:$0xff] }
  0x8c   :  { %6577 = vmatmul.mubr.msk.f32.gmra.mxu1 %vm188_vm0, %v8109_v19  ;;  %739 = vmatpush1.msra.mxu0 %v8462_v29  ;;  %v8511_v19 = vld [vmem:[%s11929_s0 + $0x10] sm:$0xff]  ;;  %v11943_v29 = vmov 0.0   ;;  %11953 = vst [vmem:[#allocation44_spill] sm:$0xff] %v8543_v28 }
  0x8d   :  { %808 = vmatpush1.msra.mxu1 %v8469_v30  ;;  %740 = vmatprep.subr.mxu0 %v8474_v32  ;;  %11942 = vst [vmem:[#allocation34_spill] sm:$0xff] %v8511_v19  ;;  %v8515_v32 = vld [vmem:[#allocation8 + $0x1e0] sm:$0xff]  ;;  %v8519_v30 = vld [vmem:[#allocation8 + $0x1c8] sm:$0xff] }
  0x8e   :  { %809 = vmatprep.subr.mxu1 %v8482_v33  ;;  %741 = vmatpush1.msra.mxu0 %v8487_v34  ;;  %11944 = vst [vmem:[#allocation35_spill] sm:$0xff] %v8515_v32  ;;  %11945 = vst [vmem:[#allocation36_spill] sm:$0xff] %v8519_v30  ;;  %v8523_v34 = vld [vmem:[#allocation8 + $0x1f8] sm:$0xff]  ;;  %v8525_v33 = vld [vmem:[#allocation8 + $0x1c0] sm:$0xff] }
  0x8f   :  { %810 = vmatpush1.msra.mxu1 %v8495_v35  ;;  %774 = vmatprep.mubr.f32.mxu0 %v11943_v29  ;;  %11946 = vst [vmem:[#allocation37_spill] sm:$0xff] %v8523_v34  ;;  %11947 = vst [vmem:[#allocation38_spill] sm:$0xff] %v8525_v33  ;;  %v8529_v35 = vld [vmem:[#allocation8 + $0x1f0] sm:$0xff] }
  0x90   :  { %811 = vmatprep.subr.mxu1 %v8502_v0  ;;  %896 = vmatprep.subr.mxu0 %v8504_v27  ;;  %11948 = vst [vmem:[#allocation39_spill] sm:$0xff] %v8529_v35  ;;  %v8535_v27 = vld [vmem:[#allocation8 + $0x1d8] sm:$0xff]  ;;  %v8537_v0 = vld [vmem:[#allocation8 + $0x1a0] sm:$0xff] }
  0x91   :  { %775 = vmatmul.mubr.f32.vlgmr.msra.gmra.mxu0 %v11943_v29  ;;  %812 = vmatpush1.msra.mxu1 %v8511_v19  ;;  %11950 = vst [vmem:[#allocation41_spill] sm:$0xff] %v8535_v27  ;;  %11951 = vst [vmem:[#allocation42_spill] sm:$0xff] %v8537_v0  ;;  %v8541_v19 = vld [vmem:[#allocation8 + $0x1d0] sm:$0xff] }
  0x92   :  { %845 = vmatprep.mubr.f32.mxu1 %v11943_v29  ;;  %897 = vmatpush1.msra.mxu0 %v8515_v32  ;;  %11952 = vst [vmem:[#allocation43_spill] sm:$0xff] %v8541_v19  ;;  %v8547_v32 = vld [vmem:[#allocation8 + $0x1b8] sm:$0xff] }
  0x93   :  { %846 = vmatmul.mubr.f32.vlgmr.msra.gmra.mxu1 %v11943_v29  ;;  %898 = vmatprep.subr.mxu0 %v8519_v30  ;;  %11954 = vst [vmem:[#allocation45_spill] sm:$0xff] %v8547_v32  ;;  %v8553_v30 = vld [vmem:[#allocation8 + $0x1b0] sm:$0xff] }
  0x94   :  { %967 = vmatprep.subr.mxu1 %v8523_v34  ;;  %899 = vmatpush1.msra.mxu0 %v8525_v33  ;;  %11956 = vst [vmem:[#allocation47_spill] sm:$0xff] %v8553_v30  ;;  %v8555_v34 = vld [vmem:[#allocation8 + $0x168] sm:$0xff]  ;;  %v8559_v33 = vld [vmem:[#allocation8 + $0x198] sm:$0xff] }
  0x95   :  { %968 = vmatpush1.msra.mxu1 %v8529_v35  ;;  %900 = vmatprep.subr.mxu0 %v8531_v25  ;;  %11957 = vst [vmem:[#allocation48_spill] sm:$0xff] %v8555_v34  ;;  %11958 = vst [vmem:[#allocation49_spill] sm:$0xff] %v8559_v33  ;;  %v8561_v35 = vld [vmem:[#allocation8 + $0x160] sm:$0xff]  ;;  %v8565_v25 = vld [vmem:[#allocation8 + $0x190] sm:$0xff] }
  0x96   :  { %969 = vmatprep.subr.mxu1 %v8535_v27  ;;  %901 = vmatpush1.msra.mxu0 %v8537_v0  ;;  %11959 = vst [vmem:[#allocation50_spill] sm:$0xff] %v8561_v35  ;;  %11960 = vst [vmem:[#allocation51_spill] sm:$0xff] %v8565_v25  ;;  %v8567_v27 = vld [vmem:[#allocation8 + $0x148] sm:$0xff]  ;;  %v8571_v0 = vld [vmem:[#allocation8 + $0x178] sm:$0xff] }
  0x97   :  { %970 = vmatpush1.msra.mxu1 %v8541_v19  ;;  %902 = vmatprep.subr.mxu0 %v8543_v28  ;;  %11961 = vst [vmem:[#allocation52_spill] sm:$0xff] %v8567_v27  ;;  %11962 = vst [vmem:[#allocation53_spill] sm:$0xff] %v8571_v0  ;;  %v8573_v19 = vld [vmem:[#allocation8 + $0x140] sm:$0xff]  ;;  %v8577_v28 = vld [vmem:[#allocation8 + $0x170] sm:$0xff] }
  0x98   :  { %971 = vmatprep.subr.mxu1 %v8547_v32  ;;  %903 = vmatpush1.msra.mxu0 %v8549_v23  ;;  %11963 = vst [vmem:[#allocation54_spill] sm:$0xff] %v8573_v19  ;;  %11964 = vst [vmem:[#allocation55_spill] sm:$0xff] %v8577_v28  ;;  %v8579_v32 = vld [vmem:[#allocation8 + $0x128] sm:$0xff]  ;;  %v8583_v23 = vld [vmem:[#allocation8 + $0x158] sm:$0xff] }
  0x99   :  { %972 = vmatpush1.msra.mxu1 %v8553_v30  ;;  %904 = vmatprep.subr.mxu0 %v8555_v34  ;;  %11965 = vst [vmem:[#allocation56_spill] sm:$0xff] %v8579_v32  ;;  %11966 = vst [vmem:[#allocation57_spill] sm:$0xff] %v8583_v23  ;;  %v8585_v30 = vld [vmem:[#allocation8 + $0x120] sm:$0xff]  ;;  %v8589_v34 = vld [vmem:[#allocation8 + $0x150] sm:$0xff] }
  0x9a   :  { %973 = vmatprep.subr.mxu1 %v8559_v33  ;;  %905 = vmatpush1.msra.mxu0 %v8561_v35  ;;  %11967 = vst [vmem:[#allocation58_spill] sm:$0xff] %v8585_v30  ;;  %11968 = vst [vmem:[#allocation59_spill] sm:$0xff] %v8589_v34  ;;  %v8591_v33 = vld [vmem:[#allocation8 + $0x108] sm:$0xff]  ;;  %v8595_v35 = vld [vmem:[#allocation8 + $0x138] sm:$0xff] }
  0x9b   :  { %974 = vmatpush1.msra.mxu1 %v8565_v25  ;;  %906 = vmatprep.subr.mxu0 %v8567_v27  ;;  %11969 = vst [vmem:[#allocation60_spill] sm:$0xff] %v8591_v33  ;;  %11970 = vst [vmem:[#allocation61_spill] sm:$0xff] %v8595_v35  ;;  %v8597_v25 = vld [vmem:[#allocation8 + $0x100] sm:$0xff]  ;;  %v8601_v27 = vld [vmem:[#allocation8 + $0x130] sm:$0xff] }
  0x9c   :  { %975 = vmatprep.subr.mxu1 %v8571_v0  ;;  %907 = vmatpush1.msra.mxu0 %v8573_v19  ;;  %11971 = vst [vmem:[#allocation62_spill] sm:$0xff] %v8597_v25  ;;  %11972 = vst [vmem:[#allocation63_spill] sm:$0xff] %v8601_v27  ;;  %v8603_v0 = vld [vmem:[#allocation8 + $0xe8] sm:$0xff]  ;;  %v8607_v19 = vld [vmem:[#allocation8 + $0x118] sm:$0xff] }
  0x9d   :  { %976 = vmatpush1.msra.mxu1 %v8577_v28  ;;  %908 = vmatprep.subr.mxu0 %v8579_v32  ;;  %11973 = vst [vmem:[#allocation64_spill] sm:$0xff] %v8603_v0  ;;  %11974 = vst [vmem:[#allocation65_spill] sm:$0xff] %v8607_v19  ;;  %v8609_v28 = vld [vmem:[#allocation8 + $0xe0] sm:$0xff]  ;;  %v8613_v32 = vld [vmem:[#allocation8 + $0x110] sm:$0xff] }
  0x9e   :  { %977 = vmatprep.subr.mxu1 %v8583_v23  ;;  %909 = vmatpush1.msra.mxu0 %v8585_v30  ;;  %11975 = vst [vmem:[#allocation66_spill] sm:$0xff] %v8609_v28  ;;  %11976 = vst [vmem:[#allocation67_spill] sm:$0xff] %v8613_v32  ;;  %v8615_v23 = vld [vmem:[#allocation8 + $0xc8] sm:$0xff]  ;;  %v8619_v30 = vld [vmem:[#allocation8 + $0xf8] sm:$0xff] }
  0x9f   :  { %978 = vmatpush1.msra.mxu1 %v8589_v34  ;;  %910 = vmatprep.subr.mxu0 %v8591_v33  ;;  %11977 = vst [vmem:[#allocation68_spill] sm:$0xff] %v8615_v23  ;;  %11978 = vst [vmem:[#allocation69_spill] sm:$0xff] %v8619_v30  ;;  %v8621_v34 = vld [vmem:[#allocation8 + $0xc0] sm:$0xff]  ;;  %v8625_v33 = vld [vmem:[#allocation8 + $0xf0] sm:$0xff] }
  0xa0   :  { %979 = vmatprep.subr.mxu1 %v8595_v35  ;;  %911 = vmatpush1.msra.mxu0 %v8597_v25  ;;  %11979 = vst [vmem:[#allocation70_spill] sm:$0xff] %v8621_v34  ;;  %11980 = vst [vmem:[#allocation71_spill] sm:$0xff] %v8625_v33  ;;  %v8627_v35 = vld [vmem:[#allocation8 + $0xa8] sm:$0xff]  ;;  %v8631_v25 = vld [vmem:[#allocation8 + $0xd8] sm:$0xff] }
  0xa1   :  { %980 = vmatpush1.msra.mxu1 %v8601_v27  ;;  %912 = vmatprep.subr.mxu0 %v8603_v0  ;;  %11981 = vst [vmem:[#allocation72_spill] sm:$0xff] %v8627_v35  ;;  %11982 = vst [vmem:[#allocation73_spill] sm:$0xff] %v8631_v25  ;;  %v8633_v27 = vld [vmem:[#allocation8 + $0xa0] sm:$0xff]  ;;  %v8637_v0 = vld [vmem:[#allocation8 + $0xd0] sm:$0xff] }
  0xa2   :  { %981 = vmatprep.subr.mxu1 %v8607_v19  ;;  %913 = vmatpush1.msra.mxu0 %v8609_v28  ;;  %11983 = vst [vmem:[#allocation74_spill] sm:$0xff] %v8633_v27  ;;  %11984 = vst [vmem:[#allocation75_spill] sm:$0xff] %v8637_v0  ;;  %v8639_v19 = vld [vmem:[#allocation8 + $0x88] sm:$0xff]  ;;  %v8643_v28 = vld [vmem:[#allocation8 + $0xb8] sm:$0xff] }
  0xa3   :  { %982 = vmatpush1.msra.mxu1 %v8613_v32  ;;  %914 = vmatprep.subr.mxu0 %v8615_v23  ;;  %11985 = vst [vmem:[#allocation76_spill] sm:$0xff] %v8639_v19  ;;  %11986 = vst [vmem:[#allocation77_spill] sm:$0xff] %v8643_v28  ;;  %v8645_v32 = vld [vmem:[#allocation8 + $0x80] sm:$0xff]  ;;  %v8649_v23 = vld [vmem:[#allocation8 + $0xb0] sm:$0xff] }
  0xa4   :  { %983 = vmatprep.subr.mxu1 %v8619_v30  ;;  %915 = vmatpush1.msra.mxu0 %v8621_v34  ;;  %11987 = vst [vmem:[#allocation78_spill] sm:$0xff] %v8645_v32  ;;  %11988 = vst [vmem:[#allocation79_spill] sm:$0xff] %v8649_v23  ;;  %v8651_v30 = vld [vmem:[#allocation8 + $0x68] sm:$0xff]  ;;  %v8655_v34 = vld [vmem:[#allocation8 + $0x98] sm:$0xff] }
  0xa5   :  { %984 = vmatpush1.msra.mxu1 %v8625_v33  ;;  %916 = vmatprep.subr.mxu0 %v8627_v35  ;;  %11989 = vst [vmem:[#allocation80_spill] sm:$0xff] %v8651_v30  ;;  %11990 = vst [vmem:[#allocation81_spill] sm:$0xff] %v8655_v34  ;;  %v8657_v33 = vld [vmem:[#allocation8 + $0x60] sm:$0xff]  ;;  %v8661_v35 = vld [vmem:[#allocation8 + $0x90] sm:$0xff] }
  0xa6   :  { %985 = vmatprep.subr.mxu1 %v8631_v25  ;;  %917 = vmatpush1.msra.mxu0 %v8633_v27  ;;  %11991 = vst [vmem:[#allocation82_spill] sm:$0xff] %v8657_v33  ;;  %11992 = vst [vmem:[#allocation83_spill] sm:$0xff] %v8661_v35  ;;  %v8663_v25 = vld [vmem:[#allocation8 + $0x48] sm:$0xff]  ;;  %v8667_v27 = vld [vmem:[#allocation8 + $0x78] sm:$0xff] }
  0xa7   :  { %986 = vmatpush1.msra.mxu1 %v8637_v0  ;;  %918 = vmatprep.subr.mxu0 %v8639_v19  ;;  %11993 = vst [vmem:[#allocation84_spill] sm:$0xff] %v8663_v25  ;;  %v8669_v0 = vld [vmem:[#allocation8 + $0x40] sm:$0xff]  ;;  %v8673_v19 = vld [vmem:[#allocation8 + $0x70] sm:$0xff] }
  0xa8   :  { %987 = vmatprep.subr.mxu1 %v8643_v28  ;;  %919 = vmatpush1.msra.mxu0 %v8645_v32  ;;  %11994 = vst [vmem:[#allocation85_spill] sm:$0xff] %v8669_v0  ;;  %v8675_v28 = vld [vmem:[#allocation8 + $0x28] sm:$0xff]  ;;  %v8679_v32 = vld [vmem:[#allocation8 + $0x58] sm:$0xff] }
  0xa9   :  { %988 = vmatpush1.msra.mxu1 %v8649_v23  ;;  %920 = vmatprep.subr.mxu0 %v8651_v30  ;;  %11995 = vst [vmem:[#allocation86_spill] sm:$0xff] %v8675_v28  ;;  %v8681_v23 = vld [vmem:[#allocation8 + $0x20] sm:$0xff]  ;;  %v8685_v30 = vld [vmem:[#allocation8 + $0x50] sm:$0xff] }
  0xaa   :  { %989 = vmatprep.subr.mxu1 %v8655_v34  ;;  %921 = vmatpush1.msra.mxu0 %v8657_v33  ;;  %v8687_v34 = vld [vmem:[#allocation8 + $0x8] sm:$0xff]  ;;  %v8691_v33 = vld [vmem:[#allocation8 + $0x38] sm:$0xff] }
  0xab   :  { %990 = vmatpush1.msra.mxu1 %v8661_v35  ;;  %922 = vmatprep.subr.mxu0 %v8663_v25  ;;  %v8693_v35 = vld [vmem:[#allocation8] sm:$0xff]  ;;  %v8697_v25 = vld [vmem:[#allocation8 + $0x30] sm:$0xff] }
  0xac   :  { %991 = vmatprep.subr.mxu1 %v8667_v27  ;;  %923 = vmatpush1.msra.mxu0 %v8669_v0  ;;  %v8701_v0 = vld [vmem:[#allocation8 + $0x18] sm:$0xff] }
  0xad   :  { %992 = vmatpush1.msra.mxu1 %v8673_v19  ;;  %924 = vmatprep.subr.mxu0 %v8675_v28  ;;  %v8705_v28 = vld [vmem:[#allocation8 + $0x10] sm:$0xff] }
  0xae   :  { %993 = vmatprep.subr.mxu1 %v8679_v32  ;;  %925 = vmatpush1.msra.mxu0 %v8681_v23 }
  0xaf   :  { %994 = vmatpush1.msra.mxu1 %v8685_v30  ;;  %926 = vmatprep.subr.mxu0 %v8687_v34 }
  0xb0   :  { %995 = vmatprep.subr.mxu1 %v8691_v33  ;;  %927 = vmatpush1.msra.mxu0 %v8693_v35 }
  0xb1   :  { %960 = vmatprep.mubr.f32.mxu0 %v11943_v29  ;;  %996 = vmatpush1.msra.mxu1 %v8697_v25 }
  0xb2   :  { %961 = vmatmul.mubr.f32.vlgmr.msra.gmra.mxu0 %v11943_v29  ;;  %997 = vmatprep.subr.mxu1 %v8701_v0 }
  0xb3   :  { %998 = vmatpush1.msra.mxu1 %v8705_v28  ;;  %1031 = vmatprep.mubr.f32.mxu1 %v11943_v29 }
  0xb4   :  { %1032 = vmatmul.mubr.f32.vlgmr.msra.gmra.mxu1 %v11943_v29  ;;  %1228 = vmatprep.subr.mxu0 %v8119_v31  ;;  %v11996_v31 = vld [vmem:[#allocation22_spill] sm:$0xff] }
  0xb5   :  { %1299 = vmatprep.subr.mxu1 %v8141_v38  ;;  %1229 = vmatpush1.msra.mxu0 %v8128_v36  ;;  %v11997_v36 = vld [vmem:[#allocation25_spill] sm:$0xff]  ;;  %v11999_v38 = vld [vmem:[#allocation27_spill] sm:$0xff] }
  0xb6   :  { %1300 = vmatpush1.msra.mxu1 %v8152_v40  ;;  %1230 = vmatprep.subr.mxu0 %v8135_v37  ;;  %v11998_v37 = vld [vmem:[#allocation23_spill] sm:$0xff]  ;;  %v12001_v40 = vld [vmem:[#allocation29_spill] sm:$0xff] }
  0xb7   :  { %1301 = vmatprep.subr.mxu1 %v8165_v42  ;;  %1231 = vmatpush1.msra.mxu0 %v8146_v39  ;;  %v12000_v39 = vld [vmem:[#allocation24_spill] sm:$0xff]  ;;  %v12003_v42 = vld [vmem:[#allocation31_spill] sm:$0xff] }
  0xb8   :  { %1302 = vmatpush1.msra.mxu1 %v8177_v44  ;;  %1232 = vmatprep.subr.mxu0 %v8157_v41  ;;  %v12002_v41 = vld [vmem:[#allocation26_spill] sm:$0xff]  ;;  %v12005_v44 = vld [vmem:[#allocation32_spill] sm:$0xff] }
  0xb9   :  { %1303 = vmatprep.subr.mxu1 %v8189_v46  ;;  %1233 = vmatpush1.msra.mxu0 %v8170_v43  ;;  %v12004_v43 = vld [vmem:[#allocation28_spill] sm:$0xff]  ;;  %v12007_v46 = vld [vmem:[#allocation34_spill] sm:$0xff] }
  0xba   :  { %1304 = vmatpush1.msra.mxu1 %v8201_v48  ;;  %1234 = vmatprep.subr.mxu0 %v8182_v45  ;;  %v12006_v45 = vld [vmem:[#allocation30_spill] sm:$0xff]  ;;  %v12009_v48 = vld [vmem:[#allocation37_spill] sm:$0xff] }
  0xbb   :  { %1305 = vmatprep.subr.mxu1 %v8213_v50  ;;  %1235 = vmatpush1.msra.mxu0 %v8194_v47  ;;  %v12008_v47 = vld [vmem:[#allocation33_spill] sm:$0xff] }
  0xbc   :  { %1306 = vmatpush1.msra.mxu1 %v8225_v52  ;;  %1236 = vmatprep.subr.mxu0 %v8206_v49  ;;  %v11694_v49 = vlaneseq  ;;  %v503_v52 = vld [vmem:[%s12012_s25] sm:$0xf] }
  0xbd   :  { %1307 = vmatprep.subr.mxu1 %v8237_v54  ;;  %1237 = vmatpush1.msra.mxu0 %v8218_v51 }
  0xbe   :  { %1308 = vmatpush1.msra.mxu1 %v8249_v56  ;;  %1238 = vmatprep.subr.mxu0 %v8230_v53  ;;  %v8783_v50 = vshrl.u32 %v11694_v49, 7  ;;  %v9217_v49 = vld [vmem:[%s11929_s0 + $0x48] sm:$0xff] }
  0xbf   :  { %1309 = vmatprep.subr.mxu1 %v8261_v58  ;;  %1239 = vmatpush1.msra.mxu0 %v8242_v55 }
  0xc0   :  { %1310 = vmatpush1.msra.mxu1 %v8273_v60  ;;  %1240 = vmatprep.subr.mxu0 %v8254_v57  ;;  %12010 = vst [vmem:[#allocation22_spill] sm:$0xff] %v8783_v50  ;;  %v8786_v51 = vsub.s32 0, %v8783_v50  ;;  %v8792_v53 = vsub.s32 1, %v8783_v50  ;;  %v8797_v58 = vsub.s32 2, %v8783_v50 }
  0xc1   :  { %1311 = vmatprep.subr.mxu1 %v8285_v62  ;;  %1241 = vmatpush1.msra.mxu0 %v8266_v59 }
  0xc2   :  { %1312 = vmatpush1.msra.mxu1 %v8297_v1  ;;  %1242 = vmatprep.subr.mxu0 %v8278_v61  ;;  %12011 = vst [vmem:[#allocation25_spill] sm:$0xff] %v8786_v51  ;;  %12013 = vst [vmem:[#allocation23_spill] sm:$0xff] %v8792_v53  ;;  %v508_v54 = vrot.slane %v503_v52, %v8786_v51  ;;  %v512_v55 = vrot.slane %v503_v52, %v8792_v53  ;;  %v8800_v61 = vsub.s32 3, %v8783_v50 }
  0xc3   :  { %1313 = vmatprep.subr.mxu1 %v8309_v3  ;;  %1243 = vmatpush1.msra.mxu0 %v8290_v63  ;;  %12014 = vst [vmem:[#allocation27_spill] sm:$0xff] %v8797_v58  ;;  %v516_v1 = vrot.slane %v503_v52, %v8797_v58 }
  0xc4   :  { %1314 = vmatpush1.msra.mxu1 %v8321_v5  ;;  %1244 = vmatprep.subr.mxu0 %v8302_v2  ;;  %12015 = vst [vmem:[#allocation24_spill] sm:$0xff] %v8800_v61  ;;  %v541_v5 = vld [vmem:[%s12016_s1] sm:$0xf] }
  0xc5   :  { %1315 = vmatprep.subr.mxu1 %v8333_v7  ;;  %1245 = vmatpush1.msra.mxu0 %v8314_v4  ;;  %v520_v4 = vrot.slane %v503_v52, %v8800_v61 }
  0xc6   :  { %1316 = vmatpush1.msra.mxu1 %v8345_v9  ;;  %1246 = vmatprep.subr.mxu0 %v8326_v6  ;;  %v546_v9 = vrot.slane %v541_v5, %v8786_v51  ;;  %v9247_v51 = vld [vmem:[%s11929_s0 + $0x38] sm:$0xff] }
  0xc7   :  { %1317 = vmatprep.subr.mxu1 %v8357_v11  ;;  %1247 = vmatpush1.msra.mxu0 %v8338_v8 }
  0xc8   :  { %1318 = vmatpush1.msra.mxu1 %v8369_v13  ;;  %1248 = vmatprep.subr.mxu0 %v8350_v10 }
  0xc9   :  { %1319 = vmatprep.subr.mxu1 %v8381_v15  ;;  %1249 = vmatpush1.msra.mxu0 %v8362_v12  ;;  %v550_v12 = vrot.slane %v541_v5, %v8792_v53  ;;  %v554_v15 = vrot.slane %v541_v5, %v8797_v58  ;;  %v9223_v58 = vld [vmem:[%s11929_s0 + $0x58] sm:$0xff]  ;;  %v9241_v53 = vld [vmem:[%s11929_s0 + $0x28] sm:$0xff] }
  0xca   :  { %1320 = vmatpush1.msra.mxu1 %v8393_v17  ;;  %1250 = vmatprep.subr.mxu0 %v8374_v14 }
  0xcb   :  { %1321 = vmatprep.subr.mxu1 %v8405_v20  ;;  %1251 = vmatpush1.msra.mxu0 %v8386_v16 }
  0xcc   :  { %1322 = vmatpush1.msra.mxu1 %v8417_v22  ;;  %1252 = vmatprep.subr.mxu0 %v8398_v18 }
  0xcd   :  { %1323 = vmatprep.subr.mxu1 %v8429_v24  ;;  %1253 = vmatpush1.msra.mxu0 %v8410_v21  ;;  %v558_v21 = vrot.slane %v541_v5, %v8800_v61  ;;  %v9229_v61 = vld [vmem:[%s11929_s0 + $0x40] sm:$0xff] }
  0xce   :  { %1324 = vmatpush1.msra.mxu1 %v8441_v26  ;;  %1254 = vmatprep.subr.mxu0 %v11996_v31 }
  0xcf   :  { %1325 = vmatprep.subr.mxu1 %v11997_v36  ;;  %1255 = vmatpush1.msra.mxu0 %v11998_v37  ;;  %v7957_v37 = vmov 1966171168  }
  0xd0   :  { %1326 = vmatpush1.msra.mxu1 %v11999_v38  ;;  %1256 = vmatprep.subr.mxu0 %v12000_v39  ;;  %v859_v38 = vunpack.c.l.s4 %v7957_v37 }
  0xd1   :  { %1327 = vmatprep.subr.mxu1 %v12001_v40  ;;  %1257 = vmatpush1.msra.mxu0 %v12002_v41 }
  0xd2   :  { %1328 = vmatpush1.msra.mxu1 %v12003_v42  ;;  %1258 = vmatprep.subr.mxu0 %v12004_v43 }
  0xd3   :  { %1329 = vmatprep.subr.mxu1 %v12005_v44  ;;  %1259 = vmatpush1.msra.mxu0 %v12006_v45  ;;  %v860_v44 = vunpack.c.0.s8 %v859_v38 }
  0xd4   :  { %1292 = vmatprep.mubr.f32.mxu0 %v11943_v29  ;;  %1330 = vmatpush1.msra.mxu1 %v12007_v46 }
  0xd5   :  { %1363 = vmatprep.mubr.f32.mxu1 %v11943_v29  ;;  %1432 = vmatprep.subr.mxu0 %v12008_v47  ;;  %v8812_v52 = vsub.s32 %v860_v44, %v8783_v50  ;;  %v9235_v50 = vld [vmem:[%s11929_s0 + $0x50] sm:$0xff] }
  0xd6   :  { %1503 = vmatprep.subr.mxu1 %v12009_v48 }
 0x120   :  { %v261_v56 = vpop.f32.mrf.mxu1 }
 0x121   :  { %v525_v57 = vadd.f32 %v508_v54, %v261_v56 }
 0x122   :  { %v263_v59 = vpop.f32.mrf.mxu1 }
 0x123   :  { %533 = vst [vmem:[#allocation3] sm:$0xff] %v525_v57  ;;  %v526_v60 = vadd.f32 %v512_v55, %v263_v59 }
 0x124   :  { %v267_v62 = vpop.f32.mrf.mxu1 }
 0x125   :  { %534 = vst [vmem:[#allocation3 + $0x8] sm:$0xff] %v526_v60  ;;  %v529_v63 = vadd.f32 %v508_v54, %v267_v62 }
 0x126   :  { %v269_v2 = vpop.f32.mrf.mxu1 }
 0x127   :  { %537 = vst [vmem:[#allocation3 + $0x20] sm:$0xff] %v529_v63  ;;  %v530_v3 = vadd.f32 %v512_v55, %v269_v2 }
 0x128   :  { %v338_v6 = vpop.f32.mrf.mxu1 }
 0x129   :  { %538 = vst [vmem:[#allocation3 + $0x28] sm:$0xff] %v530_v3  ;;  %v527_v7 = vadd.f32 %v516_v1, %v338_v6 }
 0x12a   :  { %v340_v8 = vpop.f32.mrf.mxu1  ;;  %v415_v14 = vpop.f32.mrf.mxu0 }
 0x12b   :  { %535 = vst [vmem:[#allocation3 + $0x10] sm:$0xff] %v527_v7  ;;  %v528_v10 = vadd.f32 %v520_v4, %v340_v8  ;;  %v563_v17 = vadd.f32 %v546_v9, %v415_v14 }
 0x12c   :  { %v344_v11 = vpop.f32.mrf.mxu1  ;;  %v417_v20 = vpop.f32.mrf.mxu0 }
 0x12d   :  { %536 = vst [vmem:[#allocation3 + $0x18] sm:$0xff] %v528_v10  ;;  %v531_v13 = vadd.f32 %v516_v1, %v344_v11  ;;  %571 = vst [vmem:[#allocation4] sm:$0xff] %v563_v17  ;;  %v564_v24 = vadd.f32 %v550_v12, %v417_v20 }
 0x12e   :  { %v346_v16 = vpop.f32.mrf.mxu1 }
 0x12f   :  { %539 = vst [vmem:[#allocation3 + $0x30] sm:$0xff] %v531_v13  ;;  %v532_v18 = vadd.f32 %v520_v4, %v346_v16  ;;  %572 = vst [vmem:[#allocation4 + $0x8] sm:$0xff] %v564_v24 }
 0x130   :  { %v492_v22 = vpop.f32.mrf.mxu1 }
 0x131   :  { %540 = vst [vmem:[#allocation3 + $0x38] sm:$0xff] %v532_v18  ;;  %v565_v26 = vadd.f32 %v554_v15, %v492_v22 }
 0x132   :  { %v494_v31 = vpop.f32.mrf.mxu1 }
 0x133   :  { %573 = vst [vmem:[#allocation4 + $0x10] sm:$0xff] %v565_v26  ;;  %v566_v36 = vadd.f32 %v558_v21, %v494_v31 }
 0x134   :  { %v707_v4 = vld [vmem:[#allocation3] ss:$8 sm:$0xf] }
 0x135   :  { %574 = vst [vmem:[#allocation4 + $0x18] sm:$0xff] %v566_v36 }
 0x138   :  { %v709_v5 = vld [vmem:[#allocation3 + $0x20] ss:$8 sm:$0xf] }
 0x14b   :  { %v421_v39 = vpop.f32.mrf.mxu0 }
 0x14c   :  { %v567_v40 = vadd.f32 %v546_v9, %v421_v39  ;;  %v498_v41 = vpop.f32.mrf.mxu1 }
 0x14d   :  { %v569_v42 = vadd.f32 %v554_v15, %v498_v41  ;;  %v423_v43 = vpop.f32.mrf.mxu0 }
 0x14e   :  { %575 = vst [vmem:[#allocation4 + $0x20] sm:$0xff] %v567_v40  ;;  %v568_v45 = vadd.f32 %v550_v12, %v423_v43  ;;  %v500_v46 = vpop.f32.mrf.mxu1 }
 0x14f   :  { %577 = vst [vmem:[#allocation4 + $0x30] sm:$0xff] %v569_v42  ;;  %v570_v47 = vadd.f32 %v558_v21, %v500_v46 }
 0x150   :  { %576 = vst [vmem:[#allocation4 + $0x28] sm:$0xff] %v568_v45 }
 0x151   :  { %578 = vst [vmem:[#allocation4 + $0x38] sm:$0xff] %v570_v47  ;;  %v776_v48 = vpop.f32.mrf.mxu0 }
 0x153   :  { %v847_v54 = vpop.f32.mrf.mxu1  ;;  %v778_v55 = vpop.f32.mrf.mxu0 }
 0x154   :  { %v856_v56 = vcombine.low %v776_v48, %v778_v55 }
 0x155   :  { %v849_v57 = vpop.f32.mrf.mxu1 }
 0x156   :  { %v864_v59 = vrot.slane %v856_v56, %v8812_v52  ;;  %v857_v60 = vcombine.low %v847_v54, %v849_v57  ;;  %v893_v57 = vld [vmem:[#allocation4 + $0x7] ss:$8 sm:$0xf] }
 0x158   :  { %v871_v62 = vrot.slane %v857_v60, %v8812_v52 }
 0x15a   :  { %v872_v63 = vcombine.low %v864_v59, %v871_v62  ;;  %v873_v1 = vcombine.high %v864_v59, %v871_v62  ;;  %v895_v59 = vld [vmem:[#allocation4 + $0x27] ss:$8 sm:$0xf] }
 0x15c   :  { %v880_v2 = vrot.slane %v872_v63, %v8812_v52  ;;  %v887_v3 = vrot.slane %v873_v1, %v8812_v52 }
 0x15e   :  { %v890_v6 = vadd.f32 %v880_v2, %v707_v4  ;;  %v891_v7 = vadd.f32 %v887_v3, %v709_v5 }
 0x160   :  { %v6578_v8 = vmul.f32 -1.442695, %v890_v6  ;;  %v6579_v9 = vmul.f32 -1.442695, %v891_v7  ;;  %v1092_v10 = vrot.slane %v890_v6, 1  ;;  %v1093_v11 = vrot.slane %v891_v7, 1 }
 0x161   :  { %v1114_v14 = vrot.slane %v890_v6, 3  ;;  %v1115_v15 = vrot.slane %v891_v7, 3  ;;  %v1108_v38 = vrot.slane %v890_v6, 2  ;;  %v1109_v39 = vrot.slane %v891_v7, 2 }
 0x162   :  { %6854 = vpow2.f32 %v6578_v8  ;;  %v6580_v12 = vmul.f32 -1.442695, %v1092_v10  ;;  %v6581_v13 = vmul.f32 -1.442695, %v1093_v11 }
 0x163   :  { %6856 = vpow2.f32 %v6579_v9  ;;  %v6582_v16 = vmul.f32 -1.442695, %v1114_v14  ;;  %v6583_v17 = vmul.f32 -1.442695, %v1115_v15 }
 0x164   :  { %6858 = vpow2.f32 %v6580_v12 }
 0x165   :  { %6860 = vpow2.f32 %v6581_v13 }
 0x166   :  { %6862 = vpow2.f32 %v6582_v16 }
 0x167   :  { %6864 = vpow2.f32 %v6583_v17 }
 0x16f   :  { %v6855_v18 = vpop.eup %6854 }
 0x170   :  { %v6857_v20 = vpop.eup %6856  ;;  %v1084_v21 = vadd.f32 1.0, %v6855_v18 }
 0x171   :  { %v6859_v22 = vpop.eup %6858  ;;  %v1085_v26 = vadd.f32 1.0, %v6857_v20 }
 0x172   :  { %v6861_v24 = vpop.eup %6860  ;;  %v1102_v31 = vadd.f32 1.0, %v6859_v22  ;;  %v962_v36 = vpop.f32.mrf.mxu0  ;;  %6866 = vrcp.f32 %v1084_v21 }
 0x173   :  { %v1103_v37 = vadd.f32 1.0, %v6861_v24  ;;  %v6863_v56 = vpop.eup %6862 }
 0x174   :  { %6868 = vrcp.f32 %v1102_v31  ;;  %v964_v40 = vpop.f32.mrf.mxu0  ;;  %v1033_v41 = vpop.f32.mrf.mxu1  ;;  %v1124_v15 = vadd.f32 1.0, %v6863_v56 }
 0x175   :  { %6870 = vrcp.f32 %v1103_v37  ;;  %v1042_v42 = vcombine.low %v962_v36, %v964_v40  ;;  %v6865_v60 = vpop.eup %6864 }
 0x176   :  { %6872 = vrcp.f32 %v1085_v26  ;;  %v1035_v43 = vpop.f32.mrf.mxu1  ;;  %v1125_v17 = vadd.f32 1.0, %v6865_v60 }
 0x177   :  { %6874 = vtanh.f32 %v1108_v38  ;;  %v1043_v44 = vcombine.low %v1033_v41, %v1035_v43  ;;  %v1050_v45 = vrot.slane %v1042_v42, %v8812_v52 }
 0x178   :  { %6876 = vtanh.f32 %v1109_v39 }
 0x179   :  { %v1057_v46 = vrot.slane %v1043_v44, %v8812_v52 }
 0x17b   :  { %v1058_v47 = vcombine.low %v1050_v45, %v1057_v46  ;;  %v1059_v48 = vcombine.high %v1050_v45, %v1057_v46 }
 0x17d   :  { %v1066_v54 = vrot.slane %v1058_v47, %v8812_v52  ;;  %v1073_v55 = vrot.slane %v1059_v48, %v8812_v52 }
 0x17f   :  { %v1076_v62 = vadd.f32 %v1066_v54, %v893_v57  ;;  %v1077_v63 = vadd.f32 %v1073_v55, %v895_v59  ;;  %v6867_v1 = vpop.eup %6866 }
 0x181   :  { %v6869_v2 = vpop.eup %6868  ;;  %v6584_v3 = vmul.f32 -1.442695, %v1076_v62  ;;  %v6585_v4 = vmul.f32 -1.442695, %v1077_v63  ;;  %v1154_v5 = vrot.slane %v1076_v62, 1  ;;  %v1155_v7 = vrot.slane %v1077_v63, 1 }
 0x182   :  { %v6871_v6 = vpop.eup %6870  ;;  %v1130_v9 = vmul.f32 0.0, %v6869_v2  ;;  %v1176_v22 = vrot.slane %v1076_v62, 3  ;;  %v1177_v24 = vrot.slane %v1077_v63, 3  ;;  %v1170_v26 = vrot.slane %v1076_v62, 2 }
 0x183   :  { %v6873_v8 = vpop.eup %6872  ;;  %6878 = vpow2.f32 %v6584_v3  ;;  %v6586_v10 = vmul.f32 -1.442695, %v1154_v5  ;;  %v1131_v12 = vmul.f32 0.0, %v6871_v6  ;;  %v6587_v13 = vmul.f32 -1.442695, %v1155_v7 }
 0x184   :  { %v6875_v11 = vpop.eup %6874  ;;  %6880 = vpow2.f32 %v6585_v4  ;;  %v1171_v31 = vrot.slane %v1077_v63, 2  ;;  %v6588_v36 = vmul.f32 -1.442695, %v1176_v22  ;;  %v6589_v37 = vmul.f32 -1.442695, %v1177_v24  ;;  %v12022_v22 = vld [vmem:[#allocation43_spill] sm:$0xff] }
 0x185   :  { %v6877_v14 = vpop.eup %6876  ;;  %v1132_v16 = vmul.f32 %v6875_v11, %v6867_v1  ;;  %6882 = vpow2.f32 %v6586_v10  ;;  %v12017_v11 = vld [vmem:[#allocation35_spill] sm:$0xff] }
 0x186   :  { %v1133_v18 = vmul.f32 %v6877_v14, %v6873_v8  ;;  %6884 = vpow2.f32 %v6587_v13 }
 0x187   :  { %v8822_v20 = vadd.f32 %v1132_v16, %v1130_v9  ;;  %6886 = vrcp.f32 %v1124_v15  ;;  %v12019_v15 = vld [vmem:[#allocation36_spill] sm:$0xff]  ;;  %v12020_v16 = vld [vmem:[#allocation41_spill] sm:$0xff] }
 0x188   :  { %v8824_v21 = vadd.f32 %v1133_v18, %v1131_v12  ;;  %6888 = vrcp.f32 %v1125_v17  ;;  %v12018_v12 = vld [vmem:[#allocation39_spill] sm:$0xff]  ;;  %v12021_v18 = vld [vmem:[#allocation38_spill] sm:$0xff] }
 0x189   :  { %6890 = vtanh.f32 %v8822_v20 }
 0x18a   :  { %6892 = vtanh.f32 %v8824_v21 }
 0x18b   :  { %6894 = vtanh.f32 %v1170_v26  ;;  %v12023_v26 = vld [vmem:[#allocation40_spill] sm:$0xff] }
 0x18c   :  { %6896 = vtanh.f32 %v1171_v31  ;;  %v12024_v31 = vld [vmem:[#allocation45_spill] sm:$0xff] }
 0x18d   :  { %6898 = vpow2.f32 %v6588_v36  ;;  %v12025_v36 = vld [vmem:[#allocation42_spill] sm:$0xff] }
 0x18e   :  { %6900 = vpow2.f32 %v6589_v37  ;;  %v12026_v37 = vld [vmem:[#allocation47_spill] sm:$0xff] }
 0x18f   :  { %12086 = vst [vmem:[#allocation47_spill] sm:$0xff] %v9217_v49 }
 0x190   :  { %v6879_v38 = vpop.eup %6878 }
 0x191   :  { %v6881_v39 = vpop.eup %6880  ;;  %v1146_v40 = vadd.f32 1.0, %v6879_v38  ;;  %v12027_v38 = vld [vmem:[#allocation44_spill] sm:$0xff] }
 0x192   :  { %v6883_v41 = vpop.eup %6882  ;;  %v1147_v42 = vadd.f32 1.0, %v6881_v39  ;;  %v12028_v39 = vld [vmem:[#allocation49_spill] sm:$0xff]  ;;  %12087 = vst [vmem:[#allocation44_spill] sm:$0xff] %v9223_v58 }
 0x193   :  { %v6885_v43 = vpop.eup %6884  ;;  %6902 = vrcp.f32 %v1146_v40  ;;  %v1164_v44 = vadd.f32 1.0, %v6883_v41  ;;  %v12029_v40 = vld [vmem:[#allocation46_spill] sm:$0xff]  ;;  %v12030_v41 = vld [vmem:[#allocation51_spill] sm:$0xff]  ;;  %12088 = vst [vmem:[#allocation49_spill] sm:$0xff] %v9229_v61 }
 0x194   :  { %6904 = vrcp.f32 %v1147_v42  ;;  %v1165_v45 = vadd.f32 1.0, %v6885_v43  ;;  %v6887_v46 = vpop.eup %6886  ;;  %v12031_v42 = vld [vmem:[#allocation48_spill] sm:$0xff]  ;;  %v12032_v43 = vld [vmem:[#allocation53_spill] sm:$0xff]  ;;  %12089 = vst [vmem:[#allocation46_spill] sm:$0xff] %v9235_v50  ;;  %12090 = vst [vmem:[#allocation51_spill] sm:$0xff] %v9241_v53 }
 0x195   :  { %6906 = vrcp.f32 %v1164_v44  ;;  %v6889_v47 = vpop.eup %6888  ;;  %v12033_v44 = vld [vmem:[#allocation50_spill] sm:$0xff]  ;;  %12091 = vst [vmem:[#allocation48_spill] sm:$0xff] %v9247_v51 }
 0x196   :  { %6908 = vrcp.f32 %v1165_v45  ;;  %v6891_v48 = vpop.eup %6890  ;;  %v12034_v45 = vld [vmem:[#allocation55_spill] sm:$0xff] }
 0x197   :  { %v6893_v54 = vpop.eup %6892  ;;  %v1138_v55 = vmul.f32 %v6891_v48, %v6887_v46  ;;  %v12035_v46 = vld [vmem:[#allocation52_spill] sm:$0xff]  ;;  %v12037_v48 = vld [vmem:[#allocation54_spill] sm:$0xff] }
 0x198   :  { %v1139_v56 = vmul.f32 %v6893_v54, %v6889_v47  ;;  %v6895_v57 = vpop.eup %6894  ;;  %v12036_v47 = vld [vmem:[#allocation57_spill] sm:$0xff]  ;;  %v12038_v54 = vld [vmem:[#allocation59_spill] sm:$0xff] }
 0x199   :  { %1202 = vst [vmem:[#allocation2] sm:$0x1] %v1138_v55  ;;  %v6897_v60 = vpop.eup %6896 }
 0x19a   :  { %1204 = vst [vmem:[#allocation2 + $0x10] sm:$0x1] %v1139_v56  ;;  %v1212_v59 = vcombine.low %v1138_v55, %v1139_v56  ;;  %v6899_v62 = vpop.eup %6898  ;;  %v12039_v55 = vld [vmem:[#allocation56_spill] sm:$0xff]  ;;  %v12040_v56 = vld [vmem:[#allocation61_spill] sm:$0xff] }
 0x19b   :  { %v6901_v1 = vpop.eup %6900  ;;  %v1186_v5 = vadd.f32 1.0, %v6899_v62  ;;  %v12044_v62 = vld [vmem:[#allocation65_spill] sm:$0xff] }
 0x19c   :  { %v1219_v63 = vrot.slane %v1212_v59, %v8812_v52  ;;  %v1187_v7 = vadd.f32 1.0, %v6901_v1  ;;  %v12042_v59 = vld [vmem:[#allocation63_spill] sm:$0xff] }
 0x19d   :  { %6910 = vrcp.f32 %v1186_v5  ;;  %v12046_v1 = vld [vmem:[#allocation67_spill] sm:$0xff] }
 0x19e   :  { %v1226_v3 = vrot.slane %v1219_v63, %v8812_v52  ;;  %6912 = vrcp.f32 %v1187_v7  ;;  %v12045_v63 = vld [vmem:[#allocation62_spill] sm:$0xff]  ;;  %v12050_v7 = vld [vmem:[#allocation71_spill] sm:$0xff] }
 0x1a0   :  { %v6903_v2 = vpop.eup %6902  ;;  %1293 = vmatmul.mubr.f32.vlgmr.msra.gmra.mxu0 %v1226_v3  ;;  %1364 = vmatmul.mubr.f32.vlgmr.msra.gmra.mxu1 %v1226_v3  ;;  %v12047_v3 = vld [vmem:[#allocation64_spill] sm:$0xff] }
 0x1a1   :  { %v6905_v4 = vpop.eup %6904  ;;  %v1194_v10 = vmul.f32 %v6903_v2, %v6895_v57  ;;  %1433 = vmatpush1.msra.mxu0 %v12017_v11  ;;  %1504 = vmatpush1.msra.mxu1 %v12018_v12  ;;  %v12041_v57 = vld [vmem:[#allocation58_spill] sm:$0xff] }
 0x1a2   :  { %v6907_v6 = vpop.eup %6906  ;;  %v1195_v14 = vmul.f32 %v6905_v4, %v6897_v60  ;;  %1434 = vmatprep.subr.mxu0 %v12019_v15  ;;  %1505 = vmatprep.subr.mxu1 %v12020_v16  ;;  %v12043_v60 = vld [vmem:[#allocation60_spill] sm:$0xff]  ;;  %v12048_v4 = vld [vmem:[#allocation69_spill] sm:$0xff]  ;;  %v12053_v12 = vld [vmem:[#allocation70_spill] sm:$0xff] }
 0x1a3   :  { %v6909_v8 = vpop.eup %6908  ;;  %v1192_v9 = vmul.f32 0.0, %v6907_v6  ;;  %1435 = vmatpush1.msra.mxu0 %v12021_v18  ;;  %1506 = vmatpush1.msra.mxu1 %v12022_v22  ;;  %v12049_v6 = vld [vmem:[#allocation66_spill] sm:$0xff]  ;;  %v12055_v15 = vld [vmem:[#allocation72_spill] sm:$0xff]  ;;  %v12056_v16 = vld [vmem:[#allocation77_spill] sm:$0xff] }
 0x1a4   :  { %v1193_v13 = vmul.f32 0.0, %v6909_v8  ;;  %1436 = vmatprep.subr.mxu0 %v12023_v26  ;;  %1507 = vmatprep.subr.mxu1 %v12024_v31  ;;  %v12057_v22 = vld [vmem:[#allocation74_spill] sm:$0xff]  ;;  %v12058_v26 = vld [vmem:[#allocation79_spill] sm:$0xff]  ;;  %v12059_v31 = vld [vmem:[#allocation76_spill] sm:$0xff] }
 0x1a5   :  { %v8834_v17 = vadd.f32 %v1194_v10, %v1192_v9  ;;  %1437 = vmatpush1.msra.mxu0 %v12025_v36  ;;  %1508 = vmatpush1.msra.mxu1 %v12026_v37  ;;  %v12051_v9 = vld [vmem:[#allocation68_spill] sm:$0xff]  ;;  %v12052_v10 = vld [vmem:[#allocation73_spill] sm:$0xff] }
 0x1a6   :  { %v8838_v24 = vadd.f32 %v1195_v14, %v1193_v13  ;;  %1438 = vmatprep.subr.mxu0 %v12027_v38  ;;  %1509 = vmatprep.subr.mxu1 %v12028_v39  ;;  %v12054_v13 = vld [vmem:[#allocation75_spill] sm:$0xff]  ;;  %v12060_v36 = vld [vmem:[#allocation81_spill] sm:$0xff]  ;;  %v12061_v38 = vld [vmem:[#allocation78_spill] sm:$0xff] }
 0x1a7   :  { %6914 = vtanh.f32 %v8834_v17  ;;  %1439 = vmatpush1.msra.mxu0 %v12029_v40  ;;  %1510 = vmatpush1.msra.mxu1 %v12030_v41  ;;  %v12062_v39 = vld [vmem:[#allocation83_spill] sm:$0xff]  ;;  %v12063_v40 = vld [vmem:[#allocation80_spill] sm:$0xff]  ;;  %v12064_v41 = vld [vmem:[#allocation82_spill] sm:$0xff] }
 0x1a8   :  { %6916 = vtanh.f32 %v8838_v24  ;;  %1440 = vmatprep.subr.mxu0 %v12031_v42  ;;  %1511 = vmatprep.subr.mxu1 %v12032_v43  ;;  %v12065_v43 = vld [vmem:[#allocation84_spill] sm:$0xff] }
 0x1a9   :  { %1441 = vmatpush1.msra.mxu0 %v12033_v44  ;;  %1512 = vmatpush1.msra.mxu1 %v12034_v45  ;;  %v12066_v44 = vld [vmem:[#allocation85_spill] sm:$0xff]  ;;  %v12067_v45 = vld [vmem:[#allocation86_spill] sm:$0xff] }
 0x1aa   :  { %1442 = vmatprep.subr.mxu0 %v12035_v46  ;;  %1513 = vmatprep.subr.mxu1 %v12036_v47  ;;  %v6911_v2 = vpop.eup %6910  ;;  %v8965_v46 = vld [vmem:[%s11929_s0 + $0x1a0] sm:$0xff]  ;;  %v8971_v47 = vld [vmem:[%s11929_s0 + $0x1b0] sm:$0xff] }
 0x1ab   :  { %1443 = vmatpush1.msra.mxu0 %v12037_v48  ;;  %1514 = vmatpush1.msra.mxu1 %v12038_v54  ;;  %v6913_v5 = vpop.eup %6912  ;;  %v8977_v48 = vld [vmem:[%s11929_s0 + $0x188] sm:$0xff]  ;;  %v8983_v54 = vld [vmem:[%s11929_s0 + $0x198] sm:$0xff] }
 0x1ac   :  { %1444 = vmatprep.subr.mxu0 %v12039_v55  ;;  %1515 = vmatprep.subr.mxu1 %v12040_v56  ;;  %v8989_v55 = vld [vmem:[%s11929_s0 + $0x180] sm:$0xff]  ;;  %v8995_v56 = vld [vmem:[%s11929_s0 + $0x190] sm:$0xff] }
 0x1ad   :  { %1445 = vmatpush1.msra.mxu0 %v12041_v57  ;;  %1516 = vmatpush1.msra.mxu1 %v12042_v59  ;;  %v9001_v57 = vld [vmem:[%s11929_s0 + $0x168] sm:$0xff]  ;;  %v9007_v59 = vld [vmem:[%s11929_s0 + $0x178] sm:$0xff] }
 0x1ae   :  { %1446 = vmatprep.subr.mxu0 %v12043_v60  ;;  %1517 = vmatprep.subr.mxu1 %v12044_v62  ;;  %v9013_v60 = vld [vmem:[%s11929_s0 + $0x160] sm:$0xff]  ;;  %v9019_v62 = vld [vmem:[%s11929_s0 + $0x170] sm:$0xff] }
 0x1af   :  { %1447 = vmatpush1.msra.mxu0 %v12045_v63  ;;  %1518 = vmatpush1.msra.mxu1 %v12046_v1  ;;  %v9025_v63 = vld [vmem:[%s11929_s0 + $0x148] sm:$0xff]  ;;  %v9031_v1 = vld [vmem:[%s11929_s0 + $0x158] sm:$0xff] }
 0x1b0   :  { %1448 = vmatprep.subr.mxu0 %v12047_v3  ;;  %1519 = vmatprep.subr.mxu1 %v12048_v4  ;;  %v9043_v3 = vld [vmem:[%s11929_s0 + $0x150] sm:$0xff]  ;;  %v9049_v4 = vld [vmem:[%s11929_s0 + $0x128] sm:$0xff] }
 0x1b1   :  { %1449 = vmatpush1.msra.mxu0 %v12049_v6  ;;  %1520 = vmatpush1.msra.mxu1 %v12050_v7  ;;  %v9061_v6 = vld [vmem:[%s11929_s0 + $0x120] sm:$0xff]  ;;  %v9067_v7 = vld [vmem:[%s11929_s0 + $0x130] sm:$0xff] }
 0x1b2   :  { %1450 = vmatprep.subr.mxu0 %v12051_v9  ;;  %1521 = vmatprep.subr.mxu1 %v12052_v10  ;;  %v9079_v9 = vld [vmem:[%s11929_s0 + $0x118] sm:$0xff]  ;;  %v9085_v10 = vld [vmem:[%s11929_s0 + $0x100] sm:$0xff] }
 0x1b3   :  { %1451 = vmatpush1.msra.mxu0 %v12053_v12  ;;  %1522 = vmatpush1.msra.mxu1 %v12054_v13  ;;  %v9097_v12 = vld [vmem:[%s11929_s0 + $0xe8] sm:$0xff]  ;;  %v9103_v13 = vld [vmem:[%s11929_s0 + $0xf8] sm:$0xff] }
 0x1b4   :  { %v6915_v8 = vpop.eup %6914  ;;  %1452 = vmatprep.subr.mxu0 %v12055_v15  ;;  %1523 = vmatprep.subr.mxu1 %v12056_v16  ;;  %v9115_v15 = vld [vmem:[%s11929_s0 + $0xf0] sm:$0xff]  ;;  %v9121_v16 = vld [vmem:[%s11929_s0 + $0xc8] sm:$0xff] }
 0x1b5   :  { %v6917_v11 = vpop.eup %6916  ;;  %v1200_v14 = vmul.f32 %v6915_v8, %v6911_v2  ;;  %1453 = vmatpush1.msra.mxu0 %v12057_v22  ;;  %1524 = vmatpush1.msra.mxu1 %v12058_v26  ;;  %v9037_v2 = vld [vmem:[%s11929_s0 + $0x140] sm:$0xff]  ;;  %v9073_v8 = vld [vmem:[%s11929_s0 + $0x108] sm:$0xff]  ;;  %12069 = vst [vmem:[#allocation26_spill] sm:$0xff] %v9115_v15  ;;  %12070 = vst [vmem:[#allocation31_spill] sm:$0xff] %v9121_v16 }
 0x1b6   :  { %v1201_v18 = vmul.f32 %v6917_v11, %v6913_v5  ;;  %1454 = vmatprep.subr.mxu0 %v12059_v31  ;;  %1525 = vmatprep.subr.mxu1 %v12060_v36  ;;  %v9055_v5 = vld [vmem:[%s11929_s0 + $0x138] sm:$0xff]  ;;  %v9091_v11 = vld [vmem:[%s11929_s0 + $0x110] sm:$0xff]  ;;  %v9133_v22 = vld [vmem:[%s11929_s0 + $0xc0] sm:$0xff] }
 0x1b7   :  { %1203 = vst [vmem:[#allocation2 + $0xf] sm:$0x1] %v1200_v14  ;;  %1455 = vmatpush1.msra.mxu0 %v12061_v38  ;;  %1526 = vmatpush1.msra.mxu1 %v12062_v39  ;;  %12072 = vst [vmem:[#allocation32_spill] sm:$0xff] %v9133_v22  ;;  %v9139_v26 = vld [vmem:[%s11929_s0 + $0xd0] sm:$0xff]  ;;  %v9145_v31 = vld [vmem:[%s11929_s0 + $0xa8] sm:$0xff] }
 0x1b8   :  { %1205 = vst [vmem:[#allocation2 + $0x1f] sm:$0x1] %v1201_v18  ;;  %v1416_v37 = vcombine.low %v1200_v14, %v1201_v18  ;;  %1456 = vmatprep.subr.mxu0 %v12063_v40  ;;  %1527 = vmatprep.subr.mxu1 %v8667_v27  ;;  %v9109_v14 = vld [vmem:[%s11929_s0 + $0xe0] sm:$0xff]  ;;  %v9127_v18 = vld [vmem:[%s11929_s0 + $0xd8] sm:$0xff]  ;;  %12073 = vst [vmem:[#allocation30_spill] sm:$0xff] %v9139_v26 }
 0x1b9   :  { %1457 = vmatpush1.msra.mxu0 %v12064_v41  ;;  %1528 = vmatpush1.msra.mxu1 %v8673_v19  ;;  %v8959_v19 = vld [vmem:[%s11929_s0 + $0x1b8] sm:$0xff]  ;;  %12068 = vst [vmem:[#allocation29_spill] sm:$0xff] %v9109_v14  ;;  %12071 = vst [vmem:[#allocation28_spill] sm:$0xff] %v9127_v18  ;;  %v9163_v38 = vld [vmem:[%s11929_s0 + $0xb0] sm:$0xff] }
 0x1ba   :  { %v1423_v42 = vrot.slane %v1416_v37, %v8812_v52  ;;  %1458 = vmatprep.subr.mxu0 %v12065_v43  ;;  %1529 = vmatprep.subr.mxu1 %v8679_v32  ;;  %v8935_v32 = vld [vmem:[%s11929_s0 + $0x1d8] sm:$0xff]  ;;  %12074 = vst [vmem:[#allocation34_spill] sm:$0xff] %v9145_v31  ;;  %v9157_v37 = vld [vmem:[%s11929_s0 + $0xa0] sm:$0xff]  ;;  %12077 = vst [vmem:[#allocation35_spill] sm:$0xff] %v9163_v38 }
 0x1bb   :  { %1459 = vmatpush1.msra.mxu0 %v12066_v44  ;;  %1530 = vmatpush1.msra.mxu1 %v8685_v30  ;;  %v8929_v30 = vld [vmem:[%s11929_s0 + $0x1c8] sm:$0xff]  ;;  %v9151_v36 = vld [vmem:[%s11929_s0 + $0xb8] sm:$0xff]  ;;  %12076 = vst [vmem:[#allocation37_spill] sm:$0xff] %v9157_v37  ;;  %v9181_v41 = vld [vmem:[%s11929_s0 + $0x80] sm:$0xff] }
 0x1bc   :  { %1460 = vmatprep.subr.mxu0 %v12067_v45  ;;  %1531 = vmatprep.subr.mxu1 %v8691_v33  ;;  %v1430_v27 = vrot.slane %v1423_v42, %v8812_v52  ;;  %v8941_v33 = vld [vmem:[%s11929_s0 + $0x1c0] sm:$0xff]  ;;  %12075 = vst [vmem:[#allocation33_spill] sm:$0xff] %v9151_v36  ;;  %v9169_v39 = vld [vmem:[%s11929_s0 + $0x88] sm:$0xff]  ;;  %v9175_v40 = vld [vmem:[%s11929_s0 + $0x98] sm:$0xff] }
 0x1bd   :  { %1461 = vmatpush1.msra.mxu0 %v8681_v23  ;;  %1532 = vmatpush1.msra.mxu1 %v8697_v25  ;;  %v8905_v23 = vld [vmem:[%s11929_s0 + $0x1e8] sm:$0xff]  ;;  %v8917_v25 = vld [vmem:[%s11929_s0 + $0x1e0] sm:$0xff]  ;;  %12078 = vst [vmem:[#allocation39_spill] sm:$0xff] %v9169_v39  ;;  %12079 = vst [vmem:[#allocation36_spill] sm:$0xff] %v9175_v40 }
 0x1be   :  { %1462 = vmatprep.subr.mxu0 %v8687_v34  ;;  %1533 = vmatprep.subr.mxu1 %v8701_v0  ;;  %v8911_v0 = vld [vmem:[%s11929_s0 + $0x1f8] sm:$0xff]  ;;  %v8947_v34 = vld [vmem:[%s11929_s0 + $0x1d0] sm:$0xff]  ;;  %12080 = vst [vmem:[#allocation41_spill] sm:$0xff] %v9181_v41  ;;  %v9193_v43 = vld [vmem:[%s11929_s0 + $0x68] sm:$0xff] }
 0x1bf   :  { %1463 = vmatpush1.msra.mxu0 %v8693_v35  ;;  %1496 = vmatprep.mubr.f32.mxu0 %v11943_v29  ;;  %v8953_v35 = vld [vmem:[%s11929_s0 + $0x1a8] sm:$0xff]  ;;  %v9187_v42 = vld [vmem:[%s11929_s0 + $0x90] sm:$0xff]  ;;  %12082 = vst [vmem:[#allocation43_spill] sm:$0xff] %v9193_v43  ;;  %v9199_v44 = vld [vmem:[%s11929_s0 + $0x78] sm:$0xff] }
 0x1c0   :  { %1534 = vmatpush1.msra.mxu1 %v8705_v28  ;;  %1567 = vmatprep.mubr.f32.mxu1 %v11943_v29  ;;  %v8923_v28 = vld [vmem:[%s11929_s0 + $0x1f0] sm:$0xff]  ;;  %12081 = vst [vmem:[#allocation38_spill] sm:$0xff] %v9187_v42  ;;  %12083 = vst [vmem:[#allocation40_spill] sm:$0xff] %v9199_v44  ;;  %v9205_v45 = vld [vmem:[%s11929_s0 + $0x60] sm:$0xff] }
 0x1c1   :  { %1497 = vmatmul.mubr.f32.vlgmr.msra.gmra.mxu0 %v1430_v27  ;;  %1568 = vmatmul.mubr.f32.vlgmr.msra.gmra.mxu1 %v1430_v27  ;;  %12084 = vst [vmem:[#allocation45_spill] sm:$0xff] %v9205_v45  ;;  %v9211_v27 = vld [vmem:[%s11929_s0 + $0x70] sm:$0xff] }
 0x1c2   :  { %1764 = vmatprep.subr.mxu0 %v8905_v23  ;;  %1835 = vmatprep.subr.mxu1 %v8911_v0  ;;  %12085 = vst [vmem:[#allocation42_spill] sm:$0xff] %v9211_v27 }
 0x1c3   :  { %1765 = vmatpush1.msra.mxu0 %v8917_v25  ;;  %1836 = vmatpush1.msra.mxu1 %v8923_v28 }
 0x1c4   :  { %1766 = vmatprep.subr.mxu0 %v8929_v30  ;;  %1837 = vmatprep.subr.mxu1 %v8935_v32 }
 0x1c5   :  { %1767 = vmatpush1.msra.mxu0 %v8941_v33  ;;  %1838 = vmatpush1.msra.mxu1 %v8947_v34 }
 0x1c6   :  { %1768 = vmatprep.subr.mxu0 %v8953_v35  ;;  %1839 = vmatprep.subr.mxu1 %v8959_v19 }
 0x1c7   :  { %1769 = vmatpush1.msra.mxu0 %v8965_v46  ;;  %1840 = vmatpush1.msra.mxu1 %v8971_v47 }
 0x1c8   :  { %1770 = vmatprep.subr.mxu0 %v8977_v48  ;;  %1841 = vmatprep.subr.mxu1 %v8983_v54 }
 0x1c9   :  { %1771 = vmatpush1.msra.mxu0 %v8989_v55  ;;  %1842 = vmatpush1.msra.mxu1 %v8995_v56 }
 0x1ca   :  { %1772 = vmatprep.subr.mxu0 %v9001_v57  ;;  %1843 = vmatprep.subr.mxu1 %v9007_v59 }
 0x1cb   :  { %1773 = vmatpush1.msra.mxu0 %v9013_v60  ;;  %1844 = vmatpush1.msra.mxu1 %v9019_v62 }
 0x1cc   :  { %1774 = vmatprep.subr.mxu0 %v9025_v63  ;;  %1845 = vmatprep.subr.mxu1 %v9031_v1 }
 0x1cd   :  { %1775 = vmatpush1.msra.mxu0 %v9037_v2  ;;  %1846 = vmatpush1.msra.mxu1 %v9043_v3 }
 0x1ce   :  { %1776 = vmatprep.subr.mxu0 %v9049_v4  ;;  %1847 = vmatprep.subr.mxu1 %v9055_v5 }
 0x1cf   :  { %1777 = vmatpush1.msra.mxu0 %v9061_v6  ;;  %1848 = vmatpush1.msra.mxu1 %v9067_v7 }
 0x1d0   :  { %1778 = vmatprep.subr.mxu0 %v9073_v8  ;;  %1849 = vmatprep.subr.mxu1 %v9079_v9 }
 0x1d1   :  { %1779 = vmatpush1.msra.mxu0 %v9085_v10  ;;  %1850 = vmatpush1.msra.mxu1 %v9091_v11 }
 0x1d2   :  { %1780 = vmatprep.subr.mxu0 %v9097_v12  ;;  %1851 = vmatprep.subr.mxu1 %v9103_v13 }
 0x1d3   :  { %1781 = vmatpush1.msra.mxu0 %v9109_v14  ;;  %1852 = vmatpush1.msra.mxu1 %v9115_v15 }
 0x1d4   :  { %1782 = vmatprep.subr.mxu0 %v9121_v16  ;;  %1853 = vmatprep.subr.mxu1 %v9127_v18 }
 0x1d5   :  { %1783 = vmatpush1.msra.mxu0 %v9133_v22  ;;  %1854 = vmatpush1.msra.mxu1 %v9139_v26 }
 0x1d6   :  { %1784 = vmatprep.subr.mxu0 %v9145_v31  ;;  %1855 = vmatprep.subr.mxu1 %v9151_v36 }
 0x1d7   :  { %1785 = vmatpush1.msra.mxu0 %v9157_v37  ;;  %1856 = vmatpush1.msra.mxu1 %v9163_v38  ;;  %v1209_v38 = vld [vmem:[#allocation3 + $0x21] ss:$8 sm:$0xf] }
 0x1d8   :  { %1786 = vmatprep.subr.mxu0 %v9169_v39  ;;  %1857 = vmatprep.subr.mxu1 %v9175_v40  ;;  %v1207_v39 = vld [vmem:[#allocation3 + $0x1] ss:$8 sm:$0xf] }
 0x1d9   :  { %1787 = vmatpush1.msra.mxu0 %v9181_v41  ;;  %1858 = vmatpush1.msra.mxu1 %v9187_v42 }
 0x1da   :  { %1788 = vmatprep.subr.mxu0 %v9193_v43  ;;  %1859 = vmatprep.subr.mxu1 %v9199_v44 }
 0x1db   :  { %1789 = vmatpush1.msra.mxu0 %v9205_v45  ;;  %1860 = vmatpush1.msra.mxu1 %v9211_v27 }
 0x1dc   :  { %1790 = vmatprep.subr.mxu0 %v9217_v49  ;;  %1861 = vmatprep.subr.mxu1 %v9223_v58 }
 0x1dd   :  { %1791 = vmatpush1.msra.mxu0 %v9229_v61  ;;  %1862 = vmatpush1.msra.mxu1 %v9235_v50  ;;  %v9253_v61 = vld [vmem:[%s11929_s0 + $0x20] sm:$0xff]  ;;  %v9259_v50 = vld [vmem:[%s11929_s0 + $0x30] sm:$0xff] }
 0x1de   :  { %1792 = vmatprep.subr.mxu0 %v9241_v53  ;;  %1863 = vmatprep.subr.mxu1 %v9247_v51  ;;  %12092 = vst [vmem:[#allocation53_spill] sm:$0xff] %v9253_v61  ;;  %12093 = vst [vmem:[#allocation50_spill] sm:$0xff] %v9259_v50  ;;  %v9265_v53 = vld [vmem:[%s11929_s0 + $0x8] sm:$0xff]  ;;  %v9271_v51 = vld [vmem:[%s11929_s0 + $0x18] sm:$0xff] }
 0x1df   :  { %1793 = vmatpush1.msra.mxu0 %v9253_v61  ;;  %1864 = vmatpush1.msra.mxu1 %v9259_v50  ;;  %12094 = vst [vmem:[#allocation55_spill] sm:$0xff] %v9265_v53  ;;  %12095 = vst [vmem:[#allocation52_spill] sm:$0xff] %v9271_v51  ;;  %v9277_v61 = vld [vmem:[%s11929_s0] sm:$0xff]  ;;  %v9288_v50 = vld [vmem:[#allocation8 + $0x1e8] sm:$0xff] }
 0x1e0   :  { %1794 = vmatprep.subr.mxu0 %v9265_v53  ;;  %1865 = vmatprep.subr.mxu1 %v9271_v51  ;;  %12096 = vst [vmem:[#allocation57_spill] sm:$0xff] %v9277_v61  ;;  %v9284_v53 = vld [vmem:[%s11929_s0 + $0x10] sm:$0xff]  ;;  %12098 = vst [vmem:[#allocation59_spill] sm:$0xff] %v9288_v50  ;;  %v9291_v51 = vld [vmem:[#allocation8 + $0x1f8] sm:$0xff] }
 0x1e1   :  { %1795 = vmatpush1.msra.mxu0 %v9277_v61  ;;  %1828 = vmatprep.mubr.f32.mxu0 %v11943_v29  ;;  %12097 = vst [vmem:[#allocation54_spill] sm:$0xff] %v9284_v53  ;;  %12099 = vst [vmem:[#allocation56_spill] sm:$0xff] %v9291_v51 }
 0x1e2   :  { %1866 = vmatpush1.msra.mxu1 %v9284_v53  ;;  %1899 = vmatprep.mubr.f32.mxu1 %v11943_v29 }
 0x1e3   :  { %1968 = vmatprep.subr.mxu0 %v9288_v50  ;;  %2039 = vmatprep.subr.mxu1 %v9291_v51 }
 0x260   :  { %v1294_v61 = vpop.f32.mrf.mxu0  ;;  %v1365_v58 = vpop.f32.mrf.mxu1 }
 0x262   :  { %v1296_v49 = vpop.f32.mrf.mxu0  ;;  %v1367_v27 = vpop.f32.mrf.mxu1 }
 0x263   :  { %v1374_v45 = vcombine.low %v1294_v61, %v1296_v49  ;;  %v1375_v44 = vcombine.low %v1365_v58, %v1367_v27 }
 0x265   :  { %v1382_v43 = vrot.slane %v1374_v45, %v8812_v52  ;;  %v1389_v53 = vrot.slane %v1375_v44, %v8812_v52 }
 0x267   :  { %v1390_v42 = vcombine.low %v1382_v43, %v1389_v53  ;;  %v1391_v41 = vcombine.high %v1382_v43, %v1389_v53 }
 0x269   :  { %v1398_v40 = vrot.slane %v1390_v42, %v8812_v52  ;;  %v1405_v50 = vrot.slane %v1391_v41, %v8812_v52 }
 0x26b   :  { %v1408_v37 = vadd.f32 %v1398_v40, %v1207_v39  ;;  %v1409_v51 = vadd.f32 %v1405_v50, %v1209_v38 }
 0x26d   :  { %v6590_v36 = vmul.f32 -1.442695, %v1408_v37  ;;  %v6591_v31 = vmul.f32 -1.442695, %v1409_v51  ;;  %v1628_v26 = vrot.slane %v1408_v37, 1  ;;  %v1629_v22 = vrot.slane %v1409_v51, 1 }
 0x26e   :  { %v1650_v61 = vrot.slane %v1408_v37, 3  ;;  %v1651_v53 = vrot.slane %v1409_v51, 3 }
 0x26f   :  { %6918 = vpow2.f32 %v6590_v36  ;;  %v6592_v49 = vmul.f32 -1.442695, %v1628_v26  ;;  %v6593_v58 = vmul.f32 -1.442695, %v1629_v22  ;;  %v1644_v26 = vrot.slane %v1408_v37, 2 }
 0x270   :  { %6920 = vpow2.f32 %v6591_v31  ;;  %v6594_v43 = vmul.f32 -1.442695, %v1650_v61  ;;  %v6595_v42 = vmul.f32 -1.442695, %v1651_v53  ;;  %v1645_v22 = vrot.slane %v1409_v51, 2 }
 0x271   :  { %6922 = vpow2.f32 %v6592_v49 }
 0x272   :  { %6924 = vpow2.f32 %v6593_v58 }
 0x273   :  { %6926 = vpow2.f32 %v6594_v43 }
 0x274   :  { %6928 = vpow2.f32 %v6595_v42 }
 0x27c   :  { %v6919_v44 = vpop.eup %6918 }
 0x27d   :  { %v6921_v41 = vpop.eup %6920  ;;  %v1620_v45 = vadd.f32 1.0, %v6919_v44 }
 0x27e   :  { %v6923_v27 = vpop.eup %6922  ;;  %v1621_v38 = vadd.f32 1.0, %v6921_v41 }
 0x27f   :  { %v6925_v50 = vpop.eup %6924  ;;  %v1638_v39 = vadd.f32 1.0, %v6923_v27  ;;  %6930 = vrcp.f32 %v1620_v45  ;;  %v1411_v27 = vld [vmem:[#allocation4 + $0x6] ss:$8 sm:$0xf] }
 0x280   :  { %v1639_v36 = vadd.f32 1.0, %v6925_v50  ;;  %v6927_v45 = vpop.eup %6926  ;;  %v1413_v50 = vld [vmem:[#allocation4 + $0x26] ss:$8 sm:$0xf] }
 0x281   :  { %6932 = vrcp.f32 %v1638_v39  ;;  %v1498_v31 = vpop.f32.mrf.mxu0  ;;  %v1569_v40 = vpop.f32.mrf.mxu1 }
 0x282   :  { %6934 = vrcp.f32 %v1639_v36 }
 0x283   :  { %6936 = vrcp.f32 %v1621_v38  ;;  %v1500_v49 = vpop.f32.mrf.mxu0  ;;  %v1571_v58 = vpop.f32.mrf.mxu1 }
 0x284   :  { %6938 = vtanh.f32 %v1644_v26  ;;  %v1578_v61 = vcombine.low %v1498_v31, %v1500_v49  ;;  %v1579_v53 = vcombine.low %v1569_v40, %v1571_v58  ;;  %v6929_v38 = vpop.eup %6928 }
 0x285   :  { %6940 = vtanh.f32 %v1645_v22 }
 0x286   :  { %v1586_v43 = vrot.slane %v1578_v61, %v8812_v52  ;;  %v1593_v44 = vrot.slane %v1579_v53, %v8812_v52 }
 0x288   :  { %v1594_v42 = vcombine.low %v1586_v43, %v1593_v44  ;;  %v1595_v41 = vcombine.high %v1586_v43, %v1593_v44 }
 0x28a   :  { %v1602_v37 = vrot.slane %v1594_v42, %v8812_v52  ;;  %v1609_v51 = vrot.slane %v1595_v41, %v8812_v52 }
 0x28c   :  { %v1612_v39 = vadd.f32 %v1602_v37, %v1411_v27  ;;  %v1613_v36 = vadd.f32 %v1609_v51, %v1413_v50  ;;  %v6931_v26 = vpop.eup %6930  ;;  %v1660_v37 = vadd.f32 1.0, %v6927_v45  ;;  %v1661_v27 = vadd.f32 1.0, %v6929_v38 }
 0x28e   :  { %v6933_v31 = vpop.eup %6932  ;;  %v6596_v40 = vmul.f32 -1.442695, %v1612_v39  ;;  %v6597_v22 = vmul.f32 -1.442695, %v1613_v36  ;;  %v1690_v49 = vrot.slane %v1612_v39, 1  ;;  %v1691_v61 = vrot.slane %v1613_v36, 1 }
 0x28f   :  { %v6935_v58 = vpop.eup %6934  ;;  %v1666_v44 = vmul.f32 %v6933_v31, %v8822_v20  ;;  %v1713_v20 = vrot.slane %v1613_v36, 3  ;;  %v1706_v31 = vrot.slane %v1612_v39, 2 }
 0x290   :  { %v6937_v53 = vpop.eup %6936  ;;  %6942 = vpow2.f32 %v6596_v40  ;;  %v6598_v43 = vmul.f32 -1.442695, %v1690_v49  ;;  %v6599_v41 = vmul.f32 -1.442695, %v1691_v61  ;;  %v1667_v18 = vmul.f32 %v6935_v58, %v8824_v21 }
 0x291   :  { %v6939_v42 = vpop.eup %6938  ;;  %6944 = vpow2.f32 %v6597_v22  ;;  %v1712_v40 = vrot.slane %v1612_v39, 3  ;;  %v1707_v22 = vrot.slane %v1613_v36, 2  ;;  %v6601_v45 = vmul.f32 -1.442695, %v1713_v20 }
 0x292   :  { %v6941_v16 = vpop.eup %6940  ;;  %v1668_v51 = vmul.f32 %v6939_v42, %v6931_v26  ;;  %6946 = vpow2.f32 %v6598_v43 }
 0x293   :  { %v1669_v50 = vmul.f32 %v6941_v16, %v6937_v53  ;;  %6948 = vpow2.f32 %v6599_v41  ;;  %v6600_v21 = vmul.f32 -1.442695, %v1712_v40 }
 0x294   :  { %v9304_v15 = vadd.f32 %v1668_v51, %v1666_v44  ;;  %6950 = vrcp.f32 %v1660_v37 }
 0x295   :  { %v9306_v14 = vadd.f32 %v1669_v50, %v1667_v18  ;;  %6952 = vrcp.f32 %v1661_v27 }
 0x296   :  { %6954 = vtanh.f32 %v9304_v15 }
 0x297   :  { %6956 = vtanh.f32 %v9306_v14 }
 0x298   :  { %6958 = vtanh.f32 %v1706_v31 }
 0x299   :  { %6960 = vtanh.f32 %v1707_v22 }
 0x29a   :  { %6962 = vpow2.f32 %v6600_v21 }
 0x29b   :  { %6964 = vpow2.f32 %v6601_v45 }
 0x29d   :  { %v6943_v38 = vpop.eup %6942 }
 0x29e   :  { %v6945_v16 = vpop.eup %6944  ;;  %v1682_v26 = vadd.f32 1.0, %v6943_v38 }
 0x29f   :  { %v6947_v18 = vpop.eup %6946  ;;  %v1683_v49 = vadd.f32 1.0, %v6945_v16 }
 0x2a0   :  { %v6949_v58 = vpop.eup %6948  ;;  %6966 = vrcp.f32 %v1682_v26  ;;  %v1700_v61 = vadd.f32 1.0, %v6947_v18 }
 0x2a1   :  { %6968 = vrcp.f32 %v1683_v49  ;;  %v1701_v39 = vadd.f32 1.0, %v6949_v58  ;;  %v6951_v36 = vpop.eup %6950  ;;  %v9312_v49 = vld [vmem:[#allocation8 + $0x1e0] sm:$0xff]  ;;  %v9315_v58 = vld [vmem:[#allocation8 + $0x1f0] sm:$0xff] }
 0x2a2   :  { %6970 = vrcp.f32 %v1700_v61  ;;  %v6953_v53 = vpop.eup %6952 }
 0x2a3   :  { %6972 = vrcp.f32 %v1701_v39  ;;  %v6955_v43 = vpop.eup %6954 }
 0x2a4   :  { %v6957_v44 = vpop.eup %6956  ;;  %v1674_v42 = vmul.f32 %v6955_v43, %v6951_v36  ;;  %v9319_v36 = vld [vmem:[#allocation8 + $0x1c8] sm:$0xff] }
 0x2a5   :  { %v1675_v41 = vmul.f32 %v6957_v44, %v6953_v53  ;;  %v6959_v37 = vpop.eup %6958  ;;  %v9322_v53 = vld [vmem:[#allocation8 + $0x1d8] sm:$0xff]  ;;  %v9326_v44 = vld [vmem:[#allocation8 + $0x1c0] sm:$0xff] }
 0x2a6   :  { %1738 = vst [vmem:[#allocation2 + $0x1] sm:$0x1] %v1674_v42  ;;  %v6961_v27 = vpop.eup %6960 }
 0x2a7   :  { %1740 = vst [vmem:[#allocation2 + $0x11] sm:$0x1] %v1675_v41  ;;  %v1748_v51 = vcombine.low %v1674_v42, %v1675_v41  ;;  %v6963_v50 = vpop.eup %6962  ;;  %v9329_v42 = vld [vmem:[#allocation8 + $0x1d0] sm:$0xff]  ;;  %v9334_v41 = vld [vmem:[#allocation8 + $0x1a8] sm:$0xff] }
 0x2a8   :  { %v6965_v20 = vpop.eup %6964  ;;  %v1722_v45 = vadd.f32 1.0, %v6963_v50  ;;  %v9349_v50 = vld [vmem:[#allocation8 + $0x188] sm:$0xff] }
 0x2a9   :  { %v1755_v40 = vrot.slane %v1748_v51, %v8812_v52  ;;  %v1723_v16 = vadd.f32 1.0, %v6965_v20  ;;  %v9342_v51 = vld [vmem:[#allocation8 + $0x1a0] sm:$0xff] }
 0x2aa   :  { %6974 = vrcp.f32 %v1722_v45  ;;  %v9356_v20 = vld [vmem:[#allocation8 + $0x180] sm:$0xff] }
 0x2ab   :  { %v1762_v22 = vrot.slane %v1755_v40, %v8812_v52  ;;  %6976 = vrcp.f32 %v1723_v16  ;;  %v9352_v40 = vld [vmem:[#allocation8 + $0x198] sm:$0xff]  ;;  %12100 = vst [vmem:[#allocation61_spill] sm:$0xff] %v9356_v20  ;;  %v9368_v45 = vld [vmem:[#allocation8 + $0x160] sm:$0xff]  ;;  %v9374_v16 = vld [vmem:[#allocation8 + $0x148] sm:$0xff] }
 0x2ac   :  { %12104 = vst [vmem:[#allocation65_spill] sm:$0xff] %v9368_v45  ;;  %12106 = vst [vmem:[#allocation67_spill] sm:$0xff] %v9374_v16 }
 0x2ad   :  { %v6967_v31 = vpop.eup %6966  ;;  %1829 = vmatmul.mubr.f32.vlgmr.msra.gmra.mxu0 %v1762_v22  ;;  %1900 = vmatmul.mubr.f32.vlgmr.msra.gmra.mxu1 %v1762_v22  ;;  %v9362_v22 = vld [vmem:[#allocation8 + $0x168] sm:$0xff] }
 0x2ae   :  { %v6969_v21 = vpop.eup %6968  ;;  %v1730_v18 = vmul.f32 %v6967_v31, %v6959_v37  ;;  %1969 = vmatpush1.msra.mxu0 %v9312_v49  ;;  %2040 = vmatpush1.msra.mxu1 %v9315_v58  ;;  %v9337_v37 = vld [vmem:[#allocation8 + $0x1b8] sm:$0xff]  ;;  %v9359_v31 = vld [vmem:[#allocation8 + $0x190] sm:$0xff]  ;;  %12102 = vst [vmem:[#allocation63_spill] sm:$0xff] %v9362_v22 }
 0x2af   :  { %v6971_v38 = vpop.eup %6970  ;;  %v1731_v39 = vmul.f32 %v6969_v21, %v6961_v27  ;;  %1970 = vmatprep.subr.mxu0 %v9319_v36  ;;  %2041 = vmatprep.subr.mxu1 %v9322_v53  ;;  %v9345_v27 = vld [vmem:[#allocation8 + $0x1b0] sm:$0xff]  ;;  %12101 = vst [vmem:[#allocation58_spill] sm:$0xff] %v9359_v31  ;;  %v9365_v21 = vld [vmem:[#allocation8 + $0x178] sm:$0xff] }
 0x2b0   :  { %v6973_v26 = vpop.eup %6972  ;;  %v1728_v61 = vmul.f32 %v6971_v38, %v8834_v17  ;;  %1971 = vmatpush1.msra.mxu0 %v9326_v44  ;;  %2042 = vmatpush1.msra.mxu1 %v9329_v42  ;;  %12103 = vst [vmem:[#allocation60_spill] sm:$0xff] %v9365_v21  ;;  %v9371_v38 = vld [vmem:[#allocation8 + $0x170] sm:$0xff] }
 0x2b1   :  { %v1729_v43 = vmul.f32 %v6973_v26, %v8838_v24  ;;  %1972 = vmatprep.subr.mxu0 %v9334_v41  ;;  %2043 = vmatprep.subr.mxu1 %v9337_v37  ;;  %12105 = vst [vmem:[#allocation62_spill] sm:$0xff] %v9371_v38  ;;  %v9377_v26 = vld [vmem:[#allocation8 + $0x158] sm:$0xff] }
 0x2b2   :  { %v9332_v17 = vadd.f32 %v1730_v18, %v1728_v61  ;;  %1973 = vmatpush1.msra.mxu0 %v9342_v51  ;;  %2044 = vmatpush1.msra.mxu1 %v9345_v27  ;;  %12107 = vst [vmem:[#allocation64_spill] sm:$0xff] %v9377_v26  ;;  %v9380_v18 = vld [vmem:[#allocation8 + $0x140] sm:$0xff]  ;;  %v9383_v61 = vld [vmem:[#allocation8 + $0x150] sm:$0xff] }
 0x2b3   :  { %v9340_v24 = vadd.f32 %v1731_v39, %v1729_v43  ;;  %1974 = vmatprep.subr.mxu0 %v9349_v50  ;;  %2045 = vmatprep.subr.mxu1 %v9352_v40  ;;  %12108 = vst [vmem:[#allocation69_spill] sm:$0xff] %v9380_v18  ;;  %12109 = vst [vmem:[#allocation66_spill] sm:$0xff] %v9383_v61  ;;  %v9386_v39 = vld [vmem:[#allocation8 + $0x128] sm:$0xff]  ;;  %v9389_v43 = vld [vmem:[#allocation8 + $0x138] sm:$0xff] }
 0x2b4   :  { %6978 = vtanh.f32 %v9332_v17  ;;  %1975 = vmatpush1.msra.mxu0 %v9356_v20  ;;  %2046 = vmatpush1.msra.mxu1 %v9359_v31  ;;  %12110 = vst [vmem:[#allocation71_spill] sm:$0xff] %v9386_v39  ;;  %12111 = vst [vmem:[#allocation68_spill] sm:$0xff] %v9389_v43  ;;  %v9437_v31 = vld [vmem:[#allocation8 + $0xb8] sm:$0xff]  ;;  %v9443_v20 = vld [vmem:[#allocation8 + $0xb0] sm:$0xff] }
 0x2b5   :  { %6980 = vtanh.f32 %v9340_v24  ;;  %1976 = vmatprep.subr.mxu0 %v9362_v22  ;;  %2047 = vmatprep.subr.mxu1 %v9365_v21  ;;  %v9425_v21 = vld [vmem:[#allocation8 + $0xd8] sm:$0xff]  ;;  %v9431_v22 = vld [vmem:[#allocation8 + $0xd0] sm:$0xff]  ;;  %12126 = vst [vmem:[#allocation85_spill] sm:$0xff] %v9443_v20 }
 0x2b6   :  { %1977 = vmatpush1.msra.mxu0 %v9368_v45  ;;  %2048 = vmatpush1.msra.mxu1 %v9371_v38  ;;  %v9410_v38 = vld [vmem:[#allocation8 + $0xe8] sm:$0xff]  ;;  %v9416_v45 = vld [vmem:[#allocation8 + $0xe0] sm:$0xff]  ;;  %12123 = vst [vmem:[#allocation80_spill] sm:$0xff] %v9425_v21  ;;  %12124 = vst [vmem:[#allocation82_spill] sm:$0xff] %v9431_v22 }
 0x2b7   :  { %1978 = vmatprep.subr.mxu0 %v9374_v16  ;;  %2049 = vmatprep.subr.mxu1 %v9377_v26  ;;  %v9392_v16 = vld [vmem:[#allocation8 + $0x120] sm:$0xff]  ;;  %v9395_v26 = vld [vmem:[#allocation8 + $0x130] sm:$0xff]  ;;  %12118 = vst [vmem:[#allocation79_spill] sm:$0xff] %v9410_v38  ;;  %12120 = vst [vmem:[#allocation81_spill] sm:$0xff] %v9416_v45 }
 0x2b8   :  { %1979 = vmatpush1.msra.mxu0 %v9380_v18  ;;  %2050 = vmatpush1.msra.mxu1 %v9383_v61  ;;  %12112 = vst [vmem:[#allocation73_spill] sm:$0xff] %v9392_v16  ;;  %12113 = vst [vmem:[#allocation70_spill] sm:$0xff] %v9395_v26  ;;  %v9398_v18 = vld [vmem:[#allocation8 + $0x108] sm:$0xff]  ;;  %v9401_v61 = vld [vmem:[#allocation8 + $0x118] sm:$0xff] }
 0x2b9   :  { %1980 = vmatprep.subr.mxu0 %v9386_v39  ;;  %2051 = vmatprep.subr.mxu1 %v9389_v43  ;;  %12114 = vst [vmem:[#allocation75_spill] sm:$0xff] %v9398_v18  ;;  %12115 = vst [vmem:[#allocation72_spill] sm:$0xff] %v9401_v61  ;;  %v9404_v39 = vld [vmem:[#allocation8 + $0x100] sm:$0xff]  ;;  %v9407_v43 = vld [vmem:[#allocation8 + $0x110] sm:$0xff] }
 0x2ba   :  { %1981 = vmatpush1.msra.mxu0 %v9392_v16  ;;  %2052 = vmatpush1.msra.mxu1 %v9395_v26  ;;  %12116 = vst [vmem:[#allocation77_spill] sm:$0xff] %v9404_v39  ;;  %12117 = vst [vmem:[#allocation74_spill] sm:$0xff] %v9407_v43  ;;  %v6975_v16 = vpop.eup %6974  ;;  %v9413_v26 = vld [vmem:[#allocation8 + $0xf8] sm:$0xff] }
 0x2bb   :  { %1982 = vmatprep.subr.mxu0 %v9398_v18  ;;  %2053 = vmatprep.subr.mxu1 %v9401_v61  ;;  %12119 = vst [vmem:[#allocation76_spill] sm:$0xff] %v9413_v26  ;;  %v6977_v18 = vpop.eup %6976  ;;  %v9419_v61 = vld [vmem:[#allocation8 + $0xf0] sm:$0xff] }
 0x2bc   :  { %1983 = vmatpush1.msra.mxu0 %v9404_v39  ;;  %2054 = vmatpush1.msra.mxu1 %v9407_v43  ;;  %12121 = vst [vmem:[#allocation78_spill] sm:$0xff] %v9419_v61  ;;  %v9422_v43 = vld [vmem:[#allocation8 + $0xc8] sm:$0xff] }
 0x2bd   :  { %1984 = vmatprep.subr.mxu0 %v9410_v38  ;;  %2055 = vmatprep.subr.mxu1 %v9413_v26  ;;  %12122 = vst [vmem:[#allocation83_spill] sm:$0xff] %v9422_v43  ;;  %v9428_v26 = vld [vmem:[#allocation8 + $0xc0] sm:$0xff] }
 0x2be   :  { %1985 = vmatpush1.msra.mxu0 %v9416_v45  ;;  %2056 = vmatpush1.msra.mxu1 %v9419_v61  ;;  %v9434_v61 = vld [vmem:[#allocation8 + $0xa8] sm:$0xff] }
 0x2bf   :  { %1986 = vmatprep.subr.mxu0 %v9422_v43  ;;  %2057 = vmatprep.subr.mxu1 %v9425_v21  ;;  %v9440_v21 = vld [vmem:[#allocation8 + $0xa0] sm:$0xff] }
 0x2c0   :  { %1987 = vmatpush1.msra.mxu0 %v9428_v26  ;;  %2058 = vmatpush1.msra.mxu1 %v9431_v22  ;;  %12125 = vst [vmem:[#allocation84_spill] sm:$0xff] %v9440_v21  ;;  %v9446_v22 = vld [vmem:[#allocation8 + $0x88] sm:$0xff] }
 0x2c1   :  { %v6979_v39 = vpop.eup %6978  ;;  %1988 = vmatprep.subr.mxu0 %v9434_v61  ;;  %2059 = vmatprep.subr.mxu1 %v9437_v31  ;;  %12127 = vst [vmem:[#allocation86_spill] sm:$0xff] %v9446_v22 }
 0x2c2   :  { %v6981_v38 = vpop.eup %6980  ;;  %v1736_v45 = vmul.f32 %v6979_v39, %v6975_v16  ;;  %1989 = vmatpush1.msra.mxu0 %v9440_v21  ;;  %2060 = vmatpush1.msra.mxu1 %v9443_v20  ;;  %v9449_v16 = vld [vmem:[#allocation8 + $0x98] sm:$0xff]  ;;  %v9458_v20 = vld [vmem:[#allocation8 + $0x68] sm:$0xff] }
 0x2c3   :  { %v1737_v43 = vmul.f32 %v6981_v38, %v6977_v18  ;;  %1990 = vmatprep.subr.mxu0 %v9446_v22  ;;  %2061 = vmatprep.subr.mxu1 %v9449_v16  ;;  %v9452_v38 = vld [vmem:[#allocation8 + $0x80] sm:$0xff]  ;;  %v9455_v18 = vld [vmem:[#allocation8 + $0x90] sm:$0xff]  ;;  %12130 = vst [vmem:[#allocation89_spill] sm:$0xff] %v9458_v20  ;;  %v9461_v21 = vld [vmem:[#allocation8 + $0x78] sm:$0xff] }
 0x2c4   :  { %1739 = vst [vmem:[#allocation2 + $0xe] sm:$0x1] %v1736_v45  ;;  %12128 = vst [vmem:[#allocation87_spill] sm:$0xff] %v9452_v38  ;;  %1991 = vmatpush1.msra.mxu0 %v9452_v38  ;;  %2062 = vmatpush1.msra.mxu1 %v9455_v18  ;;  %v9464_v22 = vld [vmem:[#allocation8 + $0x60] sm:$0xff]  ;;  %v9471_v38 = vld [vmem:[#allocation8 + $0x48] sm:$0xff] }
 0x2c5   :  { %1741 = vst [vmem:[#allocation2 + $0x1e] sm:$0x1] %v1737_v43  ;;  %v1952_v39 = vcombine.low %v1736_v45, %v1737_v43  ;;  %12129 = vst [vmem:[#allocation88_spill] sm:$0xff] %v9455_v18  ;;  %1992 = vmatprep.subr.mxu0 %v9458_v20  ;;  %2063 = vmatprep.subr.mxu1 %v9461_v21  ;;  %v9467_v45 = vld [vmem:[#allocation8 + $0x70] sm:$0xff]  ;;  %v9474_v18 = vld [vmem:[#allocation8 + $0x58] sm:$0xff] }
 0x2c6   :  { %12131 = vst [vmem:[#allocation90_spill] sm:$0xff] %v9461_v21  ;;  %12132 = vst [vmem:[#allocation91_spill] sm:$0xff] %v9464_v22  ;;  %1993 = vmatpush1.msra.mxu0 %v9464_v22  ;;  %2064 = vmatpush1.msra.mxu1 %v9467_v45  ;;  %v9477_v20 = vld [vmem:[#allocation8 + $0x40] sm:$0xff]  ;;  %v9480_v21 = vld [vmem:[#allocation8 + $0x50] sm:$0xff] }
 0x2c7   :  { %12133 = vst [vmem:[#allocation92_spill] sm:$0xff] %v9467_v45  ;;  %v1959_v43 = vrot.slane %v1952_v39, %v8812_v52  ;;  %12134 = vst [vmem:[#allocation93_spill] sm:$0xff] %v9471_v38  ;;  %1994 = vmatprep.subr.mxu0 %v9471_v38  ;;  %2065 = vmatprep.subr.mxu1 %v9474_v18  ;;  %v9483_v22 = vld [vmem:[#allocation8 + $0x28] sm:$0xff]  ;;  %v9486_v39 = vld [vmem:[#allocation8 + $0x38] sm:$0xff] }
 0x2c8   :  { %12135 = vst [vmem:[#allocation94_spill] sm:$0xff] %v9474_v18  ;;  %12136 = vst [vmem:[#allocation95_spill] sm:$0xff] %v9477_v20  ;;  %1995 = vmatpush1.msra.mxu0 %v9477_v20  ;;  %2066 = vmatpush1.msra.mxu1 %v9480_v21  ;;  %v9489_v38 = vld [vmem:[#allocation8 + $0x20] sm:$0xff]  ;;  %v9492_v18 = vld [vmem:[#allocation8 + $0x30] sm:$0xff] }
 0x2c9   :  { %12137 = vst [vmem:[#allocation96_spill] sm:$0xff] %v9480_v21  ;;  %12138 = vst [vmem:[#allocation97_spill] sm:$0xff] %v9483_v22  ;;  %1996 = vmatprep.subr.mxu0 %v9483_v22  ;;  %2067 = vmatprep.subr.mxu1 %v9486_v39  ;;  %v1966_v20 = vrot.slane %v1959_v43, %v8812_v52  ;;  %v9496_v45 = vld [vmem:[#allocation8 + $0x8] sm:$0xff]  ;;  %v9499_v21 = vld [vmem:[#allocation8 + $0x18] sm:$0xff] }
 0x2ca   :  { %12139 = vst [vmem:[#allocation98_spill] sm:$0xff] %v9489_v38  ;;  %1997 = vmatpush1.msra.mxu0 %v9489_v38  ;;  %2068 = vmatpush1.msra.mxu1 %v9492_v18  ;;  %v9502_v22 = vld [vmem:[#allocation8] sm:$0xff]  ;;  %v9506_v38 = vld [vmem:[#allocation8 + $0x10] sm:$0xff] }
 0x2cb   :  { %1998 = vmatprep.subr.mxu0 %v9496_v45  ;;  %2069 = vmatprep.subr.mxu1 %v9499_v21 }
 0x2cc   :  { %1999 = vmatpush1.msra.mxu0 %v9502_v22  ;;  %2032 = vmatprep.mubr.f32.mxu0 %v11943_v29 }
 0x2cd   :  { %2070 = vmatpush1.msra.mxu1 %v9506_v38  ;;  %2103 = vmatprep.mubr.f32.mxu1 %v11943_v29 }
 0x2ce   :  { %2033 = vmatmul.mubr.f32.vlgmr.msra.gmra.mxu0 %v1966_v20  ;;  %2104 = vmatmul.mubr.f32.vlgmr.msra.gmra.mxu1 %v1966_v20 }
 0x2cf   :  { %2300 = vmatprep.subr.mxu0 %v8905_v23  ;;  %2371 = vmatprep.subr.mxu1 %v8911_v0  ;;  %v12140_v23 = vld [vmem:[#allocation29_spill] sm:$0xff]  ;;  %v12141_v0 = vld [vmem:[#allocation26_spill] sm:$0xff] }
 0x2d0   :  { %2301 = vmatpush1.msra.mxu0 %v8917_v25  ;;  %2372 = vmatpush1.msra.mxu1 %v8923_v28  ;;  %v12142_v25 = vld [vmem:[#allocation31_spill] sm:$0xff]  ;;  %v12143_v28 = vld [vmem:[#allocation28_spill] sm:$0xff] }
 0x2d1   :  { %2302 = vmatprep.subr.mxu0 %v8929_v30  ;;  %2373 = vmatprep.subr.mxu1 %v8935_v32  ;;  %v12144_v30 = vld [vmem:[#allocation32_spill] sm:$0xff]  ;;  %v12145_v32 = vld [vmem:[#allocation30_spill] sm:$0xff] }
 0x2d2   :  { %2303 = vmatpush1.msra.mxu0 %v8941_v33  ;;  %2374 = vmatpush1.msra.mxu1 %v8947_v34  ;;  %v12146_v33 = vld [vmem:[#allocation34_spill] sm:$0xff]  ;;  %v12147_v34 = vld [vmem:[#allocation33_spill] sm:$0xff] }
 0x2d3   :  { %2304 = vmatprep.subr.mxu0 %v8953_v35  ;;  %2375 = vmatprep.subr.mxu1 %v8959_v19  ;;  %v12148_v35 = vld [vmem:[#allocation37_spill] sm:$0xff]  ;;  %v12149_v19 = vld [vmem:[#allocation35_spill] sm:$0xff] }
 0x2d4   :  { %2305 = vmatpush1.msra.mxu0 %v8965_v46  ;;  %2376 = vmatpush1.msra.mxu1 %v8971_v47  ;;  %v12150_v46 = vld [vmem:[#allocation39_spill] sm:$0xff]  ;;  %v12151_v47 = vld [vmem:[#allocation36_spill] sm:$0xff] }
 0x2d5   :  { %2306 = vmatprep.subr.mxu0 %v8977_v48  ;;  %2377 = vmatprep.subr.mxu1 %v8983_v54  ;;  %v12152_v48 = vld [vmem:[#allocation41_spill] sm:$0xff]  ;;  %v12153_v54 = vld [vmem:[#allocation38_spill] sm:$0xff] }
 0x2d6   :  { %2307 = vmatpush1.msra.mxu0 %v8989_v55  ;;  %2378 = vmatpush1.msra.mxu1 %v8995_v56  ;;  %v12154_v55 = vld [vmem:[#allocation43_spill] sm:$0xff]  ;;  %v12155_v56 = vld [vmem:[#allocation40_spill] sm:$0xff] }
 0x2d7   :  { %2308 = vmatprep.subr.mxu0 %v9001_v57  ;;  %2379 = vmatprep.subr.mxu1 %v9007_v59  ;;  %v12156_v57 = vld [vmem:[#allocation45_spill] sm:$0xff]  ;;  %v12157_v59 = vld [vmem:[#allocation42_spill] sm:$0xff] }
 0x2d8   :  { %2309 = vmatpush1.msra.mxu0 %v9013_v60  ;;  %2380 = vmatpush1.msra.mxu1 %v9019_v62  ;;  %v12158_v60 = vld [vmem:[#allocation47_spill] sm:$0xff]  ;;  %v12159_v62 = vld [vmem:[#allocation44_spill] sm:$0xff] }
 0x2d9   :  { %2310 = vmatprep.subr.mxu0 %v9025_v63  ;;  %2381 = vmatprep.subr.mxu1 %v9031_v1  ;;  %v12160_v63 = vld [vmem:[#allocation49_spill] sm:$0xff]  ;;  %v12161_v1 = vld [vmem:[#allocation46_spill] sm:$0xff] }
 0x2da   :  { %2311 = vmatpush1.msra.mxu0 %v9037_v2  ;;  %2382 = vmatpush1.msra.mxu1 %v9043_v3  ;;  %v12162_v2 = vld [vmem:[#allocation51_spill] sm:$0xff]  ;;  %v12163_v3 = vld [vmem:[#allocation48_spill] sm:$0xff] }
 0x2db   :  { %2312 = vmatprep.subr.mxu0 %v9049_v4  ;;  %2383 = vmatprep.subr.mxu1 %v9055_v5  ;;  %v12164_v4 = vld [vmem:[#allocation53_spill] sm:$0xff]  ;;  %v12165_v5 = vld [vmem:[#allocation50_spill] sm:$0xff] }
 0x2dc   :  { %2313 = vmatpush1.msra.mxu0 %v9061_v6  ;;  %2384 = vmatpush1.msra.mxu1 %v9067_v7  ;;  %v12166_v6 = vld [vmem:[#allocation55_spill] sm:$0xff]  ;;  %v12167_v7 = vld [vmem:[#allocation52_spill] sm:$0xff] }
 0x2dd   :  { %2314 = vmatprep.subr.mxu0 %v9073_v8  ;;  %2385 = vmatprep.subr.mxu1 %v9079_v9  ;;  %v12168_v8 = vld [vmem:[#allocation57_spill] sm:$0xff]  ;;  %v12169_v9 = vld [vmem:[#allocation54_spill] sm:$0xff] }
 0x2de   :  { %2315 = vmatpush1.msra.mxu0 %v9085_v10  ;;  %2386 = vmatpush1.msra.mxu1 %v9091_v11  ;;  %v12170_v10 = vld [vmem:[#allocation59_spill] sm:$0xff]  ;;  %v12171_v11 = vld [vmem:[#allocation56_spill] sm:$0xff] }
 0x2df   :  { %2316 = vmatprep.subr.mxu0 %v9097_v12  ;;  %2387 = vmatprep.subr.mxu1 %v9103_v13 }
 0x2e0   :  { %2317 = vmatpush1.msra.mxu0 %v12140_v23  ;;  %2388 = vmatpush1.msra.mxu1 %v12141_v0 }
 0x2e1   :  { %2318 = vmatprep.subr.mxu0 %v12142_v25  ;;  %2389 = vmatprep.subr.mxu1 %v12143_v28 }
 0x2e2   :  { %2319 = vmatpush1.msra.mxu0 %v12144_v30  ;;  %2390 = vmatpush1.msra.mxu1 %v12145_v32 }
 0x2e3   :  { %2320 = vmatprep.subr.mxu0 %v12146_v33  ;;  %2391 = vmatprep.subr.mxu1 %v12147_v34 }
 0x2e4   :  { %2321 = vmatpush1.msra.mxu0 %v12148_v35  ;;  %2392 = vmatpush1.msra.mxu1 %v12149_v19  ;;  %v1743_v35 = vld [vmem:[#allocation3 + $0x2] ss:$8 sm:$0xf] }
 0x2e5   :  { %2322 = vmatprep.subr.mxu0 %v12150_v46  ;;  %2393 = vmatprep.subr.mxu1 %v12151_v47  ;;  %v1745_v19 = vld [vmem:[#allocation3 + $0x22] ss:$8 sm:$0xf] }
 0x2e6   :  { %2323 = vmatpush1.msra.mxu0 %v12152_v48  ;;  %2394 = vmatpush1.msra.mxu1 %v12153_v54 }
 0x2e7   :  { %2324 = vmatprep.subr.mxu0 %v12154_v55  ;;  %2395 = vmatprep.subr.mxu1 %v12155_v56 }
 0x2e8   :  { %2325 = vmatpush1.msra.mxu0 %v12156_v57  ;;  %2396 = vmatpush1.msra.mxu1 %v12157_v59 }
 0x2e9   :  { %2326 = vmatprep.subr.mxu0 %v12158_v60  ;;  %2397 = vmatprep.subr.mxu1 %v12159_v62 }
 0x2ea   :  { %2327 = vmatpush1.msra.mxu0 %v12160_v63  ;;  %2398 = vmatpush1.msra.mxu1 %v12161_v1 }
 0x2eb   :  { %2328 = vmatprep.subr.mxu0 %v12162_v2  ;;  %2399 = vmatprep.subr.mxu1 %v12163_v3 }
 0x2ec   :  { %2329 = vmatpush1.msra.mxu0 %v12164_v4  ;;  %2400 = vmatpush1.msra.mxu1 %v12165_v5 }
 0x2ed   :  { %2330 = vmatprep.subr.mxu0 %v12166_v6  ;;  %2401 = vmatprep.subr.mxu1 %v12167_v7 }
 0x2ee   :  { %2331 = vmatpush1.msra.mxu0 %v12168_v8  ;;  %2364 = vmatprep.mubr.f32.mxu0 %v11943_v29 }
 0x2ef   :  { %2402 = vmatpush1.msra.mxu1 %v12169_v9  ;;  %2435 = vmatprep.mubr.f32.mxu1 %v11943_v29 }
 0x2f0   :  { %2504 = vmatprep.subr.mxu0 %v12170_v10  ;;  %2575 = vmatprep.subr.mxu1 %v12171_v11 }
 0x36d   :  { %v1830_v12 = vpop.f32.mrf.mxu0  ;;  %v1901_v13 = vpop.f32.mrf.mxu1 }
 0x36f   :  { %v1832_v20 = vpop.f32.mrf.mxu0  ;;  %v1903_v43 = vpop.f32.mrf.mxu1 }
 0x370   :  { %v1910_v23 = vcombine.low %v1830_v12, %v1832_v20  ;;  %v1911_v0 = vcombine.low %v1901_v13, %v1903_v43 }
 0x372   :  { %v1918_v25 = vrot.slane %v1910_v23, %v8812_v52  ;;  %v1925_v28 = vrot.slane %v1911_v0, %v8812_v52 }
 0x374   :  { %v1926_v30 = vcombine.low %v1918_v25, %v1925_v28  ;;  %v1927_v32 = vcombine.high %v1918_v25, %v1925_v28 }
 0x376   :  { %v1934_v33 = vrot.slane %v1926_v30, %v8812_v52  ;;  %v1941_v34 = vrot.slane %v1927_v32, %v8812_v52 }
 0x378   :  { %v1944_v46 = vadd.f32 %v1934_v33, %v1743_v35  ;;  %v1945_v47 = vadd.f32 %v1941_v34, %v1745_v19  ;;  %v1947_v19 = vld [vmem:[#allocation4 + $0x5] ss:$8 sm:$0xf] }
 0x37a   :  { %v6602_v48 = vmul.f32 -1.442695, %v1944_v46  ;;  %v6603_v54 = vmul.f32 -1.442695, %v1945_v47  ;;  %v2164_v55 = vrot.slane %v1944_v46, 1  ;;  %v2165_v56 = vrot.slane %v1945_v47, 1 }
 0x37b   :  { %v2186_v60 = vrot.slane %v1944_v46, 3  ;;  %v2187_v62 = vrot.slane %v1945_v47, 3  ;;  %v2180_v10 = vrot.slane %v1944_v46, 2  ;;  %v2181_v11 = vrot.slane %v1945_v47, 2 }
 0x37c   :  { %6982 = vpow2.f32 %v6602_v48  ;;  %v6604_v57 = vmul.f32 -1.442695, %v2164_v55  ;;  %v6605_v59 = vmul.f32 -1.442695, %v2165_v56 }
 0x37d   :  { %6984 = vpow2.f32 %v6603_v54  ;;  %v6606_v63 = vmul.f32 -1.442695, %v2186_v60  ;;  %v6607_v1 = vmul.f32 -1.442695, %v2187_v62 }
 0x37e   :  { %6986 = vpow2.f32 %v6604_v57  ;;  %v1949_v46 = vld [vmem:[#allocation4 + $0x25] ss:$8 sm:$0xf] }
 0x37f   :  { %6988 = vpow2.f32 %v6605_v59 }
 0x380   :  { %6990 = vpow2.f32 %v6606_v63 }
 0x381   :  { %6992 = vpow2.f32 %v6607_v1 }
 0x389   :  { %v6983_v2 = vpop.eup %6982 }
 0x38a   :  { %v6985_v3 = vpop.eup %6984  ;;  %v2156_v4 = vadd.f32 1.0, %v6983_v2 }
 0x38b   :  { %v6987_v5 = vpop.eup %6986  ;;  %v2157_v7 = vadd.f32 1.0, %v6985_v3 }
 0x38c   :  { %v6989_v6 = vpop.eup %6988  ;;  %v2174_v8 = vadd.f32 1.0, %v6987_v5  ;;  %6994 = vrcp.f32 %v2156_v4 }
 0x38d   :  { %v2175_v9 = vadd.f32 1.0, %v6989_v6  ;;  %v6991_v35 = vpop.eup %6990 }
 0x38e   :  { %6996 = vrcp.f32 %v2174_v8  ;;  %v2034_v12 = vpop.f32.mrf.mxu0  ;;  %v2105_v13 = vpop.f32.mrf.mxu1  ;;  %v2196_v8 = vadd.f32 1.0, %v6991_v35 }
 0x38f   :  { %6998 = vrcp.f32 %v2175_v9  ;;  %v6993_v47 = vpop.eup %6992 }
 0x390   :  { %7000 = vrcp.f32 %v2157_v7  ;;  %v2036_v20 = vpop.f32.mrf.mxu0  ;;  %v2107_v43 = vpop.f32.mrf.mxu1 }
 0x391   :  { %7002 = vtanh.f32 %v2180_v10  ;;  %v2114_v23 = vcombine.low %v2034_v12, %v2036_v20  ;;  %v2115_v0 = vcombine.low %v2105_v13, %v2107_v43  ;;  %v2197_v10 = vadd.f32 1.0, %v6993_v47 }
 0x392   :  { %7004 = vtanh.f32 %v2181_v11 }
 0x393   :  { %v2122_v25 = vrot.slane %v2114_v23, %v8812_v52  ;;  %v2129_v28 = vrot.slane %v2115_v0, %v8812_v52 }
 0x395   :  { %v2130_v30 = vcombine.low %v2122_v25, %v2129_v28  ;;  %v2131_v32 = vcombine.high %v2122_v25, %v2129_v28 }
 0x397   :  { %v2138_v33 = vrot.slane %v2130_v30, %v8812_v52  ;;  %v2145_v34 = vrot.slane %v2131_v32, %v8812_v52 }
 0x399   :  { %v2148_v48 = vadd.f32 %v2138_v33, %v1947_v19  ;;  %v2149_v54 = vadd.f32 %v2145_v34, %v1949_v46  ;;  %v6995_v55 = vpop.eup %6994 }
 0x39b   :  { %v6997_v56 = vpop.eup %6996  ;;  %v6608_v57 = vmul.f32 -1.442695, %v2148_v48  ;;  %v6609_v59 = vmul.f32 -1.442695, %v2149_v54  ;;  %v2226_v60 = vrot.slane %v2148_v48, 1  ;;  %v2227_v63 = vrot.slane %v2149_v54, 1 }
 0x39c   :  { %v6999_v62 = vpop.eup %6998  ;;  %v2202_v3 = vmul.f32 %v6997_v56, %v9304_v15  ;;  %v2248_v20 = vrot.slane %v2148_v48, 3  ;;  %v2249_v15 = vrot.slane %v2149_v54, 3  ;;  %v2242_v43 = vrot.slane %v2148_v48, 2 }
 0x39d   :  { %v7001_v1 = vpop.eup %7000  ;;  %7006 = vpow2.f32 %v6608_v57  ;;  %v6610_v2 = vmul.f32 -1.442695, %v2226_v60  ;;  %v6611_v5 = vmul.f32 -1.442695, %v2227_v63  ;;  %v2203_v6 = vmul.f32 %v6999_v62, %v9306_v14 }
 0x39e   :  { %v7003_v4 = vpop.eup %7002  ;;  %7008 = vpow2.f32 %v6609_v59  ;;  %v2243_v23 = vrot.slane %v2149_v54, 2  ;;  %v6612_v14 = vmul.f32 -1.442695, %v2248_v20  ;;  %v6613_v0 = vmul.f32 -1.442695, %v2249_v15 }
 0x39f   :  { %v7005_v7 = vpop.eup %7004  ;;  %v2204_v9 = vmul.f32 %v7003_v4, %v6995_v55  ;;  %7010 = vpow2.f32 %v6610_v2 }
 0x3a0   :  { %v2205_v11 = vmul.f32 %v7005_v7, %v7001_v1  ;;  %7012 = vpow2.f32 %v6611_v5 }
 0x3a1   :  { %v9588_v12 = vadd.f32 %v2204_v9, %v2202_v3  ;;  %7014 = vrcp.f32 %v2196_v8 }
 0x3a2   :  { %v9590_v13 = vadd.f32 %v2205_v11, %v2203_v6  ;;  %7016 = vrcp.f32 %v2197_v10 }
 0x3a3   :  { %7018 = vtanh.f32 %v9588_v12 }
 0x3a4   :  { %7020 = vtanh.f32 %v9590_v13 }
 0x3a5   :  { %7022 = vtanh.f32 %v2242_v43  ;;  %v12185_v43 = vld [vmem:[#allocation70_spill] sm:$0xff] }
 0x3a6   :  { %7024 = vtanh.f32 %v2243_v23  ;;  %v12186_v23 = vld [vmem:[#allocation75_spill] sm:$0xff] }
 0x3a7   :  { %7026 = vpow2.f32 %v6612_v14  ;;  %v12187_v14 = vld [vmem:[#allocation72_spill] sm:$0xff] }
 0x3a8   :  { %7028 = vpow2.f32 %v6613_v0  ;;  %v12188_v0 = vld [vmem:[#allocation77_spill] sm:$0xff] }
 0x3aa   :  { %v7007_v25 = vpop.eup %7006 }
 0x3ab   :  { %v7009_v28 = vpop.eup %7008  ;;  %v2218_v30 = vadd.f32 1.0, %v7007_v25  ;;  %v12189_v25 = vld [vmem:[#allocation74_spill] sm:$0xff] }
 0x3ac   :  { %v7011_v32 = vpop.eup %7010  ;;  %v2219_v33 = vadd.f32 1.0, %v7009_v28 }
 0x3ad   :  { %v7013_v34 = vpop.eup %7012  ;;  %7030 = vrcp.f32 %v2218_v30  ;;  %v2236_v35 = vadd.f32 1.0, %v7011_v32  ;;  %v12190_v30 = vld [vmem:[#allocation79_spill] sm:$0xff]  ;;  %v12191_v32 = vld [vmem:[#allocation76_spill] sm:$0xff] }
 0x3ae   :  { %7032 = vrcp.f32 %v2219_v33  ;;  %v2237_v19 = vadd.f32 1.0, %v7013_v34  ;;  %v7015_v46 = vpop.eup %7014  ;;  %v12192_v34 = vld [vmem:[#allocation81_spill] sm:$0xff] }
 0x3af   :  { %7034 = vrcp.f32 %v2236_v35  ;;  %v7017_v47 = vpop.eup %7016  ;;  %v12193_v35 = vld [vmem:[#allocation78_spill] sm:$0xff] }
 0x3b0   :  { %7036 = vrcp.f32 %v2237_v19  ;;  %v7019_v48 = vpop.eup %7018 }
 0x3b1   :  { %v7021_v54 = vpop.eup %7020  ;;  %v2210_v55 = vmul.f32 %v7019_v48, %v7015_v46  ;;  %v12194_v46 = vld [vmem:[#allocation83_spill] sm:$0xff] }
 0x3b2   :  { %v2211_v56 = vmul.f32 %v7021_v54, %v7017_v47  ;;  %v7023_v57 = vpop.eup %7022  ;;  %v12195_v47 = vld [vmem:[#allocation80_spill] sm:$0xff]  ;;  %v12196_v54 = vld [vmem:[#allocation82_spill] sm:$0xff] }
 0x3b3   :  { %2274 = vst [vmem:[#allocation2 + $0x2] sm:$0x1] %v2210_v55  ;;  %v7025_v60 = vpop.eup %7024 }
 0x3b4   :  { %2276 = vst [vmem:[#allocation2 + $0x12] sm:$0x1] %v2211_v56  ;;  %v2284_v59 = vcombine.low %v2210_v55, %v2211_v56  ;;  %v7027_v62 = vpop.eup %7026 }
 0x3b5   :  { %v7029_v1 = vpop.eup %7028  ;;  %v2258_v5 = vadd.f32 1.0, %v7027_v62 }
 0x3b6   :  { %v2291_v63 = vrot.slane %v2284_v59, %v8812_v52  ;;  %v2259_v7 = vadd.f32 1.0, %v7029_v1  ;;  %v12198_v59 = vld [vmem:[#allocation85_spill] sm:$0xff] }
 0x3b7   :  { %7038 = vrcp.f32 %v2258_v5  ;;  %v12202_v1 = vld [vmem:[#allocation89_spill] sm:$0xff]  ;;  %v12207_v5 = vld [vmem:[#allocation94_spill] sm:$0xff] }
 0x3b8   :  { %v2298_v3 = vrot.slane %v2291_v63, %v8812_v52  ;;  %7040 = vrcp.f32 %v2259_v7  ;;  %v12201_v63 = vld [vmem:[#allocation88_spill] sm:$0xff]  ;;  %v12210_v7 = vld [vmem:[#allocation97_spill] sm:$0xff] }
 0x3ba   :  { %v7031_v2 = vpop.eup %7030  ;;  %2365 = vmatmul.mubr.f32.vlgmr.msra.gmra.mxu0 %v2298_v3  ;;  %2436 = vmatmul.mubr.f32.vlgmr.msra.gmra.mxu1 %v2298_v3 }
 0x3bb   :  { %v7033_v4 = vpop.eup %7032  ;;  %v2266_v9 = vmul.f32 %v7031_v2, %v7023_v57  ;;  %2505 = vmatpush1.msra.mxu0 %v9312_v49  ;;  %2576 = vmatpush1.msra.mxu1 %v9315_v58  ;;  %v12172_v58 = vld [vmem:[#allocation61_spill] sm:$0xff]  ;;  %v12197_v57 = vld [vmem:[#allocation84_spill] sm:$0xff] }
 0x3bc   :  { %v7035_v6 = vpop.eup %7034  ;;  %v2267_v11 = vmul.f32 %v7033_v4, %v7025_v60  ;;  %2506 = vmatprep.subr.mxu0 %v9319_v36  ;;  %2577 = vmatprep.subr.mxu1 %v9322_v53  ;;  %v12173_v36 = vld [vmem:[#allocation58_spill] sm:$0xff]  ;;  %v12174_v53 = vld [vmem:[#allocation63_spill] sm:$0xff]  ;;  %v12205_v2 = vld [vmem:[#allocation92_spill] sm:$0xff] }
 0x3bd   :  { %v7037_v8 = vpop.eup %7036  ;;  %v2264_v10 = vmul.f32 %v7035_v6, %v9332_v17  ;;  %2507 = vmatpush1.msra.mxu0 %v9326_v44  ;;  %2578 = vmatpush1.msra.mxu1 %v9329_v42  ;;  %v12175_v44 = vld [vmem:[#allocation60_spill] sm:$0xff]  ;;  %v12176_v42 = vld [vmem:[#allocation65_spill] sm:$0xff]  ;;  %v12177_v17 = vld [vmem:[#allocation62_spill] sm:$0xff] }
 0x3be   :  { %v2265_v20 = vmul.f32 %v7037_v8, %v9340_v24  ;;  %2508 = vmatprep.subr.mxu0 %v9334_v41  ;;  %2579 = vmatprep.subr.mxu1 %v9337_v37  ;;  %v12178_v41 = vld [vmem:[#allocation67_spill] sm:$0xff]  ;;  %v12179_v37 = vld [vmem:[#allocation64_spill] sm:$0xff]  ;;  %v12180_v24 = vld [vmem:[#allocation69_spill] sm:$0xff] }
 0x3bf   :  { %v9604_v15 = vadd.f32 %v2266_v9, %v2264_v10  ;;  %2509 = vmatpush1.msra.mxu0 %v9342_v51  ;;  %2580 = vmatpush1.msra.mxu1 %v9345_v27  ;;  %v12181_v51 = vld [vmem:[#allocation66_spill] sm:$0xff]  ;;  %v12182_v27 = vld [vmem:[#allocation71_spill] sm:$0xff]  ;;  %v12206_v4 = vld [vmem:[#allocation93_spill] sm:$0xff] }
 0x3c0   :  { %v9608_v49 = vadd.f32 %v2267_v11, %v2265_v20  ;;  %2510 = vmatprep.subr.mxu0 %v9349_v50  ;;  %2581 = vmatprep.subr.mxu1 %v9352_v40  ;;  %v12183_v50 = vld [vmem:[#allocation68_spill] sm:$0xff]  ;;  %v12184_v40 = vld [vmem:[#allocation73_spill] sm:$0xff]  ;;  %v12199_v60 = vld [vmem:[#allocation86_spill] sm:$0xff] }
 0x3c1   :  { %7042 = vtanh.f32 %v9604_v15  ;;  %2511 = vmatpush1.msra.mxu0 %v12172_v58  ;;  %2582 = vmatpush1.msra.mxu1 %v12173_v36  ;;  %v12209_v6 = vld [vmem:[#allocation96_spill] sm:$0xff]  ;;  %v12211_v8 = vld [vmem:[#allocation98_spill] sm:$0xff] }
 0x3c2   :  { %7044 = vtanh.f32 %v9608_v49  ;;  %2512 = vmatprep.subr.mxu0 %v12174_v53  ;;  %2583 = vmatprep.subr.mxu1 %v12175_v44  ;;  %v9709_v10 = vld [vmem:[%s11929_s0 + $0x1c0] sm:$0xff]  ;;  %v9715_v11 = vld [vmem:[%s11929_s0 + $0x1d0] sm:$0xff]  ;;  %v9721_v20 = vld [vmem:[%s11929_s0 + $0x1a8] sm:$0xff] }
 0x3c3   :  { %2513 = vmatpush1.msra.mxu0 %v12176_v42  ;;  %2584 = vmatpush1.msra.mxu1 %v12177_v17  ;;  %v9727_v58 = vld [vmem:[%s11929_s0 + $0x1b8] sm:$0xff]  ;;  %v9733_v36 = vld [vmem:[%s11929_s0 + $0x1a0] sm:$0xff]  ;;  %v9739_v53 = vld [vmem:[%s11929_s0 + $0x1b0] sm:$0xff] }
 0x3c4   :  { %2514 = vmatprep.subr.mxu0 %v12178_v41  ;;  %2585 = vmatprep.subr.mxu1 %v12179_v37  ;;  %v7039_v28 = vpop.eup %7038  ;;  %v9745_v44 = vld [vmem:[%s11929_s0 + $0x188] sm:$0xff]  ;;  %v9751_v42 = vld [vmem:[%s11929_s0 + $0x198] sm:$0xff]  ;;  %v9757_v17 = vld [vmem:[%s11929_s0 + $0x180] sm:$0xff] }
 0x3c5   :  { %2515 = vmatpush1.msra.mxu0 %v12180_v24  ;;  %2586 = vmatpush1.msra.mxu1 %v12181_v51  ;;  %v7041_v33 = vpop.eup %7040  ;;  %v9763_v41 = vld [vmem:[%s11929_s0 + $0x190] sm:$0xff]  ;;  %v9769_v37 = vld [vmem:[%s11929_s0 + $0x168] sm:$0xff]  ;;  %v9775_v24 = vld [vmem:[%s11929_s0 + $0x178] sm:$0xff] }
 0x3c6   :  { %2516 = vmatprep.subr.mxu0 %v12182_v27  ;;  %2587 = vmatprep.subr.mxu1 %v12183_v50  ;;  %v9781_v51 = vld [vmem:[%s11929_s0 + $0x160] sm:$0xff]  ;;  %v9787_v27 = vld [vmem:[%s11929_s0 + $0x170] sm:$0xff]  ;;  %v9793_v50 = vld [vmem:[%s11929_s0 + $0x148] sm:$0xff] }
 0x3c7   :  { %2517 = vmatpush1.msra.mxu0 %v12184_v40  ;;  %2588 = vmatpush1.msra.mxu1 %v12185_v43  ;;  %v9799_v40 = vld [vmem:[%s11929_s0 + $0x158] sm:$0xff]  ;;  %v9805_v43 = vld [vmem:[%s11929_s0 + $0x140] sm:$0xff] }
 0x3c8   :  { %2518 = vmatprep.subr.mxu0 %v12186_v23  ;;  %2589 = vmatprep.subr.mxu1 %v12187_v14  ;;  %v9811_v23 = vld [vmem:[%s11929_s0 + $0x150] sm:$0xff]  ;;  %v9817_v14 = vld [vmem:[%s11929_s0 + $0x128] sm:$0xff] }
 0x3c9   :  { %2519 = vmatpush1.msra.mxu0 %v12188_v0  ;;  %2590 = vmatpush1.msra.mxu1 %v12189_v25  ;;  %v9823_v0 = vld [vmem:[%s11929_s0 + $0x138] sm:$0xff]  ;;  %v9829_v25 = vld [vmem:[%s11929_s0 + $0x120] sm:$0xff] }
 0x3ca   :  { %2520 = vmatprep.subr.mxu0 %v12190_v30  ;;  %2591 = vmatprep.subr.mxu1 %v12191_v32  ;;  %v9841_v30 = vld [vmem:[%s11929_s0 + $0x108] sm:$0xff]  ;;  %v9847_v32 = vld [vmem:[%s11929_s0 + $0x118] sm:$0xff] }
 0x3cb   :  { %2521 = vmatpush1.msra.mxu0 %v12192_v34  ;;  %2592 = vmatpush1.msra.mxu1 %v12193_v35  ;;  %v9859_v34 = vld [vmem:[%s11929_s0 + $0x110] sm:$0xff]  ;;  %v9865_v35 = vld [vmem:[%s11929_s0 + $0xe8] sm:$0xff] }
 0x3cc   :  { %2522 = vmatprep.subr.mxu0 %v12194_v46  ;;  %2593 = vmatprep.subr.mxu1 %v12195_v47  ;;  %v9877_v46 = vld [vmem:[%s11929_s0 + $0xe0] sm:$0xff]  ;;  %v9883_v47 = vld [vmem:[%s11929_s0 + $0xf0] sm:$0xff] }
 0x3cd   :  { %2523 = vmatpush1.msra.mxu0 %v9428_v26  ;;  %2594 = vmatpush1.msra.mxu1 %v12196_v54  ;;  %v12200_v26 = vld [vmem:[#allocation87_spill] sm:$0xff]  ;;  %12212 = vst [vmem:[#allocation29_spill] sm:$0xff] %v9877_v46  ;;  %12213 = vst [vmem:[#allocation26_spill] sm:$0xff] %v9883_v47  ;;  %v9895_v54 = vld [vmem:[%s11929_s0 + $0xd8] sm:$0xff] }
 0x3ce   :  { %v7043_v19 = vpop.eup %7042  ;;  %2524 = vmatprep.subr.mxu0 %v9434_v61  ;;  %2595 = vmatprep.subr.mxu1 %v9437_v31  ;;  %v12203_v61 = vld [vmem:[#allocation90_spill] sm:$0xff]  ;;  %v12204_v31 = vld [vmem:[#allocation91_spill] sm:$0xff]  ;;  %12215 = vst [vmem:[#allocation28_spill] sm:$0xff] %v9895_v54 }
 0x3cf   :  { %v7045_v48 = vpop.eup %7044  ;;  %v2272_v55 = vmul.f32 %v7043_v19, %v7039_v28  ;;  %2525 = vmatpush1.msra.mxu0 %v12197_v57  ;;  %2596 = vmatpush1.msra.mxu1 %v12198_v59  ;;  %v9835_v28 = vld [vmem:[%s11929_s0 + $0x130] sm:$0xff]  ;;  %v9871_v19 = vld [vmem:[%s11929_s0 + $0xf8] sm:$0xff]  ;;  %v9913_v57 = vld [vmem:[%s11929_s0 + $0xa8] sm:$0xff] }
 0x3d0   :  { %v2273_v56 = vmul.f32 %v7045_v48, %v7041_v33  ;;  %2526 = vmatprep.subr.mxu0 %v12199_v60  ;;  %2597 = vmatprep.subr.mxu1 %v9449_v16  ;;  %v12208_v16 = vld [vmem:[#allocation95_spill] sm:$0xff]  ;;  %v9853_v33 = vld [vmem:[%s11929_s0 + $0x100] sm:$0xff]  ;;  %12218 = vst [vmem:[#allocation34_spill] sm:$0xff] %v9913_v57  ;;  %v9919_v59 = vld [vmem:[%s11929_s0 + $0xb8] sm:$0xff] }
 0x3d1   :  { %2275 = vst [vmem:[#allocation2 + $0xd] sm:$0x1] %v2272_v55  ;;  %2527 = vmatpush1.msra.mxu0 %v12200_v26  ;;  %2598 = vmatpush1.msra.mxu1 %v12201_v63  ;;  %v9889_v48 = vld [vmem:[%s11929_s0 + $0xc8] sm:$0xff]  ;;  %12219 = vst [vmem:[#allocation33_spill] sm:$0xff] %v9919_v59  ;;  %v9925_v60 = vld [vmem:[%s11929_s0 + $0xa0] sm:$0xff] }
 0x3d2   :  { %2277 = vst [vmem:[#allocation2 + $0x1d] sm:$0x1] %v2273_v56  ;;  %v2488_v62 = vcombine.low %v2272_v55, %v2273_v56  ;;  %2528 = vmatprep.subr.mxu0 %v12202_v1  ;;  %2599 = vmatprep.subr.mxu1 %v12203_v61  ;;  %12214 = vst [vmem:[#allocation31_spill] sm:$0xff] %v9889_v48  ;;  %v9901_v55 = vld [vmem:[%s11929_s0 + $0xc0] sm:$0xff]  ;;  %v9907_v56 = vld [vmem:[%s11929_s0 + $0xd0] sm:$0xff] }
 0x3d3   :  { %2529 = vmatpush1.msra.mxu0 %v12204_v31  ;;  %2600 = vmatpush1.msra.mxu1 %v12205_v2  ;;  %12216 = vst [vmem:[#allocation32_spill] sm:$0xff] %v9901_v55  ;;  %12217 = vst [vmem:[#allocation30_spill] sm:$0xff] %v9907_v56  ;;  %v9937_v26 = vld [vmem:[%s11929_s0 + $0x88] sm:$0xff]  ;;  %v9943_v63 = vld [vmem:[%s11929_s0 + $0x98] sm:$0xff] }
 0x3d4   :  { %v2495_v3 = vrot.slane %v2488_v62, %v8812_v52  ;;  %2530 = vmatprep.subr.mxu0 %v12206_v4  ;;  %2601 = vmatprep.subr.mxu1 %v12207_v5  ;;  %12220 = vst [vmem:[#allocation37_spill] sm:$0xff] %v9925_v60  ;;  %v9931_v62 = vld [vmem:[%s11929_s0 + $0xb0] sm:$0xff]  ;;  %12222 = vst [vmem:[#allocation39_spill] sm:$0xff] %v9937_v26  ;;  %v9949_v1 = vld [vmem:[%s11929_s0 + $0x80] sm:$0xff] }
 0x3d5   :  { %2531 = vmatpush1.msra.mxu0 %v12208_v16  ;;  %2602 = vmatpush1.msra.mxu1 %v12209_v6  ;;  %12221 = vst [vmem:[#allocation35_spill] sm:$0xff] %v9931_v62  ;;  %12223 = vst [vmem:[#allocation36_spill] sm:$0xff] %v9943_v63  ;;  %v9955_v61 = vld [vmem:[%s11929_s0 + $0x90] sm:$0xff]  ;;  %v9961_v31 = vld [vmem:[%s11929_s0 + $0x68] sm:$0xff] }
 0x3d6   :  { %2532 = vmatprep.subr.mxu0 %v12210_v7  ;;  %2603 = vmatprep.subr.mxu1 %v9486_v39  ;;  %v2502_v9 = vrot.slane %v2495_v3, %v8812_v52  ;;  %v9703_v39 = vld [vmem:[%s11929_s0 + $0x1d8] sm:$0xff]  ;;  %12224 = vst [vmem:[#allocation41_spill] sm:$0xff] %v9949_v1  ;;  %12225 = vst [vmem:[#allocation38_spill] sm:$0xff] %v9955_v61  ;;  %v9973_v3 = vld [vmem:[%s11929_s0 + $0x60] sm:$0xff] }
 0x3d7   :  { %2533 = vmatpush1.msra.mxu0 %v12211_v8  ;;  %2604 = vmatpush1.msra.mxu1 %v9492_v18  ;;  %v9673_v18 = vld [vmem:[%s11929_s0 + $0x1e8] sm:$0xff]  ;;  %12226 = vst [vmem:[#allocation43_spill] sm:$0xff] %v9961_v31  ;;  %v9967_v2 = vld [vmem:[%s11929_s0 + $0x78] sm:$0xff]  ;;  %12228 = vst [vmem:[#allocation45_spill] sm:$0xff] %v9973_v3 }
 0x3d8   :  { %2534 = vmatprep.subr.mxu0 %v9496_v45  ;;  %2605 = vmatprep.subr.mxu1 %v9499_v21  ;;  %v9679_v21 = vld [vmem:[%s11929_s0 + $0x1f8] sm:$0xff]  ;;  %v9697_v45 = vld [vmem:[%s11929_s0 + $0x1c8] sm:$0xff]  ;;  %12227 = vst [vmem:[#allocation40_spill] sm:$0xff] %v9967_v2  ;;  %v9979_v4 = vld [vmem:[%s11929_s0 + $0x70] sm:$0xff] }
 0x3d9   :  { %2535 = vmatpush1.msra.mxu0 %v9502_v22  ;;  %2568 = vmatprep.mubr.f32.mxu0 %v11943_v29  ;;  %v9685_v22 = vld [vmem:[%s11929_s0 + $0x1e0] sm:$0xff]  ;;  %12229 = vst [vmem:[#allocation42_spill] sm:$0xff] %v9979_v4  ;;  %v9985_v5 = vld [vmem:[%s11929_s0 + $0x48] sm:$0xff]  ;;  %v9991_v16 = vld [vmem:[%s11929_s0 + $0x58] sm:$0xff] }
 0x3da   :  { %2606 = vmatpush1.msra.mxu1 %v9506_v38  ;;  %2639 = vmatprep.mubr.f32.mxu1 %v11943_v29  ;;  %v9691_v38 = vld [vmem:[%s11929_s0 + $0x1f0] sm:$0xff]  ;;  %12230 = vst [vmem:[#allocation47_spill] sm:$0xff] %v9985_v5  ;;  %12231 = vst [vmem:[#allocation44_spill] sm:$0xff] %v9991_v16  ;;  %v9997_v6 = vld [vmem:[%s11929_s0 + $0x40] sm:$0xff] }
 0x3db   :  { %2569 = vmatmul.mubr.f32.vlgmr.msra.gmra.mxu0 %v2502_v9  ;;  %2640 = vmatmul.mubr.f32.vlgmr.msra.gmra.mxu1 %v2502_v9  ;;  %12232 = vst [vmem:[#allocation49_spill] sm:$0xff] %v9997_v6  ;;  %v10003_v7 = vld [vmem:[%s11929_s0 + $0x50] sm:$0xff]  ;;  %v10009_v8 = vld [vmem:[%s11929_s0 + $0x28] sm:$0xff]  ;;  %v10015_v9 = vld [vmem:[%s11929_s0 + $0x38] sm:$0xff] }
 0x3dc   :  { %2836 = vmatprep.subr.mxu0 %v9673_v18  ;;  %2907 = vmatprep.subr.mxu1 %v9679_v21  ;;  %12233 = vst [vmem:[#allocation46_spill] sm:$0xff] %v10003_v7  ;;  %12234 = vst [vmem:[#allocation51_spill] sm:$0xff] %v10009_v8 }
 0x3dd   :  { %2837 = vmatpush1.msra.mxu0 %v9685_v22  ;;  %2908 = vmatpush1.msra.mxu1 %v9691_v38  ;;  %12235 = vst [vmem:[#allocation48_spill] sm:$0xff] %v10015_v9 }
 0x3de   :  { %2838 = vmatprep.subr.mxu0 %v9697_v45  ;;  %2909 = vmatprep.subr.mxu1 %v9703_v39 }
 0x3df   :  { %2839 = vmatpush1.msra.mxu0 %v9709_v10  ;;  %2910 = vmatpush1.msra.mxu1 %v9715_v11 }
 0x3e0   :  { %2840 = vmatprep.subr.mxu0 %v9721_v20  ;;  %2911 = vmatprep.subr.mxu1 %v9727_v58 }
 0x3e1   :  { %2841 = vmatpush1.msra.mxu0 %v9733_v36  ;;  %2912 = vmatpush1.msra.mxu1 %v9739_v53 }
 0x3e2   :  { %2842 = vmatprep.subr.mxu0 %v9745_v44  ;;  %2913 = vmatprep.subr.mxu1 %v9751_v42 }
 0x3e3   :  { %2843 = vmatpush1.msra.mxu0 %v9757_v17  ;;  %2914 = vmatpush1.msra.mxu1 %v9763_v41 }
 0x3e4   :  { %2844 = vmatprep.subr.mxu0 %v9769_v37  ;;  %2915 = vmatprep.subr.mxu1 %v9775_v24 }
 0x3e5   :  { %2845 = vmatpush1.msra.mxu0 %v9781_v51  ;;  %2916 = vmatpush1.msra.mxu1 %v9787_v27 }
 0x3e6   :  { %2846 = vmatprep.subr.mxu0 %v9793_v50  ;;  %2917 = vmatprep.subr.mxu1 %v9799_v40 }
 0x3e7   :  { %2847 = vmatpush1.msra.mxu0 %v9805_v43  ;;  %2918 = vmatpush1.msra.mxu1 %v9811_v23 }
 0x3e8   :  { %2848 = vmatprep.subr.mxu0 %v9817_v14  ;;  %2919 = vmatprep.subr.mxu1 %v9823_v0 }
 0x3e9   :  { %2849 = vmatpush1.msra.mxu0 %v9829_v25  ;;  %2920 = vmatpush1.msra.mxu1 %v9835_v28 }
 0x3ea   :  { %2850 = vmatprep.subr.mxu0 %v9841_v30  ;;  %2921 = vmatprep.subr.mxu1 %v9847_v32 }
 0x3eb   :  { %2851 = vmatpush1.msra.mxu0 %v9853_v33  ;;  %2922 = vmatpush1.msra.mxu1 %v9859_v34 }
 0x3ec   :  { %2852 = vmatprep.subr.mxu0 %v9865_v35  ;;  %2923 = vmatprep.subr.mxu1 %v9871_v19 }
 0x3ed   :  { %2853 = vmatpush1.msra.mxu0 %v9877_v46  ;;  %2924 = vmatpush1.msra.mxu1 %v9883_v47 }
 0x3ee   :  { %2854 = vmatprep.subr.mxu0 %v9889_v48  ;;  %2925 = vmatprep.subr.mxu1 %v9895_v54 }
 0x3ef   :  { %2855 = vmatpush1.msra.mxu0 %v9901_v55  ;;  %2926 = vmatpush1.msra.mxu1 %v9907_v56 }
 0x3f0   :  { %2856 = vmatprep.subr.mxu0 %v9913_v57  ;;  %2927 = vmatprep.subr.mxu1 %v9919_v59 }
 0x3f1   :  { %2857 = vmatpush1.msra.mxu0 %v9925_v60  ;;  %2928 = vmatpush1.msra.mxu1 %v9931_v62  ;;  %v2281_v62 = vld [vmem:[#allocation3 + $0x23] ss:$8 sm:$0xf] }
 0x3f2   :  { %2858 = vmatprep.subr.mxu0 %v9937_v26  ;;  %2929 = vmatprep.subr.mxu1 %v9943_v63  ;;  %v2279_v26 = vld [vmem:[#allocation3 + $0x3] ss:$8 sm:$0xf] }
 0x3f3   :  { %2859 = vmatpush1.msra.mxu0 %v9949_v1  ;;  %2930 = vmatpush1.msra.mxu1 %v9955_v61 }
 0x3f4   :  { %2860 = vmatprep.subr.mxu0 %v9961_v31  ;;  %2931 = vmatprep.subr.mxu1 %v9967_v2 }
 0x3f5   :  { %2861 = vmatpush1.msra.mxu0 %v9973_v3  ;;  %2932 = vmatpush1.msra.mxu1 %v9979_v4 }
 0x3f6   :  { %2862 = vmatprep.subr.mxu0 %v9985_v5  ;;  %2933 = vmatprep.subr.mxu1 %v9991_v16 }
 0x3f7   :  { %2863 = vmatpush1.msra.mxu0 %v9997_v6  ;;  %2934 = vmatpush1.msra.mxu1 %v10003_v7  ;;  %v10021_v6 = vld [vmem:[%s11929_s0 + $0x20] sm:$0xff]  ;;  %v10027_v7 = vld [vmem:[%s11929_s0 + $0x30] sm:$0xff] }
 0x3f8   :  { %2864 = vmatprep.subr.mxu0 %v10009_v8  ;;  %2935 = vmatprep.subr.mxu1 %v10015_v9  ;;  %12236 = vst [vmem:[#allocation53_spill] sm:$0xff] %v10021_v6  ;;  %12237 = vst [vmem:[#allocation50_spill] sm:$0xff] %v10027_v7  ;;  %v10033_v8 = vld [vmem:[%s11929_s0 + $0x8] sm:$0xff]  ;;  %v10039_v9 = vld [vmem:[%s11929_s0 + $0x18] sm:$0xff] }
 0x3f9   :  { %2865 = vmatpush1.msra.mxu0 %v10021_v6  ;;  %2936 = vmatpush1.msra.mxu1 %v10027_v7  ;;  %12238 = vst [vmem:[#allocation55_spill] sm:$0xff] %v10033_v8  ;;  %12239 = vst [vmem:[#allocation52_spill] sm:$0xff] %v10039_v9  ;;  %v10045_v6 = vld [vmem:[%s11929_s0] sm:$0xff]  ;;  %v10056_v7 = vld [vmem:[#allocation8 + $0x1e8] sm:$0xff] }
 0x3fa   :  { %2866 = vmatprep.subr.mxu0 %v10033_v8  ;;  %2937 = vmatprep.subr.mxu1 %v10039_v9  ;;  %12240 = vst [vmem:[#allocation57_spill] sm:$0xff] %v10045_v6  ;;  %v10052_v8 = vld [vmem:[%s11929_s0 + $0x10] sm:$0xff]  ;;  %12242 = vst [vmem:[#allocation59_spill] sm:$0xff] %v10056_v7  ;;  %v10059_v9 = vld [vmem:[#allocation8 + $0x1f8] sm:$0xff] }
 0x3fb   :  { %2867 = vmatpush1.msra.mxu0 %v10045_v6  ;;  %2900 = vmatprep.mubr.f32.mxu0 %v11943_v29  ;;  %12241 = vst [vmem:[#allocation54_spill] sm:$0xff] %v10052_v8  ;;  %12243 = vst [vmem:[#allocation56_spill] sm:$0xff] %v10059_v9 }
 0x3fc   :  { %2938 = vmatpush1.msra.mxu1 %v10052_v8  ;;  %2971 = vmatprep.mubr.f32.mxu1 %v11943_v29 }
 0x3fd   :  { %3040 = vmatprep.subr.mxu0 %v10056_v7  ;;  %3111 = vmatprep.subr.mxu1 %v10059_v9 }
 0x47a   :  { %v2366_v6 = vpop.f32.mrf.mxu0  ;;  %v2437_v16 = vpop.f32.mrf.mxu1 }
 0x47c   :  { %v2368_v5 = vpop.f32.mrf.mxu0  ;;  %v2439_v4 = vpop.f32.mrf.mxu1 }
 0x47d   :  { %v2446_v3 = vcombine.low %v2366_v6, %v2368_v5  ;;  %v2447_v2 = vcombine.low %v2437_v16, %v2439_v4 }
 0x47f   :  { %v2454_v31 = vrot.slane %v2446_v3, %v8812_v52  ;;  %v2461_v8 = vrot.slane %v2447_v2, %v8812_v52 }
 0x481   :  { %v2462_v61 = vcombine.low %v2454_v31, %v2461_v8  ;;  %v2463_v1 = vcombine.high %v2454_v31, %v2461_v8 }
 0x483   :  { %v2470_v63 = vrot.slane %v2462_v61, %v8812_v52  ;;  %v2477_v7 = vrot.slane %v2463_v1, %v8812_v52 }
 0x485   :  { %v2480_v60 = vadd.f32 %v2470_v63, %v2279_v26  ;;  %v2481_v9 = vadd.f32 %v2477_v7, %v2281_v62 }
 0x487   :  { %v6614_v59 = vmul.f32 -1.442695, %v2480_v60  ;;  %v6615_v57 = vmul.f32 -1.442695, %v2481_v9  ;;  %v2700_v56 = vrot.slane %v2480_v60, 1  ;;  %v2701_v55 = vrot.slane %v2481_v9, 1 }
 0x488   :  { %v2722_v2 = vrot.slane %v2480_v60, 3  ;;  %v2723_v31 = vrot.slane %v2481_v9, 3 }
 0x489   :  { %7046 = vpow2.f32 %v6614_v59  ;;  %v6616_v4 = vmul.f32 -1.442695, %v2700_v56  ;;  %v6617_v5 = vmul.f32 -1.442695, %v2701_v55  ;;  %v2716_v56 = vrot.slane %v2480_v60, 2 }
 0x48a   :  { %7048 = vpow2.f32 %v6615_v57  ;;  %v6618_v3 = vmul.f32 -1.442695, %v2722_v2  ;;  %v6619_v61 = vmul.f32 -1.442695, %v2723_v31  ;;  %v2717_v55 = vrot.slane %v2481_v9, 2 }
 0x48b   :  { %7050 = vpow2.f32 %v6616_v4 }
 0x48c   :  { %7052 = vpow2.f32 %v6617_v5 }
 0x48d   :  { %7054 = vpow2.f32 %v6618_v3 }
 0x48e   :  { %7056 = vpow2.f32 %v6619_v61 }
 0x496   :  { %v7047_v16 = vpop.eup %7046 }
 0x497   :  { %v7049_v1 = vpop.eup %7048  ;;  %v2692_v6 = vadd.f32 1.0, %v7047_v16 }
 0x498   :  { %v7051_v8 = vpop.eup %7050  ;;  %v2693_v26 = vadd.f32 1.0, %v7049_v1 }
 0x499   :  { %v7053_v62 = vpop.eup %7052  ;;  %v2710_v63 = vadd.f32 1.0, %v7051_v8  ;;  %7058 = vrcp.f32 %v2692_v6  ;;  %v2483_v8 = vld [vmem:[#allocation4 + $0x4] ss:$8 sm:$0xf] }
 0x49a   :  { %v2711_v59 = vadd.f32 1.0, %v7053_v62  ;;  %v7055_v6 = vpop.eup %7054  ;;  %v2485_v62 = vld [vmem:[#allocation4 + $0x24] ss:$8 sm:$0xf] }
 0x49b   :  { %7060 = vrcp.f32 %v2710_v63  ;;  %v2570_v57 = vpop.f32.mrf.mxu0  ;;  %v2641_v7 = vpop.f32.mrf.mxu1 }
 0x49c   :  { %7062 = vrcp.f32 %v2711_v59 }
 0x49d   :  { %7064 = vrcp.f32 %v2693_v26  ;;  %v2572_v4 = vpop.f32.mrf.mxu0  ;;  %v2643_v5 = vpop.f32.mrf.mxu1 }
 0x49e   :  { %7066 = vtanh.f32 %v2716_v56  ;;  %v2650_v2 = vcombine.low %v2570_v57, %v2572_v4  ;;  %v2651_v31 = vcombine.low %v2641_v7, %v2643_v5  ;;  %v7057_v26 = vpop.eup %7056 }
 0x49f   :  { %7068 = vtanh.f32 %v2717_v55 }
 0x4a0   :  { %v2658_v3 = vrot.slane %v2650_v2, %v8812_v52  ;;  %v2665_v16 = vrot.slane %v2651_v31, %v8812_v52 }
 0x4a2   :  { %v2666_v61 = vcombine.low %v2658_v3, %v2665_v16  ;;  %v2667_v1 = vcombine.high %v2658_v3, %v2665_v16 }
 0x4a4   :  { %v2674_v60 = vrot.slane %v2666_v61, %v8812_v52  ;;  %v2681_v9 = vrot.slane %v2667_v1, %v8812_v52 }
 0x4a6   :  { %v2684_v63 = vadd.f32 %v2674_v60, %v2483_v8  ;;  %v2685_v59 = vadd.f32 %v2681_v9, %v2485_v62  ;;  %v7059_v56 = vpop.eup %7058  ;;  %v2732_v60 = vadd.f32 1.0, %v7055_v6  ;;  %v2733_v8 = vadd.f32 1.0, %v7057_v26 }
 0x4a8   :  { %v7061_v57 = vpop.eup %7060  ;;  %v6620_v7 = vmul.f32 -1.442695, %v2684_v63  ;;  %v6621_v55 = vmul.f32 -1.442695, %v2685_v59  ;;  %v2762_v4 = vrot.slane %v2684_v63, 1  ;;  %v2763_v2 = vrot.slane %v2685_v59, 1 }
 0x4a9   :  { %v7063_v5 = vpop.eup %7062  ;;  %v2738_v16 = vmul.f32 %v7061_v57, %v9588_v12  ;;  %v2785_v12 = vrot.slane %v2685_v59, 3  ;;  %v2778_v57 = vrot.slane %v2684_v63, 2 }
 0x4aa   :  { %v7065_v31 = vpop.eup %7064  ;;  %7070 = vpow2.f32 %v6620_v7  ;;  %v6622_v3 = vmul.f32 -1.442695, %v2762_v4  ;;  %v6623_v1 = vmul.f32 -1.442695, %v2763_v2  ;;  %v2739_v54 = vmul.f32 %v7063_v5, %v9590_v13 }
 0x4ab   :  { %v7067_v61 = vpop.eup %7066  ;;  %7072 = vpow2.f32 %v6621_v55  ;;  %v2784_v7 = vrot.slane %v2684_v63, 3  ;;  %v2779_v55 = vrot.slane %v2685_v59, 2  ;;  %v6625_v6 = vmul.f32 -1.442695, %v2785_v12 }
 0x4ac   :  { %v7069_v48 = vpop.eup %7068  ;;  %v2740_v9 = vmul.f32 %v7067_v61, %v7059_v56  ;;  %7074 = vpow2.f32 %v6622_v3 }
 0x4ad   :  { %v2741_v62 = vmul.f32 %v7069_v48, %v7065_v31  ;;  %7076 = vpow2.f32 %v6623_v1  ;;  %v6624_v13 = vmul.f32 -1.442695, %v2784_v7 }
 0x4ae   :  { %v10072_v47 = vadd.f32 %v2740_v9, %v2738_v16  ;;  %7078 = vrcp.f32 %v2732_v60 }
 0x4af   :  { %v10074_v46 = vadd.f32 %v2741_v62, %v2739_v54  ;;  %7080 = vrcp.f32 %v2733_v8 }
 0x4b0   :  { %7082 = vtanh.f32 %v10072_v47 }
 0x4b1   :  { %7084 = vtanh.f32 %v10074_v46 }
 0x4b2   :  { %7086 = vtanh.f32 %v2778_v57 }
 0x4b3   :  { %7088 = vtanh.f32 %v2779_v55 }
 0x4b4   :  { %7090 = vpow2.f32 %v6624_v13 }
 0x4b5   :  { %7092 = vpow2.f32 %v6625_v6 }
 0x4b7   :  { %v7071_v26 = vpop.eup %7070 }
 0x4b8   :  { %v7073_v48 = vpop.eup %7072  ;;  %v2754_v56 = vadd.f32 1.0, %v7071_v26 }
 0x4b9   :  { %v7075_v54 = vpop.eup %7074  ;;  %v2755_v4 = vadd.f32 1.0, %v7073_v48 }
 0x4ba   :  { %v7077_v5 = vpop.eup %7076  ;;  %7094 = vrcp.f32 %v2754_v56  ;;  %v2772_v2 = vadd.f32 1.0, %v7075_v54 }
 0x4bb   :  { %7096 = vrcp.f32 %v2755_v4  ;;  %v2773_v63 = vadd.f32 1.0, %v7077_v5  ;;  %v7079_v59 = vpop.eup %7078  ;;  %v10080_v4 = vld [vmem:[#allocation8 + $0x1e0] sm:$0xff]  ;;  %v10083_v5 = vld [vmem:[#allocation8 + $0x1f0] sm:$0xff] }
 0x4bc   :  { %7098 = vrcp.f32 %v2772_v2  ;;  %v7081_v31 = vpop.eup %7080 }
 0x4bd   :  { %7100 = vrcp.f32 %v2773_v63  ;;  %v7083_v3 = vpop.eup %7082 }
 0x4be   :  { %v7085_v16 = vpop.eup %7084  ;;  %v2746_v61 = vmul.f32 %v7083_v3, %v7079_v59  ;;  %v10087_v59 = vld [vmem:[#allocation8 + $0x1c8] sm:$0xff] }
 0x4bf   :  { %v2747_v1 = vmul.f32 %v7085_v16, %v7081_v31  ;;  %v7087_v60 = vpop.eup %7086  ;;  %v10090_v31 = vld [vmem:[#allocation8 + $0x1d8] sm:$0xff]  ;;  %v10094_v16 = vld [vmem:[#allocation8 + $0x1c0] sm:$0xff] }
 0x4c0   :  { %2810 = vst [vmem:[#allocation2 + $0x3] sm:$0x1] %v2746_v61  ;;  %v7089_v8 = vpop.eup %7088 }
 0x4c1   :  { %2812 = vst [vmem:[#allocation2 + $0x13] sm:$0x1] %v2747_v1  ;;  %v2820_v9 = vcombine.low %v2746_v61, %v2747_v1  ;;  %v7091_v62 = vpop.eup %7090  ;;  %v10097_v61 = vld [vmem:[#allocation8 + $0x1d0] sm:$0xff]  ;;  %v10102_v1 = vld [vmem:[#allocation8 + $0x1a8] sm:$0xff] }
 0x4c2   :  { %v7093_v12 = vpop.eup %7092  ;;  %v2794_v6 = vadd.f32 1.0, %v7091_v62  ;;  %v10117_v62 = vld [vmem:[#allocation8 + $0x188] sm:$0xff] }
 0x4c3   :  { %v2827_v7 = vrot.slane %v2820_v9, %v8812_v52  ;;  %v2795_v48 = vadd.f32 1.0, %v7093_v12  ;;  %v10110_v9 = vld [vmem:[#allocation8 + $0x1a0] sm:$0xff] }
 0x4c4   :  { %7102 = vrcp.f32 %v2794_v6  ;;  %v10124_v12 = vld [vmem:[#allocation8 + $0x180] sm:$0xff] }
 0x4c5   :  { %v2834_v55 = vrot.slane %v2827_v7, %v8812_v52  ;;  %7104 = vrcp.f32 %v2795_v48  ;;  %v10120_v7 = vld [vmem:[#allocation8 + $0x198] sm:$0xff]  ;;  %12244 = vst [vmem:[#allocation61_spill] sm:$0xff] %v10124_v12  ;;  %v10136_v6 = vld [vmem:[#allocation8 + $0x160] sm:$0xff]  ;;  %v10142_v48 = vld [vmem:[#allocation8 + $0x148] sm:$0xff] }
 0x4c6   :  { %12248 = vst [vmem:[#allocation65_spill] sm:$0xff] %v10136_v6  ;;  %12250 = vst [vmem:[#allocation67_spill] sm:$0xff] %v10142_v48 }
 0x4c7   :  { %v7095_v57 = vpop.eup %7094  ;;  %2901 = vmatmul.mubr.f32.vlgmr.msra.gmra.mxu0 %v2834_v55  ;;  %2972 = vmatmul.mubr.f32.vlgmr.msra.gmra.mxu1 %v2834_v55  ;;  %v10130_v55 = vld [vmem:[#allocation8 + $0x168] sm:$0xff] }
 0x4c8   :  { %v7097_v13 = vpop.eup %7096  ;;  %v2802_v54 = vmul.f32 %v7095_v57, %v7087_v60  ;;  %3041 = vmatpush1.msra.mxu0 %v10080_v4  ;;  %3112 = vmatpush1.msra.mxu1 %v10083_v5  ;;  %v10105_v60 = vld [vmem:[#allocation8 + $0x1b8] sm:$0xff]  ;;  %v10127_v57 = vld [vmem:[#allocation8 + $0x190] sm:$0xff]  ;;  %12246 = vst [vmem:[#allocation63_spill] sm:$0xff] %v10130_v55 }
 0x4c9   :  { %v7099_v26 = vpop.eup %7098  ;;  %v2803_v63 = vmul.f32 %v7097_v13, %v7089_v8  ;;  %3042 = vmatprep.subr.mxu0 %v10087_v59  ;;  %3113 = vmatprep.subr.mxu1 %v10090_v31  ;;  %v10113_v8 = vld [vmem:[#allocation8 + $0x1b0] sm:$0xff]  ;;  %12245 = vst [vmem:[#allocation58_spill] sm:$0xff] %v10127_v57  ;;  %v10133_v13 = vld [vmem:[#allocation8 + $0x178] sm:$0xff] }
 0x4ca   :  { %v7101_v56 = vpop.eup %7100  ;;  %v2800_v2 = vmul.f32 %v7099_v26, %v9604_v15  ;;  %3043 = vmatpush1.msra.mxu0 %v10094_v16  ;;  %3114 = vmatpush1.msra.mxu1 %v10097_v61  ;;  %12247 = vst [vmem:[#allocation60_spill] sm:$0xff] %v10133_v13  ;;  %v10139_v26 = vld [vmem:[#allocation8 + $0x170] sm:$0xff] }
 0x4cb   :  { %v2801_v3 = vmul.f32 %v7101_v56, %v9608_v49  ;;  %3044 = vmatprep.subr.mxu0 %v10102_v1  ;;  %3115 = vmatprep.subr.mxu1 %v10105_v60  ;;  %12249 = vst [vmem:[#allocation62_spill] sm:$0xff] %v10139_v26  ;;  %v10145_v56 = vld [vmem:[#allocation8 + $0x158] sm:$0xff] }
 0x4cc   :  { %v10100_v15 = vadd.f32 %v2802_v54, %v2800_v2  ;;  %3045 = vmatpush1.msra.mxu0 %v10110_v9  ;;  %3116 = vmatpush1.msra.mxu1 %v10113_v8  ;;  %12251 = vst [vmem:[#allocation64_spill] sm:$0xff] %v10145_v56  ;;  %v10148_v54 = vld [vmem:[#allocation8 + $0x140] sm:$0xff]  ;;  %v10151_v2 = vld [vmem:[#allocation8 + $0x150] sm:$0xff] }
 0x4cd   :  { %v10108_v49 = vadd.f32 %v2803_v63, %v2801_v3  ;;  %3046 = vmatprep.subr.mxu0 %v10117_v62  ;;  %3117 = vmatprep.subr.mxu1 %v10120_v7  ;;  %12252 = vst [vmem:[#allocation69_spill] sm:$0xff] %v10148_v54  ;;  %12253 = vst [vmem:[#allocation66_spill] sm:$0xff] %v10151_v2  ;;  %v10154_v63 = vld [vmem:[#allocation8 + $0x128] sm:$0xff]  ;;  %v10157_v3 = vld [vmem:[#allocation8 + $0x138] sm:$0xff] }
 0x4ce   :  { %7106 = vtanh.f32 %v10100_v15  ;;  %3047 = vmatpush1.msra.mxu0 %v10124_v12  ;;  %3118 = vmatpush1.msra.mxu1 %v10127_v57  ;;  %12254 = vst [vmem:[#allocation71_spill] sm:$0xff] %v10154_v63  ;;  %12255 = vst [vmem:[#allocation68_spill] sm:$0xff] %v10157_v3  ;;  %v10205_v57 = vld [vmem:[#allocation8 + $0xb8] sm:$0xff]  ;;  %v10211_v12 = vld [vmem:[#allocation8 + $0xb0] sm:$0xff] }
 0x4cf   :  { %7108 = vtanh.f32 %v10108_v49  ;;  %3048 = vmatprep.subr.mxu0 %v10130_v55  ;;  %3119 = vmatprep.subr.mxu1 %v10133_v13  ;;  %v10193_v13 = vld [vmem:[#allocation8 + $0xd8] sm:$0xff]  ;;  %v10199_v55 = vld [vmem:[#allocation8 + $0xd0] sm:$0xff]  ;;  %12270 = vst [vmem:[#allocation85_spill] sm:$0xff] %v10211_v12 }
 0x4d0   :  { %3049 = vmatpush1.msra.mxu0 %v10136_v6  ;;  %3120 = vmatpush1.msra.mxu1 %v10139_v26  ;;  %v10178_v26 = vld [vmem:[#allocation8 + $0xe8] sm:$0xff]  ;;  %v10184_v6 = vld [vmem:[#allocation8 + $0xe0] sm:$0xff]  ;;  %12267 = vst [vmem:[#allocation80_spill] sm:$0xff] %v10193_v13  ;;  %12268 = vst [vmem:[#allocation82_spill] sm:$0xff] %v10199_v55 }
 0x4d1   :  { %3050 = vmatprep.subr.mxu0 %v10142_v48  ;;  %3121 = vmatprep.subr.mxu1 %v10145_v56  ;;  %v10160_v48 = vld [vmem:[#allocation8 + $0x120] sm:$0xff]  ;;  %v10163_v56 = vld [vmem:[#allocation8 + $0x130] sm:$0xff]  ;;  %12262 = vst [vmem:[#allocation79_spill] sm:$0xff] %v10178_v26  ;;  %12264 = vst [vmem:[#allocation81_spill] sm:$0xff] %v10184_v6 }
 0x4d2   :  { %3051 = vmatpush1.msra.mxu0 %v10148_v54  ;;  %3122 = vmatpush1.msra.mxu1 %v10151_v2  ;;  %12256 = vst [vmem:[#allocation73_spill] sm:$0xff] %v10160_v48  ;;  %12257 = vst [vmem:[#allocation70_spill] sm:$0xff] %v10163_v56  ;;  %v10166_v54 = vld [vmem:[#allocation8 + $0x108] sm:$0xff]  ;;  %v10169_v2 = vld [vmem:[#allocation8 + $0x118] sm:$0xff] }
 0x4d3   :  { %3052 = vmatprep.subr.mxu0 %v10154_v63  ;;  %3123 = vmatprep.subr.mxu1 %v10157_v3  ;;  %12258 = vst [vmem:[#allocation75_spill] sm:$0xff] %v10166_v54  ;;  %12259 = vst [vmem:[#allocation72_spill] sm:$0xff] %v10169_v2  ;;  %v10172_v63 = vld [vmem:[#allocation8 + $0x100] sm:$0xff]  ;;  %v10175_v3 = vld [vmem:[#allocation8 + $0x110] sm:$0xff] }
 0x4d4   :  { %3053 = vmatpush1.msra.mxu0 %v10160_v48  ;;  %3124 = vmatpush1.msra.mxu1 %v10163_v56  ;;  %12260 = vst [vmem:[#allocation77_spill] sm:$0xff] %v10172_v63  ;;  %12261 = vst [vmem:[#allocation74_spill] sm:$0xff] %v10175_v3  ;;  %v7103_v48 = vpop.eup %7102  ;;  %v10181_v56 = vld [vmem:[#allocation8 + $0xf8] sm:$0xff] }
 0x4d5   :  { %3054 = vmatprep.subr.mxu0 %v10166_v54  ;;  %3125 = vmatprep.subr.mxu1 %v10169_v2  ;;  %12263 = vst [vmem:[#allocation76_spill] sm:$0xff] %v10181_v56  ;;  %v7105_v54 = vpop.eup %7104  ;;  %v10187_v2 = vld [vmem:[#allocation8 + $0xf0] sm:$0xff] }
 0x4d6   :  { %3055 = vmatpush1.msra.mxu0 %v10172_v63  ;;  %3126 = vmatpush1.msra.mxu1 %v10175_v3  ;;  %12265 = vst [vmem:[#allocation78_spill] sm:$0xff] %v10187_v2  ;;  %v10190_v3 = vld [vmem:[#allocation8 + $0xc8] sm:$0xff] }
 0x4d7   :  { %3056 = vmatprep.subr.mxu0 %v10178_v26  ;;  %3127 = vmatprep.subr.mxu1 %v10181_v56  ;;  %12266 = vst [vmem:[#allocation83_spill] sm:$0xff] %v10190_v3  ;;  %v10196_v56 = vld [vmem:[#allocation8 + $0xc0] sm:$0xff] }
 0x4d8   :  { %3057 = vmatpush1.msra.mxu0 %v10184_v6  ;;  %3128 = vmatpush1.msra.mxu1 %v10187_v2  ;;  %v10202_v2 = vld [vmem:[#allocation8 + $0xa8] sm:$0xff] }
 0x4d9   :  { %3058 = vmatprep.subr.mxu0 %v10190_v3  ;;  %3129 = vmatprep.subr.mxu1 %v10193_v13  ;;  %v10208_v13 = vld [vmem:[#allocation8 + $0xa0] sm:$0xff] }
 0x4da   :  { %3059 = vmatpush1.msra.mxu0 %v10196_v56  ;;  %3130 = vmatpush1.msra.mxu1 %v10199_v55  ;;  %12269 = vst [vmem:[#allocation84_spill] sm:$0xff] %v10208_v13  ;;  %v10214_v55 = vld [vmem:[#allocation8 + $0x88] sm:$0xff] }
 0x4db   :  { %v7107_v63 = vpop.eup %7106  ;;  %3060 = vmatprep.subr.mxu0 %v10202_v2  ;;  %3131 = vmatprep.subr.mxu1 %v10205_v57  ;;  %12271 = vst [vmem:[#allocation86_spill] sm:$0xff] %v10214_v55 }
 0x4dc   :  { %v7109_v26 = vpop.eup %7108  ;;  %v2808_v6 = vmul.f32 %v7107_v63, %v7103_v48  ;;  %3061 = vmatpush1.msra.mxu0 %v10208_v13  ;;  %3132 = vmatpush1.msra.mxu1 %v10211_v12  ;;  %v10217_v48 = vld [vmem:[#allocation8 + $0x98] sm:$0xff]  ;;  %v10226_v12 = vld [vmem:[#allocation8 + $0x68] sm:$0xff] }
 0x4dd   :  { %v2809_v3 = vmul.f32 %v7109_v26, %v7105_v54  ;;  %3062 = vmatprep.subr.mxu0 %v10214_v55  ;;  %3133 = vmatprep.subr.mxu1 %v10217_v48  ;;  %v10220_v26 = vld [vmem:[#allocation8 + $0x80] sm:$0xff]  ;;  %v10223_v54 = vld [vmem:[#allocation8 + $0x90] sm:$0xff]  ;;  %12274 = vst [vmem:[#allocation89_spill] sm:$0xff] %v10226_v12  ;;  %v10229_v13 = vld [vmem:[#allocation8 + $0x78] sm:$0xff] }
 0x4de   :  { %2811 = vst [vmem:[#allocation2 + $0xc] sm:$0x1] %v2808_v6  ;;  %12272 = vst [vmem:[#allocation87_spill] sm:$0xff] %v10220_v26  ;;  %3063 = vmatpush1.msra.mxu0 %v10220_v26  ;;  %3134 = vmatpush1.msra.mxu1 %v10223_v54  ;;  %v10232_v55 = vld [vmem:[#allocation8 + $0x60] sm:$0xff]  ;;  %v10239_v26 = vld [vmem:[#allocation8 + $0x48] sm:$0xff] }
 0x4df   :  { %2813 = vst [vmem:[#allocation2 + $0x1c] sm:$0x1] %v2809_v3  ;;  %v3024_v63 = vcombine.low %v2808_v6, %v2809_v3  ;;  %12273 = vst [vmem:[#allocation88_spill] sm:$0xff] %v10223_v54  ;;  %3064 = vmatprep.subr.mxu0 %v10226_v12  ;;  %3135 = vmatprep.subr.mxu1 %v10229_v13  ;;  %v10235_v6 = vld [vmem:[#allocation8 + $0x70] sm:$0xff]  ;;  %v10242_v54 = vld [vmem:[#allocation8 + $0x58] sm:$0xff] }
 0x4e0   :  { %12275 = vst [vmem:[#allocation90_spill] sm:$0xff] %v10229_v13  ;;  %12276 = vst [vmem:[#allocation91_spill] sm:$0xff] %v10232_v55  ;;  %3065 = vmatpush1.msra.mxu0 %v10232_v55  ;;  %3136 = vmatpush1.msra.mxu1 %v10235_v6  ;;  %v10245_v12 = vld [vmem:[#allocation8 + $0x40] sm:$0xff]  ;;  %v10248_v13 = vld [vmem:[#allocation8 + $0x50] sm:$0xff] }
 0x4e1   :  { %12277 = vst [vmem:[#allocation92_spill] sm:$0xff] %v10235_v6  ;;  %v3031_v3 = vrot.slane %v3024_v63, %v8812_v52  ;;  %12278 = vst [vmem:[#allocation93_spill] sm:$0xff] %v10239_v26  ;;  %3066 = vmatprep.subr.mxu0 %v10239_v26  ;;  %3137 = vmatprep.subr.mxu1 %v10242_v54  ;;  %v10251_v55 = vld [vmem:[#allocation8 + $0x28] sm:$0xff]  ;;  %v10254_v63 = vld [vmem:[#allocation8 + $0x38] sm:$0xff] }
 0x4e2   :  { %12279 = vst [vmem:[#allocation94_spill] sm:$0xff] %v10242_v54  ;;  %12280 = vst [vmem:[#allocation95_spill] sm:$0xff] %v10245_v12  ;;  %3067 = vmatpush1.msra.mxu0 %v10245_v12  ;;  %3138 = vmatpush1.msra.mxu1 %v10248_v13  ;;  %v10257_v26 = vld [vmem:[#allocation8 + $0x20] sm:$0xff]  ;;  %v10260_v54 = vld [vmem:[#allocation8 + $0x30] sm:$0xff] }
 0x4e3   :  { %12281 = vst [vmem:[#allocation96_spill] sm:$0xff] %v10248_v13  ;;  %12282 = vst [vmem:[#allocation97_spill] sm:$0xff] %v10251_v55  ;;  %3068 = vmatprep.subr.mxu0 %v10251_v55  ;;  %3139 = vmatprep.subr.mxu1 %v10254_v63  ;;  %v3038_v12 = vrot.slane %v3031_v3, %v8812_v52  ;;  %v10264_v6 = vld [vmem:[#allocation8 + $0x8] sm:$0xff]  ;;  %v10267_v13 = vld [vmem:[#allocation8 + $0x18] sm:$0xff] }
 0x4e4   :  { %12283 = vst [vmem:[#allocation98_spill] sm:$0xff] %v10257_v26  ;;  %3069 = vmatpush1.msra.mxu0 %v10257_v26  ;;  %3140 = vmatpush1.msra.mxu1 %v10260_v54  ;;  %v10270_v55 = vld [vmem:[#allocation8] sm:$0xff]  ;;  %v10274_v26 = vld [vmem:[#allocation8 + $0x10] sm:$0xff] }
 0x4e5   :  { %3070 = vmatprep.subr.mxu0 %v10264_v6  ;;  %3141 = vmatprep.subr.mxu1 %v10267_v13 }
 0x4e6   :  { %3071 = vmatpush1.msra.mxu0 %v10270_v55  ;;  %3104 = vmatprep.mubr.f32.mxu0 %v11943_v29 }
 0x4e7   :  { %3142 = vmatpush1.msra.mxu1 %v10274_v26  ;;  %3175 = vmatprep.mubr.f32.mxu1 %v11943_v29 }
 0x4e8   :  { %3105 = vmatmul.mubr.f32.vlgmr.msra.gmra.mxu0 %v3038_v12  ;;  %3176 = vmatmul.mubr.f32.vlgmr.msra.gmra.mxu1 %v3038_v12 }
 0x4e9   :  { %3372 = vmatprep.subr.mxu0 %v9673_v18  ;;  %3443 = vmatprep.subr.mxu1 %v9679_v21  ;;  %v12284_v18 = vld [vmem:[#allocation29_spill] sm:$0xff]  ;;  %v12285_v21 = vld [vmem:[#allocation26_spill] sm:$0xff] }
 0x4ea   :  { %3373 = vmatpush1.msra.mxu0 %v9685_v22  ;;  %3444 = vmatpush1.msra.mxu1 %v9691_v38  ;;  %v12286_v22 = vld [vmem:[#allocation31_spill] sm:$0xff]  ;;  %v12287_v38 = vld [vmem:[#allocation28_spill] sm:$0xff] }
 0x4eb   :  { %3374 = vmatprep.subr.mxu0 %v9697_v45  ;;  %3445 = vmatprep.subr.mxu1 %v9703_v39  ;;  %v12288_v45 = vld [vmem:[#allocation32_spill] sm:$0xff]  ;;  %v12289_v39 = vld [vmem:[#allocation30_spill] sm:$0xff] }
 0x4ec   :  { %3375 = vmatpush1.msra.mxu0 %v9709_v10  ;;  %3446 = vmatpush1.msra.mxu1 %v9715_v11  ;;  %v12290_v10 = vld [vmem:[#allocation34_spill] sm:$0xff]  ;;  %v12291_v11 = vld [vmem:[#allocation33_spill] sm:$0xff] }
 0x4ed   :  { %3376 = vmatprep.subr.mxu0 %v9721_v20  ;;  %3447 = vmatprep.subr.mxu1 %v9727_v58  ;;  %v12292_v20 = vld [vmem:[#allocation37_spill] sm:$0xff]  ;;  %v12293_v58 = vld [vmem:[#allocation35_spill] sm:$0xff] }
 0x4ee   :  { %3377 = vmatpush1.msra.mxu0 %v9733_v36  ;;  %3448 = vmatpush1.msra.mxu1 %v9739_v53  ;;  %v12294_v36 = vld [vmem:[#allocation39_spill] sm:$0xff]  ;;  %v12295_v53 = vld [vmem:[#allocation36_spill] sm:$0xff] }
 0x4ef   :  { %3378 = vmatprep.subr.mxu0 %v9745_v44  ;;  %3449 = vmatprep.subr.mxu1 %v9751_v42  ;;  %v12296_v44 = vld [vmem:[#allocation41_spill] sm:$0xff]  ;;  %v12297_v42 = vld [vmem:[#allocation38_spill] sm:$0xff] }
 0x4f0   :  { %3379 = vmatpush1.msra.mxu0 %v9757_v17  ;;  %3450 = vmatpush1.msra.mxu1 %v9763_v41  ;;  %v12298_v17 = vld [vmem:[#allocation43_spill] sm:$0xff]  ;;  %v12299_v41 = vld [vmem:[#allocation40_spill] sm:$0xff] }
 0x4f1   :  { %3380 = vmatprep.subr.mxu0 %v9769_v37  ;;  %3451 = vmatprep.subr.mxu1 %v9775_v24  ;;  %v12300_v37 = vld [vmem:[#allocation45_spill] sm:$0xff]  ;;  %v12301_v24 = vld [vmem:[#allocation42_spill] sm:$0xff] }
 0x4f2   :  { %3381 = vmatpush1.msra.mxu0 %v9781_v51  ;;  %3452 = vmatpush1.msra.mxu1 %v9787_v27  ;;  %v12302_v51 = vld [vmem:[#allocation47_spill] sm:$0xff]  ;;  %v12303_v27 = vld [vmem:[#allocation44_spill] sm:$0xff] }
 0x4f3   :  { %3382 = vmatprep.subr.mxu0 %v9793_v50  ;;  %3453 = vmatprep.subr.mxu1 %v9799_v40  ;;  %v12304_v50 = vld [vmem:[#allocation49_spill] sm:$0xff]  ;;  %v12305_v40 = vld [vmem:[#allocation46_spill] sm:$0xff] }
 0x4f4   :  { %3383 = vmatpush1.msra.mxu0 %v9805_v43  ;;  %3454 = vmatpush1.msra.mxu1 %v9811_v23  ;;  %v12306_v43 = vld [vmem:[#allocation51_spill] sm:$0xff]  ;;  %v12307_v23 = vld [vmem:[#allocation48_spill] sm:$0xff] }
 0x4f5   :  { %3384 = vmatprep.subr.mxu0 %v9817_v14  ;;  %3455 = vmatprep.subr.mxu1 %v9823_v0  ;;  %v12308_v14 = vld [vmem:[#allocation53_spill] sm:$0xff]  ;;  %v12309_v0 = vld [vmem:[#allocation50_spill] sm:$0xff] }
 0x4f6   :  { %3385 = vmatpush1.msra.mxu0 %v9829_v25  ;;  %3456 = vmatpush1.msra.mxu1 %v9835_v28  ;;  %v12310_v25 = vld [vmem:[#allocation55_spill] sm:$0xff]  ;;  %v12311_v28 = vld [vmem:[#allocation52_spill] sm:$0xff] }
 0x4f7   :  { %3386 = vmatprep.subr.mxu0 %v9841_v30  ;;  %3457 = vmatprep.subr.mxu1 %v9847_v32  ;;  %v12312_v30 = vld [vmem:[#allocation57_spill] sm:$0xff]  ;;  %v12313_v32 = vld [vmem:[#allocation54_spill] sm:$0xff] }
 0x4f8   :  { %3387 = vmatpush1.msra.mxu0 %v9853_v33  ;;  %3458 = vmatpush1.msra.mxu1 %v9859_v34  ;;  %v12314_v33 = vld [vmem:[#allocation59_spill] sm:$0xff]  ;;  %v12315_v34 = vld [vmem:[#allocation56_spill] sm:$0xff] }
 0x4f9   :  { %3388 = vmatprep.subr.mxu0 %v9865_v35  ;;  %3459 = vmatprep.subr.mxu1 %v9871_v19 }
 0x4fa   :  { %3389 = vmatpush1.msra.mxu0 %v12284_v18  ;;  %3460 = vmatpush1.msra.mxu1 %v12285_v21 }
 0x4fb   :  { %3390 = vmatprep.subr.mxu0 %v12286_v22  ;;  %3461 = vmatprep.subr.mxu1 %v12287_v38 }
 0x4fc   :  { %3391 = vmatpush1.msra.mxu0 %v12288_v45  ;;  %3462 = vmatpush1.msra.mxu1 %v12289_v39 }
 0x4fd   :  { %3392 = vmatprep.subr.mxu0 %v12290_v10  ;;  %3463 = vmatprep.subr.mxu1 %v12291_v11 }
 0x4fe   :  { %3393 = vmatpush1.msra.mxu0 %v12292_v20  ;;  %3464 = vmatpush1.msra.mxu1 %v12293_v58  ;;  %v2815_v20 = vld [vmem:[#allocation3 + $0x4] ss:$8 sm:$0xf] }
 0x4ff   :  { %3394 = vmatprep.subr.mxu0 %v12294_v36  ;;  %3465 = vmatprep.subr.mxu1 %v12295_v53  ;;  %v2817_v58 = vld [vmem:[#allocation3 + $0x24] ss:$8 sm:$0xf] }
 0x500   :  { %3395 = vmatpush1.msra.mxu0 %v12296_v44  ;;  %3466 = vmatpush1.msra.mxu1 %v12297_v42 }
 0x501   :  { %3396 = vmatprep.subr.mxu0 %v12298_v17  ;;  %3467 = vmatprep.subr.mxu1 %v12299_v41 }
 0x502   :  { %3397 = vmatpush1.msra.mxu0 %v12300_v37  ;;  %3468 = vmatpush1.msra.mxu1 %v12301_v24 }
 0x503   :  { %3398 = vmatprep.subr.mxu0 %v12302_v51  ;;  %3469 = vmatprep.subr.mxu1 %v12303_v27 }
 0x504   :  { %3399 = vmatpush1.msra.mxu0 %v12304_v50  ;;  %3470 = vmatpush1.msra.mxu1 %v12305_v40 }
 0x505   :  { %3400 = vmatprep.subr.mxu0 %v12306_v43  ;;  %3471 = vmatprep.subr.mxu1 %v12307_v23 }
 0x506   :  { %3401 = vmatpush1.msra.mxu0 %v12308_v14  ;;  %3472 = vmatpush1.msra.mxu1 %v12309_v0 }
 0x507   :  { %3402 = vmatprep.subr.mxu0 %v12310_v25  ;;  %3473 = vmatprep.subr.mxu1 %v12311_v28 }
 0x508   :  { %3403 = vmatpush1.msra.mxu0 %v12312_v30  ;;  %3436 = vmatprep.mubr.f32.mxu0 %v11943_v29 }
 0x509   :  { %3474 = vmatpush1.msra.mxu1 %v12313_v32  ;;  %3507 = vmatprep.mubr.f32.mxu1 %v11943_v29 }
 0x50a   :  { %3576 = vmatprep.subr.mxu0 %v12314_v33  ;;  %3647 = vmatprep.subr.mxu1 %v12315_v34 }
 0x587   :  { %v2902_v35 = vpop.f32.mrf.mxu0  ;;  %v2973_v19 = vpop.f32.mrf.mxu1 }
 0x589   :  { %v2904_v12 = vpop.f32.mrf.mxu0  ;;  %v2975_v3 = vpop.f32.mrf.mxu1 }
 0x58a   :  { %v2982_v18 = vcombine.low %v2902_v35, %v2904_v12  ;;  %v2983_v21 = vcombine.low %v2973_v19, %v2975_v3 }
 0x58c   :  { %v2990_v22 = vrot.slane %v2982_v18, %v8812_v52  ;;  %v2997_v38 = vrot.slane %v2983_v21, %v8812_v52 }
 0x58e   :  { %v2998_v45 = vcombine.low %v2990_v22, %v2997_v38  ;;  %v2999_v39 = vcombine.high %v2990_v22, %v2997_v38 }
 0x590   :  { %v3006_v10 = vrot.slane %v2998_v45, %v8812_v52  ;;  %v3013_v11 = vrot.slane %v2999_v39, %v8812_v52 }
 0x592   :  { %v3016_v36 = vadd.f32 %v3006_v10, %v2815_v20  ;;  %v3017_v53 = vadd.f32 %v3013_v11, %v2817_v58  ;;  %v3019_v58 = vld [vmem:[#allocation4 + $0x3] ss:$8 sm:$0xf] }
 0x594   :  { %v6626_v44 = vmul.f32 -1.442695, %v3016_v36  ;;  %v6627_v42 = vmul.f32 -1.442695, %v3017_v53  ;;  %v3236_v17 = vrot.slane %v3016_v36, 1  ;;  %v3237_v41 = vrot.slane %v3017_v53, 1 }
 0x595   :  { %v3258_v51 = vrot.slane %v3016_v36, 3  ;;  %v3259_v27 = vrot.slane %v3017_v53, 3  ;;  %v3252_v33 = vrot.slane %v3016_v36, 2  ;;  %v3253_v34 = vrot.slane %v3017_v53, 2 }
 0x596   :  { %7110 = vpow2.f32 %v6626_v44  ;;  %v6628_v37 = vmul.f32 -1.442695, %v3236_v17  ;;  %v6629_v24 = vmul.f32 -1.442695, %v3237_v41 }
 0x597   :  { %7112 = vpow2.f32 %v6627_v42  ;;  %v6630_v50 = vmul.f32 -1.442695, %v3258_v51  ;;  %v6631_v40 = vmul.f32 -1.442695, %v3259_v27 }
 0x598   :  { %7114 = vpow2.f32 %v6628_v37  ;;  %v3021_v36 = vld [vmem:[#allocation4 + $0x23] ss:$8 sm:$0xf] }
 0x599   :  { %7116 = vpow2.f32 %v6629_v24 }
 0x59a   :  { %7118 = vpow2.f32 %v6630_v50 }
 0x59b   :  { %7120 = vpow2.f32 %v6631_v40 }
 0x5a3   :  { %v7111_v43 = vpop.eup %7110 }
 0x5a4   :  { %v7113_v23 = vpop.eup %7112  ;;  %v3228_v14 = vadd.f32 1.0, %v7111_v43 }
 0x5a5   :  { %v7115_v0 = vpop.eup %7114  ;;  %v3229_v28 = vadd.f32 1.0, %v7113_v23 }
 0x5a6   :  { %v7117_v25 = vpop.eup %7116  ;;  %v3246_v30 = vadd.f32 1.0, %v7115_v0  ;;  %7122 = vrcp.f32 %v3228_v14 }
 0x5a7   :  { %v3247_v32 = vadd.f32 1.0, %v7117_v25  ;;  %v7119_v20 = vpop.eup %7118 }
 0x5a8   :  { %7124 = vrcp.f32 %v3246_v30  ;;  %v3106_v35 = vpop.f32.mrf.mxu0  ;;  %v3177_v19 = vpop.f32.mrf.mxu1  ;;  %v3268_v30 = vadd.f32 1.0, %v7119_v20 }
 0x5a9   :  { %7126 = vrcp.f32 %v3247_v32  ;;  %v7121_v53 = vpop.eup %7120 }
 0x5aa   :  { %7128 = vrcp.f32 %v3229_v28  ;;  %v3108_v12 = vpop.f32.mrf.mxu0  ;;  %v3179_v3 = vpop.f32.mrf.mxu1 }
 0x5ab   :  { %7130 = vtanh.f32 %v3252_v33  ;;  %v3186_v18 = vcombine.low %v3106_v35, %v3108_v12  ;;  %v3187_v21 = vcombine.low %v3177_v19, %v3179_v3  ;;  %v3269_v33 = vadd.f32 1.0, %v7121_v53 }
 0x5ac   :  { %7132 = vtanh.f32 %v3253_v34 }
 0x5ad   :  { %v3194_v22 = vrot.slane %v3186_v18, %v8812_v52  ;;  %v3201_v38 = vrot.slane %v3187_v21, %v8812_v52 }
 0x5af   :  { %v3202_v45 = vcombine.low %v3194_v22, %v3201_v38  ;;  %v3203_v39 = vcombine.high %v3194_v22, %v3201_v38 }
 0x5b1   :  { %v3210_v10 = vrot.slane %v3202_v45, %v8812_v52  ;;  %v3217_v11 = vrot.slane %v3203_v39, %v8812_v52 }
 0x5b3   :  { %v3220_v44 = vadd.f32 %v3210_v10, %v3019_v58  ;;  %v3221_v42 = vadd.f32 %v3217_v11, %v3021_v36  ;;  %v7123_v17 = vpop.eup %7122 }
 0x5b5   :  { %v7125_v41 = vpop.eup %7124  ;;  %v6632_v37 = vmul.f32 -1.442695, %v3220_v44  ;;  %v6633_v24 = vmul.f32 -1.442695, %v3221_v42  ;;  %v3298_v51 = vrot.slane %v3220_v44, 1  ;;  %v3299_v50 = vrot.slane %v3221_v42, 1 }
 0x5b6   :  { %v7127_v27 = vpop.eup %7126  ;;  %v3274_v23 = vmul.f32 %v7125_v41, %v10072_v47  ;;  %v3320_v12 = vrot.slane %v3220_v44, 3  ;;  %v3321_v47 = vrot.slane %v3221_v42, 3  ;;  %v3314_v3 = vrot.slane %v3220_v44, 2 }
 0x5b7   :  { %v7129_v40 = vpop.eup %7128  ;;  %7134 = vpow2.f32 %v6632_v37  ;;  %v6634_v43 = vmul.f32 -1.442695, %v3298_v51  ;;  %v6635_v0 = vmul.f32 -1.442695, %v3299_v50  ;;  %v3275_v25 = vmul.f32 %v7127_v27, %v10074_v46 }
 0x5b8   :  { %v7131_v14 = vpop.eup %7130  ;;  %7136 = vpow2.f32 %v6633_v24  ;;  %v3315_v18 = vrot.slane %v3221_v42, 2  ;;  %v6636_v46 = vmul.f32 -1.442695, %v3320_v12  ;;  %v6637_v21 = vmul.f32 -1.442695, %v3321_v47 }
 0x5b9   :  { %v7133_v28 = vpop.eup %7132  ;;  %v3276_v32 = vmul.f32 %v7131_v14, %v7123_v17  ;;  %7138 = vpow2.f32 %v6634_v43 }
 0x5ba   :  { %v3277_v34 = vmul.f32 %v7133_v28, %v7129_v40  ;;  %7140 = vpow2.f32 %v6635_v0 }
 0x5bb   :  { %v10356_v35 = vadd.f32 %v3276_v32, %v3274_v23  ;;  %7142 = vrcp.f32 %v3268_v30 }
 0x5bc   :  { %v10358_v19 = vadd.f32 %v3277_v34, %v3275_v25  ;;  %7144 = vrcp.f32 %v3269_v33 }
 0x5bd   :  { %7146 = vtanh.f32 %v10356_v35 }
 0x5be   :  { %7148 = vtanh.f32 %v10358_v19 }
 0x5bf   :  { %7150 = vtanh.f32 %v3314_v3  ;;  %v12329_v3 = vld [vmem:[#allocation70_spill] sm:$0xff] }
 0x5c0   :  { %7152 = vtanh.f32 %v3315_v18  ;;  %v12330_v18 = vld [vmem:[#allocation75_spill] sm:$0xff] }
 0x5c1   :  { %7154 = vpow2.f32 %v6636_v46  ;;  %v12331_v46 = vld [vmem:[#allocation72_spill] sm:$0xff] }
 0x5c2   :  { %7156 = vpow2.f32 %v6637_v21  ;;  %v12332_v21 = vld [vmem:[#allocation77_spill] sm:$0xff] }
 0x5c4   :  { %v7135_v22 = vpop.eup %7134 }
 0x5c5   :  { %v7137_v38 = vpop.eup %7136  ;;  %v3290_v45 = vadd.f32 1.0, %v7135_v22  ;;  %v12333_v22 = vld [vmem:[#allocation74_spill] sm:$0xff] }
 0x5c6   :  { %v7139_v39 = vpop.eup %7138  ;;  %v3291_v10 = vadd.f32 1.0, %v7137_v38 }
 0x5c7   :  { %v7141_v11 = vpop.eup %7140  ;;  %7158 = vrcp.f32 %v3290_v45  ;;  %v3308_v20 = vadd.f32 1.0, %v7139_v39  ;;  %v12334_v45 = vld [vmem:[#allocation79_spill] sm:$0xff]  ;;  %v12335_v39 = vld [vmem:[#allocation76_spill] sm:$0xff] }
 0x5c8   :  { %7160 = vrcp.f32 %v3291_v10  ;;  %v3309_v58 = vadd.f32 1.0, %v7141_v11  ;;  %v7143_v36 = vpop.eup %7142  ;;  %v12336_v11 = vld [vmem:[#allocation81_spill] sm:$0xff] }
 0x5c9   :  { %7162 = vrcp.f32 %v3308_v20  ;;  %v7145_v53 = vpop.eup %7144  ;;  %v12337_v20 = vld [vmem:[#allocation78_spill] sm:$0xff] }
 0x5ca   :  { %7164 = vrcp.f32 %v3309_v58  ;;  %v7147_v44 = vpop.eup %7146 }
 0x5cb   :  { %v7149_v42 = vpop.eup %7148  ;;  %v3282_v17 = vmul.f32 %v7147_v44, %v7143_v36  ;;  %v12338_v36 = vld [vmem:[#allocation83_spill] sm:$0xff] }
 0x5cc   :  { %v3283_v41 = vmul.f32 %v7149_v42, %v7145_v53  ;;  %v7151_v37 = vpop.eup %7150  ;;  %v12339_v53 = vld [vmem:[#allocation80_spill] sm:$0xff]  ;;  %v12340_v42 = vld [vmem:[#allocation82_spill] sm:$0xff] }
 0x5cd   :  { %3346 = vst [vmem:[#allocation2 + $0x4] sm:$0x1] %v3282_v17  ;;  %v7153_v51 = vpop.eup %7152 }
 0x5ce   :  { %3348 = vst [vmem:[#allocation2 + $0x14] sm:$0x1] %v3283_v41  ;;  %v3356_v24 = vcombine.low %v3282_v17, %v3283_v41  ;;  %v7155_v27 = vpop.eup %7154 }
 0x5cf   :  { %v7157_v40 = vpop.eup %7156  ;;  %v3330_v0 = vadd.f32 1.0, %v7155_v27 }
 0x5d0   :  { %v3363_v50 = vrot.slane %v3356_v24, %v8812_v52  ;;  %v3331_v28 = vadd.f32 1.0, %v7157_v40  ;;  %v12342_v24 = vld [vmem:[#allocation85_spill] sm:$0xff] }
 0x5d1   :  { %7166 = vrcp.f32 %v3330_v0  ;;  %v12346_v40 = vld [vmem:[#allocation89_spill] sm:$0xff]  ;;  %v12351_v0 = vld [vmem:[#allocation94_spill] sm:$0xff] }
 0x5d2   :  { %v3370_v23 = vrot.slane %v3363_v50, %v8812_v52  ;;  %7168 = vrcp.f32 %v3331_v28  ;;  %v12345_v50 = vld [vmem:[#allocation88_spill] sm:$0xff]  ;;  %v12354_v28 = vld [vmem:[#allocation97_spill] sm:$0xff] }
 0x5d4   :  { %v7159_v43 = vpop.eup %7158  ;;  %3437 = vmatmul.mubr.f32.vlgmr.msra.gmra.mxu0 %v3370_v23  ;;  %3508 = vmatmul.mubr.f32.vlgmr.msra.gmra.mxu1 %v3370_v23 }
 0x5d5   :  { %v7161_v14 = vpop.eup %7160  ;;  %v3338_v32 = vmul.f32 %v7159_v43, %v7151_v37  ;;  %3577 = vmatpush1.msra.mxu0 %v10080_v4  ;;  %3648 = vmatpush1.msra.mxu1 %v10083_v5  ;;  %v12316_v5 = vld [vmem:[#allocation61_spill] sm:$0xff]  ;;  %v12341_v37 = vld [vmem:[#allocation84_spill] sm:$0xff] }
 0x5d6   :  { %v7163_v25 = vpop.eup %7162  ;;  %v3339_v34 = vmul.f32 %v7161_v14, %v7153_v51  ;;  %3578 = vmatprep.subr.mxu0 %v10087_v59  ;;  %3649 = vmatprep.subr.mxu1 %v10090_v31  ;;  %v12317_v59 = vld [vmem:[#allocation58_spill] sm:$0xff]  ;;  %v12318_v31 = vld [vmem:[#allocation63_spill] sm:$0xff]  ;;  %v12349_v43 = vld [vmem:[#allocation92_spill] sm:$0xff] }
 0x5d7   :  { %v7165_v30 = vpop.eup %7164  ;;  %v3336_v33 = vmul.f32 %v7163_v25, %v10100_v15  ;;  %3579 = vmatpush1.msra.mxu0 %v10094_v16  ;;  %3650 = vmatpush1.msra.mxu1 %v10097_v61  ;;  %v12319_v16 = vld [vmem:[#allocation60_spill] sm:$0xff]  ;;  %v12320_v61 = vld [vmem:[#allocation65_spill] sm:$0xff]  ;;  %v12321_v15 = vld [vmem:[#allocation62_spill] sm:$0xff] }
 0x5d8   :  { %v3337_v12 = vmul.f32 %v7165_v30, %v10108_v49  ;;  %3580 = vmatprep.subr.mxu0 %v10102_v1  ;;  %3651 = vmatprep.subr.mxu1 %v10105_v60  ;;  %v12322_v1 = vld [vmem:[#allocation67_spill] sm:$0xff]  ;;  %v12323_v60 = vld [vmem:[#allocation64_spill] sm:$0xff]  ;;  %v12324_v49 = vld [vmem:[#allocation69_spill] sm:$0xff] }
 0x5d9   :  { %v10372_v47 = vadd.f32 %v3338_v32, %v3336_v33  ;;  %3581 = vmatpush1.msra.mxu0 %v10110_v9  ;;  %3652 = vmatpush1.msra.mxu1 %v10113_v8  ;;  %v12325_v9 = vld [vmem:[#allocation66_spill] sm:$0xff]  ;;  %v12326_v8 = vld [vmem:[#allocation71_spill] sm:$0xff]  ;;  %v12350_v14 = vld [vmem:[#allocation93_spill] sm:$0xff] }
 0x5da   :  { %v10376_v4 = vadd.f32 %v3339_v34, %v3337_v12  ;;  %3582 = vmatprep.subr.mxu0 %v10117_v62  ;;  %3653 = vmatprep.subr.mxu1 %v10120_v7  ;;  %v12327_v62 = vld [vmem:[#allocation68_spill] sm:$0xff]  ;;  %v12328_v7 = vld [vmem:[#allocation73_spill] sm:$0xff]  ;;  %v12343_v51 = vld [vmem:[#allocation86_spill] sm:$0xff] }
 0x5db   :  { %7170 = vtanh.f32 %v10372_v47  ;;  %3583 = vmatpush1.msra.mxu0 %v12316_v5  ;;  %3654 = vmatpush1.msra.mxu1 %v12317_v59  ;;  %v12353_v25 = vld [vmem:[#allocation96_spill] sm:$0xff]  ;;  %v12355_v30 = vld [vmem:[#allocation98_spill] sm:$0xff] }
 0x5dc   :  { %7172 = vtanh.f32 %v10376_v4  ;;  %3584 = vmatprep.subr.mxu0 %v12318_v31  ;;  %3655 = vmatprep.subr.mxu1 %v12319_v16  ;;  %v10477_v33 = vld [vmem:[%s11929_s0 + $0x1c0] sm:$0xff]  ;;  %v10483_v34 = vld [vmem:[%s11929_s0 + $0x1d0] sm:$0xff]  ;;  %v10489_v12 = vld [vmem:[%s11929_s0 + $0x1a8] sm:$0xff] }
 0x5dd   :  { %3585 = vmatpush1.msra.mxu0 %v12320_v61  ;;  %3656 = vmatpush1.msra.mxu1 %v12321_v15  ;;  %v10495_v5 = vld [vmem:[%s11929_s0 + $0x1b8] sm:$0xff]  ;;  %v10501_v59 = vld [vmem:[%s11929_s0 + $0x1a0] sm:$0xff]  ;;  %v10507_v31 = vld [vmem:[%s11929_s0 + $0x1b0] sm:$0xff] }
 0x5de   :  { %3586 = vmatprep.subr.mxu0 %v12322_v1  ;;  %3657 = vmatprep.subr.mxu1 %v12323_v60  ;;  %v7167_v38 = vpop.eup %7166  ;;  %v10513_v16 = vld [vmem:[%s11929_s0 + $0x188] sm:$0xff]  ;;  %v10519_v61 = vld [vmem:[%s11929_s0 + $0x198] sm:$0xff]  ;;  %v10525_v15 = vld [vmem:[%s11929_s0 + $0x180] sm:$0xff] }
 0x5df   :  { %3587 = vmatpush1.msra.mxu0 %v12324_v49  ;;  %3658 = vmatpush1.msra.mxu1 %v12325_v9  ;;  %v7169_v10 = vpop.eup %7168  ;;  %v10531_v1 = vld [vmem:[%s11929_s0 + $0x190] sm:$0xff]  ;;  %v10537_v60 = vld [vmem:[%s11929_s0 + $0x168] sm:$0xff]  ;;  %v10543_v49 = vld [vmem:[%s11929_s0 + $0x178] sm:$0xff] }
 0x5e0   :  { %3588 = vmatprep.subr.mxu0 %v12326_v8  ;;  %3659 = vmatprep.subr.mxu1 %v12327_v62  ;;  %v10549_v9 = vld [vmem:[%s11929_s0 + $0x160] sm:$0xff]  ;;  %v10555_v8 = vld [vmem:[%s11929_s0 + $0x170] sm:$0xff]  ;;  %v10561_v62 = vld [vmem:[%s11929_s0 + $0x148] sm:$0xff] }
 0x5e1   :  { %3589 = vmatpush1.msra.mxu0 %v12328_v7  ;;  %3660 = vmatpush1.msra.mxu1 %v12329_v3  ;;  %v10567_v7 = vld [vmem:[%s11929_s0 + $0x158] sm:$0xff]  ;;  %v10573_v3 = vld [vmem:[%s11929_s0 + $0x140] sm:$0xff] }
 0x5e2   :  { %3590 = vmatprep.subr.mxu0 %v12330_v18  ;;  %3661 = vmatprep.subr.mxu1 %v12331_v46  ;;  %v10579_v18 = vld [vmem:[%s11929_s0 + $0x150] sm:$0xff]  ;;  %v10585_v46 = vld [vmem:[%s11929_s0 + $0x128] sm:$0xff] }
 0x5e3   :  { %3591 = vmatpush1.msra.mxu0 %v12332_v21  ;;  %3662 = vmatpush1.msra.mxu1 %v12333_v22  ;;  %v10591_v21 = vld [vmem:[%s11929_s0 + $0x138] sm:$0xff]  ;;  %v10597_v22 = vld [vmem:[%s11929_s0 + $0x120] sm:$0xff] }
 0x5e4   :  { %3592 = vmatprep.subr.mxu0 %v12334_v45  ;;  %3663 = vmatprep.subr.mxu1 %v12335_v39  ;;  %v10609_v45 = vld [vmem:[%s11929_s0 + $0x108] sm:$0xff]  ;;  %v10615_v39 = vld [vmem:[%s11929_s0 + $0x118] sm:$0xff] }
 0x5e5   :  { %3593 = vmatpush1.msra.mxu0 %v12336_v11  ;;  %3664 = vmatpush1.msra.mxu1 %v12337_v20  ;;  %v10627_v11 = vld [vmem:[%s11929_s0 + $0x110] sm:$0xff]  ;;  %v10633_v20 = vld [vmem:[%s11929_s0 + $0xe8] sm:$0xff] }
 0x5e6   :  { %3594 = vmatprep.subr.mxu0 %v12338_v36  ;;  %3665 = vmatprep.subr.mxu1 %v12339_v53  ;;  %v10645_v36 = vld [vmem:[%s11929_s0 + $0xe0] sm:$0xff]  ;;  %v10651_v53 = vld [vmem:[%s11929_s0 + $0xf0] sm:$0xff] }
 0x5e7   :  { %3595 = vmatpush1.msra.mxu0 %v10196_v56  ;;  %3666 = vmatpush1.msra.mxu1 %v12340_v42  ;;  %v12344_v56 = vld [vmem:[#allocation87_spill] sm:$0xff]  ;;  %12356 = vst [vmem:[#allocation29_spill] sm:$0xff] %v10645_v36  ;;  %12357 = vst [vmem:[#allocation26_spill] sm:$0xff] %v10651_v53  ;;  %v10663_v42 = vld [vmem:[%s11929_s0 + $0xd8] sm:$0xff] }
 0x5e8   :  { %v7171_v58 = vpop.eup %7170  ;;  %3596 = vmatprep.subr.mxu0 %v10202_v2  ;;  %3667 = vmatprep.subr.mxu1 %v10205_v57  ;;  %v12347_v2 = vld [vmem:[#allocation90_spill] sm:$0xff]  ;;  %v12348_v57 = vld [vmem:[#allocation91_spill] sm:$0xff]  ;;  %12359 = vst [vmem:[#allocation28_spill] sm:$0xff] %v10663_v42 }
 0x5e9   :  { %v7173_v44 = vpop.eup %7172  ;;  %v3344_v17 = vmul.f32 %v7171_v58, %v7167_v38  ;;  %3597 = vmatpush1.msra.mxu0 %v12341_v37  ;;  %3668 = vmatpush1.msra.mxu1 %v12342_v24  ;;  %v10603_v38 = vld [vmem:[%s11929_s0 + $0x130] sm:$0xff]  ;;  %v10639_v58 = vld [vmem:[%s11929_s0 + $0xf8] sm:$0xff]  ;;  %v10681_v37 = vld [vmem:[%s11929_s0 + $0xa8] sm:$0xff] }
 0x5ea   :  { %v3345_v41 = vmul.f32 %v7173_v44, %v7169_v10  ;;  %3598 = vmatprep.subr.mxu0 %v12343_v51  ;;  %3669 = vmatprep.subr.mxu1 %v10217_v48  ;;  %v12352_v48 = vld [vmem:[#allocation95_spill] sm:$0xff]  ;;  %v10621_v10 = vld [vmem:[%s11929_s0 + $0x100] sm:$0xff]  ;;  %12362 = vst [vmem:[#allocation34_spill] sm:$0xff] %v10681_v37  ;;  %v10687_v24 = vld [vmem:[%s11929_s0 + $0xb8] sm:$0xff] }
 0x5eb   :  { %3347 = vst [vmem:[#allocation2 + $0xb] sm:$0x1] %v3344_v17  ;;  %3599 = vmatpush1.msra.mxu0 %v12344_v56  ;;  %3670 = vmatpush1.msra.mxu1 %v12345_v50  ;;  %v10657_v44 = vld [vmem:[%s11929_s0 + $0xc8] sm:$0xff]  ;;  %12363 = vst [vmem:[#allocation33_spill] sm:$0xff] %v10687_v24  ;;  %v10693_v51 = vld [vmem:[%s11929_s0 + $0xa0] sm:$0xff] }
 0x5ec   :  { %3349 = vst [vmem:[#allocation2 + $0x1b] sm:$0x1] %v3345_v41  ;;  %v3560_v27 = vcombine.low %v3344_v17, %v3345_v41  ;;  %3600 = vmatprep.subr.mxu0 %v12346_v40  ;;  %3671 = vmatprep.subr.mxu1 %v12347_v2  ;;  %12358 = vst [vmem:[#allocation31_spill] sm:$0xff] %v10657_v44  ;;  %v10669_v17 = vld [vmem:[%s11929_s0 + $0xc0] sm:$0xff]  ;;  %v10675_v41 = vld [vmem:[%s11929_s0 + $0xd0] sm:$0xff] }
 0x5ed   :  { %3601 = vmatpush1.msra.mxu0 %v12348_v57  ;;  %3672 = vmatpush1.msra.mxu1 %v12349_v43  ;;  %12360 = vst [vmem:[#allocation32_spill] sm:$0xff] %v10669_v17  ;;  %12361 = vst [vmem:[#allocation30_spill] sm:$0xff] %v10675_v41  ;;  %v10705_v56 = vld [vmem:[%s11929_s0 + $0x88] sm:$0xff]  ;;  %v10711_v50 = vld [vmem:[%s11929_s0 + $0x98] sm:$0xff] }
 0x5ee   :  { %v3567_v23 = vrot.slane %v3560_v27, %v8812_v52  ;;  %3602 = vmatprep.subr.mxu0 %v12350_v14  ;;  %3673 = vmatprep.subr.mxu1 %v12351_v0  ;;  %12364 = vst [vmem:[#allocation37_spill] sm:$0xff] %v10693_v51  ;;  %v10699_v27 = vld [vmem:[%s11929_s0 + $0xb0] sm:$0xff]  ;;  %12366 = vst [vmem:[#allocation39_spill] sm:$0xff] %v10705_v56  ;;  %v10717_v40 = vld [vmem:[%s11929_s0 + $0x80] sm:$0xff] }
 0x5ef   :  { %3603 = vmatpush1.msra.mxu0 %v12352_v48  ;;  %3674 = vmatpush1.msra.mxu1 %v12353_v25  ;;  %12365 = vst [vmem:[#allocation35_spill] sm:$0xff] %v10699_v27  ;;  %12367 = vst [vmem:[#allocation36_spill] sm:$0xff] %v10711_v50  ;;  %v10723_v2 = vld [vmem:[%s11929_s0 + $0x90] sm:$0xff]  ;;  %v10729_v57 = vld [vmem:[%s11929_s0 + $0x68] sm:$0xff] }
 0x5f0   :  { %3604 = vmatprep.subr.mxu0 %v12354_v28  ;;  %3675 = vmatprep.subr.mxu1 %v10254_v63  ;;  %v3574_v32 = vrot.slane %v3567_v23, %v8812_v52  ;;  %v10471_v63 = vld [vmem:[%s11929_s0 + $0x1d8] sm:$0xff]  ;;  %12368 = vst [vmem:[#allocation41_spill] sm:$0xff] %v10717_v40  ;;  %12369 = vst [vmem:[#allocation38_spill] sm:$0xff] %v10723_v2  ;;  %v10741_v23 = vld [vmem:[%s11929_s0 + $0x60] sm:$0xff] }
 0x5f1   :  { %3605 = vmatpush1.msra.mxu0 %v12355_v30  ;;  %3676 = vmatpush1.msra.mxu1 %v10260_v54  ;;  %v10441_v54 = vld [vmem:[%s11929_s0 + $0x1e8] sm:$0xff]  ;;  %12370 = vst [vmem:[#allocation43_spill] sm:$0xff] %v10729_v57  ;;  %v10735_v43 = vld [vmem:[%s11929_s0 + $0x78] sm:$0xff]  ;;  %12372 = vst [vmem:[#allocation45_spill] sm:$0xff] %v10741_v23 }
 0x5f2   :  { %3606 = vmatprep.subr.mxu0 %v10264_v6  ;;  %3677 = vmatprep.subr.mxu1 %v10267_v13  ;;  %v10447_v13 = vld [vmem:[%s11929_s0 + $0x1f8] sm:$0xff]  ;;  %v10465_v6 = vld [vmem:[%s11929_s0 + $0x1c8] sm:$0xff]  ;;  %12371 = vst [vmem:[#allocation40_spill] sm:$0xff] %v10735_v43  ;;  %v10747_v14 = vld [vmem:[%s11929_s0 + $0x70] sm:$0xff] }
 0x5f3   :  { %3607 = vmatpush1.msra.mxu0 %v10270_v55  ;;  %3640 = vmatprep.mubr.f32.mxu0 %v11943_v29  ;;  %v10453_v55 = vld [vmem:[%s11929_s0 + $0x1e0] sm:$0xff]  ;;  %12373 = vst [vmem:[#allocation42_spill] sm:$0xff] %v10747_v14  ;;  %v10753_v0 = vld [vmem:[%s11929_s0 + $0x48] sm:$0xff]  ;;  %v10759_v48 = vld [vmem:[%s11929_s0 + $0x58] sm:$0xff] }
 0x5f4   :  { %3678 = vmatpush1.msra.mxu1 %v10274_v26  ;;  %3711 = vmatprep.mubr.f32.mxu1 %v11943_v29  ;;  %v10459_v26 = vld [vmem:[%s11929_s0 + $0x1f0] sm:$0xff]  ;;  %12374 = vst [vmem:[#allocation47_spill] sm:$0xff] %v10753_v0  ;;  %12375 = vst [vmem:[#allocation44_spill] sm:$0xff] %v10759_v48  ;;  %v10765_v25 = vld [vmem:[%s11929_s0 + $0x40] sm:$0xff] }
 0x5f5   :  { %3641 = vmatmul.mubr.f32.vlgmr.msra.gmra.mxu0 %v3574_v32  ;;  %3712 = vmatmul.mubr.f32.vlgmr.msra.gmra.mxu1 %v3574_v32  ;;  %12376 = vst [vmem:[#allocation49_spill] sm:$0xff] %v10765_v25  ;;  %v10771_v28 = vld [vmem:[%s11929_s0 + $0x50] sm:$0xff]  ;;  %v10777_v30 = vld [vmem:[%s11929_s0 + $0x28] sm:$0xff]  ;;  %v10783_v32 = vld [vmem:[%s11929_s0 + $0x38] sm:$0xff] }
 0x5f6   :  { %3908 = vmatprep.subr.mxu0 %v10441_v54  ;;  %3979 = vmatprep.subr.mxu1 %v10447_v13  ;;  %12377 = vst [vmem:[#allocation46_spill] sm:$0xff] %v10771_v28  ;;  %12378 = vst [vmem:[#allocation51_spill] sm:$0xff] %v10777_v30 }
 0x5f7   :  { %3909 = vmatpush1.msra.mxu0 %v10453_v55  ;;  %3980 = vmatpush1.msra.mxu1 %v10459_v26  ;;  %12379 = vst [vmem:[#allocation48_spill] sm:$0xff] %v10783_v32 }
 0x5f8   :  { %3910 = vmatprep.subr.mxu0 %v10465_v6  ;;  %3981 = vmatprep.subr.mxu1 %v10471_v63 }
 0x5f9   :  { %3911 = vmatpush1.msra.mxu0 %v10477_v33  ;;  %3982 = vmatpush1.msra.mxu1 %v10483_v34 }
 0x5fa   :  { %3912 = vmatprep.subr.mxu0 %v10489_v12  ;;  %3983 = vmatprep.subr.mxu1 %v10495_v5 }
 0x5fb   :  { %3913 = vmatpush1.msra.mxu0 %v10501_v59  ;;  %3984 = vmatpush1.msra.mxu1 %v10507_v31 }
 0x5fc   :  { %3914 = vmatprep.subr.mxu0 %v10513_v16  ;;  %3985 = vmatprep.subr.mxu1 %v10519_v61 }
 0x5fd   :  { %3915 = vmatpush1.msra.mxu0 %v10525_v15  ;;  %3986 = vmatpush1.msra.mxu1 %v10531_v1 }
 0x5fe   :  { %3916 = vmatprep.subr.mxu0 %v10537_v60  ;;  %3987 = vmatprep.subr.mxu1 %v10543_v49 }
 0x5ff   :  { %3917 = vmatpush1.msra.mxu0 %v10549_v9  ;;  %3988 = vmatpush1.msra.mxu1 %v10555_v8 }
 0x600   :  { %3918 = vmatprep.subr.mxu0 %v10561_v62  ;;  %3989 = vmatprep.subr.mxu1 %v10567_v7 }
 0x601   :  { %3919 = vmatpush1.msra.mxu0 %v10573_v3  ;;  %3990 = vmatpush1.msra.mxu1 %v10579_v18 }
 0x602   :  { %3920 = vmatprep.subr.mxu0 %v10585_v46  ;;  %3991 = vmatprep.subr.mxu1 %v10591_v21 }
 0x603   :  { %3921 = vmatpush1.msra.mxu0 %v10597_v22  ;;  %3992 = vmatpush1.msra.mxu1 %v10603_v38 }
 0x604   :  { %3922 = vmatprep.subr.mxu0 %v10609_v45  ;;  %3993 = vmatprep.subr.mxu1 %v10615_v39 }
 0x605   :  { %3923 = vmatpush1.msra.mxu0 %v10621_v10  ;;  %3994 = vmatpush1.msra.mxu1 %v10627_v11 }
 0x606   :  { %3924 = vmatprep.subr.mxu0 %v10633_v20  ;;  %3995 = vmatprep.subr.mxu1 %v10639_v58 }
 0x607   :  { %3925 = vmatpush1.msra.mxu0 %v10645_v36  ;;  %3996 = vmatpush1.msra.mxu1 %v10651_v53 }
 0x608   :  { %3926 = vmatprep.subr.mxu0 %v10657_v44  ;;  %3997 = vmatprep.subr.mxu1 %v10663_v42 }
 0x609   :  { %3927 = vmatpush1.msra.mxu0 %v10669_v17  ;;  %3998 = vmatpush1.msra.mxu1 %v10675_v41 }
 0x60a   :  { %3928 = vmatprep.subr.mxu0 %v10681_v37  ;;  %3999 = vmatprep.subr.mxu1 %v10687_v24 }
 0x60b   :  { %3929 = vmatpush1.msra.mxu0 %v10693_v51  ;;  %4000 = vmatpush1.msra.mxu1 %v10699_v27  ;;  %v3353_v27 = vld [vmem:[#allocation3 + $0x25] ss:$8 sm:$0xf] }
 0x60c   :  { %3930 = vmatprep.subr.mxu0 %v10705_v56  ;;  %4001 = vmatprep.subr.mxu1 %v10711_v50  ;;  %v3351_v56 = vld [vmem:[#allocation3 + $0x5] ss:$8 sm:$0xf] }
 0x60d   :  { %3931 = vmatpush1.msra.mxu0 %v10717_v40  ;;  %4002 = vmatpush1.msra.mxu1 %v10723_v2 }
 0x60e   :  { %3932 = vmatprep.subr.mxu0 %v10729_v57  ;;  %4003 = vmatprep.subr.mxu1 %v10735_v43 }
 0x60f   :  { %3933 = vmatpush1.msra.mxu0 %v10741_v23  ;;  %4004 = vmatpush1.msra.mxu1 %v10747_v14 }
 0x610   :  { %3934 = vmatprep.subr.mxu0 %v10753_v0  ;;  %4005 = vmatprep.subr.mxu1 %v10759_v48 }
 0x611   :  { %3935 = vmatpush1.msra.mxu0 %v10765_v25  ;;  %4006 = vmatpush1.msra.mxu1 %v10771_v28  ;;  %v10789_v25 = vld [vmem:[%s11929_s0 + $0x20] sm:$0xff]  ;;  %v10795_v28 = vld [vmem:[%s11929_s0 + $0x30] sm:$0xff] }
 0x612   :  { %3936 = vmatprep.subr.mxu0 %v10777_v30  ;;  %4007 = vmatprep.subr.mxu1 %v10783_v32  ;;  %12380 = vst [vmem:[#allocation53_spill] sm:$0xff] %v10789_v25  ;;  %12381 = vst [vmem:[#allocation50_spill] sm:$0xff] %v10795_v28  ;;  %v10801_v30 = vld [vmem:[%s11929_s0 + $0x8] sm:$0xff]  ;;  %v10807_v32 = vld [vmem:[%s11929_s0 + $0x18] sm:$0xff] }
 0x613   :  { %3937 = vmatpush1.msra.mxu0 %v10789_v25  ;;  %4008 = vmatpush1.msra.mxu1 %v10795_v28  ;;  %12382 = vst [vmem:[#allocation55_spill] sm:$0xff] %v10801_v30  ;;  %12383 = vst [vmem:[#allocation52_spill] sm:$0xff] %v10807_v32  ;;  %v10813_v25 = vld [vmem:[%s11929_s0] sm:$0xff]  ;;  %v10824_v28 = vld [vmem:[#allocation8 + $0x1e8] sm:$0xff] }
 0x614   :  { %3938 = vmatprep.subr.mxu0 %v10801_v30  ;;  %4009 = vmatprep.subr.mxu1 %v10807_v32  ;;  %12384 = vst [vmem:[#allocation57_spill] sm:$0xff] %v10813_v25  ;;  %v10820_v30 = vld [vmem:[%s11929_s0 + $0x10] sm:$0xff]  ;;  %12386 = vst [vmem:[#allocation59_spill] sm:$0xff] %v10824_v28  ;;  %v10827_v32 = vld [vmem:[#allocation8 + $0x1f8] sm:$0xff] }
 0x615   :  { %3939 = vmatpush1.msra.mxu0 %v10813_v25  ;;  %3972 = vmatprep.mubr.f32.mxu0 %v11943_v29  ;;  %12385 = vst [vmem:[#allocation54_spill] sm:$0xff] %v10820_v30  ;;  %12387 = vst [vmem:[#allocation56_spill] sm:$0xff] %v10827_v32 }
 0x616   :  { %4010 = vmatpush1.msra.mxu1 %v10820_v30  ;;  %4043 = vmatprep.mubr.f32.mxu1 %v11943_v29 }
 0x617   :  { %4112 = vmatprep.subr.mxu0 %v10824_v28  ;;  %4183 = vmatprep.subr.mxu1 %v10827_v32 }
 0x694   :  { %v3438_v25 = vpop.f32.mrf.mxu0  ;;  %v3509_v48 = vpop.f32.mrf.mxu1 }
 0x696   :  { %v3440_v0 = vpop.f32.mrf.mxu0  ;;  %v3511_v14 = vpop.f32.mrf.mxu1 }
 0x697   :  { %v3518_v23 = vcombine.low %v3438_v25, %v3440_v0  ;;  %v3519_v43 = vcombine.low %v3509_v48, %v3511_v14 }
 0x699   :  { %v3526_v57 = vrot.slane %v3518_v23, %v8812_v52  ;;  %v3533_v30 = vrot.slane %v3519_v43, %v8812_v52 }
 0x69b   :  { %v3534_v2 = vcombine.low %v3526_v57, %v3533_v30  ;;  %v3535_v40 = vcombine.high %v3526_v57, %v3533_v30 }
 0x69d   :  { %v3542_v50 = vrot.slane %v3534_v2, %v8812_v52  ;;  %v3549_v28 = vrot.slane %v3535_v40, %v8812_v52 }
 0x69f   :  { %v3552_v51 = vadd.f32 %v3542_v50, %v3351_v56  ;;  %v3553_v32 = vadd.f32 %v3549_v28, %v3353_v27 }
 0x6a1   :  { %v6638_v24 = vmul.f32 -1.442695, %v3552_v51  ;;  %v6639_v37 = vmul.f32 -1.442695, %v3553_v32  ;;  %v3772_v41 = vrot.slane %v3552_v51, 1  ;;  %v3773_v17 = vrot.slane %v3553_v32, 1 }
 0x6a2   :  { %v3794_v43 = vrot.slane %v3552_v51, 3  ;;  %v3795_v57 = vrot.slane %v3553_v32, 3 }
 0x6a3   :  { %7174 = vpow2.f32 %v6638_v24  ;;  %v6640_v14 = vmul.f32 -1.442695, %v3772_v41  ;;  %v6641_v0 = vmul.f32 -1.442695, %v3773_v17  ;;  %v3788_v41 = vrot.slane %v3552_v51, 2 }
 0x6a4   :  { %7176 = vpow2.f32 %v6639_v37  ;;  %v6642_v23 = vmul.f32 -1.442695, %v3794_v43  ;;  %v6643_v2 = vmul.f32 -1.442695, %v3795_v57  ;;  %v3789_v17 = vrot.slane %v3553_v32, 2 }
 0x6a5   :  { %7178 = vpow2.f32 %v6640_v14 }
 0x6a6   :  { %7180 = vpow2.f32 %v6641_v0 }
 0x6a7   :  { %7182 = vpow2.f32 %v6642_v23 }
 0x6a8   :  { %7184 = vpow2.f32 %v6643_v2 }
 0x6b0   :  { %v7175_v48 = vpop.eup %7174 }
 0x6b1   :  { %v7177_v40 = vpop.eup %7176  ;;  %v3764_v25 = vadd.f32 1.0, %v7175_v48 }
 0x6b2   :  { %v7179_v30 = vpop.eup %7178  ;;  %v3765_v56 = vadd.f32 1.0, %v7177_v40 }
 0x6b3   :  { %v7181_v27 = vpop.eup %7180  ;;  %v3782_v50 = vadd.f32 1.0, %v7179_v30  ;;  %7186 = vrcp.f32 %v3764_v25  ;;  %v3555_v30 = vld [vmem:[#allocation4 + $0x2] ss:$8 sm:$0xf] }
 0x6b4   :  { %v3783_v24 = vadd.f32 1.0, %v7181_v27  ;;  %v7183_v25 = vpop.eup %7182  ;;  %v3557_v27 = vld [vmem:[#allocation4 + $0x22] ss:$8 sm:$0xf] }
 0x6b5   :  { %7188 = vrcp.f32 %v3782_v50  ;;  %v3642_v37 = vpop.f32.mrf.mxu0  ;;  %v3713_v28 = vpop.f32.mrf.mxu1 }
 0x6b6   :  { %7190 = vrcp.f32 %v3783_v24 }
 0x6b7   :  { %7192 = vrcp.f32 %v3765_v56  ;;  %v3644_v14 = vpop.f32.mrf.mxu0  ;;  %v3715_v0 = vpop.f32.mrf.mxu1 }
 0x6b8   :  { %7194 = vtanh.f32 %v3788_v41  ;;  %v3722_v43 = vcombine.low %v3642_v37, %v3644_v14  ;;  %v3723_v57 = vcombine.low %v3713_v28, %v3715_v0  ;;  %v7185_v56 = vpop.eup %7184 }
 0x6b9   :  { %7196 = vtanh.f32 %v3789_v17 }
 0x6ba   :  { %v3730_v23 = vrot.slane %v3722_v43, %v8812_v52  ;;  %v3737_v48 = vrot.slane %v3723_v57, %v8812_v52 }
 0x6bc   :  { %v3738_v2 = vcombine.low %v3730_v23, %v3737_v48  ;;  %v3739_v40 = vcombine.high %v3730_v23, %v3737_v48 }
 0x6be   :  { %v3746_v51 = vrot.slane %v3738_v2, %v8812_v52  ;;  %v3753_v32 = vrot.slane %v3739_v40, %v8812_v52 }
 0x6c0   :  { %v3756_v50 = vadd.f32 %v3746_v51, %v3555_v30  ;;  %v3757_v24 = vadd.f32 %v3753_v32, %v3557_v27  ;;  %v7187_v41 = vpop.eup %7186  ;;  %v3804_v51 = vadd.f32 1.0, %v7183_v25  ;;  %v3805_v30 = vadd.f32 1.0, %v7185_v56 }
 0x6c2   :  { %v7189_v37 = vpop.eup %7188  ;;  %v6644_v28 = vmul.f32 -1.442695, %v3756_v50  ;;  %v6645_v17 = vmul.f32 -1.442695, %v3757_v24  ;;  %v3834_v14 = vrot.slane %v3756_v50, 1  ;;  %v3835_v43 = vrot.slane %v3757_v24, 1 }
 0x6c3   :  { %v7191_v0 = vpop.eup %7190  ;;  %v3810_v48 = vmul.f32 %v7189_v37, %v10356_v35  ;;  %v3857_v35 = vrot.slane %v3757_v24, 3  ;;  %v3850_v37 = vrot.slane %v3756_v50, 2 }
 0x6c4   :  { %v7193_v57 = vpop.eup %7192  ;;  %7198 = vpow2.f32 %v6644_v28  ;;  %v6646_v23 = vmul.f32 -1.442695, %v3834_v14  ;;  %v6647_v40 = vmul.f32 -1.442695, %v3835_v43  ;;  %v3811_v42 = vmul.f32 %v7191_v0, %v10358_v19 }
 0x6c5   :  { %v7195_v2 = vpop.eup %7194  ;;  %7200 = vpow2.f32 %v6645_v17  ;;  %v3856_v28 = vrot.slane %v3756_v50, 3  ;;  %v3851_v17 = vrot.slane %v3757_v24, 2  ;;  %v6649_v25 = vmul.f32 -1.442695, %v3857_v35 }
 0x6c6   :  { %v7197_v44 = vpop.eup %7196  ;;  %v3812_v32 = vmul.f32 %v7195_v2, %v7187_v41  ;;  %7202 = vpow2.f32 %v6646_v23 }
 0x6c7   :  { %v3813_v27 = vmul.f32 %v7197_v44, %v7193_v57  ;;  %7204 = vpow2.f32 %v6647_v40  ;;  %v6648_v19 = vmul.f32 -1.442695, %v3856_v28 }
 0x6c8   :  { %v10840_v53 = vadd.f32 %v3812_v32, %v3810_v48  ;;  %7206 = vrcp.f32 %v3804_v51 }
 0x6c9   :  { %v10842_v36 = vadd.f32 %v3813_v27, %v3811_v42  ;;  %7208 = vrcp.f32 %v3805_v30 }
 0x6ca   :  { %7210 = vtanh.f32 %v10840_v53 }
 0x6cb   :  { %7212 = vtanh.f32 %v10842_v36 }
 0x6cc   :  { %7214 = vtanh.f32 %v3850_v37 }
 0x6cd   :  { %7216 = vtanh.f32 %v3851_v17 }
 0x6ce   :  { %7218 = vpow2.f32 %v6648_v19 }
 0x6cf   :  { %7220 = vpow2.f32 %v6649_v25 }
 0x6d1   :  { %v7199_v56 = vpop.eup %7198 }
 0x6d2   :  { %v7201_v44 = vpop.eup %7200  ;;  %v3826_v41 = vadd.f32 1.0, %v7199_v56 }
 0x6d3   :  { %v7203_v42 = vpop.eup %7202  ;;  %v3827_v14 = vadd.f32 1.0, %v7201_v44 }
 0x6d4   :  { %v7205_v0 = vpop.eup %7204  ;;  %7222 = vrcp.f32 %v3826_v41  ;;  %v3844_v43 = vadd.f32 1.0, %v7203_v42 }
 0x6d5   :  { %7224 = vrcp.f32 %v3827_v14  ;;  %v3845_v50 = vadd.f32 1.0, %v7205_v0  ;;  %v7207_v24 = vpop.eup %7206  ;;  %v10848_v14 = vld [vmem:[#allocation8 + $0x1e0] sm:$0xff]  ;;  %v10851_v0 = vld [vmem:[#allocation8 + $0x1f0] sm:$0xff] }
 0x6d6   :  { %7226 = vrcp.f32 %v3844_v43  ;;  %v7209_v57 = vpop.eup %7208 }
 0x6d7   :  { %7228 = vrcp.f32 %v3845_v50  ;;  %v7211_v23 = vpop.eup %7210 }
 0x6d8   :  { %v7213_v48 = vpop.eup %7212  ;;  %v3818_v2 = vmul.f32 %v7211_v23, %v7207_v24  ;;  %v10855_v24 = vld [vmem:[#allocation8 + $0x1c8] sm:$0xff] }
 0x6d9   :  { %v3819_v40 = vmul.f32 %v7213_v48, %v7209_v57  ;;  %v7215_v51 = vpop.eup %7214  ;;  %v10858_v57 = vld [vmem:[#allocation8 + $0x1d8] sm:$0xff]  ;;  %v10862_v48 = vld [vmem:[#allocation8 + $0x1c0] sm:$0xff] }
 0x6da   :  { %3882 = vst [vmem:[#allocation2 + $0x5] sm:$0x1] %v3818_v2  ;;  %v7217_v30 = vpop.eup %7216 }
 0x6db   :  { %3884 = vst [vmem:[#allocation2 + $0x15] sm:$0x1] %v3819_v40  ;;  %v3892_v32 = vcombine.low %v3818_v2, %v3819_v40  ;;  %v7219_v27 = vpop.eup %7218  ;;  %v10865_v2 = vld [vmem:[#allocation8 + $0x1d0] sm:$0xff]  ;;  %v10870_v40 = vld [vmem:[#allocation8 + $0x1a8] sm:$0xff] }
 0x6dc   :  { %v7221_v35 = vpop.eup %7220  ;;  %v3866_v25 = vadd.f32 1.0, %v7219_v27  ;;  %v10885_v27 = vld [vmem:[#allocation8 + $0x188] sm:$0xff] }
 0x6dd   :  { %v3899_v28 = vrot.slane %v3892_v32, %v8812_v52  ;;  %v3867_v44 = vadd.f32 1.0, %v7221_v35  ;;  %v10878_v32 = vld [vmem:[#allocation8 + $0x1a0] sm:$0xff] }
 0x6de   :  { %7230 = vrcp.f32 %v3866_v25  ;;  %v10892_v35 = vld [vmem:[#allocation8 + $0x180] sm:$0xff] }
 0x6df   :  { %v3906_v17 = vrot.slane %v3899_v28, %v8812_v52  ;;  %7232 = vrcp.f32 %v3867_v44  ;;  %v10888_v28 = vld [vmem:[#allocation8 + $0x198] sm:$0xff]  ;;  %12388 = vst [vmem:[#allocation61_spill] sm:$0xff] %v10892_v35  ;;  %v10904_v25 = vld [vmem:[#allocation8 + $0x160] sm:$0xff]  ;;  %v10910_v44 = vld [vmem:[#allocation8 + $0x148] sm:$0xff] }
 0x6e0   :  { %12392 = vst [vmem:[#allocation65_spill] sm:$0xff] %v10904_v25  ;;  %12394 = vst [vmem:[#allocation67_spill] sm:$0xff] %v10910_v44 }
 0x6e1   :  { %v7223_v37 = vpop.eup %7222  ;;  %3973 = vmatmul.mubr.f32.vlgmr.msra.gmra.mxu0 %v3906_v17  ;;  %4044 = vmatmul.mubr.f32.vlgmr.msra.gmra.mxu1 %v3906_v17  ;;  %v10898_v17 = vld [vmem:[#allocation8 + $0x168] sm:$0xff] }
 0x6e2   :  { %v7225_v19 = vpop.eup %7224  ;;  %v3874_v42 = vmul.f32 %v7223_v37, %v7215_v51  ;;  %4113 = vmatpush1.msra.mxu0 %v10848_v14  ;;  %4184 = vmatpush1.msra.mxu1 %v10851_v0  ;;  %v10873_v51 = vld [vmem:[#allocation8 + $0x1b8] sm:$0xff]  ;;  %v10895_v37 = vld [vmem:[#allocation8 + $0x190] sm:$0xff]  ;;  %12390 = vst [vmem:[#allocation63_spill] sm:$0xff] %v10898_v17 }
 0x6e3   :  { %v7227_v56 = vpop.eup %7226  ;;  %v3875_v50 = vmul.f32 %v7225_v19, %v7217_v30  ;;  %4114 = vmatprep.subr.mxu0 %v10855_v24  ;;  %4185 = vmatprep.subr.mxu1 %v10858_v57  ;;  %v10881_v30 = vld [vmem:[#allocation8 + $0x1b0] sm:$0xff]  ;;  %12389 = vst [vmem:[#allocation58_spill] sm:$0xff] %v10895_v37  ;;  %v10901_v19 = vld [vmem:[#allocation8 + $0x178] sm:$0xff] }
 0x6e4   :  { %v7229_v41 = vpop.eup %7228  ;;  %v3872_v43 = vmul.f32 %v7227_v56, %v10372_v47  ;;  %4115 = vmatpush1.msra.mxu0 %v10862_v48  ;;  %4186 = vmatpush1.msra.mxu1 %v10865_v2  ;;  %12391 = vst [vmem:[#allocation60_spill] sm:$0xff] %v10901_v19  ;;  %v10907_v56 = vld [vmem:[#allocation8 + $0x170] sm:$0xff] }
 0x6e5   :  { %v3873_v23 = vmul.f32 %v7229_v41, %v10376_v4  ;;  %4116 = vmatprep.subr.mxu0 %v10870_v40  ;;  %4187 = vmatprep.subr.mxu1 %v10873_v51  ;;  %12393 = vst [vmem:[#allocation62_spill] sm:$0xff] %v10907_v56  ;;  %v10913_v41 = vld [vmem:[#allocation8 + $0x158] sm:$0xff] }
 0x6e6   :  { %v10868_v47 = vadd.f32 %v3874_v42, %v3872_v43  ;;  %4117 = vmatpush1.msra.mxu0 %v10878_v32  ;;  %4188 = vmatpush1.msra.mxu1 %v10881_v30  ;;  %12395 = vst [vmem:[#allocation64_spill] sm:$0xff] %v10913_v41  ;;  %v10916_v42 = vld [vmem:[#allocation8 + $0x140] sm:$0xff]  ;;  %v10919_v43 = vld [vmem:[#allocation8 + $0x150] sm:$0xff] }
 0x6e7   :  { %v10876_v4 = vadd.f32 %v3875_v50, %v3873_v23  ;;  %4118 = vmatprep.subr.mxu0 %v10885_v27  ;;  %4189 = vmatprep.subr.mxu1 %v10888_v28  ;;  %12396 = vst [vmem:[#allocation69_spill] sm:$0xff] %v10916_v42  ;;  %12397 = vst [vmem:[#allocation66_spill] sm:$0xff] %v10919_v43  ;;  %v10922_v50 = vld [vmem:[#allocation8 + $0x128] sm:$0xff]  ;;  %v10925_v23 = vld [vmem:[#allocation8 + $0x138] sm:$0xff] }
 0x6e8   :  { %7234 = vtanh.f32 %v10868_v47  ;;  %4119 = vmatpush1.msra.mxu0 %v10892_v35  ;;  %4190 = vmatpush1.msra.mxu1 %v10895_v37  ;;  %12398 = vst [vmem:[#allocation71_spill] sm:$0xff] %v10922_v50  ;;  %12399 = vst [vmem:[#allocation68_spill] sm:$0xff] %v10925_v23  ;;  %v10973_v37 = vld [vmem:[#allocation8 + $0xb8] sm:$0xff]  ;;  %v10979_v35 = vld [vmem:[#allocation8 + $0xb0] sm:$0xff] }
 0x6e9   :  { %7236 = vtanh.f32 %v10876_v4  ;;  %4120 = vmatprep.subr.mxu0 %v10898_v17  ;;  %4191 = vmatprep.subr.mxu1 %v10901_v19  ;;  %v10961_v19 = vld [vmem:[#allocation8 + $0xd8] sm:$0xff]  ;;  %v10967_v17 = vld [vmem:[#allocation8 + $0xd0] sm:$0xff]  ;;  %12414 = vst [vmem:[#allocation85_spill] sm:$0xff] %v10979_v35 }
 0x6ea   :  { %4121 = vmatpush1.msra.mxu0 %v10904_v25  ;;  %4192 = vmatpush1.msra.mxu1 %v10907_v56  ;;  %v10946_v56 = vld [vmem:[#allocation8 + $0xe8] sm:$0xff]  ;;  %v10952_v25 = vld [vmem:[#allocation8 + $0xe0] sm:$0xff]  ;;  %12411 = vst [vmem:[#allocation80_spill] sm:$0xff] %v10961_v19  ;;  %12412 = vst [vmem:[#allocation82_spill] sm:$0xff] %v10967_v17 }
 0x6eb   :  { %4122 = vmatprep.subr.mxu0 %v10910_v44  ;;  %4193 = vmatprep.subr.mxu1 %v10913_v41  ;;  %v10928_v44 = vld [vmem:[#allocation8 + $0x120] sm:$0xff]  ;;  %v10931_v41 = vld [vmem:[#allocation8 + $0x130] sm:$0xff]  ;;  %12406 = vst [vmem:[#allocation79_spill] sm:$0xff] %v10946_v56  ;;  %12408 = vst [vmem:[#allocation81_spill] sm:$0xff] %v10952_v25 }
 0x6ec   :  { %4123 = vmatpush1.msra.mxu0 %v10916_v42  ;;  %4194 = vmatpush1.msra.mxu1 %v10919_v43  ;;  %12400 = vst [vmem:[#allocation73_spill] sm:$0xff] %v10928_v44  ;;  %12401 = vst [vmem:[#allocation70_spill] sm:$0xff] %v10931_v41  ;;  %v10934_v42 = vld [vmem:[#allocation8 + $0x108] sm:$0xff]  ;;  %v10937_v43 = vld [vmem:[#allocation8 + $0x118] sm:$0xff] }
 0x6ed   :  { %4124 = vmatprep.subr.mxu0 %v10922_v50  ;;  %4195 = vmatprep.subr.mxu1 %v10925_v23  ;;  %12402 = vst [vmem:[#allocation75_spill] sm:$0xff] %v10934_v42  ;;  %12403 = vst [vmem:[#allocation72_spill] sm:$0xff] %v10937_v43  ;;  %v10940_v50 = vld [vmem:[#allocation8 + $0x100] sm:$0xff]  ;;  %v10943_v23 = vld [vmem:[#allocation8 + $0x110] sm:$0xff] }
 0x6ee   :  { %4125 = vmatpush1.msra.mxu0 %v10928_v44  ;;  %4196 = vmatpush1.msra.mxu1 %v10931_v41  ;;  %12404 = vst [vmem:[#allocation77_spill] sm:$0xff] %v10940_v50  ;;  %12405 = vst [vmem:[#allocation74_spill] sm:$0xff] %v10943_v23  ;;  %v7231_v44 = vpop.eup %7230  ;;  %v10949_v41 = vld [vmem:[#allocation8 + $0xf8] sm:$0xff] }
 0x6ef   :  { %4126 = vmatprep.subr.mxu0 %v10934_v42  ;;  %4197 = vmatprep.subr.mxu1 %v10937_v43  ;;  %12407 = vst [vmem:[#allocation76_spill] sm:$0xff] %v10949_v41  ;;  %v7233_v42 = vpop.eup %7232  ;;  %v10955_v43 = vld [vmem:[#allocation8 + $0xf0] sm:$0xff] }
 0x6f0   :  { %4127 = vmatpush1.msra.mxu0 %v10940_v50  ;;  %4198 = vmatpush1.msra.mxu1 %v10943_v23  ;;  %12409 = vst [vmem:[#allocation78_spill] sm:$0xff] %v10955_v43  ;;  %v10958_v23 = vld [vmem:[#allocation8 + $0xc8] sm:$0xff] }
 0x6f1   :  { %4128 = vmatprep.subr.mxu0 %v10946_v56  ;;  %4199 = vmatprep.subr.mxu1 %v10949_v41  ;;  %12410 = vst [vmem:[#allocation83_spill] sm:$0xff] %v10958_v23  ;;  %v10964_v41 = vld [vmem:[#allocation8 + $0xc0] sm:$0xff] }
 0x6f2   :  { %4129 = vmatpush1.msra.mxu0 %v10952_v25  ;;  %4200 = vmatpush1.msra.mxu1 %v10955_v43  ;;  %v10970_v43 = vld [vmem:[#allocation8 + $0xa8] sm:$0xff] }
 0x6f3   :  { %4130 = vmatprep.subr.mxu0 %v10958_v23  ;;  %4201 = vmatprep.subr.mxu1 %v10961_v19  ;;  %v10976_v19 = vld [vmem:[#allocation8 + $0xa0] sm:$0xff] }
 0x6f4   :  { %4131 = vmatpush1.msra.mxu0 %v10964_v41  ;;  %4202 = vmatpush1.msra.mxu1 %v10967_v17  ;;  %12413 = vst [vmem:[#allocation84_spill] sm:$0xff] %v10976_v19  ;;  %v10982_v17 = vld [vmem:[#allocation8 + $0x88] sm:$0xff] }
 0x6f5   :  { %v7235_v50 = vpop.eup %7234  ;;  %4132 = vmatprep.subr.mxu0 %v10970_v43  ;;  %4203 = vmatprep.subr.mxu1 %v10973_v37  ;;  %12415 = vst [vmem:[#allocation86_spill] sm:$0xff] %v10982_v17 }
 0x6f6   :  { %v7237_v56 = vpop.eup %7236  ;;  %v3880_v25 = vmul.f32 %v7235_v50, %v7231_v44  ;;  %4133 = vmatpush1.msra.mxu0 %v10976_v19  ;;  %4204 = vmatpush1.msra.mxu1 %v10979_v35  ;;  %v10985_v44 = vld [vmem:[#allocation8 + $0x98] sm:$0xff]  ;;  %v10994_v35 = vld [vmem:[#allocation8 + $0x68] sm:$0xff] }
 0x6f7   :  { %v3881_v23 = vmul.f32 %v7237_v56, %v7233_v42  ;;  %4134 = vmatprep.subr.mxu0 %v10982_v17  ;;  %4205 = vmatprep.subr.mxu1 %v10985_v44  ;;  %v10988_v56 = vld [vmem:[#allocation8 + $0x80] sm:$0xff]  ;;  %v10991_v42 = vld [vmem:[#allocation8 + $0x90] sm:$0xff]  ;;  %12418 = vst [vmem:[#allocation89_spill] sm:$0xff] %v10994_v35  ;;  %v10997_v19 = vld [vmem:[#allocation8 + $0x78] sm:$0xff] }
 0x6f8   :  { %3883 = vst [vmem:[#allocation2 + $0xa] sm:$0x1] %v3880_v25  ;;  %12416 = vst [vmem:[#allocation87_spill] sm:$0xff] %v10988_v56  ;;  %4135 = vmatpush1.msra.mxu0 %v10988_v56  ;;  %4206 = vmatpush1.msra.mxu1 %v10991_v42  ;;  %v11000_v17 = vld [vmem:[#allocation8 + $0x60] sm:$0xff]  ;;  %v11007_v56 = vld [vmem:[#allocation8 + $0x48] sm:$0xff] }
 0x6f9   :  { %3885 = vst [vmem:[#allocation2 + $0x1a] sm:$0x1] %v3881_v23  ;;  %v4096_v50 = vcombine.low %v3880_v25, %v3881_v23  ;;  %12417 = vst [vmem:[#allocation88_spill] sm:$0xff] %v10991_v42  ;;  %4136 = vmatprep.subr.mxu0 %v10994_v35  ;;  %4207 = vmatprep.subr.mxu1 %v10997_v19  ;;  %v11003_v25 = vld [vmem:[#allocation8 + $0x70] sm:$0xff]  ;;  %v11010_v42 = vld [vmem:[#allocation8 + $0x58] sm:$0xff] }
 0x6fa   :  { %12419 = vst [vmem:[#allocation90_spill] sm:$0xff] %v10997_v19  ;;  %12420 = vst [vmem:[#allocation91_spill] sm:$0xff] %v11000_v17  ;;  %4137 = vmatpush1.msra.mxu0 %v11000_v17  ;;  %4208 = vmatpush1.msra.mxu1 %v11003_v25  ;;  %v11013_v35 = vld [vmem:[#allocation8 + $0x40] sm:$0xff]  ;;  %v11016_v19 = vld [vmem:[#allocation8 + $0x50] sm:$0xff] }
 0x6fb   :  { %12421 = vst [vmem:[#allocation92_spill] sm:$0xff] %v11003_v25  ;;  %v4103_v23 = vrot.slane %v4096_v50, %v8812_v52  ;;  %12422 = vst [vmem:[#allocation93_spill] sm:$0xff] %v11007_v56  ;;  %4138 = vmatprep.subr.mxu0 %v11007_v56  ;;  %4209 = vmatprep.subr.mxu1 %v11010_v42  ;;  %v11019_v17 = vld [vmem:[#allocation8 + $0x28] sm:$0xff]  ;;  %v11022_v50 = vld [vmem:[#allocation8 + $0x38] sm:$0xff] }
 0x6fc   :  { %12423 = vst [vmem:[#allocation94_spill] sm:$0xff] %v11010_v42  ;;  %12424 = vst [vmem:[#allocation95_spill] sm:$0xff] %v11013_v35  ;;  %4139 = vmatpush1.msra.mxu0 %v11013_v35  ;;  %4210 = vmatpush1.msra.mxu1 %v11016_v19  ;;  %v11025_v56 = vld [vmem:[#allocation8 + $0x20] sm:$0xff]  ;;  %v11028_v42 = vld [vmem:[#allocation8 + $0x30] sm:$0xff] }
 0x6fd   :  { %12425 = vst [vmem:[#allocation96_spill] sm:$0xff] %v11016_v19  ;;  %12426 = vst [vmem:[#allocation97_spill] sm:$0xff] %v11019_v17  ;;  %4140 = vmatprep.subr.mxu0 %v11019_v17  ;;  %4211 = vmatprep.subr.mxu1 %v11022_v50  ;;  %v4110_v35 = vrot.slane %v4103_v23, %v8812_v52  ;;  %v11032_v25 = vld [vmem:[#allocation8 + $0x8] sm:$0xff]  ;;  %v11035_v19 = vld [vmem:[#allocation8 + $0x18] sm:$0xff] }
 0x6fe   :  { %12427 = vst [vmem:[#allocation98_spill] sm:$0xff] %v11025_v56  ;;  %4141 = vmatpush1.msra.mxu0 %v11025_v56  ;;  %4212 = vmatpush1.msra.mxu1 %v11028_v42  ;;  %v11038_v17 = vld [vmem:[#allocation8] sm:$0xff]  ;;  %v11042_v56 = vld [vmem:[#allocation8 + $0x10] sm:$0xff] }
 0x6ff   :  { %4142 = vmatprep.subr.mxu0 %v11032_v25  ;;  %4213 = vmatprep.subr.mxu1 %v11035_v19 }
 0x700   :  { %4143 = vmatpush1.msra.mxu0 %v11038_v17  ;;  %4176 = vmatprep.mubr.f32.mxu0 %v11943_v29 }
 0x701   :  { %4214 = vmatpush1.msra.mxu1 %v11042_v56  ;;  %4247 = vmatprep.mubr.f32.mxu1 %v11943_v29 }
 0x702   :  { %4177 = vmatmul.mubr.f32.vlgmr.msra.gmra.mxu0 %v4110_v35  ;;  %4248 = vmatmul.mubr.f32.vlgmr.msra.gmra.mxu1 %v4110_v35 }
 0x703   :  { %4444 = vmatprep.subr.mxu0 %v10441_v54  ;;  %4515 = vmatprep.subr.mxu1 %v10447_v13  ;;  %v12428_v54 = vld [vmem:[#allocation29_spill] sm:$0xff]  ;;  %v12429_v13 = vld [vmem:[#allocation26_spill] sm:$0xff] }
 0x704   :  { %4445 = vmatpush1.msra.mxu0 %v10453_v55  ;;  %4516 = vmatpush1.msra.mxu1 %v10459_v26  ;;  %v12430_v55 = vld [vmem:[#allocation31_spill] sm:$0xff]  ;;  %v12431_v26 = vld [vmem:[#allocation28_spill] sm:$0xff] }
 0x705   :  { %4446 = vmatprep.subr.mxu0 %v10465_v6  ;;  %4517 = vmatprep.subr.mxu1 %v10471_v63  ;;  %v12432_v6 = vld [vmem:[#allocation32_spill] sm:$0xff]  ;;  %v12433_v63 = vld [vmem:[#allocation30_spill] sm:$0xff] }
 0x706   :  { %4447 = vmatpush1.msra.mxu0 %v10477_v33  ;;  %4518 = vmatpush1.msra.mxu1 %v10483_v34  ;;  %v12434_v33 = vld [vmem:[#allocation34_spill] sm:$0xff]  ;;  %v12435_v34 = vld [vmem:[#allocation33_spill] sm:$0xff] }
 0x707   :  { %4448 = vmatprep.subr.mxu0 %v10489_v12  ;;  %4519 = vmatprep.subr.mxu1 %v10495_v5  ;;  %v12436_v12 = vld [vmem:[#allocation37_spill] sm:$0xff]  ;;  %v12437_v5 = vld [vmem:[#allocation35_spill] sm:$0xff] }
 0x708   :  { %4449 = vmatpush1.msra.mxu0 %v10501_v59  ;;  %4520 = vmatpush1.msra.mxu1 %v10507_v31  ;;  %v12438_v59 = vld [vmem:[#allocation39_spill] sm:$0xff]  ;;  %v12439_v31 = vld [vmem:[#allocation36_spill] sm:$0xff] }
 0x709   :  { %4450 = vmatprep.subr.mxu0 %v10513_v16  ;;  %4521 = vmatprep.subr.mxu1 %v10519_v61  ;;  %v12440_v16 = vld [vmem:[#allocation41_spill] sm:$0xff]  ;;  %v12441_v61 = vld [vmem:[#allocation38_spill] sm:$0xff] }
 0x70a   :  { %4451 = vmatpush1.msra.mxu0 %v10525_v15  ;;  %4522 = vmatpush1.msra.mxu1 %v10531_v1  ;;  %v12442_v15 = vld [vmem:[#allocation43_spill] sm:$0xff]  ;;  %v12443_v1 = vld [vmem:[#allocation40_spill] sm:$0xff] }
 0x70b   :  { %4452 = vmatprep.subr.mxu0 %v10537_v60  ;;  %4523 = vmatprep.subr.mxu1 %v10543_v49  ;;  %v12444_v60 = vld [vmem:[#allocation45_spill] sm:$0xff]  ;;  %v12445_v49 = vld [vmem:[#allocation42_spill] sm:$0xff] }
 0x70c   :  { %4453 = vmatpush1.msra.mxu0 %v10549_v9  ;;  %4524 = vmatpush1.msra.mxu1 %v10555_v8  ;;  %v12446_v9 = vld [vmem:[#allocation47_spill] sm:$0xff]  ;;  %v12447_v8 = vld [vmem:[#allocation44_spill] sm:$0xff] }
 0x70d   :  { %4454 = vmatprep.subr.mxu0 %v10561_v62  ;;  %4525 = vmatprep.subr.mxu1 %v10567_v7  ;;  %v12448_v62 = vld [vmem:[#allocation49_spill] sm:$0xff]  ;;  %v12449_v7 = vld [vmem:[#allocation46_spill] sm:$0xff] }
 0x70e   :  { %4455 = vmatpush1.msra.mxu0 %v10573_v3  ;;  %4526 = vmatpush1.msra.mxu1 %v10579_v18  ;;  %v12450_v3 = vld [vmem:[#allocation51_spill] sm:$0xff]  ;;  %v12451_v18 = vld [vmem:[#allocation48_spill] sm:$0xff] }
 0x70f   :  { %4456 = vmatprep.subr.mxu0 %v10585_v46  ;;  %4527 = vmatprep.subr.mxu1 %v10591_v21  ;;  %v12452_v46 = vld [vmem:[#allocation53_spill] sm:$0xff]  ;;  %v12453_v21 = vld [vmem:[#allocation50_spill] sm:$0xff] }
 0x710   :  { %4457 = vmatpush1.msra.mxu0 %v10597_v22  ;;  %4528 = vmatpush1.msra.mxu1 %v10603_v38  ;;  %v12454_v22 = vld [vmem:[#allocation55_spill] sm:$0xff]  ;;  %v12455_v38 = vld [vmem:[#allocation52_spill] sm:$0xff] }
 0x711   :  { %4458 = vmatprep.subr.mxu0 %v10609_v45  ;;  %4529 = vmatprep.subr.mxu1 %v10615_v39  ;;  %v12456_v45 = vld [vmem:[#allocation57_spill] sm:$0xff]  ;;  %v12457_v39 = vld [vmem:[#allocation54_spill] sm:$0xff] }
 0x712   :  { %4459 = vmatpush1.msra.mxu0 %v10621_v10  ;;  %4530 = vmatpush1.msra.mxu1 %v10627_v11  ;;  %v12458_v10 = vld [vmem:[#allocation59_spill] sm:$0xff]  ;;  %v12459_v11 = vld [vmem:[#allocation56_spill] sm:$0xff] }
 0x713   :  { %4460 = vmatprep.subr.mxu0 %v10633_v20  ;;  %4531 = vmatprep.subr.mxu1 %v10639_v58 }
 0x714   :  { %4461 = vmatpush1.msra.mxu0 %v12428_v54  ;;  %4532 = vmatpush1.msra.mxu1 %v12429_v13 }
 0x715   :  { %4462 = vmatprep.subr.mxu0 %v12430_v55  ;;  %4533 = vmatprep.subr.mxu1 %v12431_v26 }
 0x716   :  { %4463 = vmatpush1.msra.mxu0 %v12432_v6  ;;  %4534 = vmatpush1.msra.mxu1 %v12433_v63 }
 0x717   :  { %4464 = vmatprep.subr.mxu0 %v12434_v33  ;;  %4535 = vmatprep.subr.mxu1 %v12435_v34 }
 0x718   :  { %4465 = vmatpush1.msra.mxu0 %v12436_v12  ;;  %4536 = vmatpush1.msra.mxu1 %v12437_v5  ;;  %v3887_v12 = vld [vmem:[#allocation3 + $0x6] ss:$8 sm:$0xf] }
 0x719   :  { %4466 = vmatprep.subr.mxu0 %v12438_v59  ;;  %4537 = vmatprep.subr.mxu1 %v12439_v31  ;;  %v3889_v5 = vld [vmem:[#allocation3 + $0x26] ss:$8 sm:$0xf] }
 0x71a   :  { %4467 = vmatpush1.msra.mxu0 %v12440_v16  ;;  %4538 = vmatpush1.msra.mxu1 %v12441_v61 }
 0x71b   :  { %4468 = vmatprep.subr.mxu0 %v12442_v15  ;;  %4539 = vmatprep.subr.mxu1 %v12443_v1 }
 0x71c   :  { %4469 = vmatpush1.msra.mxu0 %v12444_v60  ;;  %4540 = vmatpush1.msra.mxu1 %v12445_v49 }
 0x71d   :  { %4470 = vmatprep.subr.mxu0 %v12446_v9  ;;  %4541 = vmatprep.subr.mxu1 %v12447_v8 }
 0x71e   :  { %4471 = vmatpush1.msra.mxu0 %v12448_v62  ;;  %4542 = vmatpush1.msra.mxu1 %v12449_v7 }
 0x71f   :  { %4472 = vmatprep.subr.mxu0 %v12450_v3  ;;  %4543 = vmatprep.subr.mxu1 %v12451_v18 }
 0x720   :  { %4473 = vmatpush1.msra.mxu0 %v12452_v46  ;;  %4544 = vmatpush1.msra.mxu1 %v12453_v21 }
 0x721   :  { %4474 = vmatprep.subr.mxu0 %v12454_v22  ;;  %4545 = vmatprep.subr.mxu1 %v12455_v38 }
 0x722   :  { %4475 = vmatpush1.msra.mxu0 %v12456_v45  ;;  %4508 = vmatprep.mubr.f32.mxu0 %v11943_v29 }
 0x723   :  { %4546 = vmatpush1.msra.mxu1 %v12457_v39  ;;  %4579 = vmatprep.mubr.f32.mxu1 %v11943_v29 }
 0x724   :  { %4647 = vmatprep.subr.mxu0 %v12458_v10  ;;  %4718 = vmatprep.subr.mxu1 %v12459_v11 }
 0x7a1   :  { %v3974_v20 = vpop.f32.mrf.mxu0  ;;  %v4045_v58 = vpop.f32.mrf.mxu1 }
 0x7a3   :  { %v3976_v35 = vpop.f32.mrf.mxu0  ;;  %v4047_v23 = vpop.f32.mrf.mxu1 }
 0x7a4   :  { %v4054_v54 = vcombine.low %v3974_v20, %v3976_v35  ;;  %v4055_v13 = vcombine.low %v4045_v58, %v4047_v23 }
 0x7a6   :  { %v4062_v55 = vrot.slane %v4054_v54, %v8812_v52  ;;  %v4069_v26 = vrot.slane %v4055_v13, %v8812_v52 }
 0x7a8   :  { %v4070_v6 = vcombine.low %v4062_v55, %v4069_v26  ;;  %v4071_v63 = vcombine.high %v4062_v55, %v4069_v26 }
 0x7aa   :  { %v4078_v33 = vrot.slane %v4070_v6, %v8812_v52  ;;  %v4085_v34 = vrot.slane %v4071_v63, %v8812_v52 }
 0x7ac   :  { %v4088_v59 = vadd.f32 %v4078_v33, %v3887_v12  ;;  %v4089_v31 = vadd.f32 %v4085_v34, %v3889_v5  ;;  %v4091_v5 = vld [vmem:[#allocation4 + $0x1] ss:$8 sm:$0xf] }
 0x7ae   :  { %v6650_v16 = vmul.f32 -1.442695, %v4088_v59  ;;  %v6651_v61 = vmul.f32 -1.442695, %v4089_v31  ;;  %v4308_v15 = vrot.slane %v4088_v59, 1  ;;  %v4309_v1 = vrot.slane %v4089_v31, 1 }
 0x7af   :  { %v4330_v9 = vrot.slane %v4088_v59, 3  ;;  %v4331_v8 = vrot.slane %v4089_v31, 3  ;;  %v4324_v10 = vrot.slane %v4088_v59, 2  ;;  %v4325_v11 = vrot.slane %v4089_v31, 2 }
 0x7b0   :  { %7238 = vpow2.f32 %v6650_v16  ;;  %v6652_v60 = vmul.f32 -1.442695, %v4308_v15  ;;  %v6653_v49 = vmul.f32 -1.442695, %v4309_v1 }
 0x7b1   :  { %7240 = vpow2.f32 %v6651_v61  ;;  %v6654_v62 = vmul.f32 -1.442695, %v4330_v9  ;;  %v6655_v7 = vmul.f32 -1.442695, %v4331_v8 }
 0x7b2   :  { %7242 = vpow2.f32 %v6652_v60  ;;  %v4093_v59 = vld [vmem:[#allocation4 + $0x21] ss:$8 sm:$0xf] }
 0x7b3   :  { %7244 = vpow2.f32 %v6653_v49 }
 0x7b4   :  { %7246 = vpow2.f32 %v6654_v62 }
 0x7b5   :  { %7248 = vpow2.f32 %v6655_v7 }
 0x7bd   :  { %v7239_v3 = vpop.eup %7238 }
 0x7be   :  { %v7241_v18 = vpop.eup %7240  ;;  %v4300_v46 = vadd.f32 1.0, %v7239_v3 }
 0x7bf   :  { %v7243_v21 = vpop.eup %7242  ;;  %v4301_v38 = vadd.f32 1.0, %v7241_v18 }
 0x7c0   :  { %v7245_v22 = vpop.eup %7244  ;;  %v4318_v45 = vadd.f32 1.0, %v7243_v21  ;;  %7250 = vrcp.f32 %v4300_v46 }
 0x7c1   :  { %v4319_v39 = vadd.f32 1.0, %v7245_v22  ;;  %v7247_v12 = vpop.eup %7246 }
 0x7c2   :  { %7252 = vrcp.f32 %v4318_v45  ;;  %v4178_v20 = vpop.f32.mrf.mxu0  ;;  %v4249_v58 = vpop.f32.mrf.mxu1  ;;  %v4340_v45 = vadd.f32 1.0, %v7247_v12 }
 0x7c3   :  { %7254 = vrcp.f32 %v4319_v39  ;;  %v7249_v31 = vpop.eup %7248 }
 0x7c4   :  { %7256 = vrcp.f32 %v4301_v38  ;;  %v4180_v35 = vpop.f32.mrf.mxu0  ;;  %v4251_v23 = vpop.f32.mrf.mxu1 }
 0x7c5   :  { %7258 = vtanh.f32 %v4324_v10  ;;  %v4258_v54 = vcombine.low %v4178_v20, %v4180_v35  ;;  %v4259_v13 = vcombine.low %v4249_v58, %v4251_v23  ;;  %v4341_v10 = vadd.f32 1.0, %v7249_v31 }
 0x7c6   :  { %7260 = vtanh.f32 %v4325_v11 }
 0x7c7   :  { %v4266_v55 = vrot.slane %v4258_v54, %v8812_v52  ;;  %v4273_v26 = vrot.slane %v4259_v13, %v8812_v52 }
 0x7c9   :  { %v4274_v6 = vcombine.low %v4266_v55, %v4273_v26  ;;  %v4275_v63 = vcombine.high %v4266_v55, %v4273_v26 }
 0x7cb   :  { %v4282_v33 = vrot.slane %v4274_v6, %v8812_v52  ;;  %v4289_v34 = vrot.slane %v4275_v63, %v8812_v52 }
 0x7cd   :  { %v4292_v16 = vadd.f32 %v4282_v33, %v4091_v5  ;;  %v4293_v61 = vadd.f32 %v4289_v34, %v4093_v59  ;;  %v7251_v15 = vpop.eup %7250 }
 0x7cf   :  { %v7253_v1 = vpop.eup %7252  ;;  %v6656_v60 = vmul.f32 -1.442695, %v4292_v16  ;;  %v6657_v49 = vmul.f32 -1.442695, %v4293_v61  ;;  %v4370_v9 = vrot.slane %v4292_v16, 1  ;;  %v4371_v62 = vrot.slane %v4293_v61, 1 }
 0x7d0   :  { %v7255_v8 = vpop.eup %7254  ;;  %v4346_v18 = vmul.f32 %v7253_v1, %v10840_v53  ;;  %v4392_v35 = vrot.slane %v4292_v16, 3  ;;  %v4393_v53 = vrot.slane %v4293_v61, 3  ;;  %v4386_v23 = vrot.slane %v4292_v16, 2 }
 0x7d1   :  { %v7257_v7 = vpop.eup %7256  ;;  %7262 = vpow2.f32 %v6656_v60  ;;  %v6658_v3 = vmul.f32 -1.442695, %v4370_v9  ;;  %v6659_v21 = vmul.f32 -1.442695, %v4371_v62  ;;  %v4347_v22 = vmul.f32 %v7255_v8, %v10842_v36 }
 0x7d2   :  { %v7259_v46 = vpop.eup %7258  ;;  %7264 = vpow2.f32 %v6657_v49  ;;  %v4387_v54 = vrot.slane %v4293_v61, 2  ;;  %v6660_v36 = vmul.f32 -1.442695, %v4392_v35  ;;  %v6661_v13 = vmul.f32 -1.442695, %v4393_v53 }
 0x7d3   :  { %v7261_v38 = vpop.eup %7260  ;;  %v4348_v39 = vmul.f32 %v7259_v46, %v7251_v15  ;;  %7266 = vpow2.f32 %v6658_v3 }
 0x7d4   :  { %v4349_v11 = vmul.f32 %v7261_v38, %v7257_v7  ;;  %7268 = vpow2.f32 %v6659_v21 }
 0x7d5   :  { %v11124_v20 = vadd.f32 %v4348_v39, %v4346_v18  ;;  %7270 = vrcp.f32 %v4340_v45 }
 0x7d6   :  { %v11126_v58 = vadd.f32 %v4349_v11, %v4347_v22  ;;  %7272 = vrcp.f32 %v4341_v10 }
 0x7d7   :  { %7274 = vtanh.f32 %v11124_v20 }
 0x7d8   :  { %7276 = vtanh.f32 %v11126_v58 }
 0x7d9   :  { %7278 = vtanh.f32 %v4386_v23  ;;  %v12473_v23 = vld [vmem:[#allocation70_spill] sm:$0xff] }
 0x7da   :  { %7280 = vtanh.f32 %v4387_v54  ;;  %v12474_v54 = vld [vmem:[#allocation75_spill] sm:$0xff] }
 0x7db   :  { %7282 = vpow2.f32 %v6660_v36  ;;  %v12475_v36 = vld [vmem:[#allocation72_spill] sm:$0xff] }
 0x7dc   :  { %7284 = vpow2.f32 %v6661_v13  ;;  %v12476_v13 = vld [vmem:[#allocation77_spill] sm:$0xff] }
 0x7de   :  { %v7263_v55 = vpop.eup %7262 }
 0x7df   :  { %v7265_v26 = vpop.eup %7264  ;;  %v4362_v6 = vadd.f32 1.0, %v7263_v55  ;;  %v12477_v55 = vld [vmem:[#allocation74_spill] sm:$0xff] }
 0x7e0   :  { %v7267_v63 = vpop.eup %7266  ;;  %v4363_v33 = vadd.f32 1.0, %v7265_v26 }
 0x7e1   :  { %v7269_v34 = vpop.eup %7268  ;;  %7286 = vrcp.f32 %v4362_v6  ;;  %v4380_v12 = vadd.f32 1.0, %v7267_v63  ;;  %v12478_v6 = vld [vmem:[#allocation79_spill] sm:$0xff]  ;;  %v12479_v63 = vld [vmem:[#allocation76_spill] sm:$0xff] }
 0x7e2   :  { %7288 = vrcp.f32 %v4363_v33  ;;  %v4381_v5 = vadd.f32 1.0, %v7269_v34  ;;  %v7271_v59 = vpop.eup %7270  ;;  %v12480_v34 = vld [vmem:[#allocation81_spill] sm:$0xff] }
 0x7e3   :  { %7290 = vrcp.f32 %v4380_v12  ;;  %v7273_v31 = vpop.eup %7272  ;;  %v12481_v12 = vld [vmem:[#allocation78_spill] sm:$0xff] }
 0x7e4   :  { %7292 = vrcp.f32 %v4381_v5  ;;  %v7275_v16 = vpop.eup %7274 }
 0x7e5   :  { %v7277_v61 = vpop.eup %7276  ;;  %v4354_v15 = vmul.f32 %v7275_v16, %v7271_v59  ;;  %v12482_v59 = vld [vmem:[#allocation83_spill] sm:$0xff] }
 0x7e6   :  { %v4355_v1 = vmul.f32 %v7277_v61, %v7273_v31  ;;  %v7279_v60 = vpop.eup %7278  ;;  %v12483_v31 = vld [vmem:[#allocation80_spill] sm:$0xff]  ;;  %v12484_v61 = vld [vmem:[#allocation82_spill] sm:$0xff] }
 0x7e7   :  { %4418 = vst [vmem:[#allocation2 + $0x6] sm:$0x1] %v4354_v15  ;;  %v7281_v9 = vpop.eup %7280 }
 0x7e8   :  { %4420 = vst [vmem:[#allocation2 + $0x16] sm:$0x1] %v4355_v1  ;;  %v4428_v49 = vcombine.low %v4354_v15, %v4355_v1  ;;  %v7283_v8 = vpop.eup %7282 }
 0x7e9   :  { %v7285_v7 = vpop.eup %7284  ;;  %v4402_v21 = vadd.f32 1.0, %v7283_v8 }
 0x7ea   :  { %v4435_v62 = vrot.slane %v4428_v49, %v8812_v52  ;;  %v4403_v38 = vadd.f32 1.0, %v7285_v7  ;;  %v12486_v49 = vld [vmem:[#allocation85_spill] sm:$0xff] }
 0x7eb   :  { %7294 = vrcp.f32 %v4402_v21  ;;  %v12490_v7 = vld [vmem:[#allocation89_spill] sm:$0xff]  ;;  %v12495_v21 = vld [vmem:[#allocation94_spill] sm:$0xff] }
 0x7ec   :  { %v4442_v18 = vrot.slane %v4435_v62, %v8812_v52  ;;  %7296 = vrcp.f32 %v4403_v38  ;;  %v12489_v62 = vld [vmem:[#allocation88_spill] sm:$0xff]  ;;  %v12498_v38 = vld [vmem:[#allocation97_spill] sm:$0xff] }
 0x7ee   :  { %v7287_v3 = vpop.eup %7286  ;;  %4509 = vmatmul.mubr.f32.vlgmr.msra.gmra.mxu0 %v4442_v18  ;;  %4580 = vmatmul.mubr.f32.vlgmr.msra.gmra.mxu1 %v4442_v18 }
 0x7ef   :  { %v7289_v46 = vpop.eup %7288  ;;  %v4410_v39 = vmul.f32 %v7287_v3, %v7279_v60  ;;  %4648 = vmatpush1.msra.mxu0 %v10848_v14  ;;  %4719 = vmatpush1.msra.mxu1 %v10851_v0  ;;  %v12460_v0 = vld [vmem:[#allocation61_spill] sm:$0xff]  ;;  %v12485_v60 = vld [vmem:[#allocation84_spill] sm:$0xff] }
 0x7f0   :  { %v7291_v22 = vpop.eup %7290  ;;  %v4411_v11 = vmul.f32 %v7289_v46, %v7281_v9  ;;  %4649 = vmatprep.subr.mxu0 %v10855_v24  ;;  %4720 = vmatprep.subr.mxu1 %v10858_v57  ;;  %v12461_v24 = vld [vmem:[#allocation58_spill] sm:$0xff]  ;;  %v12462_v57 = vld [vmem:[#allocation63_spill] sm:$0xff]  ;;  %v12493_v3 = vld [vmem:[#allocation92_spill] sm:$0xff] }
 0x7f1   :  { %v7293_v45 = vpop.eup %7292  ;;  %v4408_v10 = vmul.f32 %v7291_v22, %v10868_v47  ;;  %4650 = vmatpush1.msra.mxu0 %v10862_v48  ;;  %4721 = vmatpush1.msra.mxu1 %v10865_v2  ;;  %v12463_v48 = vld [vmem:[#allocation60_spill] sm:$0xff]  ;;  %v12464_v2 = vld [vmem:[#allocation65_spill] sm:$0xff]  ;;  %v12465_v47 = vld [vmem:[#allocation62_spill] sm:$0xff] }
 0x7f2   :  { %v4409_v35 = vmul.f32 %v7293_v45, %v10876_v4  ;;  %4651 = vmatprep.subr.mxu0 %v10870_v40  ;;  %4722 = vmatprep.subr.mxu1 %v10873_v51  ;;  %v12466_v40 = vld [vmem:[#allocation67_spill] sm:$0xff]  ;;  %v12467_v51 = vld [vmem:[#allocation64_spill] sm:$0xff]  ;;  %v12468_v4 = vld [vmem:[#allocation69_spill] sm:$0xff] }
 0x7f3   :  { %v11140_v53 = vadd.f32 %v4410_v39, %v4408_v10  ;;  %4652 = vmatpush1.msra.mxu0 %v10878_v32  ;;  %4723 = vmatpush1.msra.mxu1 %v10881_v30  ;;  %v12469_v32 = vld [vmem:[#allocation66_spill] sm:$0xff]  ;;  %v12470_v30 = vld [vmem:[#allocation71_spill] sm:$0xff]  ;;  %v12494_v46 = vld [vmem:[#allocation93_spill] sm:$0xff] }
 0x7f4   :  { %v11144_v14 = vadd.f32 %v4411_v11, %v4409_v35  ;;  %4653 = vmatprep.subr.mxu0 %v10885_v27  ;;  %4724 = vmatprep.subr.mxu1 %v10888_v28  ;;  %v12471_v27 = vld [vmem:[#allocation68_spill] sm:$0xff]  ;;  %v12472_v28 = vld [vmem:[#allocation73_spill] sm:$0xff]  ;;  %v12487_v9 = vld [vmem:[#allocation86_spill] sm:$0xff] }
 0x7f5   :  { %7298 = vtanh.f32 %v11140_v53  ;;  %4654 = vmatpush1.msra.mxu0 %v12460_v0  ;;  %4725 = vmatpush1.msra.mxu1 %v12461_v24  ;;  %v12497_v22 = vld [vmem:[#allocation96_spill] sm:$0xff]  ;;  %v12499_v45 = vld [vmem:[#allocation98_spill] sm:$0xff] }
 0x7f6   :  { %7300 = vtanh.f32 %v11144_v14  ;;  %4655 = vmatprep.subr.mxu0 %v12462_v57  ;;  %4726 = vmatprep.subr.mxu1 %v12463_v48  ;;  %v5183_v10 = vld [vmem:[#allocation11 + $0x1e0] sm:$0xff]  ;;  %v5180_v11 = vld [vmem:[#allocation11 + $0x1c8] sm:$0xff]  ;;  %v5003_v24 = vld [vmem:[#allocation10 + $0xd8] sm:$0xff] }
 0x7f7   :  { %4656 = vmatpush1.msra.mxu0 %v12464_v2  ;;  %4727 = vmatpush1.msra.mxu1 %v12465_v47  ;;  %v5176_v35 = vld [vmem:[#allocation11 + $0x1a8] sm:$0xff]  ;;  %v5175_v0 = vld [vmem:[#allocation11 + $0x1a0] sm:$0xff]  ;;  %v5002_v48 = vld [vmem:[#allocation10 + $0xd0] sm:$0xff] }
 0x7f8   :  { %4657 = vmatprep.subr.mxu0 %v12466_v40  ;;  %4728 = vmatprep.subr.mxu1 %v12467_v51  ;;  %v7295_v26 = vpop.eup %7294  ;;  %v5172_v57 = vld [vmem:[#allocation11 + $0x188] sm:$0xff]  ;;  %v5171_v2 = vld [vmem:[#allocation11 + $0x180] sm:$0xff] }
 0x7f9   :  { %4658 = vmatpush1.msra.mxu0 %v12468_v4  ;;  %4729 = vmatpush1.msra.mxu1 %v12469_v32  ;;  %v7297_v33 = vpop.eup %7296  ;;  %v5001_v47 = vld [vmem:[#allocation10 + $0xc8] sm:$0xff]  ;;  %v5000_v51 = vld [vmem:[#allocation10 + $0xc0] sm:$0xff]  ;;  %v4999_v32 = vld [vmem:[#allocation10 + $0xb8] sm:$0xff] }
 0x7fa   :  { %4659 = vmatprep.subr.mxu0 %v12470_v30  ;;  %4730 = vmatprep.subr.mxu1 %v12471_v27  ;;  %v5168_v40 = vld [vmem:[#allocation11 + $0x168] sm:$0xff]  ;;  %v5167_v4 = vld [vmem:[#allocation11 + $0x160] sm:$0xff]  ;;  %v4998_v27 = vld [vmem:[#allocation10 + $0xb0] sm:$0xff] }
 0x7fb   :  { %4660 = vmatpush1.msra.mxu0 %v12472_v28  ;;  %4731 = vmatpush1.msra.mxu1 %v12473_v23  ;;  %v5164_v30 = vld [vmem:[#allocation11 + $0x148] sm:$0xff]  ;;  %v5163_v28 = vld [vmem:[#allocation11 + $0x140] sm:$0xff] }
 0x7fc   :  { %4661 = vmatprep.subr.mxu0 %v12474_v54  ;;  %4732 = vmatprep.subr.mxu1 %v12475_v36  ;;  %v4997_v23 = vld [vmem:[#allocation10 + $0xa8] sm:$0xff]  ;;  %v4996_v36 = vld [vmem:[#allocation10 + $0xa0] sm:$0xff] }
 0x7fd   :  { %4662 = vmatpush1.msra.mxu0 %v12476_v13  ;;  %4733 = vmatpush1.msra.mxu1 %v12477_v55  ;;  %v5160_v54 = vld [vmem:[#allocation11 + $0x128] sm:$0xff]  ;;  %v5159_v13 = vld [vmem:[#allocation11 + $0x120] sm:$0xff]  ;;  %v4995_v55 = vld [vmem:[#allocation10 + $0x98] sm:$0xff] }
 0x7fe   :  { %4663 = vmatprep.subr.mxu0 %v12478_v6  ;;  %4734 = vmatprep.subr.mxu1 %v12479_v63  ;;  %v4994_v6 = vld [vmem:[#allocation10 + $0x90] sm:$0xff]  ;;  %v5155_v63 = vld [vmem:[#allocation11 + $0x100] sm:$0xff] }
 0x7ff   :  { %4664 = vmatpush1.msra.mxu0 %v12480_v34  ;;  %4735 = vmatpush1.msra.mxu1 %v12481_v12  ;;  %v5152_v34 = vld [vmem:[#allocation11 + $0xe8] sm:$0xff]  ;;  %v4992_v12 = vld [vmem:[#allocation10 + $0x80] sm:$0xff] }
 0x800   :  { %4665 = vmatprep.subr.mxu0 %v12482_v59  ;;  %4736 = vmatprep.subr.mxu1 %v12483_v31  ;;  %v4991_v59 = vld [vmem:[#allocation10 + $0x78] sm:$0xff]  ;;  %v5148_v31 = vld [vmem:[#allocation11 + $0xc8] sm:$0xff] }
 0x801   :  { %4666 = vmatpush1.msra.mxu0 %v10964_v41  ;;  %4737 = vmatpush1.msra.mxu1 %v12484_v61  ;;  %v12488_v41 = vld [vmem:[#allocation87_spill] sm:$0xff]  ;;  %v5147_v61 = vld [vmem:[#allocation11 + $0xc0] sm:$0xff] }
 0x802   :  { %v7299_v5 = vpop.eup %7298  ;;  %4667 = vmatprep.subr.mxu0 %v10970_v43  ;;  %4738 = vmatprep.subr.mxu1 %v10973_v37  ;;  %v12491_v43 = vld [vmem:[#allocation90_spill] sm:$0xff]  ;;  %v12492_v37 = vld [vmem:[#allocation91_spill] sm:$0xff] }
 0x803   :  { %v7301_v16 = vpop.eup %7300  ;;  %v4416_v15 = vmul.f32 %v7299_v5, %v7295_v26  ;;  %4668 = vmatpush1.msra.mxu0 %v12485_v60  ;;  %4739 = vmatpush1.msra.mxu1 %v12486_v49  ;;  %v5156_v26 = vld [vmem:[#allocation11 + $0x108] sm:$0xff]  ;;  %v5151_v5 = vld [vmem:[#allocation11 + $0xe0] sm:$0xff] }
 0x804   :  { %v4417_v1 = vmul.f32 %v7301_v16, %v7297_v33  ;;  %4669 = vmatprep.subr.mxu0 %v12487_v9  ;;  %4740 = vmatprep.subr.mxu1 %v10985_v44  ;;  %v12496_v44 = vld [vmem:[#allocation95_spill] sm:$0xff]  ;;  %v4988_v60 = vld [vmem:[#allocation10 + $0x60] sm:$0xff]  ;;  %v4987_v9 = vld [vmem:[#allocation10 + $0x58] sm:$0xff] }
 0x805   :  { %4419 = vst [vmem:[#allocation2 + $0x9] sm:$0x1] %v4416_v15  ;;  %4670 = vmatpush1.msra.mxu0 %v12488_v41  ;;  %4741 = vmatpush1.msra.mxu1 %v12489_v62  ;;  %v4993_v33 = vld [vmem:[#allocation10 + $0x88] sm:$0xff]  ;;  %v4990_v16 = vld [vmem:[#allocation10 + $0x70] sm:$0xff]  ;;  %v5143_v49 = vld [vmem:[#allocation11 + $0xa0] sm:$0xff] }
 0x806   :  { %4421 = vst [vmem:[#allocation2 + $0x19] sm:$0x1] %v4417_v1  ;;  %v4631_v8 = vcombine.low %v4416_v15, %v4417_v1  ;;  %4671 = vmatprep.subr.mxu0 %v12490_v7  ;;  %4742 = vmatprep.subr.mxu1 %v12491_v43  ;;  %v4989_v15 = vld [vmem:[#allocation10 + $0x68] sm:$0xff]  ;;  %v4986_v41 = vld [vmem:[#allocation10 + $0x50] sm:$0xff]  ;;  %v5139_v62 = vld [vmem:[#allocation11 + $0x80] sm:$0xff] }
 0x807   :  { %4672 = vmatpush1.msra.mxu0 %v12492_v37  ;;  %4743 = vmatpush1.msra.mxu1 %v12493_v3  ;;  %v5144_v1 = vld [vmem:[#allocation11 + $0xa8] sm:$0xff]  ;;  %v4984_v37 = vld [vmem:[#allocation10 + $0x40] sm:$0xff] }
 0x808   :  { %v4638_v18 = vrot.slane %v4631_v8, %v8812_v52  ;;  %4673 = vmatprep.subr.mxu0 %v12494_v46  ;;  %4744 = vmatprep.subr.mxu1 %v12495_v21  ;;  %v5140_v8 = vld [vmem:[#allocation11 + $0x88] sm:$0xff]  ;;  %v5135_v3 = vld [vmem:[#allocation11 + $0x60] sm:$0xff]  ;;  %v4982_v21 = vld [vmem:[#allocation10 + $0x30] sm:$0xff] }
 0x809   :  { %4674 = vmatpush1.msra.mxu0 %v12496_v44  ;;  %4745 = vmatpush1.msra.mxu1 %v12497_v22  ;;  %v4985_v7 = vld [vmem:[#allocation10 + $0x48] sm:$0xff]  ;;  %v5131_v44 = vld [vmem:[#allocation11 + $0x40] sm:$0xff] }
 0x80a   :  { %4675 = vmatprep.subr.mxu0 %v12498_v38  ;;  %4746 = vmatprep.subr.mxu1 %v11022_v50  ;;  %v4645_v39 = vrot.slane %v4638_v18, %v8812_v52  ;;  %v5184_v50 = vld [vmem:[#allocation11 + $0x1e8] sm:$0xff]  ;;  %v4983_v18 = vld [vmem:[#allocation10 + $0x38] sm:$0xff] }
 0x80b   :  { %4676 = vmatpush1.msra.mxu0 %v12499_v45  ;;  %4747 = vmatpush1.msra.mxu1 %v11028_v42  ;;  %v5007_v42 = vld [vmem:[#allocation10 + $0xf8] sm:$0xff]  ;;  %v5136_v43 = vld [vmem:[#allocation11 + $0x68] sm:$0xff]  ;;  %v4980_v45 = vld [vmem:[#allocation10 + $0x20] sm:$0xff] }
 0x80c   :  { %4677 = vmatprep.subr.mxu0 %v11032_v25  ;;  %4748 = vmatprep.subr.mxu1 %v11035_v19  ;;  %v5006_v25 = vld [vmem:[#allocation10 + $0xf0] sm:$0xff]  ;;  %v5179_v19 = vld [vmem:[#allocation11 + $0x1c0] sm:$0xff]  ;;  %v5132_v46 = vld [vmem:[#allocation11 + $0x48] sm:$0xff] }
 0x80d   :  { %4678 = vmatpush1.msra.mxu0 %v11038_v17  ;;  %4711 = vmatprep.mubr.f32.mxu0 %v11943_v29  ;;  %v5005_v17 = vld [vmem:[#allocation10 + $0xe8] sm:$0xff] }
 0x80e   :  { %4749 = vmatpush1.msra.mxu1 %v11042_v56  ;;  %4782 = vmatprep.mubr.f32.mxu1 %v11943_v29  ;;  %v5004_v56 = vld [vmem:[#allocation10 + $0xe0] sm:$0xff]  ;;  %v4981_v22 = vld [vmem:[#allocation10 + $0x28] sm:$0xff] }
 0x80f   :  { %4712 = vmatmul.mubr.f32.vlgmr.msra.gmra.mxu0 %v4645_v39  ;;  %4783 = vmatmul.mubr.f32.vlgmr.msra.gmra.mxu1 %v4645_v39  ;;  %v5128_v38 = vld [vmem:[#allocation11 + $0x28] sm:$0xff]  ;;  %v5127_v39 = vld [vmem:[#allocation11 + $0x20] sm:$0xff] }
 0x810   :  { %5273 = vmatprep.subr.mxu1 %v5184_v50  ;;  %5052 = vmatprep.subr.mxu0 %v5007_v42  ;;  %v4979_v50 = vld [vmem:[#allocation10 + $0x18] sm:$0xff]  ;;  %v4978_v42 = vld [vmem:[#allocation10 + $0x10] sm:$0xff] }
 0x811   :  { %5274 = vmatpush1.msra.mxu1 %v5183_v10  ;;  %5053 = vmatpush1.msra.mxu0 %v5006_v25  ;;  %v5124_v10 = vld [vmem:[#allocation11 + $0x8] sm:$0xff] }
 0x812   :  { %5275 = vmatprep.subr.mxu1 %v5180_v11  ;;  %5054 = vmatprep.subr.mxu0 %v5005_v17  ;;  %v5123_v11 = vld [vmem:[#allocation11] sm:$0xff]  ;;  %v4977_v25 = vld [vmem:[#allocation10 + $0x8] sm:$0xff] }
 0x813   :  { %5276 = vmatpush1.msra.mxu1 %v5179_v19  ;;  %5055 = vmatpush1.msra.mxu0 %v5004_v56  ;;  %v5248_v19 = vld [vmem:[#allocation11 + $0x3e8] sm:$0xff]  ;;  %v4976_v17 = vld [vmem:[#allocation10] sm:$0xff]  ;;  %v5039_v56 = vld [vmem:[#allocation10 + $0x1f8] sm:$0xff] }
 0x814   :  { %5277 = vmatprep.subr.mxu1 %v5176_v35  ;;  %5056 = vmatprep.subr.mxu0 %v5003_v24  ;;  %v5247_v35 = vld [vmem:[#allocation11 + $0x3e0] sm:$0xff]  ;;  %v5038_v24 = vld [vmem:[#allocation10 + $0x1f0] sm:$0xff] }
 0x815   :  { %5278 = vmatpush1.msra.mxu1 %v5175_v0  ;;  %5057 = vmatpush1.msra.mxu0 %v5002_v48  ;;  %v5244_v0 = vld [vmem:[#allocation11 + $0x3c8] sm:$0xff] }
 0x816   :  { %5279 = vmatprep.subr.mxu1 %v5172_v57  ;;  %5058 = vmatprep.subr.mxu0 %v5001_v47  ;;  %v5243_v57 = vld [vmem:[#allocation11 + $0x3c0] sm:$0xff]  ;;  %v5037_v48 = vld [vmem:[#allocation10 + $0x1e8] sm:$0xff] }
 0x817   :  { %5280 = vmatpush1.msra.mxu1 %v5171_v2  ;;  %5059 = vmatpush1.msra.mxu0 %v5000_v51  ;;  %v5240_v2 = vld [vmem:[#allocation11 + $0x3a8] sm:$0xff]  ;;  %v5036_v47 = vld [vmem:[#allocation10 + $0x1e0] sm:$0xff]  ;;  %v5035_v51 = vld [vmem:[#allocation10 + $0x1d8] sm:$0xff] }
 0x818   :  { %5281 = vmatprep.subr.mxu1 %v5168_v40  ;;  %5060 = vmatprep.subr.mxu0 %v4999_v32  ;;  %v5239_v40 = vld [vmem:[#allocation11 + $0x3a0] sm:$0xff]  ;;  %v5034_v32 = vld [vmem:[#allocation10 + $0x1d0] sm:$0xff] }
 0x819   :  { %5282 = vmatpush1.msra.mxu1 %v5167_v4  ;;  %5061 = vmatpush1.msra.mxu0 %v4998_v27  ;;  %v5236_v4 = vld [vmem:[#allocation11 + $0x388] sm:$0xff] }
 0x81a   :  { %5283 = vmatprep.subr.mxu1 %v5164_v30  ;;  %5062 = vmatprep.subr.mxu0 %v4997_v23  ;;  %v5235_v30 = vld [vmem:[#allocation11 + $0x380] sm:$0xff]  ;;  %v5033_v27 = vld [vmem:[#allocation10 + $0x1c8] sm:$0xff] }
 0x81b   :  { %5284 = vmatpush1.msra.mxu1 %v5163_v28  ;;  %5063 = vmatpush1.msra.mxu0 %v4996_v36  ;;  %v5232_v28 = vld [vmem:[#allocation11 + $0x368] sm:$0xff]  ;;  %v5032_v23 = vld [vmem:[#allocation10 + $0x1c0] sm:$0xff]  ;;  %v5031_v36 = vld [vmem:[#allocation10 + $0x1b8] sm:$0xff] }
 0x81c   :  { %5285 = vmatprep.subr.mxu1 %v5160_v54  ;;  %5064 = vmatprep.subr.mxu0 %v4995_v55  ;;  %v5231_v54 = vld [vmem:[#allocation11 + $0x360] sm:$0xff]  ;;  %v5030_v55 = vld [vmem:[#allocation10 + $0x1b0] sm:$0xff] }
 0x81d   :  { %5286 = vmatpush1.msra.mxu1 %v5159_v13  ;;  %5065 = vmatpush1.msra.mxu0 %v4994_v6  ;;  %v5228_v13 = vld [vmem:[#allocation11 + $0x348] sm:$0xff] }
 0x81e   :  { %5287 = vmatprep.subr.mxu1 %v5156_v26  ;;  %5066 = vmatprep.subr.mxu0 %v4993_v33  ;;  %v5227_v26 = vld [vmem:[#allocation11 + $0x340] sm:$0xff]  ;;  %v5029_v6 = vld [vmem:[#allocation10 + $0x1a8] sm:$0xff] }
 0x81f   :  { %5288 = vmatpush1.msra.mxu1 %v5155_v63  ;;  %5067 = vmatpush1.msra.mxu0 %v4992_v12  ;;  %v5224_v63 = vld [vmem:[#allocation11 + $0x328] sm:$0xff]  ;;  %v5028_v33 = vld [vmem:[#allocation10 + $0x1a0] sm:$0xff]  ;;  %v5027_v12 = vld [vmem:[#allocation10 + $0x198] sm:$0xff] }
 0x820   :  { %5289 = vmatprep.subr.mxu1 %v5152_v34  ;;  %5068 = vmatprep.subr.mxu0 %v4991_v59  ;;  %v5223_v34 = vld [vmem:[#allocation11 + $0x320] sm:$0xff]  ;;  %v5026_v59 = vld [vmem:[#allocation10 + $0x190] sm:$0xff] }
 0x821   :  { %5290 = vmatpush1.msra.mxu1 %v5151_v5  ;;  %5069 = vmatpush1.msra.mxu0 %v4990_v16  ;;  %v5220_v5 = vld [vmem:[#allocation11 + $0x308] sm:$0xff] }
 0x822   :  { %5291 = vmatprep.subr.mxu1 %v5148_v31  ;;  %5070 = vmatprep.subr.mxu0 %v4989_v15  ;;  %v5219_v31 = vld [vmem:[#allocation11 + $0x300] sm:$0xff]  ;;  %v5025_v16 = vld [vmem:[#allocation10 + $0x188] sm:$0xff] }
 0x823   :  { %5292 = vmatpush1.msra.mxu1 %v5147_v61  ;;  %5071 = vmatpush1.msra.mxu0 %v4988_v60  ;;  %v5216_v61 = vld [vmem:[#allocation11 + $0x2e8] sm:$0xff]  ;;  %v5024_v15 = vld [vmem:[#allocation10 + $0x180] sm:$0xff]  ;;  %v5023_v60 = vld [vmem:[#allocation10 + $0x178] sm:$0xff] }
 0x824   :  { %5293 = vmatprep.subr.mxu1 %v5144_v1  ;;  %5072 = vmatprep.subr.mxu0 %v4987_v9  ;;  %v5215_v1 = vld [vmem:[#allocation11 + $0x2e0] sm:$0xff]  ;;  %v5022_v9 = vld [vmem:[#allocation10 + $0x170] sm:$0xff] }
 0x825   :  { %5294 = vmatpush1.msra.mxu1 %v5143_v49  ;;  %5073 = vmatpush1.msra.mxu0 %v4986_v41  ;;  %v5212_v49 = vld [vmem:[#allocation11 + $0x2c8] sm:$0xff] }
 0x826   :  { %5295 = vmatprep.subr.mxu1 %v5140_v8  ;;  %5074 = vmatprep.subr.mxu0 %v4985_v7  ;;  %v5211_v8 = vld [vmem:[#allocation11 + $0x2c0] sm:$0xff]  ;;  %v5021_v41 = vld [vmem:[#allocation10 + $0x168] sm:$0xff] }
 0x827   :  { %5296 = vmatpush1.msra.mxu1 %v5139_v62  ;;  %5075 = vmatpush1.msra.mxu0 %v4984_v37  ;;  %v5208_v62 = vld [vmem:[#allocation11 + $0x2a8] sm:$0xff]  ;;  %v5020_v7 = vld [vmem:[#allocation10 + $0x160] sm:$0xff]  ;;  %v5019_v37 = vld [vmem:[#allocation10 + $0x158] sm:$0xff] }
 0x828   :  { %5297 = vmatprep.subr.mxu1 %v5136_v43  ;;  %5076 = vmatprep.subr.mxu0 %v4983_v18  ;;  %v5207_v43 = vld [vmem:[#allocation11 + $0x2a0] sm:$0xff]  ;;  %v5018_v18 = vld [vmem:[#allocation10 + $0x150] sm:$0xff] }
 0x829   :  { %5298 = vmatpush1.msra.mxu1 %v5135_v3  ;;  %5077 = vmatpush1.msra.mxu0 %v4982_v21  ;;  %v5204_v3 = vld [vmem:[#allocation11 + $0x288] sm:$0xff] }
 0x82a   :  { %5299 = vmatprep.subr.mxu1 %v5132_v46  ;;  %5078 = vmatprep.subr.mxu0 %v4981_v22  ;;  %v5203_v46 = vld [vmem:[#allocation11 + $0x280] sm:$0xff]  ;;  %v5017_v21 = vld [vmem:[#allocation10 + $0x148] sm:$0xff] }
 0x82b   :  { %5300 = vmatpush1.msra.mxu1 %v5131_v44  ;;  %5079 = vmatpush1.msra.mxu0 %v4980_v45  ;;  %v5200_v44 = vld [vmem:[#allocation11 + $0x268] sm:$0xff]  ;;  %v5016_v22 = vld [vmem:[#allocation10 + $0x140] sm:$0xff]  ;;  %v5015_v45 = vld [vmem:[#allocation10 + $0x138] sm:$0xff] }
 0x82c   :  { %5301 = vmatprep.subr.mxu1 %v5128_v38  ;;  %5080 = vmatprep.subr.mxu0 %v4979_v50  ;;  %v5199_v38 = vld [vmem:[#allocation11 + $0x260] sm:$0xff]  ;;  %v5014_v50 = vld [vmem:[#allocation10 + $0x130] sm:$0xff] }
 0x82d   :  { %5302 = vmatpush1.msra.mxu1 %v5127_v39  ;;  %5081 = vmatpush1.msra.mxu0 %v4978_v42  ;;  %v5196_v39 = vld [vmem:[#allocation11 + $0x248] sm:$0xff] }
 0x82e   :  { %5303 = vmatprep.subr.mxu1 %v5124_v10  ;;  %5082 = vmatprep.subr.mxu0 %v4977_v25  ;;  %v5195_v10 = vld [vmem:[#allocation11 + $0x240] sm:$0xff]  ;;  %v5013_v42 = vld [vmem:[#allocation10 + $0x128] sm:$0xff] }
 0x82f   :  { %5304 = vmatpush1.msra.mxu1 %v5123_v11  ;;  %5083 = vmatpush1.msra.mxu0 %v4976_v17  ;;  %v5192_v11 = vld [vmem:[#allocation11 + $0x228] sm:$0xff]  ;;  %v5012_v25 = vld [vmem:[#allocation10 + $0x120] sm:$0xff]  ;;  %v5011_v17 = vld [vmem:[#allocation10 + $0x118] sm:$0xff] }
 0x830   :  { %5305 = vmatprep.subr.mxu1 %v5248_v19  ;;  %5084 = vmatprep.subr.mxu0 %v5039_v56  ;;  %v5191_v19 = vld [vmem:[#allocation11 + $0x220] sm:$0xff]  ;;  %v5010_v56 = vld [vmem:[#allocation10 + $0x110] sm:$0xff] }
 0x831   :  { %5306 = vmatpush2.msra.mxu1 %v5247_v35  ;;  %5085 = vmatpush2.msra.mxu0 %v5038_v24  ;;  %v5188_v35 = vld [vmem:[#allocation11 + $0x208] sm:$0xff] }
 0x832   :  { %5307 = vmatprep.subr.mxu1 %v5244_v0  ;;  %5086 = vmatprep.subr.mxu0 %v5037_v48  ;;  %v5187_v0 = vld [vmem:[#allocation11 + $0x200] sm:$0xff]  ;;  %v5009_v24 = vld [vmem:[#allocation10 + $0x108] sm:$0xff]  ;;  %v5186_v48 = vld [vmem:[#allocation11 + $0x1f8] sm:$0xff] }
 0x833   :  { %5308 = vmatpush2.msra.mxu1 %v5243_v57  ;;  %5087 = vmatpush2.msra.mxu0 %v5036_v47  ;;  %v5008_v57 = vld [vmem:[#allocation10 + $0x100] sm:$0xff] }
 0x834   :  { %5309 = vmatprep.subr.mxu1 %v5240_v2  ;;  %5088 = vmatprep.subr.mxu0 %v5035_v51 }
 0x835   :  { %5310 = vmatpush2.msra.mxu1 %v5239_v40  ;;  %5089 = vmatpush2.msra.mxu0 %v5034_v32 }
 0x836   :  { %5311 = vmatprep.subr.mxu1 %v5236_v4  ;;  %5090 = vmatprep.subr.mxu0 %v5033_v27 }
 0x837   :  { %5312 = vmatpush2.msra.mxu1 %v5235_v30  ;;  %5091 = vmatpush2.msra.mxu0 %v5032_v23 }
 0x838   :  { %5313 = vmatprep.subr.mxu1 %v5232_v28  ;;  %5092 = vmatprep.subr.mxu0 %v5031_v36 }
 0x839   :  { %5314 = vmatpush2.msra.mxu1 %v5231_v54  ;;  %5093 = vmatpush2.msra.mxu0 %v5030_v55  ;;  %v4425_v55 = vld [vmem:[#allocation3 + $0x27] ss:$8 sm:$0xf] }
 0x83a   :  { %5315 = vmatprep.subr.mxu1 %v5228_v13  ;;  %5094 = vmatprep.subr.mxu0 %v5029_v6  ;;  %v4423_v13 = vld [vmem:[#allocation3 + $0x7] ss:$8 sm:$0xf] }
 0x83b   :  { %5316 = vmatpush2.msra.mxu1 %v5227_v26  ;;  %5095 = vmatpush2.msra.mxu0 %v5028_v33 }
 0x83c   :  { %5317 = vmatprep.subr.mxu1 %v5224_v63  ;;  %5096 = vmatprep.subr.mxu0 %v5027_v12 }
 0x83d   :  { %5318 = vmatpush2.msra.mxu1 %v5223_v34  ;;  %5097 = vmatpush2.msra.mxu0 %v5026_v59 }
 0x83e   :  { %5319 = vmatprep.subr.mxu1 %v5220_v5  ;;  %5098 = vmatprep.subr.mxu0 %v5025_v16 }
 0x83f   :  { %5320 = vmatpush2.msra.mxu1 %v5219_v31  ;;  %5099 = vmatpush2.msra.mxu0 %v5024_v15 }
 0x840   :  { %5321 = vmatprep.subr.mxu1 %v5216_v61  ;;  %5100 = vmatprep.subr.mxu0 %v5023_v60 }
 0x841   :  { %5322 = vmatpush2.msra.mxu1 %v5215_v1  ;;  %5101 = vmatpush2.msra.mxu0 %v5022_v9 }
 0x842   :  { %5323 = vmatprep.subr.mxu1 %v5212_v49  ;;  %5102 = vmatprep.subr.mxu0 %v5021_v41 }
 0x843   :  { %5324 = vmatpush2.msra.mxu1 %v5211_v8  ;;  %5103 = vmatpush2.msra.mxu0 %v5020_v7 }
 0x844   :  { %5325 = vmatprep.subr.mxu1 %v5208_v62  ;;  %5104 = vmatprep.subr.mxu0 %v5019_v37 }
 0x845   :  { %5326 = vmatpush2.msra.mxu1 %v5207_v43  ;;  %5105 = vmatpush2.msra.mxu0 %v5018_v18 }
 0x846   :  { %5327 = vmatprep.subr.mxu1 %v5204_v3  ;;  %5106 = vmatprep.subr.mxu0 %v5017_v21 }
 0x847   :  { %5328 = vmatpush2.msra.mxu1 %v5203_v46  ;;  %5107 = vmatpush2.msra.mxu0 %v5016_v22 }
 0x848   :  { %5329 = vmatprep.subr.mxu1 %v5200_v44  ;;  %5108 = vmatprep.subr.mxu0 %v5015_v45 }
 0x849   :  { %5330 = vmatpush2.msra.mxu1 %v5199_v38  ;;  %5109 = vmatpush2.msra.mxu0 %v5014_v50 }
 0x84a   :  { %5331 = vmatprep.subr.mxu1 %v5196_v39  ;;  %5110 = vmatprep.subr.mxu0 %v5013_v42 }
 0x84b   :  { %5332 = vmatpush2.msra.mxu1 %v5195_v10  ;;  %5111 = vmatpush2.msra.mxu0 %v5012_v25 }
 0x84c   :  { %5333 = vmatprep.subr.mxu1 %v5192_v11  ;;  %5112 = vmatprep.subr.mxu0 %v5011_v17 }
 0x84d   :  { %5334 = vmatpush2.msra.mxu1 %v5191_v19  ;;  %5113 = vmatpush2.msra.mxu0 %v5010_v56  ;;  %v4626_v19 = vld [vmem:[#allocation4] ss:$8 sm:$0xf] }
 0x84e   :  { %5335 = vmatprep.subr.mxu1 %v5188_v35  ;;  %5114 = vmatprep.subr.mxu0 %v5009_v24  ;;  %v4628_v24 = vld [vmem:[#allocation4 + $0x20] ss:$8 sm:$0xf] }
 0x84f   :  { %5336 = vmatpush2.msra.mxu1 %v5187_v0  ;;  %5115 = vmatpush2.msra.mxu0 %v5008_v57 }
 0x850   :  { %5350 = vmatprep.subr.mxu0 %v5186_v48 }
 0x8ae   :  { %v4510_v2 = vpop.f32.mrf.mxu0  ;;  %v4581_v47 = vpop.f32.mrf.mxu1 }
 0x8b0   :  { %v4512_v40 = vpop.f32.mrf.mxu0  ;;  %v4583_v51 = vpop.f32.mrf.mxu1 }
 0x8b1   :  { %v4590_v4 = vcombine.low %v4510_v2, %v4512_v40  ;;  %v4591_v32 = vcombine.low %v4581_v47, %v4583_v51 }
 0x8b3   :  { %v4598_v30 = vrot.slane %v4590_v4, %v8812_v52  ;;  %v4605_v27 = vrot.slane %v4591_v32, %v8812_v52 }
 0x8b5   :  { %v4606_v28 = vcombine.low %v4598_v30, %v4605_v27  ;;  %v4607_v23 = vcombine.high %v4598_v30, %v4605_v27 }
 0x8b7   :  { %v4614_v54 = vrot.slane %v4606_v28, %v8812_v52  ;;  %v4621_v36 = vrot.slane %v4607_v23, %v8812_v52 }
 0x8b9   :  { %v4624_v26 = vadd.f32 %v4614_v54, %v4423_v13  ;;  %v4625_v6 = vadd.f32 %v4621_v36, %v4425_v55 }
 0x8bb   :  { %v6662_v63 = vmul.f32 -1.442695, %v4624_v26  ;;  %v6663_v33 = vmul.f32 -1.442695, %v4625_v6  ;;  %v4843_v34 = vrot.slane %v4624_v26, 1  ;;  %v4844_v12 = vrot.slane %v4625_v6, 1 }
 0x8bc   :  { %v4865_v31 = vrot.slane %v4624_v26, 3  ;;  %v4866_v16 = vrot.slane %v4625_v6, 3  ;;  %v4859_v1 = vrot.slane %v4624_v26, 2  ;;  %v4860_v60 = vrot.slane %v4625_v6, 2 }
 0x8bd   :  { %7302 = vpow2.f32 %v6662_v63  ;;  %v6664_v5 = vmul.f32 -1.442695, %v4843_v34  ;;  %v6665_v59 = vmul.f32 -1.442695, %v4844_v12 }
 0x8be   :  { %7304 = vpow2.f32 %v6663_v33  ;;  %v6666_v61 = vmul.f32 -1.442695, %v4865_v31  ;;  %v6667_v15 = vmul.f32 -1.442695, %v4866_v16 }
 0x8bf   :  { %7306 = vpow2.f32 %v6664_v5 }
 0x8c0   :  { %7308 = vpow2.f32 %v6665_v59 }
 0x8c1   :  { %7310 = vpow2.f32 %v6666_v61 }
 0x8c2   :  { %7312 = vpow2.f32 %v6667_v15 }
 0x8c3   :  { %7314 = vtanh.f32 %v4859_v1 }
 0x8c4   :  { %7316 = vtanh.f32 %v4860_v60 }
 0x8ca   :  { %v7303_v49 = vpop.eup %7302 }
 0x8cb   :  { %v7305_v9 = vpop.eup %7304  ;;  %v4835_v8 = vadd.f32 1.0, %v7303_v49 }
 0x8cc   :  { %v7307_v41 = vpop.eup %7306  ;;  %v4836_v62 = vadd.f32 1.0, %v7305_v9 }
 0x8cd   :  { %v7309_v7 = vpop.eup %7308  ;;  %7318 = vrcp.f32 %v4835_v8  ;;  %v4853_v43 = vadd.f32 1.0, %v7307_v41 }
 0x8ce   :  { %7320 = vrcp.f32 %v4836_v62  ;;  %v4854_v37 = vadd.f32 1.0, %v7309_v7  ;;  %v7311_v39 = vpop.eup %7310 }
 0x8cf   :  { %7322 = vrcp.f32 %v4853_v43  ;;  %v4713_v3 = vpop.f32.mrf.mxu0  ;;  %v4784_v18 = vpop.f32.mrf.mxu1  ;;  %v4875_v25 = vadd.f32 1.0, %v7311_v39 }
 0x8d0   :  { %7324 = vrcp.f32 %v4854_v37  ;;  %v7313_v50 = vpop.eup %7312 }
 0x8d1   :  { %v4715_v46 = vpop.f32.mrf.mxu0  ;;  %v4786_v21 = vpop.f32.mrf.mxu1  ;;  %v4876_v0 = vadd.f32 1.0, %v7313_v50  ;;  %7326 = vrcp.f32 %v4875_v25 }
 0x8d2   :  { %v4793_v44 = vcombine.low %v4713_v3, %v4715_v46  ;;  %v4794_v22 = vcombine.low %v4784_v18, %v4786_v21  ;;  %v7315_v11 = vpop.eup %7314 }
 0x8d3   :  { %v7317_v56 = vpop.eup %7316  ;;  %7328 = vrcp.f32 %v4876_v0 }
 0x8d4   :  { %v4801_v38 = vrot.slane %v4793_v44, %v8812_v52  ;;  %v4808_v45 = vrot.slane %v4794_v22, %v8812_v52 }
 0x8d6   :  { %v4809_v10 = vcombine.low %v4801_v38, %v4808_v45  ;;  %v4810_v42 = vcombine.high %v4801_v38, %v4808_v45 }
 0x8d8   :  { %v4817_v17 = vrot.slane %v4809_v10, %v8812_v52  ;;  %v4824_v35 = vrot.slane %v4810_v42, %v8812_v52 }
 0x8da   :  { %v7319_v57 = vpop.eup %7318  ;;  %v4827_v48 = vadd.f32 %v4817_v17, %v4626_v19  ;;  %v4828_v2 = vadd.f32 %v4824_v35, %v4628_v24 }
 0x8db   :  { %v7321_v47 = vpop.eup %7320  ;;  %v4883_v28 = vmul.f32 %v7319_v57, %v7315_v11 }
 0x8dc   :  { %v7323_v40 = vpop.eup %7322  ;;  %v6668_v51 = vmul.f32 -1.442695, %v4827_v48  ;;  %v6669_v4 = vmul.f32 -1.442695, %v4828_v2  ;;  %v4905_v32 = vrot.slane %v4827_v48, 1  ;;  %v4906_v23 = vrot.slane %v4828_v2, 1 }
 0x8dd   :  { %v7325_v30 = vpop.eup %7324  ;;  %v4881_v27 = vmul.f32 %v7323_v40, %v11124_v20  ;;  %v4884_v36 = vmul.f32 %v7321_v47, %v7317_v56  ;;  %v4927_v63 = vrot.slane %v4827_v48, 3  ;;  %v4928_v33 = vrot.slane %v4828_v2, 3 }
 0x8de   :  { %v4882_v54 = vmul.f32 %v7325_v30, %v11126_v58  ;;  %7330 = vpow2.f32 %v6668_v51  ;;  %v6670_v13 = vmul.f32 -1.442695, %v4905_v32  ;;  %v6671_v26 = vmul.f32 -1.442695, %v4906_v23  ;;  %v7327_v12 = vpop.eup %7326  ;;  %v5185_v32 = vld [vmem:[#allocation11 + $0x1f0] sm:$0xff]  ;;  %v5178_v23 = vld [vmem:[#allocation11 + $0x1b8] sm:$0xff] }
 0x8df   :  { %v4885_v55 = vadd.f32 %v4883_v28, %v4881_v27  ;;  %7332 = vpow2.f32 %v6669_v4  ;;  %v4921_v34 = vrot.slane %v4827_v48, 2  ;;  %v6672_v20 = vmul.f32 -1.442695, %v4927_v63  ;;  %v5182_v27 = vld [vmem:[#allocation11 + $0x1d8] sm:$0xff]  ;;  %v5181_v28 = vld [vmem:[#allocation11 + $0x1d0] sm:$0xff] }
 0x8e0   :  { %v4886_v6 = vadd.f32 %v4884_v36, %v4882_v54  ;;  %7334 = vpow2.f32 %v6670_v13  ;;  %v7329_v5 = vpop.eup %7328  ;;  %v6673_v31 = vmul.f32 -1.442695, %v4928_v33  ;;  %v4922_v49 = vrot.slane %v4828_v2, 2  ;;  %v5177_v54 = vld [vmem:[#allocation11 + $0x1b0] sm:$0xff]  ;;  %v5174_v36 = vld [vmem:[#allocation11 + $0x198] sm:$0xff] }
 0x8e1   :  { %7336 = vtanh.f32 %v4885_v55  ;;  %v5173_v13 = vld [vmem:[#allocation11 + $0x190] sm:$0xff]  ;;  %v5170_v55 = vld [vmem:[#allocation11 + $0x178] sm:$0xff] }
 0x8e2   :  { %7338 = vtanh.f32 %v4886_v6  ;;  %v5166_v6 = vld [vmem:[#allocation11 + $0x158] sm:$0xff]  ;;  %v5165_v63 = vld [vmem:[#allocation11 + $0x150] sm:$0xff] }
 0x8e3   :  { %7340 = vpow2.f32 %v6671_v26  ;;  %v5169_v26 = vld [vmem:[#allocation11 + $0x170] sm:$0xff]  ;;  %v5162_v33 = vld [vmem:[#allocation11 + $0x138] sm:$0xff] }
 0x8e4   :  { %7342 = vtanh.f32 %v4921_v34  ;;  %v5161_v34 = vld [vmem:[#allocation11 + $0x130] sm:$0xff] }
 0x8e5   :  { %7344 = vpow2.f32 %v6672_v20  ;;  %v5157_v20 = vld [vmem:[#allocation11 + $0x110] sm:$0xff] }
 0x8eb   :  { %v7331_v59 = vpop.eup %7330 }
 0x8ec   :  { %v7333_v58 = vpop.eup %7332  ;;  %v4897_v16 = vadd.f32 1.0, %v7331_v59  ;;  %v5153_v59 = vld [vmem:[#allocation11 + $0xf0] sm:$0xff] }
 0x8ed   :  { %v7335_v61 = vpop.eup %7334  ;;  %v4898_v15 = vadd.f32 1.0, %v7333_v58  ;;  %v5149_v58 = vld [vmem:[#allocation11 + $0xd0] sm:$0xff] }
 0x8ee   :  { %v7337_v1 = vpop.eup %7336  ;;  %7346 = vrcp.f32 %v4897_v16  ;;  %v4915_v60 = vadd.f32 1.0, %v7335_v61  ;;  %v5146_v16 = vld [vmem:[#allocation11 + $0xb8] sm:$0xff]  ;;  %v5145_v61 = vld [vmem:[#allocation11 + $0xb0] sm:$0xff] }
 0x8ef   :  { %v7339_v9 = vpop.eup %7338  ;;  %v4889_v8 = vmul.f32 %v7337_v1, %v7327_v12  ;;  %7348 = vpow2.f32 %v6673_v31  ;;  %v5158_v12 = vld [vmem:[#allocation11 + $0x118] sm:$0xff]  ;;  %v5141_v1 = vld [vmem:[#allocation11 + $0x90] sm:$0xff] }
 0x8f0   :  { %v7341_v41 = vpop.eup %7340  ;;  %v4890_v62 = vmul.f32 %v7339_v9, %v7329_v5  ;;  %7350 = vrcp.f32 %v4915_v60  ;;  %v5154_v5 = vld [vmem:[#allocation11 + $0xf8] sm:$0xff] }
 0x8f1   :  { %4953 = vst [vmem:[#allocation2 + $0x7] sm:$0x1] %v4889_v8  ;;  %7352 = vrcp.f32 %v4898_v15  ;;  %v4916_v7 = vadd.f32 1.0, %v7341_v41  ;;  %v7343_v43 = vpop.eup %7342  ;;  %v5150_v31 = vld [vmem:[#allocation11 + $0xd8] sm:$0xff]  ;;  %v5133_v8 = vld [vmem:[#allocation11 + $0x50] sm:$0xff] }
 0x8f2   :  { %4955 = vst [vmem:[#allocation2 + $0x17] sm:$0x1] %v4890_v62  ;;  %7354 = vtanh.f32 %v4922_v49  ;;  %v7345_v37 = vpop.eup %7344  ;;  %v5142_v15 = vld [vmem:[#allocation11 + $0x98] sm:$0xff]  ;;  %v5137_v49 = vld [vmem:[#allocation11 + $0x70] sm:$0xff] }
 0x8f3   :  { %7356 = vrcp.f32 %v4916_v7  ;;  %v4937_v21 = vadd.f32 1.0, %v7345_v37  ;;  %v5138_v60 = vld [vmem:[#allocation11 + $0x78] sm:$0xff]  ;;  %v5129_v62 = vld [vmem:[#allocation11 + $0x30] sm:$0xff] }
 0x8f4   :  { %v5134_v9 = vld [vmem:[#allocation11 + $0x58] sm:$0xff] }
 0x8f5   :  { %7358 = vrcp.f32 %v4937_v21  ;;  %v5130_v41 = vld [vmem:[#allocation11 + $0x38] sm:$0xff] }
 0x8f6   :  { %v5126_v7 = vld [vmem:[#allocation11 + $0x18] sm:$0xff] }
 0x8f7   :  { %v5250_v37 = vld [vmem:[#allocation11 + $0x3f8] sm:$0xff] }
 0x8f8   :  { %v11218_v57 = vld [vmem:[#allocation2] sm:$0xff]  ;;  %v5242_v21 = vld [vmem:[#allocation11 + $0x3b8] sm:$0xff] }
 0x8f9   :  { %v11220_v48 = vld [vmem:[#allocation2 + $0x10] sm:$0xff]  ;;  %v4963_v2 = vrot.slane %v11218_v57, 7 }
 0x8fa   :  { %v4969_v40 = vrot.slane %v11220_v48, 6 }
 0x8fb   :  { %v7347_v3 = vpop.eup %7346 }
 0x8fc   :  { %v7349_v18 = vpop.eup %7348  ;;  %v4945_v38 = vmul.f32 %v7347_v3, %v7343_v43  ;;  %v4974_v30 = vsel %vm4973_vm1, %v4963_v2, %v4969_v40  ;;  %v5125_v43 = vld [vmem:[#allocation11 + $0x10] sm:$0xff]  ;;  %v5202_v40 = vld [vmem:[#allocation11 + $0x278] sm:$0xff] }
 0x8fd   :  { %v7351_v46 = vpop.eup %7350  ;;  %v4938_v50 = vadd.f32 1.0, %v7349_v18  ;;  %v5249_v3 = vld [vmem:[#allocation11 + $0x3f0] sm:$0xff]  ;;  %v5246_v18 = vld [vmem:[#allocation11 + $0x3d8] sm:$0xff] }
 0x8fe   :  { %v7353_v44 = vpop.eup %7352  ;;  %v4943_v22 = vmul.f32 %v7351_v46, %v11140_v53  ;;  %v5245_v46 = vld [vmem:[#allocation11 + $0x3d0] sm:$0xff] }
 0x8ff   :  { %v7355_v45 = vpop.eup %7354  ;;  %v5205_v2 = vld [vmem:[#allocation11 + $0x290] sm:$0xff] }
 0x900   :  { %v7357_v39 = vpop.eup %7356  ;;  %v4947_v10 = vadd.f32 %v4945_v38, %v4943_v22  ;;  %v4946_v11 = vmul.f32 %v7355_v45, %v7353_v44  ;;  %v5241_v44 = vld [vmem:[#allocation11 + $0x3b0] sm:$0xff]  ;;  %v5238_v22 = vld [vmem:[#allocation11 + $0x398] sm:$0xff] }
 0x901   :  { %v4944_v42 = vmul.f32 %v7357_v39, %v11144_v14  ;;  %v5237_v38 = vld [vmem:[#allocation11 + $0x390] sm:$0xff]  ;;  %v5234_v45 = vld [vmem:[#allocation11 + $0x378] sm:$0xff] }
 0x902   :  { %7360 = vtanh.f32 %v4947_v10  ;;  %v7359_v19 = vpop.eup %7358  ;;  %v5233_v39 = vld [vmem:[#allocation11 + $0x370] sm:$0xff] }
 0x903   :  { %v4948_v25 = vadd.f32 %v4946_v11, %v4944_v42  ;;  %7362 = vrcp.f32 %v4938_v50  ;;  %v5230_v50 = vld [vmem:[#allocation11 + $0x358] sm:$0xff]  ;;  %v5229_v10 = vld [vmem:[#allocation11 + $0x350] sm:$0xff] }
 0x904   :  { %v5226_v42 = vld [vmem:[#allocation11 + $0x338] sm:$0xff]  ;;  %v5225_v11 = vld [vmem:[#allocation11 + $0x330] sm:$0xff] }
 0x905   :  { %7364 = vtanh.f32 %v4948_v25  ;;  %v5222_v25 = vld [vmem:[#allocation11 + $0x318] sm:$0xff] }
 0x90f   :  { %v7361_v17 = vpop.eup %7360 }
 0x910   :  { %v4951_v35 = vmul.f32 %v7361_v17, %v7359_v19  ;;  %v7363_v56 = vpop.eup %7362  ;;  %v5221_v19 = vld [vmem:[#allocation11 + $0x310] sm:$0xff]  ;;  %v5218_v17 = vld [vmem:[#allocation11 + $0x2f8] sm:$0xff] }
 0x912   :  { %v7365_v0 = vpop.eup %7364  ;;  %4954 = vst [vmem:[#allocation2 + $0x8] sm:$0x1] %v4951_v35  ;;  %v5217_v35 = vld [vmem:[#allocation11 + $0x2f0] sm:$0xff] }
 0x913   :  { %v4952_v53 = vmul.f32 %v7365_v0, %v7363_v56  ;;  %v5214_v56 = vld [vmem:[#allocation11 + $0x2d8] sm:$0xff]  ;;  %v5213_v0 = vld [vmem:[#allocation11 + $0x2d0] sm:$0xff] }
 0x915   :  { %4956 = vst [vmem:[#allocation2 + $0x18] sm:$0x1] %v4952_v53  ;;  %v5210_v53 = vld [vmem:[#allocation11 + $0x2b8] sm:$0xff] }
 0x919   :  { %v4958_v24 = vld [vmem:[#allocation2 + $0x8] sm:$0xff] }
 0x91a   :  { %5337 = vmatprep.mubr.f32.mxu1 %v4958_v24  ;;  %v4964_v14 = vrot.slane %v4958_v24, 7 }
 0x91b   :  { %5338 = vmatmul.mubr.f32.vlgmr.msra.gmra.mxu1 %v11218_v57 }
 0x91c   :  { %v11224_v47 = vld [vmem:[#allocation2 + $0x18] sm:$0xff] }
 0x91d   :  { %v4970_v51 = vrot.slane %v11224_v47, 6  ;;  %5343 = vmatprep.mubr.f32.mxu1 %v11224_v47 }
 0x91f   :  { %v4975_v4 = vsel %vm4973_vm1, %v4964_v14, %v4970_v51  ;;  %5344 = vmatmul.mubr.f32.gmra.mxu1 %v11220_v48  ;;  %v5206_v14 = vld [vmem:[#allocation11 + $0x298] sm:$0xff]  ;;  %v5201_v51 = vld [vmem:[#allocation11 + $0x270] sm:$0xff] }
 0x920   :  { %5116 = vmatprep.mubr.f32.mxu0 %v4975_v4  ;;  %v5198_v4 = vld [vmem:[#allocation11 + $0x258] sm:$0xff] }
 0x921   :  { %5117 = vmatmul.mubr.f32.vlgmr.msra.gmra.mxu0 %v4974_v30  ;;  %v5194_v30 = vld [vmem:[#allocation11 + $0x238] sm:$0xff] }
 0x922   :  { %5351 = vmatpush1.msra.mxu0 %v5185_v32  ;;  %5414 = vmatprep.mubr.f32.mxu0 %v4958_v24  ;;  %v5209_v24 = vld [vmem:[#allocation11 + $0x2b0] sm:$0xff] }
 0x923   :  { %5352 = vmatprep.subr.mxu0 %v5182_v27  ;;  %v5197_v32 = vld [vmem:[#allocation11 + $0x250] sm:$0xff] }
 0x924   :  { %5353 = vmatpush1.msra.mxu0 %v5181_v28  ;;  %v5193_v27 = vld [vmem:[#allocation11 + $0x230] sm:$0xff]  ;;  %v5190_v28 = vld [vmem:[#allocation11 + $0x218] sm:$0xff] }
 0x925   :  { %5354 = vmatprep.subr.mxu0 %v5178_v23  ;;  %v5189_v23 = vld [vmem:[#allocation11 + $0x210] sm:$0xff] }
 0x926   :  { %5355 = vmatpush1.msra.mxu0 %v5177_v54  ;;  %v5040_v54 = vld [vmem:[%s11609_s7] sm:$0x3] }
 0x927   :  { %5356 = vmatprep.subr.mxu0 %v5174_v36  ;;  %v12500_v36 = vld [vmem:[#allocation25_spill] sm:$0xff] }
 0x928   :  { %5357 = vmatpush1.msra.mxu0 %v5173_v13  ;;  %v5045_v13 = vrot.slane %v5040_v54, %v12500_v36 }
 0x929   :  { %5358 = vmatprep.subr.mxu0 %v5170_v55 }
 0x92a   :  { %5359 = vmatpush1.msra.mxu0 %v5169_v26  ;;  %v11240_v26 = vld [vmem:[%s11611_s9] sm:$0xf] }
 0x92b   :  { %5360 = vmatprep.subr.mxu0 %v5166_v6  ;;  %v12501_v6 = vld [vmem:[#allocation23_spill] sm:$0xff] }
 0x92c   :  { %5361 = vmatpush1.msra.mxu0 %v5165_v63  ;;  %v5049_v63 = vrot.slane %v5040_v54, %v12501_v6 }
 0x92d   :  { %5362 = vmatprep.subr.mxu0 %v5162_v33 }
 0x92e   :  { %5363 = vmatpush1.msra.mxu0 %v5161_v34 }
 0x92f   :  { %5364 = vmatprep.subr.mxu0 %v5158_v12 }
 0x930   :  { %5365 = vmatpush1.msra.mxu0 %v5157_v20 }
 0x931   :  { %5366 = vmatprep.subr.mxu0 %v5154_v5  ;;  %v5260_v5 = vrot.slane %v11240_v26, %v12501_v6 }
 0x932   :  { %5367 = vmatpush1.msra.mxu0 %v5153_v59 }
 0x933   :  { %5368 = vmatprep.subr.mxu0 %v5150_v31 }
 0x934   :  { %5369 = vmatpush1.msra.mxu0 %v5149_v58 }
 0x935   :  { %5370 = vmatprep.subr.mxu0 %v5146_v16 }
 0x936   :  { %5371 = vmatpush1.msra.mxu0 %v5145_v61 }
 0x937   :  { %5372 = vmatprep.subr.mxu0 %v5142_v15 }
 0x938   :  { %5373 = vmatpush1.msra.mxu0 %v5141_v1 }
 0x939   :  { %5374 = vmatprep.subr.mxu0 %v5138_v60 }
 0x93a   :  { %5375 = vmatpush1.msra.mxu0 %v5137_v49 }
 0x93b   :  { %5376 = vmatprep.subr.mxu0 %v5134_v9 }
 0x93c   :  { %5377 = vmatpush1.msra.mxu0 %v5133_v8 }
 0x93d   :  { %5378 = vmatprep.subr.mxu0 %v5130_v41 }
 0x93e   :  { %5379 = vmatpush1.msra.mxu0 %v5129_v62 }
 0x93f   :  { %5380 = vmatprep.subr.mxu0 %v5126_v7 }
 0x940   :  { %5381 = vmatpush1.msra.mxu0 %v5125_v43 }
 0x941   :  { %5382 = vmatprep.subr.mxu0 %v5250_v37 }
 0x942   :  { %5383 = vmatpush2.msra.mxu0 %v5249_v3 }
 0x943   :  { %5384 = vmatprep.subr.mxu0 %v5246_v18 }
 0x944   :  { %5385 = vmatpush2.msra.mxu0 %v5245_v46 }
 0x945   :  { %5386 = vmatprep.subr.mxu0 %v5242_v21 }
 0x946   :  { %5387 = vmatpush2.msra.mxu0 %v5241_v44 }
 0x947   :  { %5388 = vmatprep.subr.mxu0 %v5238_v22 }
 0x948   :  { %5389 = vmatpush2.msra.mxu0 %v5237_v38 }
 0x949   :  { %5390 = vmatprep.subr.mxu0 %v5234_v45 }
 0x94a   :  { %5391 = vmatpush2.msra.mxu0 %v5233_v39 }
 0x94b   :  { %5392 = vmatprep.subr.mxu0 %v5230_v50 }
 0x94c   :  { %5393 = vmatpush2.msra.mxu0 %v5229_v10 }
 0x94d   :  { %5394 = vmatprep.subr.mxu0 %v5226_v42 }
 0x94e   :  { %5395 = vmatpush2.msra.mxu0 %v5225_v11 }
 0x94f   :  { %5396 = vmatprep.subr.mxu0 %v5222_v25 }
 0x950   :  { %5397 = vmatpush2.msra.mxu0 %v5221_v19 }
 0x951   :  { %5398 = vmatprep.subr.mxu0 %v5218_v17 }
 0x952   :  { %5399 = vmatpush2.msra.mxu0 %v5217_v35 }
 0x953   :  { %5400 = vmatprep.subr.mxu0 %v5214_v56  ;;  %v12502_v56 = vlaneseq }
 0x954   :  { %5401 = vmatpush2.msra.mxu0 %v5213_v0 }
 0x955   :  { %5402 = vmatprep.subr.mxu0 %v5210_v53  ;;  %v5474_v0 = vand.u32 127, %v12502_v56 }
 0x956   :  { %5403 = vmatpush2.msra.mxu0 %v5209_v24 }
 0x957   :  { %5404 = vmatprep.subr.mxu0 %v5206_v14  ;;  %v12503_v14 = vld [vmem:[#allocation22_spill] sm:$0xff] }
 0x958   :  { %5405 = vmatpush2.msra.mxu0 %v5205_v2  ;;  %v11271_v2 = vsub.s32 %v5474_v0, %v12503_v14 }
 0x959   :  { %5406 = vmatprep.subr.mxu0 %v5202_v40 }
 0x95a   :  { %5407 = vmatpush2.msra.mxu0 %v5201_v51 }
 0x95b   :  { %5408 = vmatprep.subr.mxu0 %v5198_v4 }
 0x95c   :  { %5409 = vmatpush2.msra.mxu0 %v5197_v32 }
 0x95d   :  { %5410 = vmatprep.subr.mxu0 %v5194_v30 }
 0x95e   :  { %5411 = vmatpush2.msra.mxu0 %v5193_v27 }
 0x95f   :  { %5412 = vmatprep.subr.mxu0 %v5190_v28 }
 0x960   :  { %5413 = vmatpush2.msra.mxu0 %v5189_v23 }
 0x961   :  { %5415 = vmatmul.mubr.f32.vlgmr.msra.gmra.mxu0 %v11218_v57 }
 0x962   :  { %5420 = vmatprep.mubr.f32.mxu0 %v11224_v47  ;;  %v5256_v47 = vrot.slane %v11240_v26, %v12500_v36 }
 0x965   :  { %5421 = vmatmul.mubr.f32.gmra.mxu0 %v11220_v48 }
 0x9db   :  { %v5339_v55 = vpop.f32.mrf.mxu1 }
 0x9dc   :  { %v5340_v16 = vadd.f32 %v5339_v55, %v5256_v47 }
 0x9dd   :  { %v5341_v48 = vpop.f32.mrf.mxu1 }
 0x9de   :  { %v5342_v9 = vadd.f32 %v5341_v48, %v5260_v5 }
 0x9df   :  { %v5345_v61 = vpop.f32.mrf.mxu1 }
 0x9e0   :  { %v5346_v37 = vadd.f32 %v5345_v61, %v5256_v47 }
 0x9e1   :  { %v5118_v33 = vpop.f32.mrf.mxu0  ;;  %v5347_v43 = vpop.f32.mrf.mxu1 }
 0x9e2   :  { %v5119_v57 = vadd.f32 %v5118_v33, %v5045_v13  ;;  %v5348_v46 = vadd.f32 %v5347_v43, %v5260_v5 }
 0x9e3   :  { %v5120_v34 = vpop.f32.mrf.mxu0 }
 0x9e4   :  { %v5434_v12 = vrot.slane %v5119_v57, %v8812_v52  ;;  %v5121_v20 = vadd.f32 %v5120_v34, %v5049_v63  ;;  %v7958_v57 = vmov 0  }
 0x9e5   :  { %6853 = vset.pattern.permute.xlu0 %v7958_v57  ;;  %6852 = vset.pattern.permute.xlu1 %v7958_v57 }
 0x9e6   :  { %v5435_v59 = vcombine.high %v5434_v12, %v5434_v12  ;;  %v5442_v31 = vrot.slane %v5434_v12, %v8812_v52  ;;  %v5687_v58 = vrot.slane %v5121_v20, %v8812_v52 }
 0x9e8   :  { %v5688_v15 = vcombine.high %v5687_v58, %v5687_v58  ;;  %v5695_v1 = vrot.slane %v5687_v58, %v8812_v52  ;;  %v5453_v60 = vrot.slane %v5442_v31, %v12500_v36  ;;  %v5449_v49 = vrot.slane %v5435_v59, %v8812_v52 }
 0x9ea   :  { %v5460_v8 = vmul.f32 %v5453_v60, %v5340_v16  ;;  %v5706_v41 = vrot.slane %v5695_v1, %v12500_v36  ;;  %v5457_v62 = vrot.slane %v5449_v49, %v12500_v36  ;;  %v5702_v7 = vrot.slane %v5688_v15, %v8812_v52 }
 0x9ec   :  { %5571 = vrot.lane.b32.xlu1 %v5460_v8, %s7948_s29  ;;  %v5713_v3 = vmul.f32 %v5706_v41, %v5342_v9  ;;  %v5710_v18 = vrot.slane %v5702_v7, %v12500_v36  ;;  %v5461_v21 = vmul.f32 %v5457_v62, %v5346_v37  ;;  %v5463_v52 = vsel %vm5462_vm2, %v5460_v8, 0.0 }
 0x9ee   :  { %5819 = vrot.lane.b32.xlu0 %v5713_v3, %s7948_s29  ;;  %v5714_v44 = vmul.f32 %v5710_v18, %v5348_v46  ;;  %v5715_v22 = vsel %vm5462_vm2, %v5713_v3, 0.0  ;;  %v5466_v38 = vsel %vm5462_vm2, %v5461_v21, 0.0 }
 0x9f0   :  { %5573 = vrot.lane.b32.xlu1 %v5461_v21, %s7948_s29  ;;  %v5718_v45 = vsel %vm5462_vm2, %v5714_v44, 0.0 }
 0x9f2   :  { %5821 = vrot.lane.b32.xlu0 %v5714_v44, %s7948_s29 }
 0xa11   :  { %5716 = vadd.xlane.f32.xlu0 %v5715_v22 }
 0xa14   :  { %5464 = vadd.xlane.f32.xlu1 %v5463_v52 }
 0xa15   :  { %5467 = vadd.xlane.f32.xlu0 %v5466_v38 }
 0xa18   :  { %5719 = vadd.xlane.f32.xlu1 %v5718_v45 }
 0xa5e   :  { %v5572_v39 = vpop.permute.xlu1 %5571 }
 0xa5f   :  { %v5577_v50 = vsel %vm5462_vm2, %v5572_v39, 0.0 }
 0xa60   :  { %v5820_v10 = vpop.permute.xlu0 %5819  ;;  %5578 = vadd.xlane.f32.xlu1 %v5577_v50 }
 0xa61   :  { %v5825_v42 = vsel %vm5462_vm2, %v5820_v10, 0.0 }
 0xa62   :  { %5826 = vadd.xlane.f32.xlu0 %v5825_v42  ;;  %v5574_v19 = vpop.permute.xlu1 %5573 }
 0xa63   :  { %v5580_v17 = vsel %vm5462_vm2, %v5574_v19, 0.0 }
 0xa64   :  { %v5822_v11 = vpop.permute.xlu0 %5821 }
 0xa65   :  { %v5828_v25 = vsel %vm5462_vm2, %v5822_v11, 0.0 }
 0xa66   :  { %5829 = vadd.xlane.f32.xlu0 %v5828_v25 }
 0xa6a   :  { %5581 = vadd.xlane.f32.xlu0 %v5580_v17 }
 0xa9a   :  { %v5717_v35 = vpop.xlane.xlu0 %5716 }
 0xa9b   :  { %v5721_v40 = vmul.f32 0.125, %v5717_v35 }
 0xa9d   :  { %v5465_v53 = vpop.xlane.xlu1 %5464  ;;  %v5728_v27 = vrot.slane %v5721_v40, %v11271_v2 }
 0xa9e   :  { %v5468_v24 = vpop.xlane.xlu0 %5467  ;;  %v5469_v51 = vmul.f32 0.125, %v5465_v53 }
 0xa9f   :  { %v5470_v4 = vmul.f32 0.125, %v5468_v24 }
 0xaa0   :  { %v5478_v28 = vrot.slane %v5469_v51, %v11271_v2 }
 0xaa1   :  { %v5720_v32 = vpop.xlane.xlu1 %5719  ;;  %v5482_v23 = vrot.slane %v5470_v4, %v11271_v2 }
 0xaa2   :  { %v5722_v30 = vmul.f32 0.125, %v5720_v32 }
 0xaa3   :  { %v5484_v63 = vsel %vm5483_vm3, %v5482_v23, %v5478_v28 }
 0xaa4   :  { %v5732_v54 = vrot.slane %v5722_v30, %v11271_v2  ;;  %v5487_v33 = vsel %vm5486_vm4, %v5484_v63, -inf }
 0xaa6   :  { %v5733_v13 = vsel %vm5483_vm3, %v5732_v54, %v5728_v27 }
 0xaa7   :  { %v5735_v55 = vsel %vm5486_vm4, %v5733_v13, -inf }
 0xaa8   :  { %5736 = vmax.xlane.f32.xlu1 %v5735_v55 }
 0xaac   :  { %5488 = vmax.xlane.f32.xlu1 %v5487_v33 }
 0xae9   :  { %v5579_v34 = vpop.xlane.xlu1 %5578 }
 0xaea   :  { %v5583_v5 = vmul.f32 0.125, %v5579_v34 }
 0xaeb   :  { %v5827_v47 = vpop.xlane.xlu0 %5826 }
 0xaec   :  { %v5831_v48 = vmul.f32 0.125, %v5827_v47  ;;  %v5590_v1 = vrot.slane %v5583_v5, %v11271_v2 }
 0xaee   :  { %v5838_v59 = vrot.slane %v5831_v48, %v11271_v2 }
 0xaef   :  { %v5830_v12 = vpop.xlane.xlu0 %5829 }
 0xaf0   :  { %v5832_v20 = vmul.f32 0.125, %v5830_v12 }
 0xaf2   :  { %v5842_v31 = vrot.slane %v5832_v20, %v11271_v2 }
 0xaf3   :  { %v5582_v58 = vpop.xlane.xlu0 %5581 }
 0xaf4   :  { %v5584_v16 = vmul.f32 0.125, %v5582_v58  ;;  %v5843_v61 = vsel %vm5483_vm3, %v5842_v31, %v5838_v59 }
 0xaf5   :  { %v5845_v15 = vsel %vm5486_vm4, %v5843_v61, -inf }
 0xaf6   :  { %v5594_v60 = vrot.slane %v5584_v16, %v11271_v2  ;;  %5846 = vmax.xlane.f32.xlu0 %v5845_v15 }
 0xaf8   :  { %v5595_v49 = vsel %vm5483_vm3, %v5594_v60, %v5590_v1 }
 0xaf9   :  { %v5597_v9 = vsel %vm5486_vm4, %v5595_v49, -inf }
 0xafa   :  { %5598 = vmax.xlane.f32.xlu0 %v5597_v9 }
 0xb31   :  { %v5737_v8 = vpop.xlane.xlu1 %5736 }
 0xb32   :  { %v5742_v41 = vrot.slane %v5737_v8, %v12500_v36  ;;  %v5746_v62 = vrot.slane %v5737_v8, %v12501_v6 }
 0xb34   :  { %v5749_v7 = vsub.f32 %v5721_v40, %v5742_v41  ;;  %v5750_v43 = vsub.f32 %v5722_v30, %v5746_v62 }
 0xb35   :  { %v5489_v37 = vpop.xlane.xlu1 %5488 }
 0xb36   :  { %v5751_v3 = vmul.f32 1.442695, %v5749_v7  ;;  %v5753_v18 = vmul.f32 1.442695, %v5750_v43  ;;  %v5494_v46 = vrot.slane %v5489_v37, %v12500_v36  ;;  %v5498_v21 = vrot.slane %v5489_v37, %v12501_v6 }
 0xb38   :  { %7366 = vpow2.f32 %v5751_v3  ;;  %v5501_v44 = vsub.f32 %v5469_v51, %v5494_v46  ;;  %v5502_v22 = vsub.f32 %v5470_v4, %v5498_v21 }
 0xb39   :  { %7368 = vpow2.f32 %v5753_v18 }
 0xb3a   :  { %v5503_v52 = vmul.f32 1.442695, %v5501_v44  ;;  %v5505_v38 = vmul.f32 1.442695, %v5502_v22 }
 0xb3c   :  { %7370 = vpow2.f32 %v5503_v52 }
 0xb3d   :  { %7372 = vpow2.f32 %v5505_v38 }
 0xb45   :  { %v11293_v45 = vpop.eup %7366 }
 0xb46   :  { %v11295_v39 = vpop.eup %7368  ;;  %5758 = vperm.xlu1 %6852, %v11293_v45  }
 0xb47   :  { %5761 = vperm.xlu0 %6853, %v11295_v39  }
 0xb49   :  { %v11299_v50 = vpop.eup %7370 }
 0xb4a   :  { %5510 = vperm.xlu1 %6852, %v11299_v50   ;;  %v11302_v10 = vpop.eup %7372 }
 0xb4e   :  { %5513 = vperm.xlu1 %6852, %v11302_v10  }
 0xb7f   :  { %v5847_v42 = vpop.xlane.xlu0 %5846 }
 0xb80   :  { %v5852_v11 = vrot.slane %v5847_v42, %v12500_v36  ;;  %v5856_v17 = vrot.slane %v5847_v42, %v12501_v6  ;;  %v5976_v42 = vld [vmem:[#allocation13 + $0xf8] sm:$0xff] }
 0xb81   :  { %6021 = vmatprep.subr.mxu1 %v5976_v42  ;;  %v5997_v42 = vld [vmem:[#allocation13 + $0x1a0] sm:$0xff] }
 0xb82   :  { %v5859_v35 = vsub.f32 %v5831_v48, %v5852_v11  ;;  %v5860_v53 = vsub.f32 %v5832_v20, %v5856_v17  ;;  %v5975_v11 = vld [vmem:[#allocation13 + $0xf0] sm:$0xff]  ;;  %v5972_v17 = vld [vmem:[#allocation13 + $0xd8] sm:$0xff] }
 0xb83   :  { %v5599_v25 = vpop.xlane.xlu0 %5598  ;;  %6022 = vmatpush1.msra.mxu1 %v5975_v11  ;;  %v5995_v11 = vld [vmem:[#allocation13 + $0x190] sm:$0xff] }
 0xb84   :  { %v5604_v19 = vrot.slane %v5599_v25, %v12500_v36  ;;  %v5861_v24 = vmul.f32 1.442695, %v5859_v35  ;;  %v5608_v14 = vrot.slane %v5599_v25, %v12501_v6  ;;  %v5863_v40 = vmul.f32 1.442695, %v5860_v53  ;;  %v5974_v25 = vld [vmem:[#allocation13 + $0xe8] sm:$0xff]  ;;  %v5969_v35 = vld [vmem:[#allocation13 + $0xc0] sm:$0xff] }
 0xb85   :  { %6023 = vmatprep.subr.mxu1 %v5974_v25  ;;  %v5964_v53 = vld [vmem:[#allocation13 + $0x98] sm:$0xff] }
 0xb86   :  { %v5611_v56 = vsub.f32 %v5583_v5, %v5604_v19  ;;  %v5612_v51 = vsub.f32 %v5584_v16, %v5608_v14  ;;  %v5973_v19 = vld [vmem:[#allocation13 + $0xe0] sm:$0xff]  ;;  %v5962_v14 = vld [vmem:[#allocation13 + $0x88] sm:$0xff] }
 0xb87   :  { %6024 = vmatpush1.msra.mxu1 %v5973_v19  ;;  %v5994_v19 = vld [vmem:[#allocation13 + $0x188] sm:$0xff] }
 0xb88   :  { %v5613_v0 = vmul.f32 1.442695, %v5611_v56  ;;  %v5615_v4 = vmul.f32 1.442695, %v5612_v51  ;;  %6025 = vmatprep.subr.mxu1 %v5972_v17  ;;  %v5968_v56 = vld [vmem:[#allocation13 + $0xb8] sm:$0xff]  ;;  %v5993_v17 = vld [vmem:[#allocation13 + $0x180] sm:$0xff] }
 0xb89   :  { %v5960_v51 = vld [vmem:[#allocation13 + $0x78] sm:$0xff] }
 0xb8a   :  { %7374 = vpow2.f32 %v5613_v0  ;;  %v5965_v0 = vld [vmem:[#allocation13 + $0xa0] sm:$0xff] }
 0xb8b   :  { %7376 = vpow2.f32 %v5861_v24  ;;  %v5963_v24 = vld [vmem:[#allocation13 + $0x90] sm:$0xff] }
 0xb8c   :  { %7378 = vpow2.f32 %v5863_v40  ;;  %v5961_v40 = vld [vmem:[#allocation13 + $0x80] sm:$0xff] }
 0xb8d   :  { %7380 = vpow2.f32 %v5615_v4  ;;  %v5959_v4 = vld [vmem:[#allocation13 + $0x70] sm:$0xff] }
 0xb97   :  { %v11309_v32 = vpop.eup %7374 }
 0xb98   :  { %5620 = vperm.xlu1 %6852, %v11309_v32   ;;  %v11312_v30 = vpop.eup %7376 }
 0xb99   :  { %v11315_v27 = vpop.eup %7378 }
 0xb9a   :  { %v11318_v28 = vpop.eup %7380 }
 0xb9c   :  { %5868 = vperm.xlu1 %6852, %v11312_v30  }
 0xba0   :  { %5871 = vperm.xlu1 %6852, %v11315_v27  }
 0xba4   :  { %5623 = vperm.xlu1 %6852, %v11318_v28  }
 0xbc1   :  { %v5759_v23 = vpop.permute.xlu1 %5758 }
 0xbc2   :  { %v5766_v54 = vrot.slane %v5759_v23, %v11271_v2  ;;  %v5762_v13 = vpop.permute.xlu0 %5761  ;;  %v5958_v23 = vld [vmem:[#allocation13 + $0x68] sm:$0xff] }
 0xbc3   :  { %v5770_v55 = vrot.slane %v5762_v13, %v11271_v2  ;;  %v5956_v13 = vld [vmem:[#allocation13 + $0x58] sm:$0xff] }
 0xbc5   :  { %v5511_v63 = vpop.permute.xlu1 %5510  ;;  %v5771_v33 = vsel %vm5483_vm3, %v5770_v55, %v5766_v54  ;;  %v5957_v54 = vld [vmem:[#allocation13 + $0x60] sm:$0xff]  ;;  %v5955_v55 = vld [vmem:[#allocation13 + $0x50] sm:$0xff] }
 0xbc6   :  { %v5773_v57 = vsel %vm5486_vm4, %v5771_v33, 0.0  ;;  %v5518_v48 = vrot.slane %v5511_v63, %v11271_v2  ;;  %v5954_v63 = vld [vmem:[#allocation13 + $0x48] sm:$0xff]  ;;  %v5953_v33 = vld [vmem:[#allocation13 + $0x40] sm:$0xff] }
 0xbc8   :  { %5774 = vadd.xlane.f32.xlu1 %v5773_v57  ;;  %v5952_v57 = vld [vmem:[#allocation13 + $0x38] sm:$0xff] }
 0xbc9   :  { %v5514_v47 = vpop.permute.xlu1 %5513 }
 0xbca   :  { %v5522_v34 = vrot.slane %v5514_v47, %v11271_v2  ;;  %v5951_v47 = vld [vmem:[#allocation13 + $0x30] sm:$0xff] }
 0xbcc   :  { %v5523_v12 = vsel %vm5483_vm3, %v5522_v34, %v5518_v48  ;;  %v5950_v48 = vld [vmem:[#allocation13 + $0x28] sm:$0xff]  ;;  %v5949_v34 = vld [vmem:[#allocation13 + $0x20] sm:$0xff] }
 0xbcd   :  { %v5525_v20 = vsel %vm5486_vm4, %v5523_v12, 0.0  ;;  %v5948_v12 = vld [vmem:[#allocation13 + $0x18] sm:$0xff] }
 0xbce   :  { %5526 = vadd.xlane.f32.xlu1 %v5525_v20  ;;  %v5947_v20 = vld [vmem:[#allocation13 + $0x10] sm:$0xff] }
 0xc13   :  { %v5621_v5 = vpop.permute.xlu1 %5620 }
 0xc14   :  { %v5628_v60 = vrot.slane %v5621_v5, %v11271_v2  ;;  %v5946_v5 = vld [vmem:[#allocation13 + $0x8] sm:$0xff] }
 0xc17   :  { %v5869_v59 = vpop.permute.xlu1 %5868 }
 0xc18   :  { %v5876_v58 = vrot.slane %v5869_v59, %v11271_v2  ;;  %v5945_v59 = vld [vmem:[#allocation13] sm:$0xff] }
 0xc1b   :  { %v5872_v31 = vpop.permute.xlu1 %5871 }
 0xc1c   :  { %v5880_v16 = vrot.slane %v5872_v31, %v11271_v2  ;;  %v6008_v31 = vld [vmem:[#allocation13 + $0x1f8] sm:$0xff] }
 0xc1e   :  { %v5881_v61 = vsel %vm5483_vm3, %v5880_v16, %v5876_v58  ;;  %v6007_v58 = vld [vmem:[#allocation13 + $0x1f0] sm:$0xff]  ;;  %v6006_v16 = vld [vmem:[#allocation13 + $0x1e8] sm:$0xff] }
 0xc1f   :  { %v5624_v15 = vpop.permute.xlu1 %5623  ;;  %v5883_v1 = vsel %vm5486_vm4, %v5881_v61, 0.0  ;;  %v6005_v61 = vld [vmem:[#allocation13 + $0x1e0] sm:$0xff] }
 0xc20   :  { %v5632_v49 = vrot.slane %v5624_v15, %v11271_v2  ;;  %5884 = vadd.xlane.f32.xlu0 %v5883_v1  ;;  %v6004_v15 = vld [vmem:[#allocation13 + $0x1d8] sm:$0xff]  ;;  %v6003_v1 = vld [vmem:[#allocation13 + $0x1d0] sm:$0xff] }
 0xc22   :  { %v5633_v9 = vsel %vm5483_vm3, %v5632_v49, %v5628_v60  ;;  %v6002_v60 = vld [vmem:[#allocation13 + $0x1c8] sm:$0xff] }
 0xc23   :  { %v5635_v8 = vsel %vm5486_vm4, %v5633_v9, 0.0 }
 0xc24   :  { %5636 = vadd.xlane.f32.xlu0 %v5635_v8 }
 0xc51   :  { %v5775_v41 = vpop.xlane.xlu1 %5774 }
 0xc52   :  { %v5784_v7 = vrot.slane %v5775_v41, %v12501_v6  ;;  %v5780_v3 = vrot.slane %v5775_v41, %v12500_v36 }
 0xc57   :  { %v5527_v62 = vpop.xlane.xlu1 %5526 }
 0xc58   :  { %v5532_v43 = vrot.slane %v5527_v62, %v12500_v36  ;;  %v5536_v37 = vrot.slane %v5527_v62, %v12501_v6 }
 0xc5a   :  { %7382 = vrcp.f32 %v5532_v43 }
 0xc5b   :  { %7384 = vrcp.f32 %v5536_v37 }
 0xc5c   :  { %7386 = vrcp.f32 %v5784_v7 }
 0xc5d   :  { %7388 = vrcp.f32 %v5780_v3 }
 0xc67   :  { %v7383_v2 = vpop.eup %7382 }
 0xc68   :  { %v7385_v18 = vpop.eup %7384  ;;  %v5540_v46 = vmul.f32 %v7383_v2, %v11299_v50  ;;  %v5971_v50 = vld [vmem:[#allocation13 + $0xd0] sm:$0xff]  ;;  %v6001_v2 = vld [vmem:[#allocation13 + $0x1c0] sm:$0xff] }
 0xc69   :  { %v7387_v21 = vpop.eup %7386  ;;  %v5542_v44 = vmul.f32 %v7385_v18, %v11302_v10  ;;  %v5970_v10 = vld [vmem:[#allocation13 + $0xc8] sm:$0xff]  ;;  %6026 = vmatpush1.msra.mxu1 %v5971_v50  ;;  %v6000_v18 = vld [vmem:[#allocation13 + $0x1b8] sm:$0xff] }
 0xc6a   :  { %v7389_v22 = vpop.eup %7388  ;;  %5545 = vperm.xlu0 %6853, %v5540_v46   ;;  %v5790_v52 = vmul.f32 %v7387_v21, %v11295_v39  ;;  %6027 = vmatprep.subr.mxu1 %v5970_v10  ;;  %v5967_v39 = vld [vmem:[#allocation13 + $0xb0] sm:$0xff]  ;;  %v5990_v50 = vld [vmem:[#allocation13 + $0x168] sm:$0xff]  ;;  %v5989_v10 = vld [vmem:[#allocation13 + $0x160] sm:$0xff] }
 0xc6b   :  { %5550 = vperm.xlu1 %6852, %v5542_v44   ;;  %v5788_v38 = vmul.f32 %v7389_v22, %v11293_v45  ;;  %6028 = vmatpush1.msra.mxu1 %v5969_v35  ;;  %v5966_v45 = vld [vmem:[#allocation13 + $0xa8] sm:$0xff]  ;;  %v5999_v21 = vld [vmem:[#allocation13 + $0x1b0] sm:$0xff]  ;;  %v5988_v35 = vld [vmem:[#allocation13 + $0x158] sm:$0xff] }
 0xc6c   :  { %6029 = vmatprep.subr.mxu1 %v5968_v56  ;;  %v5987_v56 = vld [vmem:[#allocation13 + $0x150] sm:$0xff] }
 0xc6d   :  { %6030 = vmatpush1.msra.mxu1 %v5967_v39  ;;  %v5986_v39 = vld [vmem:[#allocation13 + $0x148] sm:$0xff] }
 0xc6e   :  { %5798 = vperm.xlu0 %6853, %v5790_v52   ;;  %6031 = vmatprep.subr.mxu1 %v5966_v45  ;;  %v5998_v52 = vld [vmem:[#allocation13 + $0x1a8] sm:$0xff]  ;;  %v5984_v45 = vld [vmem:[#allocation13 + $0x138] sm:$0xff] }
 0xc6f   :  { %5793 = vperm.xlu1 %6852, %v5788_v38   ;;  %6032 = vmatpush1.msra.mxu1 %v5965_v0  ;;  %v5983_v0 = vld [vmem:[#allocation13 + $0x130] sm:$0xff] }
 0xc70   :  { %6033 = vmatprep.subr.mxu1 %v5964_v53  ;;  %v5982_v53 = vld [vmem:[#allocation13 + $0x128] sm:$0xff] }
 0xc71   :  { %6034 = vmatpush1.msra.mxu1 %v5963_v24  ;;  %v5981_v24 = vld [vmem:[#allocation13 + $0x120] sm:$0xff] }
 0xc72   :  { %6035 = vmatprep.subr.mxu1 %v5962_v14  ;;  %v5980_v14 = vld [vmem:[#allocation13 + $0x118] sm:$0xff] }
 0xc73   :  { %6036 = vmatpush1.msra.mxu1 %v5961_v40  ;;  %v5979_v40 = vld [vmem:[#allocation13 + $0x110] sm:$0xff] }
 0xc74   :  { %6037 = vmatprep.subr.mxu1 %v5960_v51  ;;  %v5978_v51 = vld [vmem:[#allocation13 + $0x108] sm:$0xff] }
 0xc75   :  { %6038 = vmatpush1.msra.mxu1 %v5959_v4  ;;  %v6123_v4 = vld [vmem:[#allocation14 + $0xf8] sm:$0xff] }
 0xc76   :  { %6039 = vmatprep.subr.mxu1 %v5958_v23  ;;  %v6107_v23 = vld [vmem:[#allocation14 + $0x78] sm:$0xff]  ;;  %6682 = vmatprep.subr.mxu0 %v6123_v4 }
 0xc77   :  { %6040 = vmatpush1.msra.mxu1 %v5957_v54  ;;  %v6122_v54 = vld [vmem:[#allocation14 + $0xf0] sm:$0xff]  ;;  %6683 = vmatpush3.msra.mxu0 %v6107_v23 }
 0xc78   :  { %6041 = vmatprep.subr.mxu1 %v5956_v13  ;;  %v5977_v13 = vld [vmem:[#allocation13 + $0x100] sm:$0xff]  ;;  %6684 = vmatprep.subr.mxu0 %v6122_v54 }
 0xc79   :  { %6042 = vmatpush1.msra.mxu1 %v5955_v55  ;;  %v6106_v55 = vld [vmem:[#allocation14 + $0x70] sm:$0xff] }
 0xc7a   :  { %6043 = vmatprep.subr.mxu1 %v5954_v63  ;;  %v6121_v63 = vld [vmem:[#allocation14 + $0xe8] sm:$0xff]  ;;  %6685 = vmatpush3.msra.mxu0 %v6106_v55 }
 0xc7b   :  { %6044 = vmatpush1.msra.mxu1 %v5953_v33  ;;  %v6105_v33 = vld [vmem:[#allocation14 + $0x68] sm:$0xff]  ;;  %6686 = vmatprep.subr.mxu0 %v6121_v63 }
 0xc7c   :  { %6045 = vmatprep.subr.mxu1 %v5952_v57  ;;  %v6120_v57 = vld [vmem:[#allocation14 + $0xe0] sm:$0xff]  ;;  %6687 = vmatpush3.msra.mxu0 %v6105_v33 }
 0xc7d   :  { %6046 = vmatpush1.msra.mxu1 %v5951_v47  ;;  %v6104_v47 = vld [vmem:[#allocation14 + $0x60] sm:$0xff]  ;;  %6688 = vmatprep.subr.mxu0 %v6120_v57 }
 0xc7e   :  { %6047 = vmatprep.subr.mxu1 %v5950_v48  ;;  %v6119_v48 = vld [vmem:[#allocation14 + $0xd8] sm:$0xff]  ;;  %6689 = vmatpush3.msra.mxu0 %v6104_v47 }
 0xc7f   :  { %6048 = vmatpush1.msra.mxu1 %v5949_v34  ;;  %v6103_v34 = vld [vmem:[#allocation14 + $0x58] sm:$0xff]  ;;  %6690 = vmatprep.subr.mxu0 %v6119_v48 }
 0xc80   :  { %6049 = vmatprep.subr.mxu1 %v5948_v12  ;;  %v6118_v12 = vld [vmem:[#allocation14 + $0xd0] sm:$0xff]  ;;  %6691 = vmatpush3.msra.mxu0 %v6103_v34 }
 0xc81   :  { %6050 = vmatpush1.msra.mxu1 %v5947_v20  ;;  %v6102_v20 = vld [vmem:[#allocation14 + $0x50] sm:$0xff]  ;;  %6692 = vmatprep.subr.mxu0 %v6118_v12 }
 0xc82   :  { %6051 = vmatprep.subr.mxu1 %v5946_v5  ;;  %v6117_v5 = vld [vmem:[#allocation14 + $0xc8] sm:$0xff]  ;;  %6693 = vmatpush3.msra.mxu0 %v6102_v20 }
 0xc83   :  { %6052 = vmatpush1.msra.mxu1 %v5945_v59  ;;  %v6101_v59 = vld [vmem:[#allocation14 + $0x48] sm:$0xff]  ;;  %6694 = vmatprep.subr.mxu0 %v6117_v5 }
 0xc84   :  { %6053 = vmatprep.subr.mxu1 %v6008_v31  ;;  %v6116_v31 = vld [vmem:[#allocation14 + $0xc0] sm:$0xff]  ;;  %6695 = vmatpush3.msra.mxu0 %v6101_v59 }
 0xc85   :  { %6054 = vmatpush2.msra.mxu1 %v6007_v58  ;;  %v6100_v58 = vld [vmem:[#allocation14 + $0x40] sm:$0xff]  ;;  %6696 = vmatprep.subr.mxu0 %v6116_v31 }
 0xc86   :  { %6055 = vmatprep.subr.mxu1 %v6006_v16  ;;  %v6115_v16 = vld [vmem:[#allocation14 + $0xb8] sm:$0xff]  ;;  %6697 = vmatpush3.msra.mxu0 %v6100_v58 }
 0xc87   :  { %6056 = vmatpush2.msra.mxu1 %v6005_v61  ;;  %v6099_v61 = vld [vmem:[#allocation14 + $0x38] sm:$0xff]  ;;  %6698 = vmatprep.subr.mxu0 %v6115_v16 }
 0xc88   :  { %6057 = vmatprep.subr.mxu1 %v6004_v15  ;;  %v6114_v15 = vld [vmem:[#allocation14 + $0xb0] sm:$0xff]  ;;  %6699 = vmatpush3.msra.mxu0 %v6099_v61 }
 0xc89   :  { %6058 = vmatpush2.msra.mxu1 %v6003_v1  ;;  %v6098_v1 = vld [vmem:[#allocation14 + $0x30] sm:$0xff]  ;;  %6700 = vmatprep.subr.mxu0 %v6114_v15 }
 0xc8a   :  { %6059 = vmatprep.subr.mxu1 %v6002_v60  ;;  %v6113_v60 = vld [vmem:[#allocation14 + $0xa8] sm:$0xff]  ;;  %6701 = vmatpush3.msra.mxu0 %v6098_v1 }
 0xc8b   :  { %6060 = vmatpush2.msra.mxu1 %v6001_v2  ;;  %6702 = vmatprep.subr.mxu0 %v6113_v60 }
 0xc8c   :  { %6061 = vmatprep.subr.mxu1 %v6000_v18 }
 0xc8d   :  { %6062 = vmatpush2.msra.mxu1 %v5999_v21 }
 0xc8e   :  { %6063 = vmatprep.subr.mxu1 %v5998_v52 }
 0xc8f   :  { %6064 = vmatpush2.msra.mxu1 %v5997_v42 }
 0xca9   :  { %v5885_v49 = vpop.xlane.xlu0 %5884 }
 0xcaa   :  { %v5890_v9 = vrot.slane %v5885_v49, %v12500_v36  ;;  %v5894_v8 = vrot.slane %v5885_v49, %v12501_v6  ;;  %v6097_v49 = vld [vmem:[#allocation14 + $0x28] sm:$0xff] }
 0xcab   :  { %6703 = vmatpush3.msra.mxu0 %v6097_v49 }
 0xcac   :  { %7390 = vrcp.f32 %v5890_v9  ;;  %v6112_v9 = vld [vmem:[#allocation14 + $0xa0] sm:$0xff] }
 0xcad   :  { %v5637_v41 = vpop.xlane.xlu0 %5636  ;;  %7392 = vrcp.f32 %v5894_v8  ;;  %v6096_v8 = vld [vmem:[#allocation14 + $0x20] sm:$0xff]  ;;  %6704 = vmatprep.subr.mxu0 %v6112_v9 }
 0xcae   :  { %v5642_v62 = vrot.slane %v5637_v41, %v12500_v36  ;;  %v5646_v7 = vrot.slane %v5637_v41, %v12501_v6  ;;  %v6111_v41 = vld [vmem:[#allocation14 + $0x98] sm:$0xff]  ;;  %6705 = vmatpush3.msra.mxu0 %v6096_v8 }
 0xcaf   :  { %6706 = vmatprep.subr.mxu0 %v6111_v41 }
 0xcb0   :  { %7394 = vrcp.f32 %v5642_v62  ;;  %v6095_v62 = vld [vmem:[#allocation14 + $0x18] sm:$0xff] }
 0xcb1   :  { %7396 = vrcp.f32 %v5646_v7  ;;  %v6110_v7 = vld [vmem:[#allocation14 + $0x90] sm:$0xff]  ;;  %6707 = vmatpush3.msra.mxu0 %v6095_v62 }
 0xcb2   :  { %6708 = vmatprep.subr.mxu0 %v6110_v7 }
 0xcb9   :  { %v7391_v43 = vpop.eup %7390 }
 0xcba   :  { %v5898_v37 = vmul.f32 %v7391_v43, %v11312_v30  ;;  %v7393_v3 = vpop.eup %7392  ;;  %v5996_v30 = vld [vmem:[#allocation13 + $0x198] sm:$0xff]  ;;  %v5416_v43 = vpop.f32.mrf.mxu0 }
 0xcbb   :  { %v5900_v44 = vmul.f32 %v7393_v3, %v11315_v27  ;;  %6065 = vmatprep.subr.mxu1 %v5996_v30  ;;  %v5992_v27 = vld [vmem:[#allocation13 + $0x178] sm:$0xff] }
 0xcbc   :  { %5903 = vperm.xlu1 %6852, %v5898_v37   ;;  %6066 = vmatpush2.msra.mxu1 %v5995_v11  ;;  %v5418_v37 = vpop.f32.mrf.mxu0 }
 0xcbd   :  { %v7395_v46 = vpop.eup %7394  ;;  %6067 = vmatprep.subr.mxu1 %v5994_v19 }
 0xcbe   :  { %v5650_v22 = vmul.f32 %v7395_v46, %v11309_v32  ;;  %v7397_v38 = vpop.eup %7396  ;;  %6068 = vmatpush2.msra.mxu1 %v5993_v17  ;;  %v5991_v32 = vld [vmem:[#allocation13 + $0x170] sm:$0xff]  ;;  %v5422_v3 = vpop.f32.mrf.mxu0 }
 0xcbf   :  { %v5652_v25 = vmul.f32 %v7397_v38, %v11318_v28  ;;  %6069 = vmatprep.subr.mxu1 %v5992_v27  ;;  %v5985_v28 = vld [vmem:[#allocation13 + $0x140] sm:$0xff]  ;;  %v12504_v46 = vld [vmem:[#allocation24_spill] sm:$0xff] }
 0xcc0   :  { %5908 = vperm.xlu1 %6852, %v5900_v44   ;;  %5655 = vperm.xlu0 %6853, %v5650_v22   ;;  %v5268_v21 = vrot.slane %v11240_v26, %v12504_v46  ;;  %v5424_v44 = vpop.f32.mrf.mxu0  ;;  %v12505_v22 = vld [vmem:[#allocation27_spill] sm:$0xff] }
 0xcc1   :  { %6070 = vmatpush2.msra.mxu1 %v5991_v32  ;;  %v5264_v52 = vrot.slane %v11240_v26, %v12505_v22 }
 0xcc2   :  { %6071 = vmatprep.subr.mxu1 %v5990_v50  ;;  %v5425_v42 = vadd.f32 %v5424_v44, %v5268_v21  ;;  %v5419_v11 = vadd.f32 %v5418_v37, %v5268_v21 }
 0xcc3   :  { %6072 = vmatpush2.msra.mxu1 %v5989_v10  ;;  %v5417_v19 = vadd.f32 %v5416_v43, %v5264_v52  ;;  %v5423_v27 = vadd.f32 %v5422_v3, %v5264_v52 }
 0xcc4   :  { %5660 = vperm.xlu1 %6852, %v5652_v25   ;;  %6073 = vmatprep.subr.mxu1 %v5988_v35 }
 0xcc5   :  { %6074 = vmatpush2.msra.mxu1 %v5987_v56 }
 0xcc6   :  { %6075 = vmatprep.subr.mxu1 %v5986_v39 }
 0xcc7   :  { %6076 = vmatpush2.msra.mxu1 %v5985_v28 }
 0xcc8   :  { %6077 = vmatprep.subr.mxu1 %v5984_v45 }
 0xcc9   :  { %6078 = vmatpush2.msra.mxu1 %v5983_v0 }
 0xcca   :  { %6079 = vmatprep.subr.mxu1 %v5982_v53 }
 0xccb   :  { %6080 = vmatpush2.msra.mxu1 %v5981_v24 }
 0xccc   :  { %6081 = vmatprep.subr.mxu1 %v5980_v14 }
 0xccd   :  { %6082 = vmatpush2.msra.mxu1 %v5979_v40 }
 0xcce   :  { %6083 = vmatprep.subr.mxu1 %v5978_v51 }
 0xccf   :  { %6084 = vmatpush2.msra.mxu1 %v5977_v13 }
 0xcd0   :  { %6778 = vmatprep.subr.mxu1 %v11943_v29 }
 0xce5   :  { %v5546_v2 = vpop.permute.xlu0 %5545 }
 0xce6   :  { %v5551_v18 = vpop.permute.xlu1 %5550  ;;  %v5553_v32 = vmul.f32 %v5546_v2, %v5417_v19 }
 0xce7   :  { %v5554_v50 = vmul.f32 %v5551_v18, %v5423_v27 }
 0xce8   :  { %v5555_v56 = vsel %vm5462_vm2, %v5553_v32, 0.0 }
 0xce9   :  { %v5799_v38 = vpop.permute.xlu0 %5798  ;;  %v5562_v28 = vsel %vm5462_vm2, %v5554_v50, 0.0  ;;  %v5556_v45 = vrot.slane %v5555_v56, 4 }
 0xcea   :  { %v5794_v30 = vpop.permute.xlu1 %5793  ;;  %v5802_v25 = vmul.f32 %v5799_v38, %v5425_v42  ;;  %v5563_v0 = vrot.slane %v5562_v28, 4 }
 0xceb   :  { %v5801_v17 = vmul.f32 %v5794_v30, %v5419_v11  ;;  %v5557_v51 = vadd.f32 %v5556_v45, %v5555_v56 }
 0xcec   :  { %v5810_v10 = vsel %vm5462_vm2, %v5802_v25, 0.0  ;;  %v5564_v4 = vadd.f32 %v5563_v0, %v5562_v28 }
 0xced   :  { %v5803_v35 = vsel %vm5462_vm2, %v5801_v17, 0.0  ;;  %v5811_v39 = vrot.slane %v5810_v10, 4  ;;  %v5558_v48 = vrot.slane %v5557_v51, 2 }
 0xcee   :  { %v5804_v26 = vrot.slane %v5803_v35, 4  ;;  %v5565_v12 = vrot.slane %v5564_v4, 2 }
 0xcef   :  { %v5812_v53 = vadd.f32 %v5811_v39, %v5810_v10  ;;  %v5559_v41 = vadd.f32 %v5558_v48, %v5557_v51  ;;  %v6108_v51 = vld [vmem:[#allocation14 + $0x80] sm:$0xff]  ;;  %v6361_v48 = vld [vmem:[%s11620_s18 + $0x78] sm:$0xff] }
 0xcf0   :  { %v5805_v24 = vadd.f32 %v5804_v26, %v5803_v35  ;;  %v5566_v8 = vadd.f32 %v5565_v12, %v5564_v4  ;;  %v6092_v4 = vld [vmem:[#allocation14] sm:$0xff]  ;;  %v6359_v12 = vld [vmem:[%s11620_s18 + $0x68] sm:$0xff] }
 0xcf1   :  { %v5813_v23 = vrot.slane %v5812_v53, 2  ;;  %v5560_v52 = vrot.slane %v5559_v41, 1 }
 0xcf2   :  { %v5806_v13 = vrot.slane %v5805_v24, 2  ;;  %v5567_v22 = vrot.slane %v5566_v8, 1 }
 0xcf3   :  { %v5814_v20 = vadd.f32 %v5813_v23, %v5812_v53  ;;  %v5561_v32 = vadd.f32 %v5560_v52, %v5559_v41  ;;  %v6377_v23 = vld [vmem:[%s11620_s18 + $0xf8] sm:$0xff]  ;;  %v6352_v41 = vld [vmem:[%s11620_s18 + $0x30] sm:$0xff]  ;;  %v6346_v52 = vld [vmem:[%s11620_s18] sm:$0xff] }
 0xcf4   :  { %v5807_v31 = vadd.f32 %v5806_v13, %v5805_v24  ;;  %v5568_v50 = vadd.f32 %v5567_v22, %v5566_v8  ;;  %v6094_v24 = vld [vmem:[#allocation14 + $0x10] sm:$0xff]  ;;  %v6362_v22 = vld [vmem:[%s11620_s18 + $0x80] sm:$0xff] }
 0xcf5   :  { %v5815_v62 = vrot.slane %v5814_v20, 1  ;;  %6709 = vmatpush3.msra.mxu0 %v6094_v24  ;;  %v6368_v8 = vld [vmem:[%s11620_s18 + $0xb0] sm:$0xff] }
 0xcf6   :  { %v5808_v43 = vrot.slane %v5807_v31, 1  ;;  %v5929_v45 = vsel %vm5483_vm3, %v5568_v50, %v5561_v32 }
 0xcf8   :  { %v5809_v38 = vadd.f32 %v5808_v43, %v5807_v31  ;;  %v6357_v31 = vld [vmem:[%s11620_s18 + $0x58] sm:$0xff]  ;;  %v6366_v43 = vld [vmem:[%s11620_s18 + $0xa0] sm:$0xff] }
 0xd37   :  { %v5904_v14 = vpop.permute.xlu1 %5903 }
 0xd38   :  { %v5911_v40 = vmul.f32 %v5904_v14, %v5419_v11  ;;  %v6109_v14 = vld [vmem:[#allocation14 + $0x88] sm:$0xff] }
 0xd39   :  { %6710 = vmatprep.subr.mxu0 %v6109_v14  ;;  %v6250_v14 = vld [vmem:[%s11618_s16 + $0x58] sm:$0xff] }
 0xd3a   :  { %v5913_v54 = vsel %vm5665_vm5, %v5911_v40, 0.0  ;;  %v6093_v40 = vld [vmem:[#allocation14 + $0x8] sm:$0xff] }
 0xd3b   :  { %v5914_v55 = vrot.slane %v5913_v54, 4  ;;  %v5909_v63 = vpop.permute.xlu1 %5908  ;;  %v5656_v33 = vpop.permute.xlu0 %5655  ;;  %6711 = vmatpush3.msra.mxu0 %v6093_v40  ;;  %v6249_v40 = vld [vmem:[%s11618_s16 + $0x50] sm:$0xff] }
 0xd3c   :  { %v5912_v57 = vmul.f32 %v5909_v63, %v5425_v42  ;;  %v5663_v47 = vmul.f32 %v5656_v33, %v5417_v19  ;;  %v5816_v42 = vadd.f32 %v5815_v62, %v5814_v20  ;;  %6712 = vmatprep.subr.mxu0 %v6108_v51  ;;  %v6374_v20 = vld [vmem:[%s11620_s18 + $0xe0] sm:$0xff]  ;;  %v6367_v62 = vld [vmem:[%s11620_s18 + $0xa8] sm:$0xff] }
 0xd3d   :  { %v5915_v34 = vadd.f32 %v5914_v55, %v5913_v54  ;;  %6713 = vmatpush3.msra.mxu0 %v6092_v4  ;;  %v6009_v54 = vld [vmem:[%s11613_s11] sm:$0x3]  ;;  %v6248_v51 = vld [vmem:[%s11618_s16 + $0x48] sm:$0xff] }
 0xd3e   :  { %v5920_v5 = vsel %vm5665_vm5, %v5912_v57, 0.0  ;;  %v5666_v59 = vsel %vm5665_vm5, %v5663_v47, 0.0  ;;  %v5937_v35 = vsel %vm5483_vm3, %v5816_v42, %v5809_v38  ;;  %6734 = vmatprep.subr.mxu0 %v6377_v23  ;;  %v6018_v13 = vrot.slane %v6009_v54, %v12501_v6  ;;  %v6375_v6 = vld [vmem:[%s11620_s18 + $0xe8] sm:$0xff]  ;;  %v6674_v42 = vld [vmem:[%s11615_s13] ss:$0 sm:$0xff]  ;;  %v6246_v23 = vld [vmem:[%s11618_s16 + $0x38] sm:$0xff] }
 0xd3f   :  { %v5916_v58 = vrot.slane %v5915_v34, 2  ;;  %v5921_v16 = vrot.slane %v5920_v5, 4  ;;  %v5667_v61 = vrot.slane %v5666_v59, 4  ;;  %v5661_v15 = vpop.permute.xlu1 %5660  ;;  %v6014_v55 = vrot.slane %v6009_v54, %v12500_v36  ;;  %v6360_v36 = vld [vmem:[%s11620_s18 + $0x70] sm:$0xff]  ;;  %v6247_v4 = vld [vmem:[%s11618_s16 + $0x40] sm:$0xff] }
 0xd40   :  { %v5664_v1 = vmul.f32 %v5661_v15, %v5423_v27  ;;  %v6355_v15 = vld [vmem:[%s11620_s18 + $0x48] sm:$0xff]  ;;  %v6245_v54 = vld [vmem:[%s11618_s16 + $0x30] sm:$0xff] }
 0xd41   :  { %v5917_v60 = vadd.f32 %v5916_v58, %v5915_v34  ;;  %v5922_v49 = vadd.f32 %v5921_v16, %v5920_v5  ;;  %v5668_v9 = vadd.f32 %v5667_v61, %v5666_v59  ;;  %v6376_v34 = vld [vmem:[%s11620_s18 + $0xf0] sm:$0xff]  ;;  %v6358_v5 = vld [vmem:[%s11620_s18 + $0x60] sm:$0xff]  ;;  %v6373_v59 = vld [vmem:[%s11620_s18 + $0xd8] sm:$0xff] }
 0xd42   :  { %v5673_v7 = vsel %vm5665_vm5, %v5664_v1, 0.0  ;;  %v6372_v58 = vld [vmem:[%s11620_s18 + $0xd0] sm:$0xff]  ;;  %v6371_v61 = vld [vmem:[%s11620_s18 + $0xc8] sm:$0xff]  ;;  %v6370_v1 = vld [vmem:[%s11620_s18 + $0xc0] sm:$0xff] }
 0xd43   :  { %v5923_v37 = vrot.slane %v5922_v49, 2  ;;  %v5669_v3 = vrot.slane %v5668_v9, 2  ;;  %v5674_v2 = vrot.slane %v5673_v7, 4  ;;  %v5918_v18 = vrot.slane %v5917_v60, 1  ;;  %v6356_v16 = vld [vmem:[%s11620_s18 + $0x50] sm:$0xff] }
 0xd45   :  { %v5924_v46 = vadd.f32 %v5923_v37, %v5922_v49  ;;  %v5670_v21 = vadd.f32 %v5669_v3, %v5668_v9  ;;  %v5675_v44 = vadd.f32 %v5674_v2, %v5673_v7  ;;  %v5919_v25 = vadd.f32 %v5918_v18, %v5917_v60  ;;  %v6354_v60 = vld [vmem:[%s11620_s18 + $0x40] sm:$0xff]  ;;  %v6369_v49 = vld [vmem:[%s11620_s18 + $0xb8] sm:$0xff]  ;;  %v6351_v7 = vld [vmem:[%s11620_s18 + $0x28] sm:$0xff] }
 0xd46   :  { %v6353_v9 = vld [vmem:[%s11620_s18 + $0x38] sm:$0xff]  ;;  %v6350_v37 = vld [vmem:[%s11620_s18 + $0x20] sm:$0xff]  ;;  %v6364_v18 = vld [vmem:[%s11620_s18 + $0x90] sm:$0xff] }
 0xd47   :  { %v5925_v30 = vrot.slane %v5924_v46, 1  ;;  %v5676_v11 = vrot.slane %v5675_v44, 2  ;;  %v5671_v17 = vrot.slane %v5670_v21, 1  ;;  %v6365_v3 = vld [vmem:[%s11620_s18 + $0x98] sm:$0xff] }
 0xd48   :  { %v6349_v2 = vld [vmem:[%s11620_s18 + $0x18] sm:$0xff] }
 0xd49   :  { %v5926_v19 = vadd.f32 %v5925_v30, %v5924_v46  ;;  %v5677_v27 = vadd.f32 %v5676_v11, %v5675_v44  ;;  %v5672_v28 = vadd.f32 %v5671_v17, %v5670_v21  ;;  %v6348_v46 = vld [vmem:[%s11620_s18 + $0x10] sm:$0xff]  ;;  %v6363_v21 = vld [vmem:[%s11620_s18 + $0x88] sm:$0xff] }
 0xd4a   :  { %v6347_v44 = vld [vmem:[%s11620_s18 + $0x8] sm:$0xff] }
 0xd4b   :  { %v5678_v10 = vrot.slane %v5677_v27, 1  ;;  %v5941_v56 = vsel %vm5483_vm3, %v5926_v19, %v5919_v25 }
 0xd4c   :  { %v5944_v39 = vsel %vm5462_vm2, %v5937_v35, %v5941_v56  ;;  %v6254_v35 = vld [vmem:[%s11618_s16 + $0x78] sm:$0xff]  ;;  %v6253_v56 = vld [vmem:[%s11618_s16 + $0x70] sm:$0xff] }
 0xd4d   :  { %v5679_v26 = vadd.f32 %v5678_v10, %v5677_v27  ;;  %6085 = vmatprep.mubr.f32.mxu1 %v5944_v39  ;;  %v6252_v39 = vld [vmem:[%s11618_s16 + $0x68] sm:$0xff] }
 0xd4f   :  { %v5933_v0 = vsel %vm5483_vm3, %v5679_v26, %v5672_v28  ;;  %v6251_v28 = vld [vmem:[%s11618_s16 + $0x60] sm:$0xff] }
 0xd50   :  { %v5943_v53 = vsel %vm5462_vm2, %v5929_v45, %v5933_v0 }
 0xd51   :  { %6086 = vmatmul.mubr.f32.vlgmr.msra.gmra.mxu1 %v5943_v53 }
 0xd52   :  { %6779 = vmatpush3.msra.mxu1 %v6254_v35  ;;  %6810 = vmatprep.mubr.msk.f32.mxu1 %vm7959_vm7, %v11943_v29 }
 0xd53   :  { %6780 = vmatprep.subr.mxu1 %v11943_v29 }
 0xd54   :  { %6781 = vmatpush3.msra.mxu1 %v6253_v56 }
 0xd55   :  { %6782 = vmatprep.subr.mxu1 %v11943_v29 }
 0xd56   :  { %6783 = vmatpush3.msra.mxu1 %v6252_v39 }
 0xd57   :  { %6784 = vmatprep.subr.mxu1 %v11943_v29 }
 0xd58   :  { %6785 = vmatpush3.msra.mxu1 %v6251_v28 }
 0xd59   :  { %6786 = vmatprep.subr.mxu1 %v11943_v29 }
 0xd5a   :  { %6787 = vmatpush3.msra.mxu1 %v6250_v14 }
 0xd5b   :  { %6788 = vmatprep.subr.mxu1 %v11943_v29 }
 0xd5c   :  { %6789 = vmatpush3.msra.mxu1 %v6249_v40 }
 0xd5d   :  { %6790 = vmatprep.subr.mxu1 %v11943_v29 }
 0xd5e   :  { %6791 = vmatpush3.msra.mxu1 %v6248_v51 }
 0xd5f   :  { %6792 = vmatprep.subr.mxu1 %v11943_v29 }
 0xd60   :  { %6793 = vmatpush3.msra.mxu1 %v6247_v4 }
 0xd61   :  { %6794 = vmatprep.subr.mxu1 %v11943_v29 }
 0xd62   :  { %6795 = vmatpush3.msra.mxu1 %v6246_v23 }
 0xd63   :  { %6796 = vmatprep.subr.mxu1 %v11943_v29 }
 0xd64   :  { %6797 = vmatpush3.msra.mxu1 %v6245_v54 }
 0xd65   :  { %6798 = vmatprep.subr.mxu1 %v11943_v29 }
 0xe11   :  { %v6087_v63 = vpop.f32.mrf.mxu1 }
 0xe12   :  { %v11380_v47 = vadd.f32 %v6087_v63, %v6014_v55  ;;  %v6243_v55 = vld [vmem:[%s11618_s16 + $0x20] sm:$0xff]  ;;  %v6242_v63 = vld [vmem:[%s11618_s16 + $0x18] sm:$0xff] }
 0xe13   :  { %v6089_v33 = vpop.f32.mrf.mxu1 }
 0xe14   :  { %v6090_v57 = vadd.f32 %v6089_v33, %v6018_v13  ;;  %v6244_v13 = vld [vmem:[%s11618_s16 + $0x28] sm:$0xff]  ;;  %v6241_v33 = vld [vmem:[%s11618_s16 + $0x10] sm:$0xff] }
 0xe15   :  { %6799 = vmatpush3.msra.mxu1 %v6244_v13 }
 0xe16   :  { %6195 = vmatprep.mubr.f32.mxu0 %v6090_v57  ;;  %6800 = vmatprep.subr.mxu1 %v11943_v29 }
 0xe17   :  { %6196 = vmatmul.mubr.f32.vlgmr.msra.gmra.mxu0 %v11380_v47  ;;  %6801 = vmatpush3.msra.mxu1 %v6243_v55 }
 0xe18   :  { %6735 = vmatpush3.msra.mxu0 %v6361_v48  ;;  %6449 = vmatprep.mubr.f32.mxu0 %v6090_v57  ;;  %v6240_v57 = vld [vmem:[%s11618_s16 + $0x8] sm:$0xff] }
 0xe19   :  { %6736 = vmatprep.subr.mxu0 %v6376_v34  ;;  %6802 = vmatprep.subr.mxu1 %v11943_v29 }
 0xe1a   :  { %6737 = vmatpush3.msra.mxu0 %v6360_v36  ;;  %6803 = vmatpush3.msra.mxu1 %v6242_v63 }
 0xe1b   :  { %6738 = vmatprep.subr.mxu0 %v6375_v6  ;;  %6804 = vmatprep.subr.mxu1 %v11943_v29 }
 0xe1c   :  { %6739 = vmatpush3.msra.mxu0 %v6359_v12  ;;  %6805 = vmatpush3.msra.mxu1 %v6241_v33  ;;  %v6676_v12 = vld [vmem:[%s11616_s14] ss:$0 sm:$0xff] }
 0xe1d   :  { %6740 = vmatprep.subr.mxu0 %v6374_v20  ;;  %6806 = vmatprep.subr.mxu1 %v11943_v29 }
 0xe1e   :  { %6741 = vmatpush3.msra.mxu0 %v6358_v5  ;;  %6807 = vmatpush3.msra.mxu1 %v6240_v57  ;;  %v6677_v5 = vld [vmem:[%s11617_s15] ss:$0 sm:$0xff] }
 0xe1f   :  { %6742 = vmatprep.subr.mxu0 %v6373_v59  ;;  %6808 = vmatprep.subr.mxu1 %v11943_v29 }
 0xe20   :  { %6743 = vmatpush3.msra.mxu0 %v6357_v31 }
 0xe21   :  { %6744 = vmatprep.subr.mxu0 %v6372_v58  ;;  %v6463_v58 = vld [vmem:[%s11622_s20 + $0x38] sm:$0xff] }
 0xe22   :  { %6745 = vmatpush3.msra.mxu0 %v6356_v16 }
 0xe23   :  { %6746 = vmatprep.subr.mxu0 %v6371_v61  ;;  %v6462_v61 = vld [vmem:[%s11622_s20 + $0x30] sm:$0xff] }
 0xe24   :  { %6747 = vmatpush3.msra.mxu0 %v6355_v15  ;;  %v6461_v15 = vld [vmem:[%s11622_s20 + $0x28] sm:$0xff] }
 0xe25   :  { %6748 = vmatprep.subr.mxu0 %v6370_v1 }
 0xe26   :  { %6749 = vmatpush3.msra.mxu0 %v6354_v60  ;;  %v6460_v60 = vld [vmem:[%s11622_s20 + $0x20] sm:$0xff] }
 0xe27   :  { %6750 = vmatprep.subr.mxu0 %v6369_v49 }
 0xe28   :  { %6751 = vmatpush3.msra.mxu0 %v6353_v9  ;;  %v6459_v9 = vld [vmem:[%s11622_s20 + $0x18] sm:$0xff] }
 0xe29   :  { %6752 = vmatprep.subr.mxu0 %v6368_v8  ;;  %v6679_v8 = vld [vmem:[%s11621_s19] ss:$0 sm:$0xff] }
 0xe2a   :  { %6753 = vmatpush3.msra.mxu0 %v6352_v41  ;;  %v6458_v41 = vld [vmem:[%s11622_s20 + $0x10] sm:$0xff] }
 0xe2b   :  { %6754 = vmatprep.subr.mxu0 %v6367_v62 }
 0xe2c   :  { %6755 = vmatpush3.msra.mxu0 %v6351_v7  ;;  %v6457_v7 = vld [vmem:[%s11622_s20 + $0x8] sm:$0xff] }
 0xe2d   :  { %6756 = vmatprep.subr.mxu0 %v6366_v43  ;;  %v6456_v43 = vld [vmem:[%s11622_s20] sm:$0xff] }
 0xe2e   :  { %6757 = vmatpush3.msra.mxu0 %v6350_v37 }
 0xe2f   :  { %6758 = vmatprep.subr.mxu0 %v6365_v3  ;;  %v6678_v3 = vld [vmem:[%s11619_s17] ss:$0 sm:$0xff]  ;;  %s7961_s17 = smov [#allocation16]  }
 0xe30   :  { %6759 = vmatpush3.msra.mxu0 %v6349_v2 }
 0xe31   :  { %6760 = vmatprep.subr.mxu0 %v6364_v18 }
 0xe32   :  { %6761 = vmatpush3.msra.mxu0 %v6348_v46 }
 0xe33   :  { %6762 = vmatprep.subr.mxu0 %v6363_v21 }
 0xe34   :  { %6763 = vmatpush3.msra.mxu0 %v6347_v44  ;;  %v6680_v44 = vld [vmem:[%s11623_s21] ss:$0 sm:$0xff]  ;;  %s6558_s21 = sshll.u32 %s7961_s17, 4  ;;  %s6559_s21 = int_to_ptr.vmem [resolvable:$true] %s6558_s21 }
 0xe35   :  { %6764 = vmatprep.subr.mxu0 %v6362_v22  ;;  %s7912_s27 = scalar_lea.vmem %s6559_s21, 32  ;;  %p7917_p3 = scmp.lt.s32.totalorder %s6559_s21, %s6559_s21 }
 0xe36   :  { %6765 = vmatpush3.msra.mxu0 %v6346_v52  ;;  %p7913_p2 = scmp.ne.s32.totalorder %s6559_s21, %s7912_s27  ;;  %p7918_p4 = scmp.lt.s32.totalorder %s7912_s27, %s7912_s27 }
 0xe37   :  { %6450 = vmatmul.mubr.f32.vlgmr.msra.gmra.mxu0 %v11380_v47  ;;  %v6239_v47 = vld [vmem:[%s11618_s16] sm:$0xff] }
 0xe38   :  { %6809 = vmatpush3.msra.mxu1 %v6239_v47  ;;  %p7919_p5 = por %p7918_p4, %p7917_p3 }
 0xe39   :  { %6813 = vmatprep.subr.mxu1 %v11943_v29 }
 0xe3a   :  { %p7920_p6 = pnand %p7919_p5, %p7913_p2 }
 0xed7   :  { %v6714_v38 = vpop.f32.mrf.mxu0 }
 0xed9   :  { %v6715_v30 = vpop.f32.mrf.mxu0 }
 0xeda   :  { %v6716_v11 = vadd.f32 %v6715_v30, %v6714_v38 }
 0xedc   :  { %v6198_v25 = vadd.f32 %v6716_v11, %v6674_v42 }
 0xede   :  { %v6675_v19 = vmul.f32 -1.442695, %v6198_v25 }
 0xee0   :  { %7398 = vpow2.f32 %v6675_v19 }
 0xeed   :  { %v7399_v17 = vpop.eup %7398 }
 0xeee   :  { %v6204_v27 = vadd.f32 1.0, %v7399_v17 }
 0xef0   :  { %7400 = vrcp.f32 %v6204_v27 }
 0xef7   :  { %v6766_v16 = vpop.f32.mrf.mxu0 }
 0xef9   :  { %v6767_v1 = vpop.f32.mrf.mxu0 }
 0xefa   :  { %v6768_v49 = vadd.f32 %v6767_v1, %v6766_v16 }
 0xefc   :  { %v6452_v62 = vadd.f32 %v6768_v49, %v6679_v8 }
 0xefd   :  { %v7401_v32 = vpop.eup %7400 }
 0xefe   :  { %v6207_v50 = vmul.f32 %v7401_v32, %v6198_v25  ;;  %v6455_v37 = vmax.f32 %v6452_v62, 0.0 }
 0xf00   :  { %v6209_v10 = vsel %vm6208_vm6, %v6207_v50, 0.0 }
 0xf01   :  { %6210 = vadd.xlane.f32.xlu0 %v6209_v10 }
 0xf8a   :  { %v6211_v26 = vpop.xlane.xlu0 %6210 }
 0xf8b   :  { %v6213_v45 = vmul.f32 0.0078125, %v6211_v26 }
 0xf8d   :  { %v6214_v0 = vsub.f32 %v6207_v50, %v6213_v45 }
 0xf8f   :  { %v6215_v53 = vmul.f32 %v6214_v0, %v6214_v0 }
 0xf91   :  { %v6216_v24 = vsel %vm6208_vm6, %v6215_v53, 0.0 }
 0xf92   :  { %6217 = vadd.xlane.f32.xlu1 %v6216_v24 }
0x101b   :  { %v6218_v48 = vpop.xlane.xlu1 %6217 }
0x101c   :  { %v6219_v34 = vmul.f32 0.0078125, %v6218_v48 }
0x101e   :  { %v6220_v36 = vadd.f32 1e-05, %v6219_v34 }
0x1020   :  { %7402 = vrsqrt.f32 %v6220_v36 }
0x102d   :  { %v7403_v6 = vpop.eup %7402 }
0x102e   :  { %v6222_v20 = vmul.f32 %v7403_v6, %v6214_v0 }
0x1030   :  { %v6230_v59 = vmul.f32 %v6676_v12, %v6222_v20 }
0x1032   :  { %v6238_v31 = vadd.f32 %v6677_v5, %v6230_v59 }
0x1034   :  { %6811 = vmatmul.mubr.f32.vlgmr.msra.gmra.mxu1 %v6238_v31 }
0x1035   :  { %6814 = vmatpush3.msra.mxu1 %v6463_v58  ;;  %6829 = vmatprep.mubr.msk.f32.mxu1 %vm7959_vm7, %v11943_v29 }
0x1036   :  { %6815 = vmatprep.subr.mxu1 %v11943_v29 }
0x1037   :  { %6816 = vmatpush3.msra.mxu1 %v6462_v61 }
0x1038   :  { %6817 = vmatprep.subr.mxu1 %v11943_v29 }
0x1039   :  { %6818 = vmatpush3.msra.mxu1 %v6461_v15 }
0x103a   :  { %6819 = vmatprep.subr.mxu1 %v11943_v29 }
0x103b   :  { %6820 = vmatpush3.msra.mxu1 %v6460_v60 }
0x103c   :  { %6821 = vmatprep.subr.mxu1 %v11943_v29 }
0x103d   :  { %6822 = vmatpush3.msra.mxu1 %v6459_v9 }
0x103e   :  { %6823 = vmatprep.subr.mxu1 %v11943_v29 }
0x103f   :  { %6824 = vmatpush3.msra.mxu1 %v6458_v41 }
0x1040   :  { %6825 = vmatprep.subr.mxu1 %v11943_v29 }
0x1041   :  { %6826 = vmatpush3.msra.mxu1 %v6457_v7 }
0x1042   :  { %6827 = vmatprep.subr.mxu1 %v11943_v29 }
0x1043   :  { %6828 = vmatpush3.msra.mxu1 %v6456_v43 }
0x1044   :  { %6830 = vmatmul.mubr.msk.f32.vlgmr.msra.gmra.mxu1 %vm5462_vm2, %v6455_v37 }
0x10f4   :  { %v6328_v2 = vpop.f32.mrf.mxu1 }
0x10f5   :  { %v6329_v18 = vadd.f32 %v6678_v3, %v6328_v2 }
0x10f6   :  { %v6812_v46 = vpop.f32.mrf.mxu1 }
0x10f7   :  { %v6333_v21 = vsel %vm6332_vm8, %v6329_v18, -inf }
0x10f8   :  { %6334 = vmax.xlane.f32.xlu0 %v6333_v21 }
0x1104   :  { %v6540_v22 = vpop.f32.mrf.mxu1 }
0x1105   :  { %v6541_v29 = vadd.f32 %v6680_v44, %v6540_v22 }
0x1106   :  { %v6831_v52 = vpop.f32.mrf.mxu1 }
0x1107   :  { %6545 = vrot.lane.b32.xlu1 %v6541_v29, %s7960_s2 }
0x1179   :  { %v6546_v10 = vpop.permute.xlu1 %6545 }
0x1181   :  { %v6335_v38 = vpop.xlane.xlu0 %6334 }
0x1182   :  { %v6336_v42 = vsub.f32 %v6329_v18, %v6335_v38 }
0x1184   :  { %v6337_v30 = vmul.f32 1.442695, %v6336_v42 }
0x1186   :  { %7404 = vpow2.f32 %v6337_v30 }
0x1193   :  { %v7405_v11 = vpop.eup %7404 }
0x1194   :  { %v6339_v25 = vsel %vm6332_vm8, %v7405_v11, 0.0 }
0x1195   :  { %6340 = vadd.xlane.f32.xlu0 %v6339_v25 }
0x121e   :  { %v6341_v19 = vpop.xlane.xlu0 %6340 }
0x121f   :  { %7406 = vlog2.f32 %v6341_v19 }
0x122c   :  { %v7407_v17 = vpop.eup %7406 }
0x122d   :  { %v6343_v27 = vmul.f32 0.6931472, %v7407_v17 }
0x122f   :  { %v6344_v32 = vadd.f32 %v6343_v27, %v6335_v38 }
0x1231   :  { %v6345_v50 = vsub.f32 %v6329_v18, %v6344_v32 }
0x1233   :  { %v6549_v35 = vsel %vm6548_vm9, %v6345_v50, %v6546_v10 }
0x1234   :  { %6551 = vst.msk [vmem:[#allocation16] sm:$0x3] %vm6550_vm10, %v6549_v35 }
0x1235   :  { %7923 = shalt.err (!%p7920_p6)
}
0x1236   :  { %6561 = dma.vmem_to_hbm [thread:$0]  %s6559_s21, 32, %s11624_s22, [#allocation7]  }
0x1237   :  { %7940 = dma.done.wait [#allocation7], 32  }
0x1238   :  { %7941 = vsyncadd [#allocation7], 4294967264 }
0x1239   :  { %6565 = vsyncpa [#allocation6], 1 }
0x123a   :  { %6566 = vsyncpa [#allocation9], 1 }
0x123b   :  { %6567 = vsyncpa [#allocation12], 1 }
0x123c   :  { %6568 = vsyncpa [#allocation15], 1 }
0x123d   :  { %6569 = vsyncpa [#allocation7], 1 }

</bundles_post_ra>
